<compile_context>
chip_gen: v5e
topology: v5e:2x2
jax: 0.10.0
libtpu: 0.0.40
codegen_flags: <defaults>
</compile_context>

<pallas_src>
import functools

import numpy as np
import jax
import jax.numpy as jnp
from jax.experimental import pallas as pl
from jax.experimental.pallas import tpu as pltpu

Z_DIM = 32
C0, H0, W0 = 64, 7, 7        # fc_dinput output reshaped to 64 x 7 x 7
C1 = 32                      # hidden conv channels
C_OUT = 1                    # MNIST is single channel
K = 4                        # conv-transpose kernel size
STRIDE = 2
PAD = 1


def _convt_out_size(s):
    return (s - 1) * STRIDE - 2 * PAD + K


H1, W1 = _convt_out_size(H0), _convt_out_size(W0)     # 14, 14
H2, W2 = _convt_out_size(H1), _convt_out_size(W1)     # 28, 28

LANES0 = W0 * C0             # 448  fc output / ct1 input lanes, ordered (j, ci)
LANES1 = W1 * C1             # 448  ct1 output / ct2 input lanes, ordered (x, ci)
LANES2 = W2 * C_OUT          # 28   ct2 output lanes, ordered (x,)

TB_MAX = 64                            # batch-tile cap (per-tile working set ~15 MB f32)
VMEM_LIMIT_BYTES = 32 * 1024 * 1024    # explicit scoped-VMEM budget (safe on v5e/v6e/v7x)


def _round_up(x, m):
    return ((x + m - 1) // m) * m


def _pick_batch_tile(n):
    """Batch tile: multiple of 8 rows; >=2 tiles when n>8 so v7x uses both TensorCores."""
    if n <= 8:
        return 8
    n_tiles = max(2, pl.cdiv(n, TB_MAX))
    return min(TB_MAX, _round_up(pl.cdiv(n, n_tiles), 8))


# ---------------------------------------------------------------------------
# In-kernel helpers (all row operations are on 8-aligned row blocks of size tb,
# so every slice / concat / reshape below is a clean sublane-aligned relabel).
# ---------------------------------------------------------------------------
def _shift_down(x, tb):
    """Row-block p of result <- block p-1 of x (zeros at p=0)."""
    return jnp.concatenate([jnp.zeros((tb, x.shape[1]), x.dtype), x[:-tb]], axis=0)


def _shift_up(x, tb):
    """Row-block p of result <- block p+1 of x (zeros at the last block)."""
    return jnp.concatenate([x[tb:], jnp.zeros((tb, x.shape[1]), x.dtype)], axis=0)


def _interleave(even, odd, tb):
    """Row-block interleave: out block 2p = even block p, out block 2p+1 = odd block p."""
    h = even.shape[0] // tb
    c = even.shape[1]
    stacked = jnp.concatenate(
        [even.reshape(h, 1, tb, c), odd.reshape(h, 1, tb, c)], axis=1)   # [h, 2, tb, c]
    return stacked.reshape(2 * h * tb, c)


# ---------------------------------------------------------------------------
# Fused decoder kernel: fc + ConvT1(+bias+ReLU) + ConvT2(+bias+sigmoid)
# Activation layout everywhere: rows = (spatial_row, sample), lanes = (x, channel).
# ---------------------------------------------------------------------------
def _decoder_kernel(z_ref, fcw_ref, fcb_ref, g1_ref, b1_ref, g2_ref, b2_ref,
                    o_ref, *, tb):
    f32 = jnp.float32
    z = z_ref[...]                                                   # [tb, 32] bf16

    # ---- fc_dinput: one small GEMM per output image row i -> rows ordered (i, n) ----
    h_rows = []
    for i in range(H0):
        hi = jnp.dot(z, fcw_ref[i], preferred_element_type=f32)      # [tb, 448]
        h_rows.append(hi + fcb_ref[i][None, :])
    h = jnp.concatenate(h_rows, axis=0).astype(jnp.bfloat16)         # [7*tb, 448]

    # ---- ConvTranspose2d #1: width+channels folded into lane-dense GEMMs (G1_kh),
    #      height handled by shifted adds + even/odd interleave, all in VMEM ----
    p = [jnp.dot(h, g1_ref[kh], preferred_element_type=f32) for kh in range(K)]
    even = p[1] + _shift_down(p[3], tb)                              # output rows y=2p
    odd = _shift_up(p[0], tb) + p[2]                                 # output rows y=2p+1
    y1 = _interleave(even, odd, tb)                                  # [14*tb, 448]
    y1 = jnp.maximum(y1 + b1_ref[...], 0.0).astype(jnp.bfloat16)     # bias + ReLU (once/pixel)

    # ---- ConvTranspose2d #2: same trick, then bias + sigmoid ----
    q = [jnp.dot(y1, g2_ref[kh], preferred_element_type=f32) for kh in range(K)]
    even2 = q[1] + _shift_down(q[3], tb)
    odd2 = _shift_up(q[0], tb) + q[2]
    out = _interleave(even2, odd2, tb)                               # [28*tb, 28]
    out = jax.nn.sigmoid(out + b2_ref[0, 0])
    o_ref[...] = out.reshape(H2, tb, W2)                             # block (28, tb, 28)


# ---------------------------------------------------------------------------
# Parameters: PyTorch-style init (raw) + one-time kernel re-layout (prepped)
# ---------------------------------------------------------------------------
def init_params(key):
    ks = jax.random.split(key, 6)

    def u(k, shape, fan_in):
        bound = 1.0 / jnp.sqrt(jnp.float32(fan_in))
        return jax.random.uniform(k, shape, jnp.float32, -bound, bound)

    # nn.Linear fan_in = in_features; nn.ConvTranspose2d fan_in = Cout * K * K
    return {
        "fc_w": u(ks[0], (Z_DIM, C0 * H0 * W0), Z_DIM),
        "fc_b": u(ks[1], (C0 * H0 * W0,), Z_DIM),
        "ct1_w": u(ks[2], (C0, C1, K, K), C1 * K * K),
        "ct1_b": u(ks[3], (C1,), C1 * K * K),
        "ct2_w": u(ks[4], (C1, C_OUT, K, K), C_OUT * K * K),
        "ct2_b": u(ks[5], (C_OUT,), C_OUT * K * K),
    }


def _make_width_scatter_mat(w, w_in):
    """Fold the WIDTH axis + channel contraction of a stride-2/K4/pad1 ConvTranspose2d
    into per-kh matrices G[kh]: [w_in*Cin, w_out*Cout] with
    G[kh, j*Cin+ci, x*Cout+co] = w[ci, co, kh, kw] where x = 2*j + kw - PAD."""
    cin, cout = w.shape[0], w.shape[1]
    w_out = _convt_out_size(w_in)
    w_np = np.asarray(w, np.float32)
    g = np.zeros((K, w_in * cin, w_out * cout), np.float32)
    for kh in range(K):
        for j in range(w_in):
            for kw in range(K):
                x = STRIDE * j + kw - PAD
                if 0 <= x < w_out:
                    g[kh, j * cin:(j + 1) * cin, x * cout:(x + 1) * cout] = w_np[:, :, kh, kw]
    return g


def prepare_params(raw):
    """One-time weight re-layout, hoisted out of the forward path."""
    # fc weight per output image row i, columns ordered (j, c) to match the kernel layout.
    fc_w = np.asarray(raw["fc_w"], np.float32).reshape(Z_DIM, C0, H0, W0)
    fcw = fc_w.transpose(2, 0, 3, 1).reshape(H0, Z_DIM, LANES0)        # [7, 32, 448]
    fcb = (np.asarray(raw["fc_b"], np.float32).reshape(C0, H0, W0)
           .transpose(1, 2, 0).reshape(H0, LANES0))                    # [7, 448]
    g1 = _make_width_scatter_mat(raw["ct1_w"], W0)                     # [4, 448, 448]
    b1 = np.tile(np.asarray(raw["ct1_b"], np.float32), W1).reshape(1, LANES1)
    g2 = _make_width_scatter_mat(raw["ct2_w"], W1)                     # [4, 448, 28]
    b2 = np.asarray(raw["ct2_b"], np.float32).reshape(1, 1)
    return {
        "fcw": jnp.asarray(fcw, jnp.bfloat16),
        "fcb": jnp.asarray(fcb, jnp.float32),
        "g1": jnp.asarray(g1, jnp.bfloat16),
        "b1": jnp.asarray(b1, jnp.float32),
        "g2": jnp.asarray(g2, jnp.bfloat16),
        "b2": jnp.asarray(b2, jnp.float32),
    }


# ---------------------------------------------------------------------------
# Forward (= decode): one fused pallas_call, grid over batch tiles.
# ---------------------------------------------------------------------------
def decode(params, z):
    n = z.shape[0]
    tb = _pick_batch_tile(n)
    n_pad = _round_up(n, tb)
    z_p = jnp.pad(z.astype(jnp.bfloat16), ((0, n_pad - n), (0, 0)))
    grid = (n_pad // tb,)

    out = pl.pallas_call(
        functools.partial(_decoder_kernel, tb=tb),
        out_shape=jax.ShapeDtypeStruct((H2, n_pad, W2), jnp.float32),
        grid=grid,
        in_specs=[
            pl.BlockSpec((tb, Z_DIM), lambda g: (g, 0)),                 # z (batch-tiled)
            pl.BlockSpec((H0, Z_DIM, LANES0), lambda g: (0, 0, 0)),      # fc weight
            pl.BlockSpec((H0, LANES0), lambda g: (0, 0)),                # fc bias
            pl.BlockSpec((K, LANES0, LANES1), lambda g: (0, 0, 0)),      # ct1 scatter mats
            pl.BlockSpec((1, LANES1), lambda g: (0, 0)),                 # ct1 bias (tiled)
            pl.BlockSpec((K, LANES1, LANES2), lambda g: (0, 0, 0)),      # ct2 scatter mats
            pl.BlockSpec((1, 1), lambda g: (0, 0)),                      # ct2 bias
        ],
        out_specs=pl.BlockSpec((H2, tb, W2), lambda g: (0, g, 0)),
        compiler_params=pltpu.CompilerParams(
            dimension_semantics=("parallel",),        # batch tiles across v7x's 2 TCs
            vmem_limit_bytes=VMEM_LIMIT_BYTES,
        ),
    )(z_p, params["fcw"], params["fcb"], params["g1"], params["b1"],
      params["g2"], params["b2"])

    # Kernel layout is (y, n, x); C_OUT == 1 so NCHW is a pure reshape after the transpose.
    return out.transpose(1, 0, 2)[:n].reshape(n, C_OUT, H2, W2)


def forward(params, z):
    return decode(params, z)


# ---------------------------------------------------------------------------
# Pure-JAX f32 reference (dilated-conv formulation of ConvTranspose2d)
# ---------------------------------------------------------------------------
def reference_decode(raw, z):
    n = z.shape[0]
    h = (z @ raw["fc_w"] + raw["fc_b"]).reshape(n, C0, H0, W0)

    def convt(x, w_t, b, act):
        w = jnp.transpose(w_t, (1, 0, 2, 3))[:, :, ::-1, ::-1]
        y = jax.lax.conv_general_dilated(
            x, w, window_strides=(1, 1),
            padding=[(K - 1 - PAD, K - 1 - PAD)] * 2,
            lhs_dilation=(STRIDE, STRIDE),
            dimension_numbers=("NCHW", "OIHW", "NCHW"))
        y = y + b.reshape(1, -1, 1, 1)
        return jnp.maximum(y, 0.0) if act == "relu" else jax.nn.sigmoid(y)

    h = convt(h, raw["ct1_w"], raw["ct1_b"], "relu")
    return convt(h, raw["ct2_w"], raw["ct2_b"], "sigmoid")


if __name__ == "__main__":
    key = jax.random.PRNGKey(0)
    pkey, zkey = jax.random.split(key)
    raw = init_params(pkey)
    params = prepare_params(raw)            # weight preprocessing hoisted out of forward
    z = jax.random.normal(zkey, (2, Z_DIM), dtype=jnp.float32)

    out = jax.block_until_ready(jax.jit(forward)(params, z))

    assert out.shape == (2, C_OUT, H2, W2), out.shape
    assert out.dtype == jnp.float32
    assert bool(jnp.all(jnp.isfinite(out)))
    assert bool(jnp.all((out >= 0.0) & (out <= 1.0)))                # sigmoid output range

    ref = jax.block_until_ready(reference_decode(raw, z))
    max_err = float(jnp.max(jnp.abs(out - ref.astype(jnp.float32))))
    assert max_err < 5e-2, max_err                                   # bf16 operands vs f32 ref

    print("KERNEL_OK")
</pallas_src>

<mosaic_0001>
module attributes {stable_mosaic.version = 11 : i64} {
  func.func @_decoder_kernel(%arg0: i32, %arg1: memref<8x32xbf16, #tpu.memory_space<vmem>>, %arg2: memref<7x32x448xbf16, #tpu.memory_space<vmem>>, %arg3: memref<7x448xf32, #tpu.memory_space<vmem>>, %arg4: memref<4x448x448xbf16, #tpu.memory_space<vmem>>, %arg5: memref<1x448xf32, #tpu.memory_space<vmem>>, %arg6: memref<4x448x28xbf16, #tpu.memory_space<vmem>>, %arg7: memref<1x1xf32, #tpu.memory_space<vmem>>, %arg8: memref<28x8x28xf32, #tpu.memory_space<vmem>>) attributes {dimension_semantics = [#tpu.dimension_semantics<parallel>], iteration_bounds = array<i64: 1>, scalar_prefetch = 0 : i64, scratch_operands = 0 : i64, tpu.core_type = #tpu.core_type<tc>, window_params = [{transform_indices = @transform_0, window_bounds = array<i64: 8, 32>}, {pipeline_mode = #tpu.pipeline_mode<synchronous>, transform_indices = @transform_1, window_bounds = array<i64: 7, 32, 448>}, {pipeline_mode = #tpu.pipeline_mode<synchronous>, transform_indices = @transform_2, window_bounds = array<i64: 7, 448>}, {pipeline_mode = #tpu.pipeline_mode<synchronous>, transform_indices = @transform_3, window_bounds = array<i64: 4, 448, 448>}, {pipeline_mode = #tpu.pipeline_mode<synchronous>, transform_indices = @transform_4, window_bounds = array<i64: 1, 448>}, {pipeline_mode = #tpu.pipeline_mode<synchronous>, transform_indices = @transform_5, window_bounds = array<i64: 4, 448, 28>}, {pipeline_mode = #tpu.pipeline_mode<synchronous>, transform_indices = @transform_6, window_bounds = array<i64: 1, 1>}, {transform_indices = @transform_7, window_bounds = array<i64: 28, 8, 28>}]} {
    %c0 = arith.constant 0 : index
    %c0_0 = arith.constant 0 : index
    %0 = vector.load %arg1[%c0, %c0_0] : memref<8x32xbf16, #tpu.memory_space<vmem>>, vector<8x32xbf16>
    %c0_1 = arith.constant 0 : index
    %c0_2 = arith.constant 0 : index
    %c0_3 = arith.constant 0 : index
    %1 = vector.load %arg2[%c0_1, %c0_2, %c0_3] : memref<7x32x448xbf16, #tpu.memory_space<vmem>>, vector<1x32x448xbf16>
    %2 = vector.shape_cast %1 : vector<1x32x448xbf16> to vector<32x448xbf16>
    %cst = arith.constant dense<0.000000e+00> : vector<8x448xf32>
    %3 = tpu.matmul %0, %2, %cst {dimension_numbers = #tpu.dot_dimension_numbers<[1], [0], [0], [1], [0, 0, 1, 1], [], []>} : vector<8x32xbf16>, vector<32x448xbf16>, vector<8x448xf32> -> vector<8x448xf32>
    %c0_4 = arith.constant 0 : index
    %c0_5 = arith.constant 0 : index
    %4 = vector.load %arg3[%c0_4, %c0_5] : memref<7x448xf32, #tpu.memory_space<vmem>>, vector<1x448xf32>
    %5 = vector.shape_cast %4 : vector<1x448xf32> to vector<448xf32>
    %6 = vector.shape_cast %5 : vector<448xf32> to vector<1x448xf32>
    %7 = vector.broadcast %6 : vector<1x448xf32> to vector<8x448xf32>
    %8 = arith.addf %3, %7 : vector<8x448xf32>
    %c1 = arith.constant 1 : index
    %c0_6 = arith.constant 0 : index
    %c0_7 = arith.constant 0 : index
    %9 = vector.load %arg2[%c1, %c0_6, %c0_7] : memref<7x32x448xbf16, #tpu.memory_space<vmem>>, vector<1x32x448xbf16>
    %10 = vector.shape_cast %9 : vector<1x32x448xbf16> to vector<32x448xbf16>
    %cst_8 = arith.constant dense<0.000000e+00> : vector<8x448xf32>
    %11 = tpu.matmul %0, %10, %cst_8 {dimension_numbers = #tpu.dot_dimension_numbers<[1], [0], [0], [1], [0, 0, 1, 1], [], []>} : vector<8x32xbf16>, vector<32x448xbf16>, vector<8x448xf32> -> vector<8x448xf32>
    %c1_9 = arith.constant 1 : index
    %c0_10 = arith.constant 0 : index
    %12 = vector.load %arg3[%c1_9, %c0_10] : memref<7x448xf32, #tpu.memory_space<vmem>>, vector<1x448xf32>
    %13 = vector.shape_cast %12 : vector<1x448xf32> to vector<448xf32>
    %14 = vector.shape_cast %13 : vector<448xf32> to vector<1x448xf32>
    %15 = vector.broadcast %14 : vector<1x448xf32> to vector<8x448xf32>
    %16 = arith.addf %11, %15 : vector<8x448xf32>
    %c2 = arith.constant 2 : index
    %c0_11 = arith.constant 0 : index
    %c0_12 = arith.constant 0 : index
    %17 = vector.load %arg2[%c2, %c0_11, %c0_12] : memref<7x32x448xbf16, #tpu.memory_space<vmem>>, vector<1x32x448xbf16>
    %18 = vector.shape_cast %17 : vector<1x32x448xbf16> to vector<32x448xbf16>
    %cst_13 = arith.constant dense<0.000000e+00> : vector<8x448xf32>
    %19 = tpu.matmul %0, %18, %cst_13 {dimension_numbers = #tpu.dot_dimension_numbers<[1], [0], [0], [1], [0, 0, 1, 1], [], []>} : vector<8x32xbf16>, vector<32x448xbf16>, vector<8x448xf32> -> vector<8x448xf32>
    %c2_14 = arith.constant 2 : index
    %c0_15 = arith.constant 0 : index
    %20 = vector.load %arg3[%c2_14, %c0_15] : memref<7x448xf32, #tpu.memory_space<vmem>>, vector<1x448xf32>
    %21 = vector.shape_cast %20 : vector<1x448xf32> to vector<448xf32>
    %22 = vector.shape_cast %21 : vector<448xf32> to vector<1x448xf32>
    %23 = vector.broadcast %22 : vector<1x448xf32> to vector<8x448xf32>
    %24 = arith.addf %19, %23 : vector<8x448xf32>
    %c3 = arith.constant 3 : index
    %c0_16 = arith.constant 0 : index
    %c0_17 = arith.constant 0 : index
    %25 = vector.load %arg2[%c3, %c0_16, %c0_17] : memref<7x32x448xbf16, #tpu.memory_space<vmem>>, vector<1x32x448xbf16>
    %26 = vector.shape_cast %25 : vector<1x32x448xbf16> to vector<32x448xbf16>
    %cst_18 = arith.constant dense<0.000000e+00> : vector<8x448xf32>
    %27 = tpu.matmul %0, %26, %cst_18 {dimension_numbers = #tpu.dot_dimension_numbers<[1], [0], [0], [1], [0, 0, 1, 1], [], []>} : vector<8x32xbf16>, vector<32x448xbf16>, vector<8x448xf32> -> vector<8x448xf32>
    %c3_19 = arith.constant 3 : index
    %c0_20 = arith.constant 0 : index
    %28 = vector.load %arg3[%c3_19, %c0_20] : memref<7x448xf32, #tpu.memory_space<vmem>>, vector<1x448xf32>
    %29 = vector.shape_cast %28 : vector<1x448xf32> to vector<448xf32>
    %30 = vector.shape_cast %29 : vector<448xf32> to vector<1x448xf32>
    %31 = vector.broadcast %30 : vector<1x448xf32> to vector<8x448xf32>
    %32 = arith.addf %27, %31 : vector<8x448xf32>
    %c4 = arith.constant 4 : index
    %c0_21 = arith.constant 0 : index
    %c0_22 = arith.constant 0 : index
    %33 = vector.load %arg2[%c4, %c0_21, %c0_22] : memref<7x32x448xbf16, #tpu.memory_space<vmem>>, vector<1x32x448xbf16>
    %34 = vector.shape_cast %33 : vector<1x32x448xbf16> to vector<32x448xbf16>
    %cst_23 = arith.constant dense<0.000000e+00> : vector<8x448xf32>
    %35 = tpu.matmul %0, %34, %cst_23 {dimension_numbers = #tpu.dot_dimension_numbers<[1], [0], [0], [1], [0, 0, 1, 1], [], []>} : vector<8x32xbf16>, vector<32x448xbf16>, vector<8x448xf32> -> vector<8x448xf32>
    %c4_24 = arith.constant 4 : index
    %c0_25 = arith.constant 0 : index
    %36 = vector.load %arg3[%c4_24, %c0_25] : memref<7x448xf32, #tpu.memory_space<vmem>>, vector<1x448xf32>
    %37 = vector.shape_cast %36 : vector<1x448xf32> to vector<448xf32>
    %38 = vector.shape_cast %37 : vector<448xf32> to vector<1x448xf32>
    %39 = vector.broadcast %38 : vector<1x448xf32> to vector<8x448xf32>
    %40 = arith.addf %35, %39 : vector<8x448xf32>
    %c5 = arith.constant 5 : index
    %c0_26 = arith.constant 0 : index
    %c0_27 = arith.constant 0 : index
    %41 = vector.load %arg2[%c5, %c0_26, %c0_27] : memref<7x32x448xbf16, #tpu.memory_space<vmem>>, vector<1x32x448xbf16>
    %42 = vector.shape_cast %41 : vector<1x32x448xbf16> to vector<32x448xbf16>
    %cst_28 = arith.constant dense<0.000000e+00> : vector<8x448xf32>
    %43 = tpu.matmul %0, %42, %cst_28 {dimension_numbers = #tpu.dot_dimension_numbers<[1], [0], [0], [1], [0, 0, 1, 1], [], []>} : vector<8x32xbf16>, vector<32x448xbf16>, vector<8x448xf32> -> vector<8x448xf32>
    %c5_29 = arith.constant 5 : index
    %c0_30 = arith.constant 0 : index
    %44 = vector.load %arg3[%c5_29, %c0_30] : memref<7x448xf32, #tpu.memory_space<vmem>>, vector<1x448xf32>
    %45 = vector.shape_cast %44 : vector<1x448xf32> to vector<448xf32>
    %46 = vector.shape_cast %45 : vector<448xf32> to vector<1x448xf32>
    %47 = vector.broadcast %46 : vector<1x448xf32> to vector<8x448xf32>
    %48 = arith.addf %43, %47 : vector<8x448xf32>
    %c6 = arith.constant 6 : index
    %c0_31 = arith.constant 0 : index
    %c0_32 = arith.constant 0 : index
    %49 = vector.load %arg2[%c6, %c0_31, %c0_32] : memref<7x32x448xbf16, #tpu.memory_space<vmem>>, vector<1x32x448xbf16>
    %50 = vector.shape_cast %49 : vector<1x32x448xbf16> to vector<32x448xbf16>
    %cst_33 = arith.constant dense<0.000000e+00> : vector<8x448xf32>
    %51 = tpu.matmul %0, %50, %cst_33 {dimension_numbers = #tpu.dot_dimension_numbers<[1], [0], [0], [1], [0, 0, 1, 1], [], []>} : vector<8x32xbf16>, vector<32x448xbf16>, vector<8x448xf32> -> vector<8x448xf32>
    %c6_34 = arith.constant 6 : index
    %c0_35 = arith.constant 0 : index
    %52 = vector.load %arg3[%c6_34, %c0_35] : memref<7x448xf32, #tpu.memory_space<vmem>>, vector<1x448xf32>
    %53 = vector.shape_cast %52 : vector<1x448xf32> to vector<448xf32>
    %54 = vector.shape_cast %53 : vector<448xf32> to vector<1x448xf32>
    %55 = vector.broadcast %54 : vector<1x448xf32> to vector<8x448xf32>
    %56 = arith.addf %51, %55 : vector<8x448xf32>
    %57 = tpu.concatenate %8, %16, %24, %32, %40, %48, %56 in 0 : vector<8x448xf32>, vector<8x448xf32>, vector<8x448xf32>, vector<8x448xf32>, vector<8x448xf32>, vector<8x448xf32>, vector<8x448xf32> -> vector<56x448xf32>
    %58 = arith.truncf %57 : vector<56x448xf32> to vector<56x448xbf16>
    %c0_36 = arith.constant 0 : index
    %c0_37 = arith.constant 0 : index
    %c0_38 = arith.constant 0 : index
    %59 = vector.load %arg4[%c0_36, %c0_37, %c0_38] : memref<4x448x448xbf16, #tpu.memory_space<vmem>>, vector<1x448x448xbf16>
    %60 = vector.shape_cast %59 : vector<1x448x448xbf16> to vector<448x448xbf16>
    %cst_39 = arith.constant dense<0.000000e+00> : vector<56x448xf32>
    %61 = tpu.matmul %58, %60, %cst_39 {dimension_numbers = #tpu.dot_dimension_numbers<[1], [0], [0], [1], [0, 0, 1, 1], [], []>} : vector<56x448xbf16>, vector<448x448xbf16>, vector<56x448xf32> -> vector<56x448xf32>
    %c1_40 = arith.constant 1 : index
    %c0_41 = arith.constant 0 : index
    %c0_42 = arith.constant 0 : index
    %62 = vector.load %arg4[%c1_40, %c0_41, %c0_42] : memref<4x448x448xbf16, #tpu.memory_space<vmem>>, vector<1x448x448xbf16>
    %63 = vector.shape_cast %62 : vector<1x448x448xbf16> to vector<448x448xbf16>
    %cst_43 = arith.constant dense<0.000000e+00> : vector<56x448xf32>
    %64 = tpu.matmul %58, %63, %cst_43 {dimension_numbers = #tpu.dot_dimension_numbers<[1], [0], [0], [1], [0, 0, 1, 1], [], []>} : vector<56x448xbf16>, vector<448x448xbf16>, vector<56x448xf32> -> vector<56x448xf32>
    %c2_44 = arith.constant 2 : index
    %c0_45 = arith.constant 0 : index
    %c0_46 = arith.constant 0 : index
    %65 = vector.load %arg4[%c2_44, %c0_45, %c0_46] : memref<4x448x448xbf16, #tpu.memory_space<vmem>>, vector<1x448x448xbf16>
    %66 = vector.shape_cast %65 : vector<1x448x448xbf16> to vector<448x448xbf16>
    %cst_47 = arith.constant dense<0.000000e+00> : vector<56x448xf32>
    %67 = tpu.matmul %58, %66, %cst_47 {dimension_numbers = #tpu.dot_dimension_numbers<[1], [0], [0], [1], [0, 0, 1, 1], [], []>} : vector<56x448xbf16>, vector<448x448xbf16>, vector<56x448xf32> -> vector<56x448xf32>
    %c3_48 = arith.constant 3 : index
    %c0_49 = arith.constant 0 : index
    %c0_50 = arith.constant 0 : index
    %68 = vector.load %arg4[%c3_48, %c0_49, %c0_50] : memref<4x448x448xbf16, #tpu.memory_space<vmem>>, vector<1x448x448xbf16>
    %69 = vector.shape_cast %68 : vector<1x448x448xbf16> to vector<448x448xbf16>
    %cst_51 = arith.constant dense<0.000000e+00> : vector<56x448xf32>
    %70 = tpu.matmul %58, %69, %cst_51 {dimension_numbers = #tpu.dot_dimension_numbers<[1], [0], [0], [1], [0, 0, 1, 1], [], []>} : vector<56x448xbf16>, vector<448x448xbf16>, vector<56x448xf32> -> vector<56x448xf32>
    %cst_52 = arith.constant 0.000000e+00 : f32
    %71 = vector.broadcast %cst_52 : f32 to vector<8x448xf32>
    %72 = vector.extract_strided_slice %70 {offsets = [0, 0], sizes = [48, 448], strides = [1, 1]} : vector<56x448xf32> to vector<48x448xf32>
    %73 = tpu.concatenate %71, %72 in 0 : vector<8x448xf32>, vector<48x448xf32> -> vector<56x448xf32>
    %74 = arith.addf %64, %73 : vector<56x448xf32>
    %75 = vector.extract_strided_slice %61 {offsets = [8, 0], sizes = [48, 448], strides = [1, 1]} : vector<56x448xf32> to vector<48x448xf32>
    %cst_53 = arith.constant 0.000000e+00 : f32
    %76 = vector.broadcast %cst_53 : f32 to vector<8x448xf32>
    %77 = tpu.concatenate %75, %76 in 0 : vector<48x448xf32>, vector<8x448xf32> -> vector<56x448xf32>
    %78 = arith.addf %77, %67 : vector<56x448xf32>
    %79 = vector.shape_cast %74 : vector<56x448xf32> to vector<7x1x8x448xf32>
    %80 = vector.shape_cast %78 : vector<56x448xf32> to vector<7x1x8x448xf32>
    %81 = tpu.concatenate %79, %80 in 1 : vector<7x1x8x448xf32>, vector<7x1x8x448xf32> -> vector<7x2x8x448xf32>
    %82 = vector.shape_cast %81 : vector<7x2x8x448xf32> to vector<112x448xf32>
    %c0_54 = arith.constant 0 : index
    %c0_55 = arith.constant 0 : index
    %83 = vector.load %arg5[%c0_54, %c0_55] : memref<1x448xf32, #tpu.memory_space<vmem>>, vector<1x448xf32>
    %84 = vector.broadcast %83 : vector<1x448xf32> to vector<112x448xf32>
    %85 = arith.addf %82, %84 : vector<112x448xf32>
    %cst_56 = arith.constant 0.000000e+00 : f32
    %86 = vector.broadcast %cst_56 : f32 to vector<112x448xf32>
    %87 = arith.maximumf %85, %86 : vector<112x448xf32>
    %88 = arith.truncf %87 : vector<112x448xf32> to vector<112x448xbf16>
    %c0_57 = arith.constant 0 : index
    %c0_58 = arith.constant 0 : index
    %c0_59 = arith.constant 0 : index
    %89 = vector.load %arg6[%c0_57, %c0_58, %c0_59] : memref<4x448x28xbf16, #tpu.memory_space<vmem>>, vector<1x448x28xbf16>
    %90 = vector.shape_cast %89 : vector<1x448x28xbf16> to vector<448x28xbf16>
    %cst_60 = arith.constant dense<0.000000e+00> : vector<112x28xf32>
    %91 = tpu.matmul %88, %90, %cst_60 {dimension_numbers = #tpu.dot_dimension_numbers<[1], [0], [0], [1], [0, 0, 1, 1], [], []>} : vector<112x448xbf16>, vector<448x28xbf16>, vector<112x28xf32> -> vector<112x28xf32>
    %c1_61 = arith.constant 1 : index
    %c0_62 = arith.constant 0 : index
    %c0_63 = arith.constant 0 : index
    %92 = vector.load %arg6[%c1_61, %c0_62, %c0_63] : memref<4x448x28xbf16, #tpu.memory_space<vmem>>, vector<1x448x28xbf16>
    %93 = vector.shape_cast %92 : vector<1x448x28xbf16> to vector<448x28xbf16>
    %cst_64 = arith.constant dense<0.000000e+00> : vector<112x28xf32>
    %94 = tpu.matmul %88, %93, %cst_64 {dimension_numbers = #tpu.dot_dimension_numbers<[1], [0], [0], [1], [0, 0, 1, 1], [], []>} : vector<112x448xbf16>, vector<448x28xbf16>, vector<112x28xf32> -> vector<112x28xf32>
    %c2_65 = arith.constant 2 : index
    %c0_66 = arith.constant 0 : index
    %c0_67 = arith.constant 0 : index
    %95 = vector.load %arg6[%c2_65, %c0_66, %c0_67] : memref<4x448x28xbf16, #tpu.memory_space<vmem>>, vector<1x448x28xbf16>
    %96 = vector.shape_cast %95 : vector<1x448x28xbf16> to vector<448x28xbf16>
    %cst_68 = arith.constant dense<0.000000e+00> : vector<112x28xf32>
    %97 = tpu.matmul %88, %96, %cst_68 {dimension_numbers = #tpu.dot_dimension_numbers<[1], [0], [0], [1], [0, 0, 1, 1], [], []>} : vector<112x448xbf16>, vector<448x28xbf16>, vector<112x28xf32> -> vector<112x28xf32>
    %c3_69 = arith.constant 3 : index
    %c0_70 = arith.constant 0 : index
    %c0_71 = arith.constant 0 : index
    %98 = vector.load %arg6[%c3_69, %c0_70, %c0_71] : memref<4x448x28xbf16, #tpu.memory_space<vmem>>, vector<1x448x28xbf16>
    %99 = vector.shape_cast %98 : vector<1x448x28xbf16> to vector<448x28xbf16>
    %cst_72 = arith.constant dense<0.000000e+00> : vector<112x28xf32>
    %100 = tpu.matmul %88, %99, %cst_72 {dimension_numbers = #tpu.dot_dimension_numbers<[1], [0], [0], [1], [0, 0, 1, 1], [], []>} : vector<112x448xbf16>, vector<448x28xbf16>, vector<112x28xf32> -> vector<112x28xf32>
    %cst_73 = arith.constant 0.000000e+00 : f32
    %101 = vector.broadcast %cst_73 : f32 to vector<8x28xf32>
    %102 = vector.extract_strided_slice %100 {offsets = [0, 0], sizes = [104, 28], strides = [1, 1]} : vector<112x28xf32> to vector<104x28xf32>
    %103 = tpu.concatenate %101, %102 in 0 : vector<8x28xf32>, vector<104x28xf32> -> vector<112x28xf32>
    %104 = arith.addf %94, %103 : vector<112x28xf32>
    %105 = vector.extract_strided_slice %91 {offsets = [8, 0], sizes = [104, 28], strides = [1, 1]} : vector<112x28xf32> to vector<104x28xf32>
    %cst_74 = arith.constant 0.000000e+00 : f32
    %106 = vector.broadcast %cst_74 : f32 to vector<8x28xf32>
    %107 = tpu.concatenate %105, %106 in 0 : vector<104x28xf32>, vector<8x28xf32> -> vector<112x28xf32>
    %108 = arith.addf %107, %97 : vector<112x28xf32>
    %109 = vector.shape_cast %104 : vector<112x28xf32> to vector<14x1x8x28xf32>
    %110 = vector.shape_cast %108 : vector<112x28xf32> to vector<14x1x8x28xf32>
    %111 = tpu.concatenate %109, %110 in 1 : vector<14x1x8x28xf32>, vector<14x1x8x28xf32> -> vector<14x2x8x28xf32>
    %112 = vector.shape_cast %111 : vector<14x2x8x28xf32> to vector<224x28xf32>
    %c0_75 = arith.constant 0 : index
    %c0_76 = arith.constant 0 : index
    %113 = vector.load %arg7[%c0_75, %c0_76] : memref<1x1xf32, #tpu.memory_space<vmem>>, vector<1x1xf32>
    %114 = vector.extract %113[0, 0] : f32 from vector<1x1xf32>
    %115 = vector.broadcast %114 : f32 to vector<224x28xf32>
    %116 = arith.addf %112, %115 : vector<224x28xf32>
    %117 = arith.negf %116 : vector<224x28xf32>
    %118 = math.exp %117 : vector<224x28xf32>
    %cst_77 = arith.constant 1.000000e+00 : f32
    %119 = vector.broadcast %cst_77 : f32 to vector<224x28xf32>
    %120 = arith.addf %119, %118 : vector<224x28xf32>
    %121 = arith.divf %119, %120 : vector<224x28xf32>
    %122 = vector.shape_cast %121 : vector<224x28xf32> to vector<28x8x28xf32>
    %c0_78 = arith.constant 0 : index
    %c0_79 = arith.constant 0 : index
    %c0_80 = arith.constant 0 : index
    %123 = vector.load %arg8[%c0_78, %c0_79, %c0_80] : memref<28x8x28xf32, #tpu.memory_space<vmem>>, vector<28x8x28xf32>
    tpu.vector_store %arg8[%c0_78, %c0_79, %c0_80], %122 {strides = array<i32>} : memref<28x8x28xf32, #tpu.memory_space<vmem>>, vector<28x8x28xf32>,
    return
  }
  func.func @transform_0(%arg0: i32) -> (i32, i32) {
    %c0_i32 = arith.constant 0 : i32
    %c0_i32_0 = arith.constant 0 : i32
    return %arg0, %c0_i32 : i32, i32
  }
  func.func @transform_1(%arg0: i32) -> (i32, i32, i32) {
    %c0_i32 = arith.constant 0 : i32
    %c0_i32_0 = arith.constant 0 : i32
    %c0_i32_1 = arith.constant 0 : i32
    %c0_i32_2 = arith.constant 0 : i32
    return %c0_i32, %c0_i32_0, %c0_i32_1 : i32, i32, i32
  }
  func.func @transform_2(%arg0: i32) -> (i32, i32) {
    %c0_i32 = arith.constant 0 : i32
    %c0_i32_0 = arith.constant 0 : i32
    %c0_i32_1 = arith.constant 0 : i32
    return %c0_i32, %c0_i32_0 : i32, i32
  }
  func.func @transform_3(%arg0: i32) -> (i32, i32, i32) {
    %c0_i32 = arith.constant 0 : i32
    %c0_i32_0 = arith.constant 0 : i32
    %c0_i32_1 = arith.constant 0 : i32
    %c0_i32_2 = arith.constant 0 : i32
    return %c0_i32, %c0_i32_0, %c0_i32_1 : i32, i32, i32
  }
  func.func @transform_4(%arg0: i32) -> (i32, i32) {
    %c0_i32 = arith.constant 0 : i32
    %c0_i32_0 = arith.constant 0 : i32
    %c0_i32_1 = arith.constant 0 : i32
    return %c0_i32, %c0_i32_0 : i32, i32
  }
  func.func @transform_5(%arg0: i32) -> (i32, i32, i32) {
    %c0_i32 = arith.constant 0 : i32
    %c0_i32_0 = arith.constant 0 : i32
    %c0_i32_1 = arith.constant 0 : i32
    %c0_i32_2 = arith.constant 0 : i32
    return %c0_i32, %c0_i32_0, %c0_i32_1 : i32, i32, i32
  }
  func.func @transform_6(%arg0: i32) -> (i32, i32) {
    %c0_i32 = arith.constant 0 : i32
    %c0_i32_0 = arith.constant 0 : i32
    %c0_i32_1 = arith.constant 0 : i32
    return %c0_i32, %c0_i32_0 : i32, i32
  }
  func.func @transform_7(%arg0: i32) -> (i32, i32, i32) {
    %c0_i32 = arith.constant 0 : i32
    %c0_i32_0 = arith.constant 0 : i32
    %c0_i32_1 = arith.constant 0 : i32
    return %c0_i32, %arg0, %c0_i32_0 : i32, i32, i32
  }
}

</mosaic_0001>

<bundles_post_ra>
// kernel: forward.1
= control target key start
LH: loop header
LB: loop body
LE: loop exit
PB: predicated region body
PF: predicated region fallthrough
CT: control target
= control target key end

     0   :  { %s13157_s0 = inlined_call_operand.vmem [shape: bf16[8,32], index: 0, kind: input, shape index: {}]   ;;  %s13158_s1 = inlined_call_operand.hbm [shape: bf16[7,32,448], index: 1, kind: input, shape index: {}]   ;;  %s13159_s2 = inlined_call_operand.hbm [shape: f32[7,448], index: 2, kind: input, shape index: {}]   ;;  %s13160_s3 = inlined_call_operand.hbm [shape: bf16[4,448,448], index: 3, kind: input, shape index: {}]   ;;  %s13161_s4 = inlined_call_operand.hbm [shape: f32[1,448], index: 4, kind: input, shape index: {}]   ;;  %s13162_s5 = inlined_call_operand.vmem [shape: bf16[4,448,28], index: 5, kind: input, shape index: {}]   ;;  %s13163_s6 = inlined_call_operand.<no memory space> [shape: f32[1,1], index: 6, kind: input, shape index: {}]   ;;  %s13164_s7 = inlined_call_operand.vmem [shape: f32[28,8,28], index: 7, kind: output, shape index: {}]  }
   0x1   :  { %v12_v0 = vstv %s13163_s6 }
   0x2   :  { %13 = vst [vmem:[#allocation2] sm:$0x1] %v12_v0 }
   0x3   :  { %14 = vsyncpa [#allocation4], 0 }
   0x4   :  { %15 = vsyncpa [#allocation6], 0  ;;  %s37_s28 = sshll.u32 %s13159_s2, 4  ;;  %s38_s28 = int_to_ptr.hbm [resolvable:$true] %s37_s28 }
   0x5   :  { %16 = vsyncpa [#allocation9], 0  ;;  %s11380_s29 = smov [#allocation5]   ;;  %s23_s10 = sshll.u32 %s13158_s1, 4  ;;  %s24_s10 = int_to_ptr.hbm [resolvable:$true] %s23_s10 }
   0x6   :  { %s39_s30 = sshll.u32 %s11380_s29, 4  ;;  %s11381_s11 = smov [#allocation3]   ;;  %s40_s30 = int_to_ptr.vmem [resolvable:$true] %s39_s30 }
   0x7   :  { %42 = dma.hbm_to_vmem [thread:$0]  %s38_s28, 512, %s40_s30, [#allocation6]  }
   0x8   :  { %s25_s6 = sshll.u32 %s11381_s11, 4  ;;  %s11382_s12 = smov 256   ;;  %s26_s6 = int_to_ptr.vmem [resolvable:$true] %s25_s6 }
   0x9   :  { %s11383_s13 = smov 16   ;;  %s47_s2 = sshll.u32 %s13160_s3, 4  ;;  %s48_s2 = int_to_ptr.hbm [resolvable:$true] %s47_s2 }
   0xa   :  { %31 = dma.hbm_to_vmem [thread:$0]  %s24_s10, 7168, %s26_s6, [#allocation4], %s11382_s12, %s11382_s12, %s11383_s13  }
   0xb   :  { %s11384_s16 = smov [#allocation7]   ;;  %s61_s1 = sshll.u32 %s13161_s4, 4  ;;  %s62_s1 = int_to_ptr.hbm [resolvable:$true] %s61_s1 }
   0xc   :  { %s49_s17 = sshll.u32 %s11384_s16, 4  ;;  %s11385_s20 = smov [#allocation8]   ;;  %s50_s17 = int_to_ptr.vmem [resolvable:$true] %s49_s17 }
   0xd   :  { %55 = dma.hbm_to_vmem [thread:$0]  %s48_s2, 57344, %s50_s17, [#allocation6], %s11382_s12, %s11382_s12, %s11383_s13  }
   0xe   :  { %s63_s21 = sshll.u32 %s11385_s20, 4  ;;  %s64_s21 = int_to_ptr.vmem [resolvable:$true] %s63_s21 }
   0xf   :  { %66 = dma.hbm_to_vmem [thread:$0]  %s62_s1, 64, %s64_s21, [#allocation9]  }
  0x10   :  { %11374 = dma.done.wait [#allocation4], 7168  }
  0x11   :  { %11375 = vsyncadd [#allocation4], 4294960128 }
  0x12   :  { %11376 = dma.done.wait [#allocation6], 57856  }
  0x13   :  { %11377 = vsyncadd [#allocation6], 4294909440 }
  0x14   :  { %11378 = dma.done.wait [#allocation9], 64  }
  0x15   :  { %11379 = vsyncadd [#allocation9], 4294967232  ;;  %vm147_vm0 = vcmask 261120   ;;  %v7780_v1 = vld [vmem:[#allocation3 + $0x20] sm:$0xf]  ;;  %vm1563_vm1 = vcmask 523264  }
  0x16   :  { %v10548_v2 = vld [vmem:[#allocation3 + $0x2c] sm:$0xf0]  ;;  %v10546_v3 = vld [vmem:[#allocation3 + $0x24] sm:$0xf]  ;;  %v7782_v5 = vld [vmem:[#allocation3 + $0x30] sm:$0xf0] }
  0x17   :  { %v7781_v4 = vor.u32 %v10548_v2, %v7780_v1  ;;  %v7788_v6 = vld [vmem:[#allocation3 + $0x28] sm:$0xf]  ;;  %v10549_v7 = vld [vmem:[#allocation3 + $0x34] sm:$0xf0]  ;;  %v7785_v8 = vor.u32 %v10546_v3, %v7782_v5  ;;  %v10547_v10 = vld [vmem:[#allocation3 + $0x2c] sm:$0xf] }
  0x18   :  { %v7789_v9 = vor.u32 %v10549_v7, %v7788_v6  ;;  %v7790_v11 = vld [vmem:[#allocation3 + $0x38] sm:$0xf0]  ;;  %v7764_v12 = vld [vmem:[#allocation3] sm:$0xf]  ;;  %v10544_v14 = vld [vmem:[#allocation3 + $0xc] sm:$0xf0] }
  0x19   :  { %157 = vmatpush.bf16.msra.mxu0 %v7781_v4  ;;  %v7793_v13 = vor.u32 %v10547_v10, %v7790_v11  ;;  %v10542_v15 = vld [vmem:[#allocation3 + $0x4] sm:$0xf]  ;;  %v7766_v16 = vld [vmem:[#allocation3 + $0x10] sm:$0xf0]  ;;  %170 = vmatpush.bf16.msra.mxu1 %v7785_v8  ;;  %v7765_v17 = vor.u32 %v10544_v14, %v7764_v12  ;;  %v7772_v19 = vld [vmem:[#allocation3 + $0x8] sm:$0xf] }
  0x1a   :  { %183 = vmatpush.bf16.msra.mxu2 %v7789_v9  ;;  %v7769_v18 = vor.u32 %v10542_v15, %v7766_v16  ;;  %v10545_v20 = vld [vmem:[#allocation3 + $0x14] sm:$0xf0]  ;;  %v10543_v21 = vld [vmem:[#allocation3 + $0xc] sm:$0xf]  ;;  %v7774_v23 = vld [vmem:[#allocation3 + $0x18] sm:$0xf0] }
  0x1b   :  { %196 = vmatpush.bf16.msra.mxu3 %v7793_v13  ;;  %v7773_v22 = vor.u32 %v10545_v20, %v7772_v19  ;;  %v11444_v24 = vld [vmem:[%s13157_s0] sm:$0xf]  ;;  %v10555_v25 = vld [vmem:[#allocation3 + $0x6c] sm:$0xf]  ;;  %v7777_v26 = vor.u32 %v10543_v21, %v7774_v23  ;;  %v7824_v28 = vld [vmem:[#allocation3 + $0x68] sm:$0xf] }
  0x1c   :  { %v7826_v27 = vld [vmem:[#allocation3 + $0x78] sm:$0xf0]  ;;  %v10557_v29 = vld [vmem:[#allocation3 + $0x74] sm:$0xf0]  ;;  %v10551_v32 = vld [vmem:[#allocation3 + $0x4c] sm:$0xf] }
  0x1d   :  { %158 = vmatpush.bf16.msra.mxu0 %v7765_v17  ;;  %v7829_v30 = vor.u32 %v10555_v25, %v7826_v27  ;;  %v7825_v31 = vor.u32 %v10557_v29, %v7824_v28  ;;  %v7810_v33 = vld [vmem:[#allocation3 + $0x58] sm:$0xf0]  ;;  %v7816_v34 = vld [vmem:[#allocation3 + $0x60] sm:$0xf]  ;;  %171 = vmatpush.bf16.msra.mxu1 %v7769_v18  ;;  %v10556_v35 = vld [vmem:[#allocation3 + $0x6c] sm:$0xf0] }
  0x1e   :  { %184 = vmatpush.bf16.msra.mxu2 %v7773_v22  ;;  %v10554_v36 = vld [vmem:[#allocation3 + $0x64] sm:$0xf]  ;;  %v7818_v37 = vld [vmem:[#allocation3 + $0x70] sm:$0xf0]  ;;  %v7817_v38 = vor.u32 %v10556_v35, %v7816_v34  ;;  %v7808_v40 = vld [vmem:[#allocation3 + $0x48] sm:$0xf]  ;;  %v7813_v43 = vor.u32 %v10551_v32, %v7810_v33 }
  0x1f   :  { %197 = vmatpush.bf16.msra.mxu3 %v7777_v26  ;;  %v7821_v39 = vor.u32 %v10554_v36, %v7818_v37  ;;  %v10553_v41 = vld [vmem:[#allocation3 + $0x54] sm:$0xf0]  ;;  %v7800_v42 = vld [vmem:[#allocation3 + $0x40] sm:$0xf]  ;;  %v10552_v45 = vld [vmem:[#allocation3 + $0x4c] sm:$0xf0] }
  0x20   :  { %7794 = vmatmul.msk.bf16.vlgmr.msra.gmra.mxu0 %vm147_vm0, %v11444_v24  ;;  %v7809_v44 = vor.u32 %v10553_v41, %v7808_v40  ;;  %v10550_v46 = vld [vmem:[#allocation3 + $0x44] sm:$0xf]  ;;  %v7802_v47 = vld [vmem:[#allocation3 + $0x50] sm:$0xf0]  ;;  %7795 = vmatmul.msk.bf16.vlgmr.msra.gmra.mxu1 %vm147_vm0, %v11444_v24  ;;  %v10563_v48 = vld [vmem:[#allocation3 + $0xac] sm:$0xf]  ;;  %v7801_v51 = vor.u32 %v10552_v45, %v7800_v42 }
  0x21   :  { %7796 = vmatmul.msk.bf16.vlgmr.msra.gmra.mxu2 %vm147_vm0, %v11444_v24  ;;  %v7862_v49 = vld [vmem:[#allocation3 + $0xb8] sm:$0xf0]  ;;  %v7860_v50 = vld [vmem:[#allocation3 + $0xa8] sm:$0xf]  ;;  %269 = vmatpush.bf16.msrb.mxu0 %v7817_v38  ;;  %v10565_v53 = vld [vmem:[#allocation3 + $0xb4] sm:$0xf0]  ;;  %v7805_v56 = vor.u32 %v10550_v46, %v7802_v47 }
  0x22   :  { %295 = vmatpush.bf16.msrb.mxu2 %v7825_v31  ;;  %7797 = vmatmul.msk.bf16.vlgmr.msra.gmra.mxu3 %vm147_vm0, %v11444_v24  ;;  %v7865_v52 = vor.u32 %v10563_v48, %v7862_v49  ;;  %v10559_v54 = vld [vmem:[#allocation3 + $0x8c] sm:$0xf]  ;;  %v7846_v55 = vld [vmem:[#allocation3 + $0x98] sm:$0xf0]  ;;  %v7861_v57 = vor.u32 %v10565_v53, %v7860_v50  ;;  %v7852_v58 = vld [vmem:[#allocation3 + $0xa0] sm:$0xf] }
  0x23   :  { %308 = vmatpush.bf16.msrb.mxu3 %v7829_v30  ;;  %282 = vmatpush.bf16.msrb.mxu1 %v7821_v39  ;;  %v10564_v59 = vld [vmem:[#allocation3 + $0xac] sm:$0xf0]  ;;  %v10562_v60 = vld [vmem:[#allocation3 + $0xa4] sm:$0xf]  ;;  %v7854_v62 = vld [vmem:[#allocation3 + $0xb0] sm:$0xf0]  ;;  %v7849_v1 = vor.u32 %v10559_v54, %v7846_v55 }
  0x24   :  { %v7853_v61 = vor.u32 %v10564_v59, %v7852_v58  ;;  %v7844_v63 = vld [vmem:[#allocation3 + $0x88] sm:$0xf]  ;;  %v10561_v0 = vld [vmem:[#allocation3 + $0x94] sm:$0xf0]  ;;  %v7857_v2 = vor.u32 %v10562_v60, %v7854_v62  ;;  %v7836_v4 = vld [vmem:[#allocation3 + $0x80] sm:$0xf] }
  0x25   :  { %v7845_v3 = vor.u32 %v10561_v0, %v7844_v63  ;;  %v10560_v5 = vld [vmem:[#allocation3 + $0x8c] sm:$0xf0]  ;;  %v10558_v6 = vld [vmem:[#allocation3 + $0x84] sm:$0xf]  ;;  %270 = vmatpush.bf16.msrb.mxu0 %v7801_v51  ;;  %v7838_v7 = vld [vmem:[#allocation3 + $0x90] sm:$0xf0] }
  0x26   :  { %296 = vmatpush.bf16.msrb.mxu2 %v7809_v44  ;;  %v7837_v8 = vor.u32 %v10560_v5, %v7836_v4  ;;  %v7841_v9 = vor.u32 %v10558_v6, %v7838_v7  ;;  %v10571_v10 = vld [vmem:[#allocation3 + $0xec] sm:$0xf]  ;;  %v7896_v11 = vld [vmem:[#allocation3 + $0xe8] sm:$0xf]  ;;  %v10573_v12 = vld [vmem:[#allocation3 + $0xf4] sm:$0xf0] }
  0x27   :  { %309 = vmatpush.bf16.msrb.mxu3 %v7813_v43  ;;  %283 = vmatpush.bf16.msrb.mxu1 %v7805_v56  ;;  %v7898_v13 = vld [vmem:[#allocation3 + $0xf8] sm:$0xf0]  ;;  %v7888_v14 = vld [vmem:[#allocation3 + $0xe0] sm:$0xf]  ;;  %v10572_v15 = vld [vmem:[#allocation3 + $0xec] sm:$0xf0]  ;;  %v7897_v18 = vor.u32 %v10573_v12, %v7896_v11 }
  0x28   :  { %v10570_v16 = vld [vmem:[#allocation3 + $0xe4] sm:$0xf]  ;;  %v7890_v17 = vld [vmem:[#allocation3 + $0xf0] sm:$0xf0]  ;;  %v7901_v19 = vor.u32 %v10571_v10, %v7898_v13  ;;  %v10567_v20 = vld [vmem:[#allocation3 + $0xcc] sm:$0xf]  ;;  %v7889_v21 = vor.u32 %v10572_v15, %v7888_v14 }
  0x29   :  { %381 = vmatpush.bf16.msra.mxu0 %v7853_v61  ;;  %v7880_v22 = vld [vmem:[#allocation3 + $0xc8] sm:$0xf]  ;;  %v10569_v23 = vld [vmem:[#allocation3 + $0xd4] sm:$0xf0]  ;;  %v7882_v25 = vld [vmem:[#allocation3 + $0xd8] sm:$0xf0]  ;;  %v7893_v26 = vor.u32 %v10570_v16, %v7890_v17 }
  0x2a   :  { %407 = vmatpush.bf16.msra.mxu2 %v7861_v57  ;;  %v7872_v27 = vld [vmem:[#allocation3 + $0xc0] sm:$0xf]  ;;  %v10568_v28 = vld [vmem:[#allocation3 + $0xcc] sm:$0xf0]  ;;  %v10566_v29 = vld [vmem:[#allocation3 + $0xc4] sm:$0xf]  ;;  %v7881_v31 = vor.u32 %v10569_v23, %v7880_v22  ;;  %v7885_v32 = vor.u32 %v10567_v20, %v7882_v25 }
  0x2b   :  { %420 = vmatpush.bf16.msra.mxu3 %v7865_v52  ;;  %394 = vmatpush.bf16.msra.mxu1 %v7857_v2  ;;  %v7874_v30 = vld [vmem:[#allocation3 + $0xd0] sm:$0xf0]  ;;  %v7873_v33 = vor.u32 %v10568_v28, %v7872_v27  ;;  %v10579_v35 = vld [vmem:[#allocation3 + $0x12c] sm:$0xf]  ;;  %v7932_v36 = vld [vmem:[#allocation3 + $0x128] sm:$0xf] }
  0x2c   :  { %v7877_v34 = vor.u32 %v10566_v29, %v7874_v30  ;;  %v10581_v37 = vld [vmem:[#allocation3 + $0x134] sm:$0xf0]  ;;  %v7934_v38 = vld [vmem:[#allocation3 + $0x138] sm:$0xf0]  ;;  %v7924_v39 = vld [vmem:[#allocation3 + $0x120] sm:$0xf] }
  0x2d   :  { %382 = vmatpush.bf16.msra.mxu0 %v7837_v8  ;;  %v10580_v40 = vld [vmem:[#allocation3 + $0x12c] sm:$0xf0]  ;;  %v10578_v41 = vld [vmem:[#allocation3 + $0x124] sm:$0xf]  ;;  %v7926_v42 = vld [vmem:[#allocation3 + $0x130] sm:$0xf0]  ;;  %v7933_v43 = vor.u32 %v10581_v37, %v7932_v36  ;;  %v7937_v44 = vor.u32 %v10579_v35, %v7934_v38 }
  0x2e   :  { %408 = vmatpush.bf16.msra.mxu2 %v7845_v3  ;;  %v10575_v45 = vld [vmem:[#allocation3 + $0x10c] sm:$0xf]  ;;  %v7925_v46 = vor.u32 %v10580_v40, %v7924_v39  ;;  %v7916_v47 = vld [vmem:[#allocation3 + $0x108] sm:$0xf]  ;;  %v10577_v48 = vld [vmem:[#allocation3 + $0x114] sm:$0xf0]  ;;  %v7929_v50 = vor.u32 %v10578_v41, %v7926_v42 }
  0x2f   :  { %421 = vmatpush.bf16.msra.mxu3 %v7849_v1  ;;  %395 = vmatpush.bf16.msra.mxu1 %v7841_v9  ;;  %v7918_v49 = vld [vmem:[#allocation3 + $0x118] sm:$0xf0]  ;;  %v7908_v51 = vld [vmem:[#allocation3 + $0x100] sm:$0xf]  ;;  %v10576_v52 = vld [vmem:[#allocation3 + $0x10c] sm:$0xf0]  ;;  %v7917_v55 = vor.u32 %v10577_v48, %v7916_v47 }
  0x30   :  { %7830 = vmatmul.msk.bf16.vlgmr.msrb.gmra.mxu0 %vm147_vm0, %v11444_v24  ;;  %7831 = vmatmul.msk.bf16.vlgmr.msrb.gmra.mxu1 %vm147_vm0, %v11444_v24  ;;  %v10574_v53 = vld [vmem:[#allocation3 + $0x104] sm:$0xf]  ;;  %v7910_v54 = vld [vmem:[#allocation3 + $0x110] sm:$0xf0]  ;;  %v7921_v56 = vor.u32 %v10575_v45, %v7918_v49  ;;  %v7909_v57 = vor.u32 %v10576_v52, %v7908_v51  ;;  %v10587_v59 = vld [vmem:[#allocation3 + $0x16c] sm:$0xf] }
  0x31   :  { %7832 = vmatmul.msk.bf16.vlgmr.msrb.gmra.mxu2 %vm147_vm0, %v11444_v24  ;;  %493 = vmatpush.bf16.msrb.mxu0 %v7889_v21  ;;  %v7913_v58 = vor.u32 %v10574_v53, %v7910_v54  ;;  %v7968_v60 = vld [vmem:[#allocation3 + $0x168] sm:$0xf]  ;;  %v10589_v61 = vld [vmem:[#allocation3 + $0x174] sm:$0xf0]  ;;  %v7970_v62 = vld [vmem:[#allocation3 + $0x178] sm:$0xf0] }
  0x32   :  { %7833 = vmatmul.msk.bf16.vlgmr.msrb.gmra.mxu3 %vm147_vm0, %v11444_v24  ;;  %519 = vmatpush.bf16.msrb.mxu2 %v7897_v18  ;;  %v7960_v63 = vld [vmem:[#allocation3 + $0x160] sm:$0xf]  ;;  %v10588_v0 = vld [vmem:[#allocation3 + $0x16c] sm:$0xf0]  ;;  %v10586_v1 = vld [vmem:[#allocation3 + $0x164] sm:$0xf]  ;;  %v7969_v3 = vor.u32 %v10589_v61, %v7968_v60  ;;  %v7973_v4 = vor.u32 %v10587_v59, %v7970_v62 }
  0x33   :  { %532 = vmatpush.bf16.msrb.mxu3 %v7901_v19  ;;  %506 = vmatpush.bf16.msrb.mxu1 %v7893_v26  ;;  %v7962_v2 = vld [vmem:[#allocation3 + $0x170] sm:$0xf0]  ;;  %v10583_v5 = vld [vmem:[#allocation3 + $0x14c] sm:$0xf]  ;;  %v7961_v6 = vor.u32 %v10588_v0, %v7960_v63  ;;  %v7952_v7 = vld [vmem:[#allocation3 + $0x148] sm:$0xf] }
  0x34   :  { %v10585_v8 = vld [vmem:[#allocation3 + $0x154] sm:$0xf0]  ;;  %v7954_v9 = vld [vmem:[#allocation3 + $0x158] sm:$0xf0]  ;;  %v7965_v10 = vor.u32 %v10586_v1, %v7962_v2  ;;  %v7944_v11 = vld [vmem:[#allocation3 + $0x140] sm:$0xf] }
  0x35   :  { %494 = vmatpush.bf16.msrb.mxu0 %v7873_v33  ;;  %v10584_v12 = vld [vmem:[#allocation3 + $0x14c] sm:$0xf0]  ;;  %v10582_v13 = vld [vmem:[#allocation3 + $0x144] sm:$0xf]  ;;  %v7946_v14 = vld [vmem:[#allocation3 + $0x150] sm:$0xf0]  ;;  %v7953_v15 = vor.u32 %v10585_v8, %v7952_v7  ;;  %v7957_v16 = vor.u32 %v10583_v5, %v7954_v9 }
  0x36   :  { %520 = vmatpush.bf16.msrb.mxu2 %v7881_v31  ;;  %v7945_v17 = vor.u32 %v10584_v12, %v7944_v11  ;;  %v7949_v18 = vor.u32 %v10582_v13, %v7946_v14  ;;  %v10595_v19 = vld [vmem:[#allocation3 + $0x1ac] sm:$0xf]  ;;  %v8004_v20 = vld [vmem:[#allocation3 + $0x1a8] sm:$0xf]  ;;  %v10597_v21 = vld [vmem:[#allocation3 + $0x1b4] sm:$0xf0] }
  0x37   :  { %533 = vmatpush.bf16.msrb.mxu3 %v7885_v32  ;;  %507 = vmatpush.bf16.msrb.mxu1 %v7877_v34  ;;  %v8006_v22 = vld [vmem:[#allocation3 + $0x1b8] sm:$0xf0]  ;;  %v7996_v23 = vld [vmem:[#allocation3 + $0x1a0] sm:$0xf]  ;;  %v10596_v25 = vld [vmem:[#allocation3 + $0x1ac] sm:$0xf0]  ;;  %v8005_v28 = vor.u32 %v10597_v21, %v8004_v20 }
  0x38   :  { %v10594_v26 = vld [vmem:[#allocation3 + $0x1a4] sm:$0xf]  ;;  %v7998_v27 = vld [vmem:[#allocation3 + $0x1b0] sm:$0xf0]  ;;  %v8009_v29 = vor.u32 %v10595_v19, %v8006_v22  ;;  %v10591_v30 = vld [vmem:[#allocation3 + $0x18c] sm:$0xf]  ;;  %v7997_v31 = vor.u32 %v10596_v25, %v7996_v23 }
  0x39   :  { %v7988_v32 = vld [vmem:[#allocation3 + $0x188] sm:$0xf]  ;;  %v10593_v33 = vld [vmem:[#allocation3 + $0x194] sm:$0xf0]  ;;  %v7990_v34 = vld [vmem:[#allocation3 + $0x198] sm:$0xf0]  ;;  %v8001_v35 = vor.u32 %v10594_v26, %v7998_v27 }
  0x3a   :  { %v7980_v36 = vld [vmem:[#allocation3 + $0x180] sm:$0xf]  ;;  %v10592_v37 = vld [vmem:[#allocation3 + $0x18c] sm:$0xf0]  ;;  %v10590_v38 = vld [vmem:[#allocation3 + $0x184] sm:$0xf]  ;;  %v7989_v40 = vor.u32 %v10593_v33, %v7988_v32  ;;  %v7993_v41 = vor.u32 %v10591_v30, %v7990_v34 }
  0x3b   :  { %v7982_v39 = vld [vmem:[#allocation3 + $0x190] sm:$0xf0]  ;;  %v7981_v42 = vor.u32 %v10592_v37, %v7980_v36  ;;  %v10628_v45 = vld [vmem:[#allocation7 + $0xec] sm:$0xf0]  ;;  %v8384_v48 = vld [vmem:[#allocation7 + $0x2e0] sm:$0xf] }
  0x3c   :  { %v10660_v47 = vld [vmem:[#allocation7 + $0x1ec] sm:$0xf0]  ;;  %v8112_v52 = vld [vmem:[#allocation7 + $0xc0] sm:$0xf]  ;;  %vm7726_vm5 = vcmask 228352  }
  0x3d   :  { %v10692_v49 = vld [vmem:[#allocation7 + $0x2ec] sm:$0xf0]  ;;  %v8096_v59 = vld [vmem:[#allocation7 + $0xa0] sm:$0xf] }
  0x3e   :  { %v10624_v53 = vld [vmem:[#allocation7 + $0xcc] sm:$0xf0]  ;;  %v8385_v54 = vor.u32 %v10692_v49, %v8384_v48  ;;  %v8224_v61 = vld [vmem:[#allocation7 + $0x1a0] sm:$0xf] }
  0x3f   :  { %v10620_v60 = vld [vmem:[#allocation7 + $0xac] sm:$0xf0]  ;;  %v8368_v1 = vld [vmem:[#allocation7 + $0x2c0] sm:$0xf] }
  0x40   :  { %7866 = vmatmul.msk.bf16.vlgmr.msra.gmra.mxu0 %vm147_vm0, %v11444_v24  ;;  %7867 = vmatmul.msk.bf16.vlgmr.msra.gmra.mxu1 %vm147_vm0, %v11444_v24  ;;  %v10652_v62 = vld [vmem:[#allocation7 + $0x1ac] sm:$0xf0]  ;;  %v8097_v63 = vor.u32 %v10620_v60, %v8096_v59  ;;  %v8208_v7 = vld [vmem:[#allocation7 + $0x180] sm:$0xf] }
  0x41   :  { %7868 = vmatmul.msk.bf16.vlgmr.msra.gmra.mxu2 %vm147_vm0, %v11444_v24  ;;  %605 = vmatpush.bf16.msra.mxu0 %v7925_v46  ;;  %v8256_v46 = vld [vmem:[#allocation7 + $0x1e0] sm:$0xf]  ;;  %v8225_v0 = vor.u32 %v10652_v62, %v8224_v61  ;;  %v10688_v2 = vld [vmem:[#allocation7 + $0x2cc] sm:$0xf0] }
  0x42   :  { %7869 = vmatmul.msk.bf16.vlgmr.msra.gmra.mxu3 %vm147_vm0, %v11444_v24  ;;  %631 = vmatpush.bf16.msra.mxu2 %v7933_v43  ;;  %v7985_v43 = vor.u32 %v10590_v38, %v7982_v39  ;;  %v8257_v51 = vor.u32 %v10660_v47, %v8256_v46  ;;  %v10616_v5 = vld [vmem:[#allocation7 + $0x8c] sm:$0xf0]  ;;  %v8352_v9 = vld [vmem:[#allocation7 + $0x2a0] sm:$0xf] }
  0x43   :  { %644 = vmatpush.bf16.msra.mxu3 %v7937_v44  ;;  %618 = vmatpush.bf16.msra.mxu1 %v7929_v50  ;;  %v8128_v44 = vld [vmem:[#allocation7 + $0xe0] sm:$0xf]  ;;  %v10648_v8 = vld [vmem:[#allocation7 + $0x18c] sm:$0xf0] }
  0x44   :  { %v8129_v50 = vor.u32 %v10628_v45, %v8128_v44  ;;  %v10684_v11 = vld [vmem:[#allocation7 + $0x2ac] sm:$0xf0]  ;;  %v8064_v13 = vld [vmem:[#allocation7 + $0x60] sm:$0xf] }
  0x45   :  { %606 = vmatpush.bf16.msra.mxu0 %v7909_v57  ;;  %v8113_v57 = vor.u32 %v10624_v53, %v8112_v52  ;;  %v8353_v12 = vor.u32 %v10684_v11, %v8352_v9  ;;  %v10612_v14 = vld [vmem:[#allocation7 + $0x6c] sm:$0xf0]  ;;  %v8336_v19 = vld [vmem:[#allocation7 + $0x280] sm:$0xf] }
  0x46   :  { %632 = vmatpush.bf16.msra.mxu2 %v7917_v55  ;;  %v8240_v55 = vld [vmem:[#allocation7 + $0x1c0] sm:$0xf]  ;;  %v10680_v20 = vld [vmem:[#allocation7 + $0x28c] sm:$0xf0] }
  0x47   :  { %645 = vmatpush.bf16.msra.mxu3 %v7921_v56  ;;  %619 = vmatpush.bf16.msra.mxu1 %v7913_v58  ;;  %v10656_v56 = vld [vmem:[#allocation7 + $0x1cc] sm:$0xf0]  ;;  %v8337_v21 = vor.u32 %v10680_v20, %v8336_v19  ;;  %v8048_v22 = vld [vmem:[#allocation7 + $0x40] sm:$0xf] }
  0x48   :  { %v8241_v58 = vor.u32 %v10656_v56, %v8240_v55  ;;  %v10608_v23 = vld [vmem:[#allocation7 + $0x4c] sm:$0xf0]  ;;  %v8176_v25 = vld [vmem:[#allocation7 + $0x140] sm:$0xf] }
  0x49   :  { %v8049_v26 = vor.u32 %v10608_v23, %v8048_v22  ;;  %v8320_v27 = vld [vmem:[#allocation7 + $0x260] sm:$0xf]  ;;  %v10708_v32 = vld [vmem:[#allocation7 + $0x36c] sm:$0xf0] }
  0x4a   :  { %v8032_v34 = vld [vmem:[#allocation7 + $0x20] sm:$0xf]  ;;  %v10636_v38 = vld [vmem:[#allocation7 + $0x12c] sm:$0xf0] }
  0x4b   :  { %v8160_v36 = vld [vmem:[#allocation7 + $0x120] sm:$0xf]  ;;  %v10704_v44 = vld [vmem:[#allocation7 + $0x34c] sm:$0xf0] }
  0x4c   :  { %v8161_v39 = vor.u32 %v10636_v38, %v8160_v36  ;;  %v8016_v46 = vld [vmem:[#allocation7] sm:$0xf]  ;;  %v10600_v47 = vld [vmem:[#allocation7 + $0xc] sm:$0xf0]  ;;  %v10626_v36 = vld [vmem:[#allocation7 + $0xe4] sm:$0xf] }
  0x4d   :  { %v8017_v48 = vor.u32 %v10600_v47, %v8016_v46  ;;  %v8144_v49 = vld [vmem:[#allocation7 + $0x100] sm:$0xf]  ;;  %v10668_v53 = vld [vmem:[#allocation7 + $0x22c] sm:$0xf0]  ;;  %v10658_v46 = vld [vmem:[#allocation7 + $0x1e4] sm:$0xf] }
  0x4e   :  { %v8288_v52 = vld [vmem:[#allocation7 + $0x220] sm:$0xf]  ;;  %v10700_v56 = vld [vmem:[#allocation7 + $0x32c] sm:$0xf0]  ;;  %v8258_v47 = vld [vmem:[#allocation7 + $0x1f0] sm:$0xf0] }
  0x4f   :  { %v8289_v55 = vor.u32 %v10668_v53, %v8288_v52  ;;  %v10664_v59 = vld [vmem:[#allocation7 + $0x20c] sm:$0xf0]  ;;  %v8400_v61 = vld [vmem:[#allocation7 + $0x300] sm:$0xf]  ;;  %v8386_v53 = vld [vmem:[#allocation7 + $0x2f0] sm:$0xf0] }
  0x50   :  { %7902 = vmatmul.msk.bf16.vlgmr.msrb.gmra.mxu0 %vm147_vm0, %v11444_v24  ;;  %7903 = vmatmul.msk.bf16.vlgmr.msrb.gmra.mxu1 %vm147_vm0, %v11444_v24  ;;  %v10696_v62 = vld [vmem:[#allocation7 + $0x30c] sm:$0xf0] }
  0x51   :  { %7904 = vmatmul.msk.bf16.vlgmr.msrb.gmra.mxu2 %vm147_vm0, %v11444_v24  ;;  %717 = vmatpush.bf16.msrb.mxu0 %v7961_v6 }
  0x52   :  { %7905 = vmatmul.msk.bf16.vlgmr.msrb.gmra.mxu3 %vm147_vm0, %v11444_v24  ;;  %743 = vmatpush.bf16.msrb.mxu2 %v7969_v3  ;;  %v8369_v3 = vor.u32 %v10688_v2, %v8368_v1 }
  0x53   :  { %756 = vmatpush.bf16.msrb.mxu3 %v7973_v4  ;;  %730 = vmatpush.bf16.msrb.mxu1 %v7965_v10  ;;  %v8080_v4 = vld [vmem:[#allocation7 + $0x80] sm:$0xf]  ;;  %v8209_v10 = vor.u32 %v10648_v8, %v8208_v7 }
  0x54   :  { %v8081_v6 = vor.u32 %v10616_v5, %v8080_v4  ;;  %v97_v7 = vld [vmem:[#allocation5] ss:$8 sm:$0xf] }
  0x55   :  { %718 = vmatpush.bf16.msrb.mxu0 %v7945_v17  ;;  %v10644_v17 = vld [vmem:[#allocation7 + $0x16c] sm:$0xf0]  ;;  %v99_v8 = vperm.slane %v97_v7, 0 }
  0x56   :  { %744 = vmatpush.bf16.msrb.mxu2 %v7953_v15  ;;  %v8192_v15 = vld [vmem:[#allocation7 + $0x160] sm:$0xf] }
  0x57   :  { %757 = vmatpush.bf16.msrb.mxu3 %v7957_v16  ;;  %731 = vmatpush.bf16.msrb.mxu1 %v7949_v18  ;;  %v8065_v16 = vor.u32 %v10612_v14, %v8064_v13  ;;  %v8193_v18 = vor.u32 %v10644_v17, %v8192_v15 }
  0x60   :  { %7938 = vmatmul.msk.bf16.vlgmr.msra.gmra.mxu0 %vm147_vm0, %v11444_v24  ;;  %7939 = vmatmul.msk.bf16.vlgmr.msra.gmra.mxu1 %vm147_vm0, %v11444_v24 }
  0x61   :  { %7940 = vmatmul.msk.bf16.vlgmr.msra.gmra.mxu2 %vm147_vm0, %v11444_v24  ;;  %829 = vmatpush.bf16.msra.mxu0 %v7997_v31  ;;  %v8448_v31 = vld [vmem:[#allocation7 + $0x360] sm:$0xf] }
  0x62   :  { %7941 = vmatmul.msk.bf16.vlgmr.msra.gmra.mxu3 %vm147_vm0, %v11444_v24  ;;  %855 = vmatpush.bf16.msra.mxu2 %v8005_v28  ;;  %v10676_v28 = vld [vmem:[#allocation7 + $0x26c] sm:$0xf0]  ;;  %v8449_v33 = vor.u32 %v10708_v32, %v8448_v31 }
  0x63   :  { %868 = vmatpush.bf16.msra.mxu3 %v8009_v29  ;;  %842 = vmatpush.bf16.msra.mxu1 %v8001_v35  ;;  %v8321_v30 = vor.u32 %v10676_v28, %v8320_v27  ;;  %v10604_v35 = vld [vmem:[#allocation7 + $0x2c] sm:$0xf0] }
  0x64   :  { %v8033_v37 = vor.u32 %v10604_v35, %v8032_v34 }
  0x65   :  { %830 = vmatpush.bf16.msra.mxu0 %v7981_v42  ;;  %v8432_v42 = vld [vmem:[#allocation7 + $0x340] sm:$0xf] }
  0x66   :  { %856 = vmatpush.bf16.msra.mxu2 %v7989_v40  ;;  %v8304_v40 = vld [vmem:[#allocation7 + $0x240] sm:$0xf]  ;;  %v8433_v45 = vor.u32 %v10704_v44, %v8432_v42  ;;  %v10706_v42 = vld [vmem:[#allocation7 + $0x364] sm:$0xf] }
  0x67   :  { %869 = vmatpush.bf16.msra.mxu3 %v7993_v41  ;;  %843 = vmatpush.bf16.msra.mxu1 %v7985_v43  ;;  %v10672_v41 = vld [vmem:[#allocation7 + $0x24c] sm:$0xf0] }
  0x68   :  { %v8305_v43 = vor.u32 %v10672_v41, %v8304_v40 }
  0x70   :  { %7974 = vmatmul.msk.bf16.vlgmr.msrb.gmra.mxu0 %vm147_vm0, %v11444_v24  ;;  %7975 = vmatmul.msk.bf16.vlgmr.msrb.gmra.mxu1 %vm147_vm0, %v11444_v24 }
  0x71   :  { %7976 = vmatmul.msk.bf16.vlgmr.msrb.gmra.mxu2 %vm147_vm0, %v11444_v24  ;;  %1576 = vmatpush.bf16.msrb.mxu0 %v8129_v50  ;;  %v10632_v50 = vld [vmem:[#allocation7 + $0x10c] sm:$0xf0] }
  0x72   :  { %7977 = vmatmul.msk.bf16.vlgmr.msrb.gmra.mxu3 %vm147_vm0, %v11444_v24  ;;  %1603 = vmatpush.bf16.msrb.mxu1 %v8257_v51  ;;  %v8145_v51 = vor.u32 %v10632_v50, %v8144_v49  ;;  %v10622_v49 = vld [vmem:[#allocation7 + $0xc4] sm:$0xf]  ;;  %v8114_v50 = vld [vmem:[#allocation7 + $0xd0] sm:$0xf0] }
  0x73   :  { %1630 = vmatpush.bf16.msrb.mxu2 %v8385_v54  ;;  %1661 = vmatpush.bf16.msrb.mxu3 %v8449_v33  ;;  %v8416_v54 = vld [vmem:[#allocation7 + $0x320] sm:$0xf]  ;;  %v8117_v52 = vor.u32 %v10622_v49, %v8114_v50  ;;  %v10646_v50 = vld [vmem:[#allocation7 + $0x184] sm:$0xf] }
  0x75   :  { %1577 = vmatpush.bf16.msrb.mxu0 %v8113_v57  ;;  %v8417_v57 = vor.u32 %v10700_v56, %v8416_v54 }
  0x76   :  { %1604 = vmatpush.bf16.msrb.mxu1 %v8241_v58  ;;  %v8272_v58 = vld [vmem:[#allocation7 + $0x200] sm:$0xf] }
  0x77   :  { %1631 = vmatpush.bf16.msrb.mxu2 %v8369_v3  ;;  %1662 = vmatpush.bf16.msrb.mxu3 %v8433_v45  ;;  %v8273_v60 = vor.u32 %v10664_v59, %v8272_v58  ;;  %v437_v58 = vld [vmem:[#allocation5 + $0x3] ss:$8 sm:$0xf] }
  0x79   :  { %1578 = vmatpush.bf16.msrb.mxu0 %v8097_v63  ;;  %v8401_v63 = vor.u32 %v10696_v62, %v8400_v61  ;;  %v8242_v61 = vld [vmem:[#allocation7 + $0x1d0] sm:$0xf0]  ;;  %v10618_v62 = vld [vmem:[#allocation7 + $0xa4] sm:$0xf] }
  0x7a   :  { %1605 = vmatpush.bf16.msrb.mxu1 %v8225_v0 }
  0x7b   :  { %1632 = vmatpush.bf16.msrb.mxu2 %v8353_v12  ;;  %1663 = vmatpush.bf16.msrb.mxu3 %v8417_v57 }
  0x7d   :  { %1579 = vmatpush.bf16.msrb.mxu0 %v8081_v6  ;;  %v213_v6 = vld [vmem:[#allocation5 + $0x1] ss:$8 sm:$0xf] }
  0x7e   :  { %1606 = vmatpush.bf16.msrb.mxu1 %v8209_v10  ;;  %v215_v9 = vperm.slane %v213_v6, 0  ;;  %v100_v10 = vperm.slane %v97_v7, 1  ;;  %v216_v11 = vperm.slane %v213_v6, 1  ;;  %v217_v23 = vperm.slane %v213_v6, 2 }
  0x7f   :  { %1633 = vmatpush.bf16.msrb.mxu2 %v8337_v21  ;;  %1664 = vmatpush.bf16.msrb.mxu3 %v8401_v63  ;;  %v101_v21 = vperm.slane %v97_v7, 2 }
  0x80   :  { %8010 = vmatmul.msk.bf16.vlgmr.msra.gmra.mxu0 %vm147_vm0, %v11444_v24  ;;  %8011 = vmatmul.msk.bf16.vlgmr.msra.gmra.mxu1 %vm147_vm0, %v11444_v24 }
  0x81   :  { %8012 = vmatmul.msk.bf16.vlgmr.msra.gmra.mxu2 %vm147_vm0, %v11444_v24  ;;  %1580 = vmatpush.bf16.msrb.mxu0 %v8065_v16 }
  0x82   :  { %8013 = vmatmul.msk.bf16.vlgmr.msra.gmra.mxu3 %vm147_vm0, %v11444_v24  ;;  %1607 = vmatpush.bf16.msrb.mxu1 %v8193_v18  ;;  %v10640_v24 = vld [vmem:[#allocation7 + $0x14c] sm:$0xf0] }
  0x83   :  { %v8177_v29 = vor.u32 %v10640_v24, %v8176_v25  ;;  %1634 = vmatpush.bf16.msrb.mxu2 %v8321_v30  ;;  %v102_v25 = vperm.slane %v97_v7, 3  ;;  %v439_v7 = vperm.slane %v437_v58, 0 }
  0x85   :  { %1581 = vmatpush.bf16.msrb.mxu0 %v8049_v26  ;;  %v218_v26 = vperm.slane %v213_v6, 3 }
  0x86   :  { %1608 = vmatpush.bf16.msrb.mxu1 %v8177_v29 }
  0x87   :  { %1635 = vmatpush.bf16.msrb.mxu2 %v8305_v43  ;;  %v8450_v43 = vld [vmem:[#allocation7 + $0x370] sm:$0xf0] }
  0x88   :  { %v8453_v45 = vor.u32 %v10706_v42, %v8450_v43 }
  0x89   :  { %1582 = vmatpush.bf16.msrb.mxu0 %v8033_v37  ;;  %v8130_v37 = vld [vmem:[#allocation7 + $0xf0] sm:$0xf0] }
  0x8a   :  { %1609 = vmatpush.bf16.msrb.mxu1 %v8161_v39  ;;  %v8133_v38 = vor.u32 %v10626_v36, %v8130_v37  ;;  %v10682_v36 = vld [vmem:[#allocation7 + $0x2a4] sm:$0xf]  ;;  %v8354_v37 = vld [vmem:[#allocation7 + $0x2b0] sm:$0xf0] }
  0x8b   :  { %1636 = vmatpush.bf16.msrb.mxu2 %v8289_v55 }
  0x8c   :  { %1684 = vmatpush.bf16.msra.mxu3 %v8133_v38 }
  0x8d   :  { %1583 = vmatpush.bf16.msrb.mxu0 %v8017_v48  ;;  %v8261_v48 = vor.u32 %v10658_v46, %v8258_v47 }
  0x8e   :  { %1610 = vmatpush.bf16.msrb.mxu1 %v8145_v51  ;;  %v10690_v51 = vld [vmem:[#allocation7 + $0x2e4] sm:$0xf] }
  0x8f   :  { %1637 = vmatpush.bf16.msrb.mxu2 %v8273_v60  ;;  %v8389_v54 = vor.u32 %v10690_v51, %v8386_v53  ;;  %v10654_v60 = vld [vmem:[#allocation7 + $0x1c4] sm:$0xf]  ;;  %v8210_v51 = vld [vmem:[#allocation7 + $0x190] sm:$0xf0] }
  0x90   :  { %1685 = vmatpush.bf16.msra.mxu3 %v8117_v52  ;;  %v8245_v63 = vor.u32 %v10654_v60, %v8242_v61  ;;  %v8213_v52 = vor.u32 %v10646_v50, %v8210_v51  ;;  %v10610_v53 = vld [vmem:[#allocation7 + $0x64] sm:$0xf] }
  0x91   :  { %1711 = vmatpush.bf16.msra.mxu0 %v8261_v48 }
  0x92   :  { %1738 = vmatpush.bf16.msra.mxu1 %v8389_v54  ;;  %v8066_v54 = vld [vmem:[#allocation7 + $0x70] sm:$0xf0] }
  0x93   :  { %1769 = vmatpush.bf16.msra.mxu2 %v8453_v45 }
  0x95   :  { %1712 = vmatpush.bf16.msra.mxu0 %v8245_v63  ;;  %v8418_v63 = vld [vmem:[#allocation7 + $0x330] sm:$0xf0] }
  0x9d   :  { %v160_v0 = vpop.f32.mrf.mxu0  ;;  %v173_v1 = vpop.f32.mrf.mxu1 }
  0x9e   :  { %v161_v15 = vadd.f32 %v160_v0, %v99_v8  ;;  %v174_v18 = vadd.f32 %v173_v1, %v100_v10  ;;  %v8098_v0 = vld [vmem:[#allocation7 + $0xb0] sm:$0xf0]  ;;  %v10686_v1 = vld [vmem:[#allocation7 + $0x2c4] sm:$0xf] }
  0xa4   :  { %v186_v2 = vpop.f32.mrf.mxu2 }
  0xa5   :  { %v199_v3 = vpop.f32.mrf.mxu3  ;;  %v162_v4 = vpop.f32.mrf.mxu0  ;;  %v187_v27 = vadd.f32 %v186_v2, %v101_v21  ;;  %v8370_v2 = vld [vmem:[#allocation7 + $0x2d0] sm:$0xf0] }
  0xa6   :  { %v175_v5 = vpop.f32.mrf.mxu1  ;;  %v200_v31 = vadd.f32 %v199_v3, %v102_v25  ;;  %v8101_v3 = vor.u32 %v10618_v62, %v8098_v0  ;;  %v8373_v4 = vor.u32 %v10686_v1, %v8370_v2  ;;  %v10698_v62 = vld [vmem:[#allocation7 + $0x324] sm:$0xf] }
  0xa7   :  { %v325_v5 = vld [vmem:[#allocation5 + $0x2] ss:$8 sm:$0xf]  ;;  %v8421_v1 = vor.u32 %v10698_v62, %v8418_v63  ;;  %v10642_v2 = vld [vmem:[#allocation7 + $0x164] sm:$0xf] }
  0xa8   :  { %v327_v6 = vperm.slane %v325_v5, 0  ;;  %1686 = vmatpush.bf16.msra.mxu3 %v8101_v3  ;;  %1739 = vmatpush.bf16.msra.mxu1 %v8373_v4  ;;  %v328_v8 = vperm.slane %v325_v5, 1  ;;  %v329_v21 = vperm.slane %v325_v5, 2  ;;  %v330_v25 = vperm.slane %v325_v5, 3  ;;  %v8194_v3 = vld [vmem:[#allocation7 + $0x170] sm:$0xf0] }
  0xa9   :  { %v10606_v4 = vld [vmem:[#allocation7 + $0x44] sm:$0xf]  ;;  %v8197_v5 = vor.u32 %v10642_v2, %v8194_v3  ;;  %v8018_v63 = vld [vmem:[#allocation7 + $0x10] sm:$0xf0] }
  0xaa   :  { %v10598_v62 = vld [vmem:[#allocation7 + $0x4] sm:$0xf] }
  0xab   :  { %v8021_v2 = vor.u32 %v10598_v62, %v8018_v63 }
  0xac   :  { %v188_v12 = vpop.f32.mrf.mxu2 }
  0xad   :  { %v201_v13 = vpop.f32.mrf.mxu3  ;;  %v272_v14 = vpop.f32.mrf.mxu0 }
  0xae   :  { %v273_v16 = vadd.f32 %v272_v14, %v215_v9  ;;  %v285_v17 = vpop.f32.mrf.mxu1  ;;  %v440_v9 = vperm.slane %v437_v58, 1  ;;  %v10702_v13 = vld [vmem:[#allocation7 + $0x344] sm:$0xf]  ;;  %v8434_v14 = vld [vmem:[#allocation7 + $0x350] sm:$0xf0] }
  0xaf   :  { %v286_v19 = vadd.f32 %v285_v17, %v216_v11 }
  0xb0   :  { %v11502_v20 = vpack.c.bf16 %v273_v16, %v161_v15 }
  0xb1   :  { %v11504_v22 = vpack.c.bf16 %v286_v19, %v174_v18  ;;  %v8437_v18 = vor.u32 %v10702_v13, %v8434_v14  ;;  %v11532_v14 = vld [vmem:[#allocation5 + $0x5] ss:$8 sm:$0xf] }
  0xb2   :  { %1584 = vmatmul.bf16.vlgmr.msrb.gmra.mxu0 %v11502_v20 }
  0xb3   :  { %1611 = vmatmul.bf16.vlgmr.msrb.gmra.mxu1 %v11504_v22  ;;  %1770 = vmatpush.bf16.msra.mxu2 %v8437_v18  ;;  %v10670_v18 = vld [vmem:[#allocation7 + $0x244] sm:$0xf] }
  0xb4   :  { %v298_v24 = vpop.f32.mrf.mxu2 }
  0xb5   :  { %v299_v28 = vadd.f32 %v298_v24, %v217_v23  ;;  %v311_v29 = vpop.f32.mrf.mxu3  ;;  %v274_v30 = vpop.f32.mrf.mxu0  ;;  %v441_v24 = vperm.slane %v437_v58, 2 }
  0xb6   :  { %v312_v32 = vadd.f32 %v311_v29, %v218_v26  ;;  %v287_v33 = vpop.f32.mrf.mxu1  ;;  %v10650_v29 = vld [vmem:[#allocation7 + $0x1a4] sm:$0xf]  ;;  %v8226_v30 = vld [vmem:[#allocation7 + $0x1b0] sm:$0xf0] }
  0xb7   :  { %v11508_v34 = vpack.c.bf16 %v299_v28, %v187_v27  ;;  %v442_v27 = vperm.slane %v437_v58, 3  ;;  %v8082_v33 = vld [vmem:[#allocation7 + $0x90] sm:$0xf0]  ;;  %1771 = vmatpush.bf16.msra.mxu2 %v8421_v1 }
  0xb8   :  { %v11510_v35 = vpack.c.bf16 %v312_v32, %v200_v31  ;;  %v10614_v31 = vld [vmem:[#allocation7 + $0x84] sm:$0xf]  ;;  %v8229_v32 = vor.u32 %v10650_v29, %v8226_v30  ;;  %v663_v29 = vperm.slane %v11532_v14, 0  ;;  %v664_v30 = vperm.slane %v11532_v14, 1 }
  0xb9   :  { %1638 = vmatmul.bf16.vlgmr.msrb.gmra.mxu2 %v11508_v34  ;;  %v8085_v38 = vor.u32 %v10614_v31, %v8082_v33  ;;  %v10602_v31 = vld [vmem:[#allocation7 + $0x24] sm:$0xf] }
  0xba   :  { %8462 = vmatmul.msk.bf16.vlgmr.msrb.gmra.mxu3 %vm1563_vm1, %v11510_v35  ;;  %1713 = vmatpush.bf16.msra.mxu0 %v8229_v32  ;;  %v8034_v32 = vld [vmem:[#allocation7 + $0x30] sm:$0xf0]  ;;  %v10634_v33 = vld [vmem:[#allocation7 + $0x124] sm:$0xf] }
  0xbb   :  { %1687 = vmatpush.bf16.msra.mxu3 %v8085_v38  ;;  %v10666_v38 = vld [vmem:[#allocation7 + $0x224] sm:$0xf] }
  0xbc   :  { %v300_v39 = vpop.f32.mrf.mxu2 }
  0xbd   :  { %v313_v40 = vpop.f32.mrf.mxu3  ;;  %v384_v41 = vpop.f32.mrf.mxu0  ;;  %v8357_v39 = vor.u32 %v10682_v36, %v8354_v37  ;;  %v8037_v36 = vor.u32 %v10602_v31, %v8034_v32  ;;  %v8162_v37 = vld [vmem:[#allocation7 + $0x130] sm:$0xf0] }
  0xbe   :  { %v397_v44 = vpop.f32.mrf.mxu1  ;;  %v385_v15 = vadd.f32 %v384_v41, %v327_v6  ;;  %1714 = vmatpush.bf16.msra.mxu0 %v8213_v52  ;;  %v8050_v6 = vld [vmem:[#allocation7 + $0x50] sm:$0xf0] }
  0xbf   :  { %v398_v19 = vadd.f32 %v397_v44, %v328_v8  ;;  %1740 = vmatpush.bf16.msra.mxu1 %v8357_v39  ;;  %v8322_v8 = vld [vmem:[#allocation7 + $0x270] sm:$0xf0] }
  0xc0   :  { %v8290_v39 = vld [vmem:[#allocation7 + $0x230] sm:$0xf0] }
  0xc2   :  { %1715 = vmatpush.bf16.msra.mxu0 %v8197_v5 }
  0xc4   :  { %v410_v55 = vpop.f32.mrf.mxu2 }
  0xc5   :  { %v423_v56 = vpop.f32.mrf.mxu3  ;;  %v386_v57 = vpop.f32.mrf.mxu0  ;;  %v411_v41 = vadd.f32 %v410_v55, %v329_v21  ;;  %v10678_v55 = vld [vmem:[#allocation7 + $0x284] sm:$0xf]  ;;  %v8306_v21 = vld [vmem:[#allocation7 + $0x250] sm:$0xf0] }
  0xc6   :  { %v399_v59 = vpop.f32.mrf.mxu1  ;;  %v424_v45 = vadd.f32 %v423_v56, %v330_v25  ;;  %v8069_v57 = vor.u32 %v10610_v53, %v8066_v54  ;;  %v8338_v56 = vld [vmem:[#allocation7 + $0x290] sm:$0xf0]  ;;  %v8309_v25 = vor.u32 %v10670_v18, %v8306_v21 }
  0xc7   :  { %v8341_v59 = vor.u32 %v10678_v55, %v8338_v56  ;;  %v8146_v54 = vld [vmem:[#allocation7 + $0x110] sm:$0xf0]  ;;  %v10662_v55 = vld [vmem:[#allocation7 + $0x204] sm:$0xf] }
  0xc8   :  { %1688 = vmatpush.bf16.msra.mxu3 %v8069_v57  ;;  %v8274_v57 = vld [vmem:[#allocation7 + $0x210] sm:$0xf0] }
  0xc9   :  { %1741 = vmatpush.bf16.msra.mxu1 %v8341_v59 }
  0xcc   :  { %v412_v10 = vpop.f32.mrf.mxu2 }
  0xcd   :  { %v425_v11 = vpop.f32.mrf.mxu3  ;;  %v496_v12 = vpop.f32.mrf.mxu0 }
  0xce   :  { %v497_v16 = vadd.f32 %v496_v12, %v439_v7  ;;  %v509_v17 = vpop.f32.mrf.mxu1  ;;  %v10674_v7 = vld [vmem:[#allocation7 + $0x264] sm:$0xf] }
  0xcf   :  { %v510_v23 = vadd.f32 %v509_v17, %v440_v9  ;;  %v8053_v9 = vor.u32 %v10606_v4, %v8050_v6  ;;  %v8325_v10 = vor.u32 %v10674_v7, %v8322_v8  ;;  %v8178_v17 = vld [vmem:[#allocation7 + $0x150] sm:$0xf0]  ;;  %v665_v4 = vperm.slane %v11532_v14, 2 }
  0xd0   :  { %v11515_v26 = vpack.c.bf16 %v497_v16, %v385_v15  ;;  %v10638_v16 = vld [vmem:[#allocation7 + $0x144] sm:$0xf]  ;;  %v666_v6 = vperm.slane %v11532_v14, 3 }
  0xd1   :  { %v11517_v28 = vpack.c.bf16 %v510_v23, %v398_v19  ;;  %1689 = vmatpush.bf16.msra.mxu3 %v8053_v9  ;;  %1742 = vmatpush.bf16.msra.mxu1 %v8325_v10  ;;  %v8181_v19 = vor.u32 %v10638_v16, %v8178_v17  ;;  %v549_v23 = vld [vmem:[#allocation5 + $0x4] ss:$8 sm:$0xf]  ;;  %v773_v17 = vld [vmem:[#allocation5 + $0x6] ss:$8 sm:$0xf] }
  0xd2   :  { %1588 = vmatmul.bf16.gmra.mxu0 %v11515_v26  ;;  %v553_v3 = vperm.slane %v549_v23, 2  ;;  %v554_v5 = vperm.slane %v549_v23, 3  ;;  %v775_v14 = vperm.slane %v773_v17, 0  ;;  %v776_v21 = vperm.slane %v773_v17, 1 }
  0xd3   :  { %1615 = vmatmul.bf16.gmra.mxu1 %v11517_v28  ;;  %1716 = vmatpush.bf16.msra.mxu0 %v8181_v19 }
  0xd4   :  { %v522_v40 = vpop.f32.mrf.mxu2 }
  0xd5   :  { %v523_v42 = vadd.f32 %v522_v40, %v441_v24  ;;  %v535_v43 = vpop.f32.mrf.mxu3  ;;  %v498_v44 = vpop.f32.mrf.mxu0  ;;  %v551_v24 = vperm.slane %v549_v23, 0  ;;  %1743 = vmatpush.bf16.msra.mxu1 %v8309_v25  ;;  %1690 = vmatpush.bf16.msra.mxu3 %v8037_v36  ;;  %v8456_v25 = vld [vmem:[#allocation7 + $0x368] sm:$0xf]  ;;  %v10625_v36 = vld [vmem:[#allocation7 + $0xd4] sm:$0xf0] }
  0xd6   :  { %v536_v46 = vadd.f32 %v535_v43, %v442_v27  ;;  %v511_v47 = vpop.f32.mrf.mxu1  ;;  %v552_v27 = vperm.slane %v549_v23, 1  ;;  %v10629_v23 = vld [vmem:[#allocation7 + $0xf4] sm:$0xf0] }
  0xd7   :  { %v11521_v48 = vpack.c.bf16 %v523_v42, %v411_v41  ;;  %v8165_v41 = vor.u32 %v10634_v33, %v8162_v37  ;;  %v8293_v42 = vor.u32 %v10666_v38, %v8290_v39  ;;  %v10630_v47 = vld [vmem:[#allocation7 + $0x104] sm:$0xf]  ;;  %v8120_v33 = vld [vmem:[#allocation7 + $0xc8] sm:$0xf] }
  0xd8   :  { %v11523_v49 = vpack.c.bf16 %v536_v46, %v424_v45  ;;  %v10694_v45 = vld [vmem:[#allocation7 + $0x304] sm:$0xf]  ;;  %v8402_v46 = vld [vmem:[#allocation7 + $0x310] sm:$0xf0]  ;;  %v8149_v59 = vor.u32 %v10630_v47, %v8146_v54  ;;  %v8392_v37 = vld [vmem:[#allocation7 + $0x2e8] sm:$0xf] }
  0xd9   :  { %1642 = vmatmul.bf16.gmra.mxu2 %v11521_v48  ;;  %1717 = vmatpush.bf16.msra.mxu0 %v8165_v41  ;;  %v8405_v53 = vor.u32 %v10694_v45, %v8402_v46  ;;  %v10693_v41 = vld [vmem:[#allocation7 + $0x2f4] sm:$0xf0] }
  0xda   :  { %8463 = vmatmul.msk.bf16.gmra.mxu3 %vm1563_vm1, %v11523_v49  ;;  %1744 = vmatpush.bf16.msra.mxu1 %v8293_v42 }
  0xdb   :  { %1772 = vmatpush.bf16.msra.mxu2 %v8405_v53  ;;  %1691 = vmatpush.bf16.msra.mxu3 %v8021_v2  ;;  %v10657_v53 = vld [vmem:[#allocation7 + $0x1d4] sm:$0xf0]  ;;  %v8104_v2 = vld [vmem:[#allocation7 + $0xa8] sm:$0xf] }
  0xdc   :  { %v524_v58 = vpop.f32.mrf.mxu2 }
  0xdd   :  { %v537_v60 = vpop.f32.mrf.mxu3  ;;  %v608_v61 = vpop.f32.mrf.mxu0  ;;  %1718 = vmatpush.bf16.msra.mxu0 %v8149_v59 }
  0xde   :  { %v621_v0 = vpop.f32.mrf.mxu1  ;;  %v609_v50 = vadd.f32 %v608_v61, %v551_v24  ;;  %v8277_v60 = vor.u32 %v10662_v55, %v8274_v57 }
  0xdf   :  { %v622_v56 = vadd.f32 %v621_v0, %v552_v27  ;;  %v10709_v27 = vld [vmem:[#allocation7 + $0x374] sm:$0xf0] }
  0xe0   :  { %1745 = vmatpush.bf16.msra.mxu1 %v8277_v60  ;;  %v8457_v31 = vor.u32 %v10709_v27, %v8456_v25  ;;  %v10685_v25 = vld [vmem:[#allocation7 + $0x2b4] sm:$0xf0]  ;;  %v8216_v27 = vld [vmem:[#allocation7 + $0x188] sm:$0xf] }
  0xe2   :  { %1877 = vmatpush.bf16.msrb.mxu2 %v8457_v31  ;;  %v10613_v31 = vld [vmem:[#allocation7 + $0x74] sm:$0xf0] }
  0xe4   :  { %v11528_v11 = vpop.f32.mrf.mxu2 }
  0xe5   :  { %v11530_v12 = vpop.f32.mrf.mxu3  ;;  %v610_v13 = vpop.f32.mrf.mxu0  ;;  %v635_v7 = vadd.f32 %v11528_v11, %v553_v3  ;;  %v8136_v11 = vld [vmem:[#allocation7 + $0xe8] sm:$0xf]  ;;  %v10621_v3 = vld [vmem:[#allocation7 + $0xb4] sm:$0xf0] }
  0xe6   :  { %v623_v15 = vpop.f32.mrf.mxu1  ;;  %v648_v13 = vadd.f32 %v11530_v12, %v554_v5  ;;  %v8137_v24 = vor.u32 %v10629_v23, %v8136_v11  ;;  %v8264_v12 = vld [vmem:[#allocation7 + $0x1e8] sm:$0xf]  ;;  %v8105_v5 = vor.u32 %v10621_v3, %v8104_v2  ;;  %v10605_v2 = vld [vmem:[#allocation7 + $0x34] sm:$0xf0] }
  0xe7   :  { %v8360_v11 = vld [vmem:[#allocation7 + $0x2a8] sm:$0xf] }
  0xe8   :  { %1792 = vmatpush.bf16.msrb.mxu3 %v8137_v24  ;;  %v8361_v24 = vor.u32 %v10685_v25, %v8360_v11  ;;  %v8168_v3 = vld [vmem:[#allocation7 + $0x128] sm:$0xf]  ;;  %v10665_v11 = vld [vmem:[#allocation7 + $0x214] sm:$0xf0] }
  0xec   :  { %v636_v40 = vpop.f32.mrf.mxu2 }
  0xed   :  { %v649_v43 = vpop.f32.mrf.mxu3  ;;  %v720_v44 = vpop.f32.mrf.mxu0  ;;  %v8121_v40 = vor.u32 %v10625_v36, %v8120_v33  ;;  %v10681_v36 = vld [vmem:[#allocation7 + $0x294] sm:$0xf0] }
  0xee   :  { %v721_v51 = vadd.f32 %v720_v44, %v663_v29  ;;  %v733_v52 = vpop.f32.mrf.mxu1  ;;  %v10661_v29 = vld [vmem:[#allocation7 + $0x1f4] sm:$0xf0]  ;;  %v8393_v44 = vor.u32 %v10693_v41, %v8392_v37 }
  0xef   :  { %v734_v58 = vadd.f32 %v733_v52, %v664_v30  ;;  %v8265_v32 = vor.u32 %v10661_v29, %v8264_v12  ;;  %1793 = vmatpush.bf16.msrb.mxu3 %v8121_v40  ;;  %v8248_v52 = vld [vmem:[#allocation7 + $0x1c8] sm:$0xf]  ;;  %v10649_v12 = vld [vmem:[#allocation7 + $0x194] sm:$0xf0] }
  0xf0   :  { %v11536_v1 = vpack.c.bf16 %v721_v51, %v609_v50  ;;  %1846 = vmatpush.bf16.msrb.mxu1 %v8393_v44  ;;  %v777_v50 = vperm.slane %v773_v17, 2  ;;  %v778_v51 = vperm.slane %v773_v17, 3  ;;  %v8249_v55 = vor.u32 %v10657_v53, %v8248_v52  ;;  %v8200_v40 = vld [vmem:[#allocation7 + $0x168] sm:$0xf]  ;;  %v10609_v44 = vld [vmem:[#allocation7 + $0x54] sm:$0xf0] }
  0xf1   :  { %v11538_v61 = vpack.c.bf16 %v734_v58, %v622_v56  ;;  %1819 = vmatpush.bf16.msrb.mxu0 %v8265_v32  ;;  %v8217_v29 = vor.u32 %v10649_v12, %v8216_v27  ;;  %v8344_v32 = vld [vmem:[#allocation7 + $0x288] sm:$0xf]  ;;  %v10677_v52 = vld [vmem:[#allocation7 + $0x274] sm:$0xf0] }
  0xf2   :  { %1593 = vmatmul.bf16.gmra.mxu0 %v11536_v1  ;;  %v8345_v37 = vor.u32 %v10681_v36, %v8344_v32  ;;  %v10601_v27 = vld [vmem:[#allocation7 + $0x14] sm:$0xf0]  ;;  %v10707_v36 = vld [vmem:[#allocation7 + $0x36c] sm:$0xf] }
  0xf3   :  { %1620 = vmatmul.bf16.gmra.mxu1 %v11538_v61  ;;  %1794 = vmatpush.bf16.msrb.mxu3 %v8105_v5  ;;  %v10637_v5 = vld [vmem:[#allocation7 + $0x134] sm:$0xf0] }
  0xf4   :  { %v746_v0 = vpop.f32.mrf.mxu2 }
  0xf5   :  { %v747_v8 = vadd.f32 %v746_v0, %v665_v4  ;;  %v759_v9 = vpop.f32.mrf.mxu3  ;;  %v722_v10 = vpop.f32.mrf.mxu0  ;;  %1820 = vmatpush.bf16.msrb.mxu0 %v8249_v55  ;;  %v8376_v4 = vld [vmem:[#allocation7 + $0x2c8] sm:$0xf]  ;;  %v10641_v55 = vld [vmem:[#allocation7 + $0x154] sm:$0xf0] }
  0xf6   :  { %v760_v15 = vadd.f32 %v759_v9, %v666_v6  ;;  %v735_v16 = vpop.f32.mrf.mxu1  ;;  %v10689_v6 = vld [vmem:[#allocation7 + $0x2d4] sm:$0xf0]  ;;  %v8440_v0 = vld [vmem:[#allocation7 + $0x348] sm:$0xf] }
  0xf7   :  { %v11546_v18 = vpack.c.bf16 %v747_v8, %v635_v7  ;;  %v10705_v7 = vld [vmem:[#allocation7 + $0x354] sm:$0xf0]  ;;  %v8377_v9 = vor.u32 %v10689_v6, %v8376_v4  ;;  %v8296_v6 = vld [vmem:[#allocation7 + $0x228] sm:$0xf] }
  0xf8   :  { %v11548_v19 = vpack.c.bf16 %v760_v15, %v648_v13  ;;  %v8441_v10 = vor.u32 %v10705_v7, %v8440_v0  ;;  %v8232_v13 = vld [vmem:[#allocation7 + $0x1a8] sm:$0xf]  ;;  %v10653_v15 = vld [vmem:[#allocation7 + $0x1b4] sm:$0xf0]  ;;  %v8169_v7 = vor.u32 %v10637_v5, %v8168_v3  ;;  %v10703_v3 = vld [vmem:[#allocation7 + $0x34c] sm:$0xf] }
  0xf9   :  { %1647 = vmatmul.bf16.gmra.mxu2 %v11546_v18  ;;  %v8233_v17 = vor.u32 %v10653_v15, %v8232_v13  ;;  %1847 = vmatpush.bf16.msrb.mxu1 %v8377_v9  ;;  %v10669_v0 = vld [vmem:[#allocation7 + $0x234] sm:$0xf0]  ;;  %v8408_v9 = vld [vmem:[#allocation7 + $0x308] sm:$0xf] }
  0xfa   :  { %8464 = vmatmul.msk.bf16.gmra.mxu3 %vm1563_vm1, %v11548_v19  ;;  %1878 = vmatpush.bf16.msrb.mxu2 %v8441_v10  ;;  %v10697_v10 = vld [vmem:[#allocation7 + $0x314] sm:$0xf0]  ;;  %v8152_v15 = vld [vmem:[#allocation7 + $0x108] sm:$0xf] }
  0xfb   :  { %1821 = vmatpush.bf16.msrb.mxu0 %v8233_v17  ;;  %v8409_v13 = vor.u32 %v10697_v10, %v8408_v9  ;;  %v8280_v17 = vld [vmem:[#allocation7 + $0x208] sm:$0xf] }
  0xfc   :  { %v748_v30 = vpop.f32.mrf.mxu2  ;;  %v8281_v25 = vor.u32 %v10665_v11, %v8280_v17  ;;  %v10683_v17 = vld [vmem:[#allocation7 + $0x2ac] sm:$0xf] }
  0xfd   :  { %v761_v38 = vpop.f32.mrf.mxu3  ;;  %v832_v39 = vpop.f32.mrf.mxu0  ;;  %1848 = vmatpush.bf16.msrb.mxu1 %v8361_v24  ;;  %v8072_v30 = vld [vmem:[#allocation7 + $0x68] sm:$0xf] }
  0xfe   :  { %v833_v42 = vadd.f32 %v832_v39, %v775_v14  ;;  %v845_v43 = vpop.f32.mrf.mxu1  ;;  %v8088_v14 = vld [vmem:[#allocation7 + $0x88] sm:$0xf]  ;;  %v8073_v33 = vor.u32 %v10613_v31, %v8072_v30  ;;  %v10701_v39 = vld [vmem:[#allocation7 + $0x334] sm:$0xf0]  ;;  %v8138_v30 = vld [vmem:[#allocation7 + $0xf8] sm:$0xf0] }
  0xff   :  { %v846_v45 = vadd.f32 %v845_v43, %v776_v21  ;;  %v10617_v21 = vld [vmem:[#allocation7 + $0x94] sm:$0xf0]  ;;  %1822 = vmatpush.bf16.msrb.mxu0 %v8217_v29  ;;  %v8424_v38 = vld [vmem:[#allocation7 + $0x328] sm:$0xf]  ;;  %v10627_v29 = vld [vmem:[#allocation7 + $0xec] sm:$0xf] }
 0x100   :  { %v11553_v46 = vpack.c.bf16 %v833_v42, %v833_v42  ;;  %v8089_v23 = vor.u32 %v10617_v21, %v8088_v14  ;;  %v8425_v41 = vor.u32 %v10701_v39, %v8424_v38  ;;  %v10645_v42 = vld [vmem:[#allocation7 + $0x174] sm:$0xf0]  ;;  %v8056_v43 = vld [vmem:[#allocation7 + $0x48] sm:$0xf]  ;;  %v8141_v31 = vor.u32 %v10627_v29, %v8138_v30  ;;  %v10659_v38 = vld [vmem:[#allocation7 + $0x1ec] sm:$0xf] }
 0x101   :  { %v11555_v47 = vpack.c.bf16 %v846_v45, %v846_v45  ;;  %1849 = vmatpush.bf16.msrb.mxu1 %v8345_v37  ;;  %v8201_v45 = vor.u32 %v10645_v42, %v8200_v40  ;;  %v8024_v24 = vld [vmem:[#allocation7 + $0x8] sm:$0xf]  ;;  %v8458_v37 = vld [vmem:[#allocation7 + $0x378] sm:$0xf0]  ;;  %v10611_v29 = vld [vmem:[#allocation7 + $0x6c] sm:$0xf] }
 0x102   :  { %1598 = vmatmul.bf16.gmra.mxu0 %v11553_v46  ;;  %1795 = vmatpush.bf16.msrb.mxu3 %v8089_v23  ;;  %v8025_v12 = vor.u32 %v10601_v27, %v8024_v24  ;;  %v8461_v39 = vor.u32 %v10707_v36, %v8458_v37  ;;  %v8266_v40 = vld [vmem:[#allocation7 + $0x1f8] sm:$0xf0] }
 0x103   :  { %1625 = vmatmul.bf16.gmra.mxu1 %v11555_v47  ;;  %1879 = vmatpush.bf16.msrb.mxu2 %v8425_v41  ;;  %v10623_v41 = vld [vmem:[#allocation7 + $0xcc] sm:$0xf]  ;;  %v8122_v42 = vld [vmem:[#allocation7 + $0xd8] sm:$0xf0] }
 0x104   :  { %v858_v54 = vpop.f32.mrf.mxu2  ;;  %1823 = vmatpush.bf16.msrb.mxu0 %v8201_v45  ;;  %v10691_v45 = vld [vmem:[#allocation7 + $0x2ec] sm:$0xf]  ;;  %v8074_v30 = vld [vmem:[#allocation7 + $0x78] sm:$0xf0] }
 0x105   :  { %v859_v57 = vadd.f32 %v858_v54, %v777_v50  ;;  %v871_v56 = vpop.f32.mrf.mxu3  ;;  %v834_v58 = vpop.f32.mrf.mxu0  ;;  %v8057_v50 = vor.u32 %v10609_v44, %v8056_v43  ;;  %v8184_v54 = vld [vmem:[#allocation7 + $0x148] sm:$0xf]  ;;  %v8269_v43 = vor.u32 %v10659_v38, %v8266_v40  ;;  %v8125_v44 = vor.u32 %v10623_v41, %v8122_v42  ;;  %v10699_v41 = vld [vmem:[#allocation7 + $0x32c] sm:$0xf]  ;;  %v8426_v42 = vld [vmem:[#allocation7 + $0x338] sm:$0xf0] }
 0x106   :  { %v872_v59 = vadd.f32 %v871_v56, %v778_v51  ;;  %v847_v60 = vpop.f32.mrf.mxu1  ;;  %1796 = vmatpush.bf16.msrb.mxu3 %v8073_v33  ;;  %v8328_v51 = vld [vmem:[#allocation7 + $0x268] sm:$0xf]  ;;  %v8185_v56 = vor.u32 %v10641_v55, %v8184_v54  ;;  %v10673_v58 = vld [vmem:[#allocation7 + $0x254] sm:$0xf0]  ;;  %v8250_v54 = vld [vmem:[#allocation7 + $0x1d8] sm:$0xf0] }
 0x107   :  { %v11559_v62 = vpack.c.bf16 %v859_v57, %v859_v57  ;;  %v8329_v53 = vor.u32 %v10677_v52, %v8328_v51  ;;  %v8312_v57 = vld [vmem:[#allocation7 + $0x248] sm:$0xf]  ;;  %1880 = vmatpush.bf16.msrb.mxu2 %v8409_v13 }
 0x108   :  { %v11561_v63 = vpack.c.bf16 %v872_v59, %v872_v59  ;;  %v8313_v59 = vor.u32 %v10673_v58, %v8312_v57  ;;  %1824 = vmatpush.bf16.msrb.mxu0 %v8185_v56  ;;  %v8040_v60 = vld [vmem:[#allocation7 + $0x28] sm:$0xf]  ;;  %v10619_v56 = vld [vmem:[#allocation7 + $0xac] sm:$0xf]  ;;  %v8106_v58 = vld [vmem:[#allocation7 + $0xb8] sm:$0xf0] }
 0x109   :  { %1652 = vmatmul.bf16.gmra.mxu2 %v11559_v62  ;;  %1850 = vmatpush.bf16.msrb.mxu1 %v8329_v53  ;;  %v8041_v4 = vor.u32 %v10605_v2, %v8040_v60  ;;  %v10655_v53 = vld [vmem:[#allocation7 + $0x1cc] sm:$0xf]  ;;  %v8109_v60 = vor.u32 %v10619_v56, %v8106_v58  ;;  %v8378_v2 = vld [vmem:[#allocation7 + $0x2d8] sm:$0xf0] }
 0x10a   :  { %8465 = vmatmul.msk.bf16.gmra.mxu3 %vm1563_vm1, %v11561_v63  ;;  %v8253_v57 = vor.u32 %v10655_v53, %v8250_v54  ;;  %v8058_v53 = vld [vmem:[#allocation7 + $0x58] sm:$0xf0]  ;;  %v10675_v54 = vld [vmem:[#allocation7 + $0x26c] sm:$0xf] }
 0x10b   :  { %1797 = vmatpush.bf16.msrb.mxu3 %v8057_v50  ;;  %v8394_v50 = vld [vmem:[#allocation7 + $0x2f8] sm:$0xf0] }
 0x10c   :  { %v860_v8 = vpop.f32.mrf.mxu2  ;;  %1825 = vmatpush.bf16.msrb.mxu0 %v8169_v7  ;;  %v8397_v51 = vor.u32 %v10691_v45, %v8394_v50  ;;  %v8234_v7 = vld [vmem:[#allocation7 + $0x1b8] sm:$0xf0] }
 0x10d   :  { %v873_v16 = vpop.f32.mrf.mxu3  ;;  %1851 = vmatpush.bf16.msrb.mxu1 %v8313_v59  ;;  %v8297_v8 = vor.u32 %v10669_v0, %v8296_v6  ;;  %v10687_v59 = vld [vmem:[#allocation7 + $0x2cc] sm:$0xf]  ;;  %v8202_v45 = vld [vmem:[#allocation7 + $0x178] sm:$0xf0] }
 0x10e   :  { %v10633_v16 = vld [vmem:[#allocation7 + $0x114] sm:$0xf0]  ;;  %v8381_v5 = vor.u32 %v10687_v59, %v8378_v2  ;;  %v10651_v0 = vld [vmem:[#allocation7 + $0x1ac] sm:$0xf]  ;;  %v8330_v56 = vld [vmem:[#allocation7 + $0x278] sm:$0xf0] }
 0x10f   :  { %1798 = vmatpush.bf16.msrb.mxu3 %v8041_v4  ;;  %v8153_v21 = vor.u32 %v10633_v16, %v8152_v15  ;;  %v8442_v4 = vld [vmem:[#allocation7 + $0x358] sm:$0xf0]  ;;  %v10615_v15 = vld [vmem:[#allocation7 + $0x8c] sm:$0xf]  ;;  %v8333_v58 = vor.u32 %v10675_v54, %v8330_v56 }
 0x110   :  { %v8445_v6 = vor.u32 %v10703_v3, %v8442_v4  ;;  %v8090_v16 = vld [vmem:[#allocation7 + $0x98] sm:$0xf0]  ;;  %v10639_v59 = vld [vmem:[#allocation7 + $0x14c] sm:$0xf] }
 0x111   :  { %1852 = vmatpush.bf16.msrb.mxu1 %v8297_v8  ;;  %1826 = vmatpush.bf16.msrb.mxu0 %v8153_v21  ;;  %v8237_v8 = vor.u32 %v10651_v0, %v8234_v7  ;;  %v8362_v21 = vld [vmem:[#allocation7 + $0x2b8] sm:$0xf0]  ;;  %v10671_v2 = vld [vmem:[#allocation7 + $0x24c] sm:$0xf] }
 0x112   :  { %1719 = vmatmul.bf16.vlgmr.msra.gmra.mxu0 %v11504_v22  ;;  %v8365_v11 = vor.u32 %v10683_v17, %v8362_v21  ;;  %v10603_v7 = vld [vmem:[#allocation7 + $0x2c] sm:$0xf] }
 0x113   :  { %1746 = vmatmul.bf16.vlgmr.msra.gmra.mxu1 %v11508_v34  ;;  %1799 = vmatpush.bf16.msrb.mxu3 %v8025_v12  ;;  %v10631_v21 = vld [vmem:[#allocation7 + $0x10c] sm:$0xf] }
 0x115   :  { %1853 = vmatpush.bf16.msrb.mxu1 %v8281_v25  ;;  %1927 = vmatpush.bf16.msra.mxu0 %v8269_v43  ;;  %v8218_v25 = vld [vmem:[#allocation7 + $0x198] sm:$0xf0]  ;;  %v10643_v43 = vld [vmem:[#allocation7 + $0x16c] sm:$0xf] }
 0x116   :  { %v8205_v50 = vor.u32 %v10643_v43, %v8202_v45 }
 0x119   :  { %8466 = vmatmul.msk.bf16.vlgmr.msra.gmra.mxu2 %vm1563_vm1, %v11510_v35  ;;  %1954 = vmatpush.bf16.msra.mxu1 %v8397_v51  ;;  %v10607_v51 = vld [vmem:[#allocation7 + $0x4c] sm:$0xf] }
 0x11a   :  { %1692 = vmatmul.bf16.vlgmr.msra.gmra.mxu3 %v11502_v20  ;;  %1985 = vmatpush.bf16.msra.mxu2 %v8461_v39 }
 0x11b   :  { %1900 = vmatpush.bf16.msra.mxu3 %v8141_v31  ;;  %1928 = vmatpush.bf16.msra.mxu0 %v8253_v57  ;;  %v10679_v31 = vld [vmem:[#allocation7 + $0x28c] sm:$0xf]  ;;  %v8061_v57 = vor.u32 %v10607_v51, %v8058_v53  ;;  %v8592_v51 = vld [vmem:[#allocation7 + $0x7e0] sm:$0xf]  ;;  %v10852_v53 = vld [vmem:[#allocation7 + $0x7ec] sm:$0xf0] }
 0x11c   :  { %v8593_v54 = vor.u32 %v10852_v53, %v8592_v51 }
 0x11d   :  { %1955 = vmatpush.bf16.msra.mxu1 %v8381_v5  ;;  %v8314_v5 = vld [vmem:[#allocation7 + $0x258] sm:$0xf0] }
 0x11e   :  { %1986 = vmatpush.bf16.msra.mxu2 %v8445_v6  ;;  %v8317_v0 = vor.u32 %v10671_v2, %v8314_v5  ;;  %v8720_v2 = vld [vmem:[#allocation7 + $0x8e0] sm:$0xf]  ;;  %v10884_v5 = vld [vmem:[#allocation7 + $0x8ec] sm:$0xf0] }
 0x11f   :  { %1901 = vmatpush.bf16.msra.mxu3 %v8125_v44  ;;  %1929 = vmatpush.bf16.msra.mxu0 %v8237_v8  ;;  %v8429_v44 = vor.u32 %v10699_v41, %v8426_v42  ;;  %v8042_v8 = vld [vmem:[#allocation7 + $0x38] sm:$0xf0] }
 0x121   :  { %1956 = vmatpush.bf16.msra.mxu1 %v8365_v11  ;;  %v8154_v11 = vld [vmem:[#allocation7 + $0x118] sm:$0xf0] }
 0x122   :  { %1723 = vmatmul.bf16.gmra.mxu0 %v11517_v28  ;;  %1987 = vmatpush.bf16.msra.mxu2 %v8429_v44 }
 0x123   :  { %1750 = vmatmul.bf16.gmra.mxu1 %v11521_v48  ;;  %1902 = vmatpush.bf16.msra.mxu3 %v8109_v60  ;;  %v8186_v60 = vld [vmem:[#allocation7 + $0x158] sm:$0xf0] }
 0x124   :  { %v8189_v4 = vor.u32 %v10639_v59, %v8186_v60  ;;  %v8912_v59 = vld [vmem:[#allocation7 + $0xa60] sm:$0xf]  ;;  %v10932_v60 = vld [vmem:[#allocation7 + $0xa6c] sm:$0xf0] }
 0x129   :  { %8467 = vmatmul.msk.bf16.gmra.mxu2 %vm1563_vm1, %v11523_v49 }
 0x12a   :  { %1696 = vmatmul.bf16.gmra.mxu3 %v11515_v26 }
 0x12f   :  { %v1585_v14 = vpop.f32.mrf.mxu0 }
 0x130   :  { %v1612_v23 = vpop.f32.mrf.mxu1  ;;  %v8093_v14 = vor.u32 %v10615_v15, %v8090_v16  ;;  %v10667_v15 = vld [vmem:[#allocation7 + $0x22c] sm:$0xf]  ;;  %v8298_v16 = vld [vmem:[#allocation7 + $0x238] sm:$0xf0] }
 0x131   :  { %v10647_v23 = vld [vmem:[#allocation7 + $0x18c] sm:$0xf] }
 0x132   :  { %1728 = vmatmul.bf16.gmra.mxu0 %v11538_v61  ;;  %1903 = vmatpush.bf16.msra.mxu3 %v8093_v14  ;;  %v8221_v27 = vor.u32 %v10647_v23, %v8218_v25  ;;  %v8301_v14 = vor.u32 %v10667_v15, %v8298_v16  ;;  %v10663_v23 = vld [vmem:[#allocation7 + $0x20c] sm:$0xf]  ;;  %v8848_v15 = vld [vmem:[#allocation7 + $0x9e0] sm:$0xf] }
 0x133   :  { %1755 = vmatmul.bf16.gmra.mxu1 %v11546_v18 }
 0x134   :  { %1930 = vmatpush.bf16.msra.mxu0 %v8221_v27  ;;  %v10695_v27 = vld [vmem:[#allocation7 + $0x30c] sm:$0xf] }
 0x137   :  { %v11583_v52 = vpop.f32.mrf.mxu0 }
 0x138   :  { %v11585_v55 = vpop.f32.mrf.mxu1  ;;  %1931 = vmatpush.bf16.msra.mxu0 %v8205_v50 }
 0x139   :  { %8468 = vmatmul.msk.bf16.gmra.mxu2 %vm1563_vm1, %v11548_v19  ;;  %13168 = vst [vmem:[#allocation13_spill] sm:$0xff] %v11585_v55 }
 0x13a   :  { %1701 = vmatmul.bf16.gmra.mxu3 %v11536_v1 }
 0x13c   :  { %v1639_v32 = vpop.f32.mrf.mxu2  ;;  %1932 = vmatpush.bf16.msra.mxu0 %v8189_v4  ;;  %v8913_v4 = vor.u32 %v10932_v60, %v8912_v59  ;;  %v8688_v59 = vld [vmem:[#allocation7 + $0x8a0] sm:$0xf] }
 0x13d   :  { %v1666_v33 = vpop.f32.mrf.mxu3  ;;  %v8077_v32 = vor.u32 %v10611_v29, %v8074_v30  ;;  %v8410_v29 = vld [vmem:[#allocation7 + $0x318] sm:$0xf0]  ;;  %v8157_v30 = vor.u32 %v10631_v21, %v8154_v11 }
 0x13e   :  { %v8346_v33 = vld [vmem:[#allocation7 + $0x298] sm:$0xf0] }
 0x13f   :  { %v8349_v37 = vor.u32 %v10679_v31, %v8346_v33  ;;  %1904 = vmatpush.bf16.msra.mxu3 %v8077_v32  ;;  %v8282_v31 = vld [vmem:[#allocation7 + $0x218] sm:$0xf0]  ;;  %v8413_v33 = vor.u32 %v10695_v27, %v8410_v29 }
 0x141   :  { %1957 = vmatpush.bf16.msra.mxu1 %v8349_v37  ;;  %v10599_v37 = vld [vmem:[#allocation7 + $0xc] sm:$0xf]  ;;  %1988 = vmatpush.bf16.msra.mxu2 %v8413_v33  ;;  %v8560_v33 = vld [vmem:[#allocation7 + $0x7a0] sm:$0xf] }
 0x142   :  { %1733 = vmatmul.bf16.gmra.mxu0 %v11555_v47 }
 0x143   :  { %1760 = vmatmul.bf16.gmra.mxu1 %v11559_v62  ;;  %1905 = vmatpush.bf16.msra.mxu3 %v8061_v57 }
 0x144   :  { %v11592_v24 = vpop.f32.mrf.mxu2 }
 0x145   :  { %13169 = vst [vmem:[#allocation14_spill] sm:$0xff] %v11592_v24  ;;  %v11594_v12 = vpop.f32.mrf.mxu3  ;;  %1958 = vmatpush.bf16.msra.mxu1 %v8333_v58 }
 0x146   :  { %13170 = vst [vmem:[#allocation15_spill] sm:$0xff] %v11594_v12  ;;  %v8810_v12 = vld [vmem:[#allocation7 + $0x998] sm:$0xf0] }
 0x149   :  { %8469 = vmatmul.msk.bf16.gmra.mxu2 %vm1563_vm1, %v11561_v63  ;;  %1959 = vmatpush.bf16.msra.mxu1 %v8317_v0 }
 0x14a   :  { %1706 = vmatmul.bf16.gmra.mxu3 %v11553_v46 }
 0x14d   :  { %1960 = vmatpush.bf16.msra.mxu1 %v8301_v14  ;;  %v10916_v14 = vld [vmem:[#allocation7 + $0x9ec] sm:$0xf0] }
 0x14e   :  { %v8849_v21 = vor.u32 %v10916_v14, %v8848_v15 }
 0x14f   :  { %v1589_v9 = vpop.f32.mrf.mxu0 }
 0x150   :  { %v1616_v10 = vpop.f32.mrf.mxu1 }
 0x151   :  { %v1617_v13 = vadd.f32 %v1616_v10, %v1589_v9  ;;  %v10635_v9 = vld [vmem:[#allocation7 + $0x12c] sm:$0xf]  ;;  %v8045_v10 = vor.u32 %v10603_v7, %v8042_v8  ;;  %v8721_v8 = vor.u32 %v10884_v5, %v8720_v2  ;;  %v10876_v2 = vld [vmem:[#allocation7 + $0x8ac] sm:$0xf0] }
 0x152   :  { %1827 = vmatmul.bf16.vlgmr.msrb.gmra.mxu0 %v11504_v22  ;;  %v10840_v5 = vld [vmem:[#allocation7 + $0x78c] sm:$0xf0] }
 0x153   :  { %1854 = vmatmul.bf16.vlgmr.msrb.gmra.mxu1 %v11508_v34  ;;  %1906 = vmatpush.bf16.msra.mxu3 %v8045_v10  ;;  %v8576_v10 = vld [vmem:[#allocation7 + $0x7c0] sm:$0xf] }
 0x157   :  { %v11603_v3 = vpop.f32.mrf.mxu0 }
 0x158   :  { %13171 = vst [vmem:[#allocation16_spill] sm:$0xff] %v11603_v3  ;;  %v11605_v6 = vpop.f32.mrf.mxu1  ;;  %v8570_v3 = vld [vmem:[#allocation7 + $0x7b8] sm:$0xf0] }
 0x159   :  { %8470 = vmatmul.msk.bf16.vlgmr.msrb.gmra.mxu2 %vm1563_vm1, %v11510_v35  ;;  %13172 = vst [vmem:[#allocation17_spill] sm:$0xff] %v11605_v6 }
 0x15a   :  { %1800 = vmatmul.bf16.vlgmr.msrb.gmra.mxu3 %v11502_v20  ;;  %2882 = vmatpush.bf16.msrb.mxu2 %v8913_v4  ;;  %v8544_v4 = vld [vmem:[#allocation7 + $0x780] sm:$0xf] }
 0x15c   :  { %v1643_v36 = vpop.f32.mrf.mxu2 }
 0x15d   :  { %v1644_v38 = vadd.f32 %v1643_v36, %v1617_v13  ;;  %v1670_v39 = vpop.f32.mrf.mxu3  ;;  %v8170_v13 = vld [vmem:[#allocation7 + $0x138] sm:$0xf0]  ;;  %v8285_v36 = vor.u32 %v10663_v23, %v8282_v31  ;;  %v8704_v31 = vld [vmem:[#allocation7 + $0x8c0] sm:$0xf] }
 0x15e   :  { %v8173_v17 = vor.u32 %v10635_v9, %v8170_v13  ;;  %v10848_v13 = vld [vmem:[#allocation7 + $0x7cc] sm:$0xf0] }
 0x15f   :  { %v11599_v40 = vadd.f32 %v1670_v39, %v1644_v38  ;;  %v8026_v38 = vld [vmem:[#allocation7 + $0x18] sm:$0xf0]  ;;  %1961 = vmatpush.bf16.msra.mxu1 %v8285_v36 }
 0x160   :  { %1933 = vmatpush.bf16.msra.mxu0 %v8173_v17  ;;  %v8029_v41 = vor.u32 %v10599_v37, %v8026_v38  ;;  %v8577_v17 = vor.u32 %v10848_v13, %v8576_v10  ;;  %v10844_v37 = vld [vmem:[#allocation7 + $0x7ac] sm:$0xf0]  ;;  %v8832_v38 = vld [vmem:[#allocation7 + $0x9c0] sm:$0xf] }
 0x161   :  { %v8816_v10 = vld [vmem:[#allocation7 + $0x9a0] sm:$0xf]  ;;  %v10908_v13 = vld [vmem:[#allocation7 + $0x9ac] sm:$0xf0] }
 0x162   :  { %1831 = vmatmul.bf16.gmra.mxu0 %v11517_v28  ;;  %1907 = vmatpush.bf16.msra.mxu3 %v8029_v41 }
 0x163   :  { %1858 = vmatmul.bf16.gmra.mxu1 %v11521_v48 }
 0x164   :  { %1934 = vmatpush.bf16.msra.mxu0 %v8157_v30  ;;  %v11612_v42 = vpop.f32.mrf.mxu2  ;;  %2850 = vmatpush.bf16.msrb.mxu1 %v8849_v21  ;;  %v8672_v21 = vld [vmem:[#allocation7 + $0x880] sm:$0xf] }
 0x165   :  { %13173 = vst [vmem:[#allocation18_spill] sm:$0xff] %v11612_v42  ;;  %v11614_v43 = vpop.f32.mrf.mxu3 }
 0x166   :  { %13174 = vst [vmem:[#allocation19_spill] sm:$0xff] %v11614_v43  ;;  %2794 = vmatpush.bf16.msrb.mxu3 %v8593_v54 }
 0x168   :  { %2822 = vmatpush.bf16.msrb.mxu0 %v8721_v8  ;;  %v8689_v8 = vor.u32 %v10876_v2, %v8688_v59  ;;  %v10900_v2 = vld [vmem:[#allocation7 + $0x96c] sm:$0xf0] }
 0x169   :  { %8471 = vmatmul.msk.bf16.gmra.mxu2 %vm1563_vm1, %v11523_v49 }
 0x16a   :  { %1804 = vmatmul.bf16.gmra.mxu3 %v11515_v26 }
 0x16b   :  { %2795 = vmatpush.bf16.msrb.mxu3 %v8577_v17 }
 0x16f   :  { %v1594_v25 = vpop.f32.mrf.mxu0 }
 0x170   :  { %v1621_v32 = vpop.f32.mrf.mxu1 }
 0x171   :  { %v1622_v39 = vadd.f32 %v1621_v32, %v1594_v25  ;;  %v10880_v32 = vld [vmem:[#allocation7 + $0x8cc] sm:$0xf0] }
 0x172   :  { %1836 = vmatmul.bf16.gmra.mxu0 %v11538_v61  ;;  %v8705_v36 = vor.u32 %v10880_v32, %v8704_v31  ;;  %v10904_v31 = vld [vmem:[#allocation7 + $0x98c] sm:$0xf0] }
 0x173   :  { %1863 = vmatmul.bf16.gmra.mxu1 %v11546_v18 }
 0x174   :  { %2823 = vmatpush.bf16.msrb.mxu0 %v8705_v36 }
 0x177   :  { %v1596_v44 = vpop.f32.mrf.mxu0 }
 0x178   :  { %v1623_v45 = vpop.f32.mrf.mxu1  ;;  %2824 = vmatpush.bf16.msrb.mxu0 %v8689_v8  ;;  %v8640_v8 = vld [vmem:[#allocation7 + $0x840] sm:$0xf] }
 0x179   :  { %v1624_v50 = vadd.f32 %v1623_v45, %v1596_v44  ;;  %8472 = vmatmul.msk.bf16.gmra.mxu2 %vm1563_vm1, %v11548_v19  ;;  %v8561_v44 = vor.u32 %v10844_v37, %v8560_v33 }
 0x17a   :  { %1809 = vmatmul.bf16.gmra.mxu3 %v11536_v1 }
 0x17b   :  { %2796 = vmatpush.bf16.msrb.mxu3 %v8561_v44  ;;  %v10924_v44 = vld [vmem:[#allocation7 + $0xa2c] sm:$0xf0] }
 0x17c   :  { %v1648_v57 = vpop.f32.mrf.mxu2 }
 0x17d   :  { %v1649_v56 = vadd.f32 %v1648_v57, %v1622_v39  ;;  %v1675_v58 = vpop.f32.mrf.mxu3  ;;  %v10912_v39 = vld [vmem:[#allocation7 + $0x9cc] sm:$0xf0] }
 0x17e   :  { %v8833_v45 = vor.u32 %v10912_v39, %v8832_v38 }
 0x17f   :  { %v11619_v0 = vadd.f32 %v1675_v58, %v1649_v56  ;;  %v1599_v7 = vpop.f32.mrf.mxu0  ;;  %v8896_v56 = vld [vmem:[#allocation7 + $0xa40] sm:$0xf]  ;;  %v10928_v58 = vld [vmem:[#allocation7 + $0xa4c] sm:$0xf0] }
 0x180   :  { %v1626_v9 = vpop.f32.mrf.mxu1  ;;  %2851 = vmatpush.bf16.msrb.mxu1 %v8833_v45  ;;  %v8897_v60 = vor.u32 %v10928_v58, %v8896_v56  ;;  %v8656_v45 = vld [vmem:[#allocation7 + $0x860] sm:$0xf] }
 0x181   :  { %v1627_v16 = vadd.f32 %v1626_v9, %v1599_v7  ;;  %v8545_v9 = vor.u32 %v10840_v5, %v8544_v4 }
 0x182   :  { %1841 = vmatmul.bf16.gmra.mxu0 %v11555_v47  ;;  %2883 = vmatpush.bf16.msrb.mxu2 %v8897_v60  ;;  %v8784_v60 = vld [vmem:[#allocation7 + $0x960] sm:$0xf] }
 0x183   :  { %1868 = vmatmul.bf16.gmra.mxu1 %v11559_v62  ;;  %2797 = vmatpush.bf16.msrb.mxu3 %v8545_v9  ;;  %v8785_v5 = vor.u32 %v10900_v2, %v8784_v60  ;;  %v10864_v9 = vld [vmem:[#allocation7 + $0x84c] sm:$0xf0] }
 0x184   :  { %v1650_v11 = vpop.f32.mrf.mxu2 }
 0x185   :  { %v1651_v23 = vadd.f32 %v1650_v11, %v1624_v50  ;;  %v1677_v25 = vpop.f32.mrf.mxu3  ;;  %v10872_v11 = vld [vmem:[#allocation7 + $0x88c] sm:$0xf0] }
 0x187   :  { %v11623_v27 = vadd.f32 %v1677_v25, %v1651_v23  ;;  %v1601_v29 = vpop.f32.mrf.mxu0  ;;  %v8528_v23 = vld [vmem:[#allocation7 + $0x760] sm:$0xf]  ;;  %v8673_v25 = vor.u32 %v10872_v11, %v8672_v21 }
 0x188   :  { %v1628_v30 = vpop.f32.mrf.mxu1  ;;  %v10836_v29 = vld [vmem:[#allocation7 + $0x76c] sm:$0xf0] }
 0x189   :  { %8473 = vmatmul.msk.bf16.gmra.mxu2 %vm1563_vm1, %v11561_v63  ;;  %v8800_v30 = vld [vmem:[#allocation7 + $0x980] sm:$0xf]  ;;  %v8529_v33 = vor.u32 %v10836_v29, %v8528_v23  ;;  %2825 = vmatpush.bf16.msrb.mxu0 %v8673_v25  ;;  %v10828_v29 = vld [vmem:[#allocation7 + $0x72c] sm:$0xf0] }
 0x18a   :  { %1814 = vmatmul.bf16.gmra.mxu3 %v11553_v46  ;;  %v8801_v36 = vor.u32 %v10904_v31, %v8800_v30  ;;  %v8624_v30 = vld [vmem:[#allocation7 + $0x820] sm:$0xf] }
 0x18b   :  { %2798 = vmatpush.bf16.msrb.mxu3 %v8529_v33  ;;  %v8752_v33 = vld [vmem:[#allocation7 + $0x920] sm:$0xf] }
 0x18c   :  { %v1653_v41 = vpop.f32.mrf.mxu2 }
 0x18d   :  { %v1654_v50 = vadd.f32 %v1653_v41, %v1627_v16  ;;  %v1680_v51 = vpop.f32.mrf.mxu3  ;;  %v8817_v16 = vor.u32 %v10908_v13, %v8816_v10  ;;  %v8880_v41 = vld [vmem:[#allocation7 + $0xa20] sm:$0xf] }
 0x18e   :  { %v8768_v10 = vld [vmem:[#allocation7 + $0x940] sm:$0xf] }
 0x18f   :  { %v11628_v53 = vadd.f32 %v1680_v51, %v1654_v50  ;;  %v1720_v54 = vpop.f32.mrf.mxu0  ;;  %2852 = vmatpush.bf16.msrb.mxu1 %v8817_v16  ;;  %v8881_v50 = vor.u32 %v10924_v44, %v8880_v41  ;;  %v10868_v51 = vld [vmem:[#allocation7 + $0x86c] sm:$0xf0] }
 0x190   :  { %v1747_v57 = vpop.f32.mrf.mxu1  ;;  %v8512_v54 = vld [vmem:[#allocation7 + $0x740] sm:$0xf]  ;;  %v8657_v58 = vor.u32 %v10868_v51, %v8656_v45  ;;  %v10896_v16 = vld [vmem:[#allocation7 + $0x94c] sm:$0xf0] }
 0x191   :  { %v10832_v57 = vld [vmem:[#allocation7 + $0x74c] sm:$0xf0]  ;;  %2884 = vmatpush.bf16.msrb.mxu2 %v8881_v50  ;;  %v8769_v23 = vor.u32 %v10896_v16, %v8768_v10  ;;  %v8608_v50 = vld [vmem:[#allocation7 + $0x800] sm:$0xf] }
 0x192   :  { %1935 = vmatmul.bf16.vlgmr.msra.gmra.mxu0 %v11504_v22  ;;  %v8513_v59 = vor.u32 %v10832_v57, %v8512_v54  ;;  %v10856_v51 = vld [vmem:[#allocation7 + $0x80c] sm:$0xf0]  ;;  %v8736_v54 = vld [vmem:[#allocation7 + $0x900] sm:$0xf] }
 0x193   :  { %1962 = vmatmul.bf16.vlgmr.msra.gmra.mxu1 %v11508_v34  ;;  %2826 = vmatpush.bf16.msrb.mxu0 %v8657_v58  ;;  %v10888_v58 = vld [vmem:[#allocation7 + $0x90c] sm:$0xf0] }
 0x194   :  { %v1655_v7 = vpop.f32.mrf.mxu2  ;;  %2853 = vmatpush.bf16.msrb.mxu1 %v8801_v36  ;;  %2799 = vmatpush.bf16.msrb.mxu3 %v8513_v59  ;;  %v10892_v36 = vld [vmem:[#allocation7 + $0x92c] sm:$0xf0]  ;;  %v8737_v2 = vor.u32 %v10888_v58, %v8736_v54  ;;  %v8578_v58 = vld [vmem:[#allocation7 + $0x7d0] sm:$0xf0] }
 0x195   :  { %v1682_v15 = vpop.f32.mrf.mxu3  ;;  %v8753_v41 = vor.u32 %v10892_v36, %v8752_v33 }
 0x196   :  { %v8641_v15 = vor.u32 %v10864_v9, %v8640_v8  ;;  %v8480_v8 = vld [vmem:[#allocation7 + $0x700] sm:$0xf]  ;;  %v10824_v9 = vld [vmem:[#allocation7 + $0x70c] sm:$0xf0] }
 0x197   :  { %v1721_v17 = vpop.f32.mrf.mxu0 }
 0x198   :  { %v1748_v14 = vpop.f32.mrf.mxu1  ;;  %2854 = vmatpush.bf16.msrb.mxu1 %v8785_v5  ;;  %2827 = vmatpush.bf16.msrb.mxu0 %v8641_v15  ;;  %v8864_v5 = vld [vmem:[#allocation7 + $0xa00] sm:$0xf]  ;;  %v8481_v15 = vor.u32 %v10824_v9, %v8480_v8 }
 0x199   :  { %8474 = vmatmul.msk.bf16.vlgmr.msra.gmra.mxu2 %vm1563_vm1, %v11510_v35 }
 0x19a   :  { %1908 = vmatmul.bf16.vlgmr.msra.gmra.mxu3 %v11502_v20 }
 0x19c   :  { %v1774_v32 = vpop.f32.mrf.mxu2  ;;  %2855 = vmatpush.bf16.msrb.mxu1 %v8769_v23 }
 0x19d   :  { %v1693_v37 = vpop.f32.mrf.mxu3  ;;  %v10860_v32 = vld [vmem:[#allocation7 + $0x82c] sm:$0xf0] }
 0x19f   :  { %v1724_v38 = vpop.f32.mrf.mxu0 }
 0x1a0   :  { %v1751_v39 = vpop.f32.mrf.mxu1  ;;  %2856 = vmatpush.bf16.msrb.mxu1 %v8753_v41 }
 0x1a2   :  { %1939 = vmatmul.bf16.gmra.mxu0 %v11517_v28 }
 0x1a3   :  { %1966 = vmatmul.bf16.gmra.mxu1 %v11521_v48 }
 0x1a4   :  { %v1775_v56 = vpop.f32.mrf.mxu2  ;;  %2857 = vmatpush.bf16.msrb.mxu1 %v8737_v2 }
 0x1a5   :  { %v1694_v4 = vpop.f32.mrf.mxu3 }
 0x1a6   :  { %v1722_v7 = vadd.f32 %v1721_v17, %v1694_v4  ;;  %v8496_v17 = vld [vmem:[#allocation7 + $0x720] sm:$0xf] }
 0x1a7   :  { %v1726_v13 = vpop.f32.mrf.mxu0  ;;  %v8497_v31 = vor.u32 %v10828_v29, %v8496_v17 }
 0x1a8   :  { %v1749_v21 = vadd.f32 %v1748_v14, %v1722_v7  ;;  %v1753_v11 = vpop.f32.mrf.mxu1  ;;  %v8625_v14 = vor.u32 %v10860_v32, %v8624_v30  ;;  %v10920_v7 = vld [vmem:[#allocation7 + $0xa0c] sm:$0xf0]  ;;  %v10850_v30 = vld [vmem:[#allocation7 + $0x7e4] sm:$0xf] }
 0x1a9   :  { %8475 = vmatmul.msk.bf16.gmra.mxu2 %vm1563_vm1, %v11523_v49  ;;  %2800 = vmatpush.bf16.msrb.mxu3 %v8497_v31  ;;  %v8594_v31 = vld [vmem:[#allocation7 + $0x7f0] sm:$0xf0] }
 0x1aa   :  { %v11639_v25 = vadd.f32 %v1775_v56, %v1749_v21  ;;  %1912 = vmatmul.bf16.gmra.mxu3 %v11515_v26  ;;  %2828 = vmatpush.bf16.msrb.mxu0 %v8625_v14  ;;  %v8609_v56 = vor.u32 %v10856_v51, %v8608_v50  ;;  %v8597_v32 = vor.u32 %v10850_v30, %v8594_v31  ;;  %v8914_v14 = vld [vmem:[#allocation7 + $0xa70] sm:$0xf0]  ;;  %v10842_v30 = vld [vmem:[#allocation7 + $0x7a4] sm:$0xf] }
 0x1ac   :  { %v1778_v37 = vpop.f32.mrf.mxu2 }
 0x1ad   :  { %v1697_v44 = vpop.f32.mrf.mxu3  ;;  %2801 = vmatpush.bf16.msrb.mxu3 %v8481_v15 }
 0x1ae   :  { %v1725_v45 = vadd.f32 %v1724_v38, %v1697_v44  ;;  %v8865_v38 = vor.u32 %v10920_v7, %v8864_v5  ;;  %2829 = vmatpush.bf16.msrb.mxu0 %v8609_v56  ;;  %v10846_v56 = vld [vmem:[#allocation7 + $0x7c4] sm:$0xf]  ;;  %v8850_v5 = vld [vmem:[#allocation7 + $0x9f0] sm:$0xf0] }
 0x1af   :  { %v1729_v57 = vpop.f32.mrf.mxu0  ;;  %v8581_v2 = vor.u32 %v10846_v56, %v8578_v58  ;;  %v8898_v56 = vld [vmem:[#allocation7 + $0xa50] sm:$0xf0]  ;;  %v10874_v58 = vld [vmem:[#allocation7 + $0x8a4] sm:$0xf] }
 0x1b0   :  { %v1752_v59 = vadd.f32 %v1751_v39, %v1725_v45  ;;  %v1756_v60 = vpop.f32.mrf.mxu1  ;;  %2885 = vmatpush.bf16.msrb.mxu2 %v8865_v38 }
 0x1b1   :  { %2906 = vmatpush.bf16.msra.mxu3 %v8597_v32  ;;  %v8562_v32 = vld [vmem:[#allocation7 + $0x7b0] sm:$0xf0] }
 0x1b2   :  { %v11642_v4 = vadd.f32 %v1778_v37, %v1752_v59  ;;  %1944 = vmatmul.bf16.gmra.mxu0 %v11538_v61  ;;  %v10930_v37 = vld [vmem:[#allocation7 + $0xa64] sm:$0xf] }
 0x1b3   :  { %1971 = vmatmul.bf16.gmra.mxu1 %v11546_v18  ;;  %v8917_v44 = vor.u32 %v10930_v37, %v8914_v14  ;;  %v10914_v59 = vld [vmem:[#allocation7 + $0x9e4] sm:$0xf]  ;;  %v8565_v14 = vor.u32 %v10842_v30, %v8562_v32  ;;  %v8674_v30 = vld [vmem:[#allocation7 + $0x890] sm:$0xf0] }
 0x1b4   :  { %v1780_v10 = vpop.f32.mrf.mxu2  ;;  %v8853_v8 = vor.u32 %v10914_v59, %v8850_v5  ;;  %v10838_v5 = vld [vmem:[#allocation7 + $0x784] sm:$0xf] }
 0x1b5   :  { %v1699_v16 = vpop.f32.mrf.mxu3  ;;  %2994 = vmatpush.bf16.msra.mxu2 %v8917_v44  ;;  %2907 = vmatpush.bf16.msra.mxu3 %v8581_v2  ;;  %v8690_v2 = vld [vmem:[#allocation7 + $0x8b0] sm:$0xf0] }
 0x1b6   :  { %v1727_v39 = vadd.f32 %v1726_v13, %v1699_v16  ;;  %v10882_v13 = vld [vmem:[#allocation7 + $0x8e4] sm:$0xf]  ;;  %2962 = vmatpush.bf16.msra.mxu1 %v8853_v8  ;;  %v8546_v8 = vld [vmem:[#allocation7 + $0x790] sm:$0xf0] }
 0x1b7   :  { %v1731_v21 = vpop.f32.mrf.mxu0 }
 0x1b8   :  { %v1754_v23 = vadd.f32 %v1753_v11, %v1727_v39  ;;  %v1758_v17 = vpop.f32.mrf.mxu1  ;;  %v8722_v11 = vld [vmem:[#allocation7 + $0x8f0] sm:$0xf0]  ;;  %v10878_v39 = vld [vmem:[#allocation7 + $0x8c4] sm:$0xf] }
 0x1b9   :  { %8476 = vmatmul.msk.bf16.gmra.mxu2 %vm1563_vm1, %v11548_v19  ;;  %v8725_v50 = vor.u32 %v10882_v13, %v8722_v11  ;;  %2908 = vmatpush.bf16.msra.mxu3 %v8565_v14 }
 0x1ba   :  { %v11648_v29 = vadd.f32 %v1780_v10, %v1754_v23  ;;  %1917 = vmatmul.bf16.gmra.mxu3 %v11536_v1  ;;  %v8706_v23 = vld [vmem:[#allocation7 + $0x8d0] sm:$0xf0] }
 0x1bb   :  { %2934 = vmatpush.bf16.msra.mxu0 %v8725_v50  ;;  %v8709_v31 = vor.u32 %v10878_v39, %v8706_v23  ;;  %v10870_v23 = vld [vmem:[#allocation7 + $0x884] sm:$0xf] }
 0x1bc   :  { %v1783_v33 = vpop.f32.mrf.mxu2  ;;  %v8677_v32 = vor.u32 %v10870_v23, %v8674_v30  ;;  %v10862_v23 = vld [vmem:[#allocation7 + $0x844] sm:$0xf]  ;;  %v8642_v30 = vld [vmem:[#allocation7 + $0x850] sm:$0xf0] }
 0x1bd   :  { %v1702_v36 = vpop.f32.mrf.mxu3 }
 0x1be   :  { %v1730_v41 = vadd.f32 %v1729_v57, %v1702_v36  ;;  %v8834_v36 = vld [vmem:[#allocation7 + $0x9d0] sm:$0xf0] }
 0x1bf   :  { %v1734_v45 = vpop.f32.mrf.mxu0  ;;  %2935 = vmatpush.bf16.msra.mxu0 %v8709_v31  ;;  %v10834_v31 = vld [vmem:[#allocation7 + $0x764] sm:$0xf] }
 0x1c0   :  { %v1757_v51 = vadd.f32 %v1756_v60, %v1730_v41  ;;  %v1761_v54 = vpop.f32.mrf.mxu1 }
 0x1c2   :  { %v11651_v7 = vadd.f32 %v1783_v33, %v1757_v51  ;;  %1949 = vmatmul.bf16.gmra.mxu0 %v11555_v47  ;;  %v10910_v33 = vld [vmem:[#allocation7 + $0x9c4] sm:$0xf] }
 0x1c3   :  { %1976 = vmatmul.bf16.gmra.mxu1 %v11559_v62  ;;  %v10926_v51 = vld [vmem:[#allocation7 + $0xa44] sm:$0xf] }
 0x1c4   :  { %v1785_v57 = vpop.f32.mrf.mxu2  ;;  %v8901_v59 = vor.u32 %v10926_v51, %v8898_v56  ;;  %v8882_v51 = vld [vmem:[#allocation7 + $0xa30] sm:$0xf0]  ;;  %v10866_v56 = vld [vmem:[#allocation7 + $0x864] sm:$0xf] }
 0x1c5   :  { %v1704_v38 = vpop.f32.mrf.mxu3 }
 0x1c6   :  { %v1732_v60 = vadd.f32 %v1731_v21, %v1704_v38  ;;  %v8837_v21 = vor.u32 %v10910_v33, %v8834_v36  ;;  %v8549_v38 = vor.u32 %v10838_v5, %v8546_v8  ;;  %2995 = vmatpush.bf16.msra.mxu2 %v8901_v59  ;;  %v8530_v33 = vld [vmem:[#allocation7 + $0x770] sm:$0xf0]  ;;  %v10902_v36 = vld [vmem:[#allocation7 + $0x984] sm:$0xf] }
 0x1c7   :  { %v1736_v9 = vpop.f32.mrf.mxu0  ;;  %v8658_v59 = vld [vmem:[#allocation7 + $0x870] sm:$0xf0] }
 0x1c8   :  { %v1759_v10 = vadd.f32 %v1758_v17, %v1732_v60  ;;  %v1763_v15 = vpop.f32.mrf.mxu1  ;;  %2963 = vmatpush.bf16.msra.mxu1 %v8837_v21  ;;  %v10906_v60 = vld [vmem:[#allocation7 + $0x9a4] sm:$0xf]  ;;  %v8818_v9 = vld [vmem:[#allocation7 + $0x9b0] sm:$0xf0]  ;;  %2909 = vmatpush.bf16.msra.mxu3 %v8549_v38  ;;  %v8533_v21 = vor.u32 %v10834_v31, %v8530_v33  ;;  %v8645_v33 = vor.u32 %v10862_v23, %v8642_v30 }
 0x1c9   :  { %8477 = vmatmul.msk.bf16.gmra.mxu2 %vm1563_vm1, %v11561_v63  ;;  %v8514_v5 = vld [vmem:[#allocation7 + $0x750] sm:$0xf0]  ;;  %v10898_v38 = vld [vmem:[#allocation7 + $0x964] sm:$0xf] }
 0x1ca   :  { %v11657_v16 = vadd.f32 %v1785_v57, %v1759_v10  ;;  %1922 = vmatmul.bf16.gmra.mxu3 %v11553_v46  ;;  %v8821_v10 = vor.u32 %v10906_v60, %v8818_v9  ;;  %v8786_v60 = vld [vmem:[#allocation7 + $0x970] sm:$0xf0]  ;;  %v10894_v31 = vld [vmem:[#allocation7 + $0x944] sm:$0xf] }
 0x1cc   :  { %v1788_v37 = vpop.f32.mrf.mxu2  ;;  %2964 = vmatpush.bf16.msra.mxu1 %v8821_v10  ;;  %2910 = vmatpush.bf16.msra.mxu3 %v8533_v21 }
 0x1cd   :  { %v1707_v13 = vpop.f32.mrf.mxu3 }
 0x1ce   :  { %v1735_v17 = vadd.f32 %v1734_v45, %v1707_v13  ;;  %v8693_v45 = vor.u32 %v10874_v58, %v8690_v2  ;;  %v10830_v2 = vld [vmem:[#allocation7 + $0x744] sm:$0xf] }
 0x1cf   :  { %v1828_v41 = vpop.f32.mrf.mxu0 }
 0x1d0   :  { %v1762_v44 = vadd.f32 %v1761_v54, %v1735_v17  ;;  %v1855_v11 = vpop.f32.mrf.mxu1  ;;  %2936 = vmatpush.bf16.msra.mxu0 %v8693_v45  ;;  %v8517_v45 = vor.u32 %v10830_v2, %v8514_v5 }
 0x1d1   :  { %v10922_v11 = vld [vmem:[#allocation7 + $0xa24] sm:$0xf] }
 0x1d2   :  { %v11660_v50 = vadd.f32 %v1788_v37, %v1762_v44  ;;  %2830 = vmatmul.bf16.vlgmr.msrb.gmra.mxu0 %v11504_v22  ;;  %v8802_v37 = vld [vmem:[#allocation7 + $0x990] sm:$0xf0]  ;;  %v8885_v58 = vor.u32 %v10922_v11, %v8882_v51  ;;  %2911 = vmatpush.bf16.msra.mxu3 %v8517_v45  ;;  %v10858_v11 = vld [vmem:[#allocation7 + $0x824] sm:$0xf] }
 0x1d3   :  { %2858 = vmatmul.bf16.vlgmr.msrb.gmra.mxu1 %v11508_v34  ;;  %v8805_v13 = vor.u32 %v10902_v36, %v8802_v37  ;;  %v8770_v36 = vld [vmem:[#allocation7 + $0x950] sm:$0xf0] }
 0x1d4   :  { %v1790_v57 = vpop.f32.mrf.mxu2  ;;  %2937 = vmatpush.bf16.msra.mxu0 %v8677_v32  ;;  %2996 = vmatpush.bf16.msra.mxu2 %v8885_v58  ;;  %v8773_v21 = vor.u32 %v10894_v31, %v8770_v36  ;;  %v10890_v58 = vld [vmem:[#allocation7 + $0x924] sm:$0xf] }
 0x1d5   :  { %v1709_v54 = vpop.f32.mrf.mxu3  ;;  %2965 = vmatpush.bf16.msra.mxu1 %v8805_v13  ;;  %v8661_v57 = vor.u32 %v10866_v56, %v8658_v59  ;;  %v8626_v56 = vld [vmem:[#allocation7 + $0x830] sm:$0xf0]  ;;  %v10918_v36 = vld [vmem:[#allocation7 + $0xa04] sm:$0xf] }
 0x1d6   :  { %v8789_v54 = vor.u32 %v10898_v38, %v8786_v60  ;;  %v8754_v59 = vld [vmem:[#allocation7 + $0x930] sm:$0xf0]  ;;  %v10886_v60 = vld [vmem:[#allocation7 + $0x904] sm:$0xf] }
 0x1d7   :  { %v1829_v15 = vpop.f32.mrf.mxu0  ;;  %v8757_v5 = vor.u32 %v10890_v58, %v8754_v59  ;;  %v8610_v38 = vld [vmem:[#allocation7 + $0x810] sm:$0xf0] }
 0x1d8   :  { %v1856_v39 = vpop.f32.mrf.mxu1  ;;  %2938 = vmatpush.bf16.msra.mxu0 %v8661_v57 }
 0x1d9   :  { %8926 = vmatmul.msk.bf16.vlgmr.msrb.gmra.mxu2 %vm1563_vm1, %v11510_v35  ;;  %2966 = vmatpush.bf16.msra.mxu1 %v8789_v54 }
 0x1da   :  { %2802 = vmatmul.bf16.vlgmr.msrb.gmra.mxu3 %v11502_v20 }
 0x1dc   :  { %v1882_v14 = vpop.f32.mrf.mxu2  ;;  %2939 = vmatpush.bf16.msra.mxu0 %v8645_v33 }
 0x1dd   :  { %v1801_v17 = vpop.f32.mrf.mxu3  ;;  %2967 = vmatpush.bf16.msra.mxu1 %v8773_v21  ;;  %v10822_v21 = vld [vmem:[#allocation7 + $0x704] sm:$0xf] }
 0x1de   :  { %v8498_v17 = vld [vmem:[#allocation7 + $0x730] sm:$0xf0] }
 0x1df   :  { %v1832_v41 = vpop.f32.mrf.mxu0 }
 0x1e0   :  { %v1859_v44 = vpop.f32.mrf.mxu1 }
 0x1e1   :  { %2968 = vmatpush.bf16.msra.mxu1 %v8757_v5  ;;  %v10853_v5 = vld [vmem:[#allocation7 + $0x7f4] sm:$0xf0] }
 0x1e2   :  { %2835 = vmatmul.bf16.gmra.mxu0 %v11517_v28 }
 0x1e3   :  { %2863 = vmatmul.bf16.gmra.mxu1 %v11521_v48 }
 0x1e4   :  { %v1883_v8 = vpop.f32.mrf.mxu2 }
 0x1e5   :  { %v1802_v9 = vpop.f32.mrf.mxu3 }
 0x1e6   :  { %v1830_v10 = vadd.f32 %v1829_v15, %v1802_v9  ;;  %v10826_v15 = vld [vmem:[#allocation7 + $0x724] sm:$0xf] }
 0x1e7   :  { %v1834_v32 = vpop.f32.mrf.mxu0  ;;  %v8501_v51 = vor.u32 %v10826_v15, %v8498_v17  ;;  %v8482_v15 = vld [vmem:[#allocation7 + $0x710] sm:$0xf0] }
 0x1e8   :  { %v1857_v37 = vadd.f32 %v1856_v39, %v1830_v10  ;;  %v1861_v14 = vpop.f32.mrf.mxu1  ;;  %v8629_v39 = vor.u32 %v10858_v11, %v8626_v56  ;;  %v8738_v10 = vld [vmem:[#allocation7 + $0x910] sm:$0xf0]  ;;  %v8485_v11 = vor.u32 %v10822_v21, %v8482_v15  ;;  %v8584_v21 = vld [vmem:[#allocation7 + $0x7c8] sm:$0xf] }
 0x1e9   :  { %8927 = vmatmul.msk.bf16.gmra.mxu2 %vm1563_vm1, %v11523_v49  ;;  %2912 = vmatpush.bf16.msra.mxu3 %v8501_v51  ;;  %v8741_v31 = vor.u32 %v10886_v60, %v8738_v10  ;;  %v10933_v60 = vld [vmem:[#allocation7 + $0xa74] sm:$0xf0]  ;;  %v8856_v15 = vld [vmem:[#allocation7 + $0x9e8] sm:$0xf] }
 0x1ea   :  { %v11671_v13 = vadd.f32 %v1883_v8, %v1857_v37  ;;  %2807 = vmatmul.bf16.gmra.mxu3 %v11515_v26  ;;  %2940 = vmatpush.bf16.msra.mxu0 %v8629_v39  ;;  %v10854_v8 = vld [vmem:[#allocation7 + $0x804] sm:$0xf]  ;;  %v8866_v37 = vld [vmem:[#allocation7 + $0xa10] sm:$0xf0]  ;;  %v8600_v39 = vld [vmem:[#allocation7 + $0x7e8] sm:$0xf] }
 0x1eb   :  { %v8613_v54 = vor.u32 %v10854_v8, %v8610_v38  ;;  %2969 = vmatpush.bf16.msra.mxu1 %v8741_v31  ;;  %v8920_v38 = vld [vmem:[#allocation7 + $0xa68] sm:$0xf] }
 0x1ec   :  { %v1886_v2 = vpop.f32.mrf.mxu2  ;;  %v8921_v10 = vor.u32 %v10933_v60, %v8920_v38  ;;  %v10881_v38 = vld [vmem:[#allocation7 + $0x8d4] sm:$0xf0]  ;;  %v8568_v60 = vld [vmem:[#allocation7 + $0x7a8] sm:$0xf] }
 0x1ed   :  { %v1805_v57 = vpop.f32.mrf.mxu3  ;;  %2913 = vmatpush.bf16.msra.mxu3 %v8485_v11  ;;  %v10917_v11 = vld [vmem:[#allocation7 + $0x9f4] sm:$0xf0] }
 0x1ee   :  { %v1833_v45 = vadd.f32 %v1832_v41, %v1805_v57  ;;  %v8869_v41 = vor.u32 %v10918_v36, %v8866_v37  ;;  %2941 = vmatpush.bf16.msra.mxu0 %v8613_v54  ;;  %v8601_v57 = vor.u32 %v10853_v5, %v8600_v39 }
 0x1ef   :  { %v1837_v9 = vpop.f32.mrf.mxu0 }
 0x1f0   :  { %v1860_v23 = vadd.f32 %v1859_v44, %v1833_v45  ;;  %v1864_v30 = vpop.f32.mrf.mxu1  ;;  %2997 = vmatpush.bf16.msra.mxu2 %v8869_v41  ;;  %v10849_v41 = vld [vmem:[#allocation7 + $0x7d4] sm:$0xf0] }
 0x1f1   :  { %3018 = vmatpush.bf16.msrb.mxu3 %v8601_v57 }
 0x1f2   :  { %v11674_v33 = vadd.f32 %v1886_v2, %v1860_v23  ;;  %2840 = vmatmul.bf16.gmra.mxu0 %v11538_v61 }
 0x1f3   :  { %2868 = vmatmul.bf16.gmra.mxu1 %v11546_v18 }
 0x1f4   :  { %v1888_v17 = vpop.f32.mrf.mxu2  ;;  %3106 = vmatpush.bf16.msrb.mxu2 %v8921_v10  ;;  %v8840_v10 = vld [vmem:[#allocation7 + $0x9c8] sm:$0xf] }
 0x1f5   :  { %v1807_v51 = vpop.f32.mrf.mxu3 }
 0x1f6   :  { %v1835_v44 = vadd.f32 %v1834_v32, %v1807_v51  ;;  %v8728_v32 = vld [vmem:[#allocation7 + $0x8e8] sm:$0xf] }
 0x1f7   :  { %v1839_v56 = vpop.f32.mrf.mxu0 }
 0x1f8   :  { %v1862_v58 = vadd.f32 %v1861_v14, %v1835_v44  ;;  %v1866_v59 = vpop.f32.mrf.mxu1  ;;  %v10885_v14 = vld [vmem:[#allocation7 + $0x8f4] sm:$0xf0]  ;;  %v8857_v44 = vor.u32 %v10917_v11, %v8856_v15 }
 0x1f9   :  { %8928 = vmatmul.msk.bf16.gmra.mxu2 %vm1563_vm1, %v11548_v19  ;;  %v8729_v31 = vor.u32 %v10885_v14, %v8728_v32  ;;  %v10913_v14 = vld [vmem:[#allocation7 + $0x9d4] sm:$0xf0] }
 0x1fa   :  { %v11680_v2 = vadd.f32 %v1888_v17, %v1862_v58  ;;  %2812 = vmatmul.bf16.gmra.mxu3 %v11536_v1  ;;  %v8585_v17 = vor.u32 %v10849_v41, %v8584_v21  ;;  %3074 = vmatpush.bf16.msrb.mxu1 %v8857_v44  ;;  %v8904_v44 = vld [vmem:[#allocation7 + $0xa48] sm:$0xf] }
 0x1fb   :  { %3046 = vmatpush.bf16.msrb.mxu0 %v8729_v31 }
 0x1fc   :  { %v1891_v45 = vpop.f32.mrf.mxu2  ;;  %3019 = vmatpush.bf16.msrb.mxu3 %v8585_v17 }
 0x1fd   :  { %v1810_v8 = vpop.f32.mrf.mxu3 }
 0x1fe   :  { %v1838_v54 = vadd.f32 %v1837_v9, %v1810_v8 }
 0x1ff   :  { %v1842_v23 = vpop.f32.mrf.mxu0 }
 0x200   :  { %v1865_v36 = vadd.f32 %v1864_v30, %v1838_v54  ;;  %v1869_v37 = vpop.f32.mrf.mxu1  ;;  %v10845_v54 = vld [vmem:[#allocation7 + $0x7b4] sm:$0xf0] }
 0x202   :  { %v11683_v51 = vadd.f32 %v1891_v45, %v1865_v36  ;;  %2845 = vmatmul.bf16.gmra.mxu0 %v11555_v47  ;;  %v8712_v45 = vld [vmem:[#allocation7 + $0x8c8] sm:$0xf]  ;;  %v8569_v36 = vor.u32 %v10845_v54, %v8568_v60 }
 0x203   :  { %2873 = vmatmul.bf16.gmra.mxu1 %v11559_v62  ;;  %v8713_v32 = vor.u32 %v10881_v38, %v8712_v45  ;;  %v8824_v60 = vld [vmem:[#allocation7 + $0x9a8] sm:$0xf] }
 0x204   :  { %v1893_v9 = vpop.f32.mrf.mxu2  ;;  %3020 = vmatpush.bf16.msrb.mxu3 %v8569_v36  ;;  %v10873_v36 = vld [vmem:[#allocation7 + $0x894] sm:$0xf0] }
 0x205   :  { %v1812_v58 = vpop.f32.mrf.mxu3  ;;  %3047 = vmatpush.bf16.msrb.mxu0 %v8713_v32  ;;  %v10909_v32 = vld [vmem:[#allocation7 + $0x9b4] sm:$0xf0] }
 0x206   :  { %v1840_v30 = vadd.f32 %v1839_v56, %v1812_v58  ;;  %v8841_v56 = vor.u32 %v10913_v14, %v8840_v10  ;;  %v8696_v58 = vld [vmem:[#allocation7 + $0x8a8] sm:$0xf]  ;;  %v8825_v54 = vor.u32 %v10909_v32, %v8824_v60  ;;  %v10833_v32 = vld [vmem:[#allocation7 + $0x754] sm:$0xf0] }
 0x207   :  { %v1844_v39 = vpop.f32.mrf.mxu0  ;;  %v8520_v60 = vld [vmem:[#allocation7 + $0x748] sm:$0xf] }
 0x208   :  { %v1867_v5 = vadd.f32 %v1866_v59, %v1840_v30  ;;  %v1871_v57 = vpop.f32.mrf.mxu1  ;;  %3075 = vmatpush.bf16.msrb.mxu1 %v8841_v56  ;;  %v10877_v39 = vld [vmem:[#allocation7 + $0x8b4] sm:$0xf0]  ;;  %v8536_v56 = vld [vmem:[#allocation7 + $0x768] sm:$0xf] }
 0x209   :  { %8929 = vmatmul.msk.bf16.gmra.mxu2 %vm1563_vm1, %v11561_v63  ;;  %v10841_v57 = vld [vmem:[#allocation7 + $0x794] sm:$0xf0] }
 0x20a   :  { %v11689_v8 = vadd.f32 %v1893_v9, %v1867_v5  ;;  %2817 = vmatmul.bf16.gmra.mxu3 %v11553_v46  ;;  %v10929_v9 = vld [vmem:[#allocation7 + $0xa54] sm:$0xf0]  ;;  %v8552_v5 = vld [vmem:[#allocation7 + $0x788] sm:$0xf] }
 0x20b   :  { %v8905_v30 = vor.u32 %v10929_v9, %v8904_v44  ;;  %v8553_v38 = vor.u32 %v10841_v57, %v8552_v5  ;;  %v8888_v5 = vld [vmem:[#allocation7 + $0xa28] sm:$0xf]  ;;  %v10925_v57 = vld [vmem:[#allocation7 + $0xa34] sm:$0xf0] }
 0x20c   :  { %v1896_v31 = vpop.f32.mrf.mxu2  ;;  %3076 = vmatpush.bf16.msrb.mxu1 %v8825_v54 }
 0x20d   :  { %v1815_v21 = vpop.f32.mrf.mxu3  ;;  %3107 = vmatpush.bf16.msrb.mxu2 %v8905_v30  ;;  %3021 = vmatpush.bf16.msrb.mxu3 %v8553_v38  ;;  %v10869_v38 = vld [vmem:[#allocation7 + $0x874] sm:$0xf0] }
 0x20e   :  { %v1843_v59 = vadd.f32 %v1842_v23, %v1815_v21  ;;  %v8697_v23 = vor.u32 %v10877_v39, %v8696_v58 }
 0x20f   :  { %v1936_v41 = vpop.f32.mrf.mxu0 }
 0x210   :  { %v1870_v15 = vadd.f32 %v1869_v37, %v1843_v59  ;;  %v1963_v17 = vpop.f32.mrf.mxu1  ;;  %3048 = vmatpush.bf16.msrb.mxu0 %v8697_v23  ;;  %v10837_v59 = vld [vmem:[#allocation7 + $0x774] sm:$0xf0]  ;;  %v8808_v41 = vld [vmem:[#allocation7 + $0x988] sm:$0xf]  ;;  %v8889_v23 = vor.u32 %v10925_v57, %v8888_v5 }
 0x211   :  { %v8537_v44 = vor.u32 %v10837_v59, %v8536_v56  ;;  %v10901_v56 = vld [vmem:[#allocation7 + $0x974] sm:$0xf0] }
 0x212   :  { %v11692_v11 = vadd.f32 %v1896_v31, %v1870_v15  ;;  %2942 = vmatmul.bf16.vlgmr.msra.gmra.mxu0 %v11504_v22  ;;  %v8680_v31 = vld [vmem:[#allocation7 + $0x888] sm:$0xf]  ;;  %v10905_v15 = vld [vmem:[#allocation7 + $0x994] sm:$0xf0]  ;;  %3108 = vmatpush.bf16.msrb.mxu2 %v8889_v23 }
 0x213   :  { %2970 = vmatmul.bf16.vlgmr.msra.gmra.mxu1 %v11508_v34  ;;  %v8681_v21 = vor.u32 %v10873_v36, %v8680_v31  ;;  %v8809_v9 = vor.u32 %v10905_v15, %v8808_v41  ;;  %3022 = vmatpush.bf16.msrb.mxu3 %v8537_v44  ;;  %v8521_v31 = vor.u32 %v10833_v32, %v8520_v60  ;;  %v8792_v36 = vld [vmem:[#allocation7 + $0x968] sm:$0xf]  ;;  %v10897_v5 = vld [vmem:[#allocation7 + $0x954] sm:$0xf0] }
 0x214   :  { %v1898_v45 = vpop.f32.mrf.mxu2  ;;  %v8793_v59 = vor.u32 %v10901_v56, %v8792_v36  ;;  %v8648_v15 = vld [vmem:[#allocation7 + $0x848] sm:$0xf]  ;;  %v10829_v23 = vld [vmem:[#allocation7 + $0x734] sm:$0xf0] }
 0x215   :  { %v1817_v37 = vpop.f32.mrf.mxu3  ;;  %3049 = vmatpush.bf16.msrb.mxu0 %v8681_v21  ;;  %3077 = vmatpush.bf16.msrb.mxu1 %v8809_v9  ;;  %v8664_v45 = vld [vmem:[#allocation7 + $0x868] sm:$0xf]  ;;  %v10861_v32 = vld [vmem:[#allocation7 + $0x834] sm:$0xf0] }
 0x216   :  { %v8665_v54 = vor.u32 %v10869_v38, %v8664_v45  ;;  %v8776_v44 = vld [vmem:[#allocation7 + $0x948] sm:$0xf] }
 0x217   :  { %v1937_v10 = vpop.f32.mrf.mxu0  ;;  %3023 = vmatpush.bf16.msrb.mxu3 %v8521_v31  ;;  %v8777_v42 = vor.u32 %v10897_v5, %v8776_v44  ;;  %v8632_v38 = vld [vmem:[#allocation7 + $0x828] sm:$0xf]  ;;  %v10893_v31 = vld [vmem:[#allocation7 + $0x934] sm:$0xf0] }
 0x218   :  { %v1964_v14 = vpop.f32.mrf.mxu1 }
 0x219   :  { %8930 = vmatmul.msk.bf16.vlgmr.msra.gmra.mxu2 %vm1563_vm1, %v11510_v35  ;;  %3050 = vmatpush.bf16.msrb.mxu0 %v8665_v54  ;;  %v8760_v54 = vld [vmem:[#allocation7 + $0x928] sm:$0xf] }
 0x21a   :  { %2914 = vmatmul.bf16.vlgmr.msra.gmra.mxu3 %v11502_v20  ;;  %3078 = vmatpush.bf16.msrb.mxu1 %v8793_v59  ;;  %v8761_v56 = vor.u32 %v10893_v31, %v8760_v54 }
 0x21c   :  { %v1990_v17 = vpop.f32.mrf.mxu2 }
 0x21d   :  { %v1909_v58 = vpop.f32.mrf.mxu3  ;;  %v10865_v17 = vld [vmem:[#allocation7 + $0x854] sm:$0xf0] }
 0x21e   :  { %v8649_v58 = vor.u32 %v10865_v17, %v8648_v15  ;;  %3079 = vmatpush.bf16.msrb.mxu1 %v8777_v42  ;;  %v8744_v15 = vld [vmem:[#allocation7 + $0x908] sm:$0xf] }
 0x21f   :  { %v1940_v30 = vpop.f32.mrf.mxu0 }
 0x220   :  { %v1967_v39 = vpop.f32.mrf.mxu1  ;;  %3051 = vmatpush.bf16.msrb.mxu0 %v8649_v58  ;;  %v10889_v58 = vld [vmem:[#allocation7 + $0x914] sm:$0xf0] }
 0x222   :  { %2947 = vmatmul.bf16.gmra.mxu0 %v11517_v28  ;;  %3080 = vmatpush.bf16.msrb.mxu1 %v8761_v56 }
 0x223   :  { %2975 = vmatmul.bf16.gmra.mxu1 %v11521_v48 }
 0x224   :  { %v1991_v37 = vpop.f32.mrf.mxu2 }
 0x225   :  { %v1910_v21 = vpop.f32.mrf.mxu3 }
 0x226   :  { %v1938_v41 = vadd.f32 %v1937_v10, %v1910_v21  ;;  %v8504_v10 = vld [vmem:[#allocation7 + $0x728] sm:$0xf] }
 0x227   :  { %v1942_v9 = vpop.f32.mrf.mxu0  ;;  %v8505_v60 = vor.u32 %v10829_v23, %v8504_v10  ;;  %v8872_v23 = vld [vmem:[#allocation7 + $0xa08] sm:$0xf] }
 0x228   :  { %v1965_v57 = vadd.f32 %v1964_v14, %v1938_v41  ;;  %v1969_v43 = vpop.f32.mrf.mxu1  ;;  %v8633_v14 = vor.u32 %v10861_v32, %v8632_v38  ;;  %v10857_v41 = vld [vmem:[#allocation7 + $0x814] sm:$0xf0]  ;;  %v8488_v32 = vld [vmem:[#allocation7 + $0x708] sm:$0xf] }
 0x229   :  { %8931 = vmatmul.msk.bf16.gmra.mxu2 %vm1563_vm1, %v11523_v49  ;;  %3024 = vmatpush.bf16.msrb.mxu3 %v8505_v60  ;;  %v10921_v38 = vld [vmem:[#allocation7 + $0xa14] sm:$0xf0] }
 0x22a   :  { %v11703_v45 = vadd.f32 %v1991_v37, %v1965_v57  ;;  %2919 = vmatmul.bf16.gmra.mxu3 %v11515_v26  ;;  %3052 = vmatpush.bf16.msrb.mxu0 %v8633_v14  ;;  %v8616_v37 = vld [vmem:[#allocation7 + $0x808] sm:$0xf]  ;;  %v8745_v57 = vor.u32 %v10889_v58, %v8744_v15  ;;  %v10825_v60 = vld [vmem:[#allocation7 + $0x714] sm:$0xf0] }
 0x22b   :  { %v8617_v44 = vor.u32 %v10857_v41, %v8616_v37  ;;  %v8489_v31 = vor.u32 %v10825_v60, %v8488_v32  ;;  %v10851_v37 = vld [vmem:[#allocation7 + $0x7ec] sm:$0xf]  ;;  %v8602_v41 = vld [vmem:[#allocation7 + $0x7f8] sm:$0xf0] }
 0x22c   :  { %v1994_v36 = vpop.f32.mrf.mxu2  ;;  %3081 = vmatpush.bf16.msrb.mxu1 %v8745_v57  ;;  %v8605_v15 = vor.u32 %v10851_v37, %v8602_v41  ;;  %v10847_v37 = vld [vmem:[#allocation7 + $0x7cc] sm:$0xf]  ;;  %v8586_v41 = vld [vmem:[#allocation7 + $0x7d8] sm:$0xf0] }
 0x22d   :  { %v1913_v21 = vpop.f32.mrf.mxu3  ;;  %3025 = vmatpush.bf16.msrb.mxu3 %v8489_v31 }
 0x22e   :  { %v1941_v59 = vadd.f32 %v1940_v30, %v1913_v21  ;;  %v8873_v30 = vor.u32 %v10921_v38, %v8872_v23  ;;  %3053 = vmatpush.bf16.msrb.mxu0 %v8617_v44 }
 0x22f   :  { %v1945_v17 = vpop.f32.mrf.mxu0 }
 0x230   :  { %v1968_v5 = vadd.f32 %v1967_v39, %v1941_v59  ;;  %v1972_v42 = vpop.f32.mrf.mxu1  ;;  %3109 = vmatpush.bf16.msrb.mxu2 %v8873_v30 }
 0x231   :  { %3130 = vmatpush.bf16.msra.mxu3 %v8605_v15 }
 0x232   :  { %v11706_v10 = vadd.f32 %v1994_v36, %v1968_v5  ;;  %2952 = vmatmul.bf16.gmra.mxu0 %v11538_v61 }
 0x233   :  { %2980 = vmatmul.bf16.gmra.mxu1 %v11546_v18 }
 0x234   :  { %v1996_v54 = vpop.f32.mrf.mxu2 }
 0x235   :  { %v1915_v14 = vpop.f32.mrf.mxu3 }
 0x236   :  { %v1943_v39 = vadd.f32 %v1942_v9, %v1915_v14  ;;  %v10931_v14 = vld [vmem:[#allocation7 + $0xa6c] sm:$0xf] }
 0x237   :  { %v1947_v56 = vpop.f32.mrf.mxu0 }
 0x238   :  { %v1970_v36 = vadd.f32 %v1969_v43, %v1943_v39  ;;  %v1974_v21 = vpop.f32.mrf.mxu1  ;;  %v8922_v39 = vld [vmem:[#allocation7 + $0xa78] sm:$0xf0] }
 0x239   :  { %8932 = vmatmul.msk.bf16.gmra.mxu2 %vm1563_vm1, %v11548_v19 }
 0x23a   :  { %v11712_v59 = vadd.f32 %v1996_v54, %v1970_v36  ;;  %2924 = vmatmul.bf16.gmra.mxu3 %v11536_v1  ;;  %v10883_v36 = vld [vmem:[#allocation7 + $0x8ec] sm:$0xf] }
 0x23c   :  { %v1999_v44 = vpop.f32.mrf.mxu2 }
 0x23d   :  { %v1918_v58 = vpop.f32.mrf.mxu3 }
 0x23e   :  { %v1946_v5 = vadd.f32 %v1945_v17, %v1918_v58  ;;  %v8925_v17 = vor.u32 %v10931_v14, %v8922_v39  ;;  %v8589_v58 = vor.u32 %v10847_v37, %v8586_v41  ;;  %v10879_v39 = vld [vmem:[#allocation7 + $0x8cc] sm:$0xf] }
 0x23f   :  { %v1950_v57 = vpop.f32.mrf.mxu0 }
 0x240   :  { %v1973_v9 = vadd.f32 %v1972_v42, %v1946_v5  ;;  %v1977_v23 = vpop.f32.mrf.mxu1  ;;  %v8730_v42 = vld [vmem:[#allocation7 + $0x8f8] sm:$0xf0]  ;;  %3218 = vmatpush.bf16.msra.mxu2 %v8925_v17  ;;  %3131 = vmatpush.bf16.msra.mxu3 %v8589_v58 }
 0x241   :  { %v8858_v5 = vld [vmem:[#allocation7 + $0x9f8] sm:$0xf0] }
 0x242   :  { %v11715_v38 = vadd.f32 %v1999_v44, %v1973_v9  ;;  %2957 = vmatmul.bf16.gmra.mxu0 %v11555_v47  ;;  %v8733_v44 = vor.u32 %v10883_v36, %v8730_v42  ;;  %v10911_v36 = vld [vmem:[#allocation7 + $0x9cc] sm:$0xf]  ;;  %v8842_v42 = vld [vmem:[#allocation7 + $0x9d8] sm:$0xf0] }
 0x243   :  { %2985 = vmatmul.bf16.gmra.mxu1 %v11559_v62  ;;  %v8845_v41 = vor.u32 %v10911_v36, %v8842_v42 }
 0x244   :  { %v2001_v43 = vpop.f32.mrf.mxu2  ;;  %3158 = vmatpush.bf16.msra.mxu0 %v8733_v44 }
 0x245   :  { %v1920_v32 = vpop.f32.mrf.mxu3 }
 0x246   :  { %v1948_v30 = vadd.f32 %v1947_v56, %v1920_v32  ;;  %v10915_v56 = vld [vmem:[#allocation7 + $0x9ec] sm:$0xf] }
 0x247   :  { %v1952_v60 = vpop.f32.mrf.mxu0 }
 0x248   :  { %v1975_v54 = vadd.f32 %v1974_v21, %v1948_v30  ;;  %v1979_v31 = vpop.f32.mrf.mxu1  ;;  %v8861_v21 = vor.u32 %v10915_v56, %v8858_v5  ;;  %v10927_v56 = vld [vmem:[#allocation7 + $0xa4c] sm:$0xf]  ;;  %v8906_v5 = vld [vmem:[#allocation7 + $0xa58] sm:$0xf0] }
 0x249   :  { %8933 = vmatmul.msk.bf16.gmra.mxu2 %vm1563_vm1, %v11561_v63 }
 0x24a   :  { %v11721_v15 = vadd.f32 %v2001_v43, %v1975_v54  ;;  %2929 = vmatmul.bf16.gmra.mxu3 %v11553_v46  ;;  %3186 = vmatpush.bf16.msra.mxu1 %v8861_v21  ;;  %v8714_v43 = vld [vmem:[#allocation7 + $0x8d8] sm:$0xf0]  ;;  %v10843_v54 = vld [vmem:[#allocation7 + $0x7ac] sm:$0xf] }
 0x24b   :  { %v8717_v6 = vor.u32 %v10879_v39, %v8714_v43  ;;  %v8573_v17 = vor.u32 %v10843_v54, %v8570_v3  ;;  %v10875_v21 = vld [vmem:[#allocation7 + $0x8ac] sm:$0xf]  ;;  %v8554_v3 = vld [vmem:[#allocation7 + $0x798] sm:$0xf0] }
 0x24c   :  { %v2004_v9 = vpop.f32.mrf.mxu2  ;;  %v10907_v39 = vld [vmem:[#allocation7 + $0x9ac] sm:$0xf]  ;;  %v8826_v43 = vld [vmem:[#allocation7 + $0x9b8] sm:$0xf0] }
 0x24d   :  { %v1923_v32 = vpop.f32.mrf.mxu3  ;;  %3159 = vmatpush.bf16.msra.mxu0 %v8717_v6  ;;  %3132 = vmatpush.bf16.msra.mxu3 %v8573_v17  ;;  %v8829_v54 = vor.u32 %v10907_v39, %v8826_v43  ;;  %v8794_v43 = vld [vmem:[#allocation7 + $0x978] sm:$0xf0] }
 0x24e   :  { %v1951_v30 = vadd.f32 %v1950_v57, %v1923_v32  ;;  %3187 = vmatpush.bf16.msra.mxu1 %v8845_v41  ;;  %v8698_v32 = vld [vmem:[#allocation7 + $0x8b8] sm:$0xf0]  ;;  %v10871_v41 = vld [vmem:[#allocation7 + $0x88c] sm:$0xf] }
 0x24f   :  { %v2831_v60 = vpop.f32.mrf.mxu0 }
 0x250   :  { %v1978_v31 = vadd.f32 %v1977_v23, %v1951_v30  ;;  %v2859_v14 = vpop.f32.mrf.mxu1  ;;  %v10839_v30 = vld [vmem:[#allocation7 + $0x78c] sm:$0xf] }
 0x251   :  { %v8557_v6 = vor.u32 %v10839_v30, %v8554_v3 }
 0x252   :  { %v11724_v37 = vadd.f32 %v2004_v9, %v1978_v31  ;;  %3054 = vmatmul.bf16.vlgmr.msrb.gmra.mxu0 %v11504_v22  ;;  %v8909_v9 = vor.u32 %v10927_v56, %v8906_v5  ;;  %v8701_v31 = vor.u32 %v10875_v21, %v8698_v32  ;;  %3188 = vmatpush.bf16.msra.mxu1 %v8829_v54  ;;  %v10835_v21 = vld [vmem:[#allocation7 + $0x76c] sm:$0xf]  ;;  %v8538_v32 = vld [vmem:[#allocation7 + $0x778] sm:$0xf0] }
 0x253   :  { %3082 = vmatmul.bf16.vlgmr.msrb.gmra.mxu1 %v11508_v34  ;;  %3133 = vmatpush.bf16.msra.mxu3 %v8557_v6  ;;  %v10899_v6 = vld [vmem:[#allocation7 + $0x96c] sm:$0xf] }
 0x254   :  { %v2006_v57 = vpop.f32.mrf.mxu2  ;;  %3219 = vmatpush.bf16.msra.mxu2 %v8909_v9  ;;  %3160 = vmatpush.bf16.msra.mxu0 %v8701_v31  ;;  %v8541_v9 = vor.u32 %v10835_v21, %v8538_v32  ;;  %v10867_v31 = vld [vmem:[#allocation7 + $0x86c] sm:$0xf]  ;;  %v8797_v54 = vor.u32 %v10899_v6, %v8794_v43  ;;  %v8634_v43 = vld [vmem:[#allocation7 + $0x838] sm:$0xf0] }
 0x255   :  { %v1925_v23 = vpop.f32.mrf.mxu3  ;;  %v8682_v57 = vld [vmem:[#allocation7 + $0x898] sm:$0xf0]  ;;  %v10923_v32 = vld [vmem:[#allocation7 + $0xa2c] sm:$0xf] }
 0x256   :  { %v10903_v23 = vld [vmem:[#allocation7 + $0x98c] sm:$0xf]  ;;  %v8685_v5 = vor.u32 %v10871_v41, %v8682_v57 }
 0x257   :  { %v2833_v44 = vpop.f32.mrf.mxu0  ;;  %v8813_v30 = vor.u32 %v10903_v23, %v8810_v12  ;;  %3134 = vmatpush.bf16.msra.mxu3 %v8541_v9  ;;  %v8778_v23 = vld [vmem:[#allocation7 + $0x958] sm:$0xf0] }
 0x258   :  { %v2861_v58 = vpop.f32.mrf.mxu1  ;;  %3161 = vmatpush.bf16.msra.mxu0 %v8685_v5 }
 0x259   :  { %8934 = vmatmul.msk.bf16.vlgmr.msrb.gmra.mxu2 %vm1563_vm1, %v11510_v35  ;;  %3189 = vmatpush.bf16.msra.mxu1 %v8813_v30  ;;  %v8890_v30 = vld [vmem:[#allocation7 + $0xa38] sm:$0xf0] }
 0x25a   :  { %3026 = vmatmul.bf16.vlgmr.msrb.gmra.mxu3 %v11502_v20  ;;  %v8893_v9 = vor.u32 %v10923_v32, %v8890_v30  ;;  %v8746_v30 = vld [vmem:[#allocation7 + $0x918] sm:$0xf0] }
 0x25c   :  { %v2887_v36 = vpop.f32.mrf.mxu2  ;;  %3220 = vmatpush.bf16.msra.mxu2 %v8893_v9 }
 0x25d   :  { %v2803_v42 = vpop.f32.mrf.mxu3  ;;  %3190 = vmatpush.bf16.msra.mxu1 %v8797_v54  ;;  %v10891_v54 = vld [vmem:[#allocation7 + $0x92c] sm:$0xf] }
 0x25e   :  { %v2832_v17 = vadd.f32 %v2831_v60, %v2803_v42  ;;  %v8666_v60 = vld [vmem:[#allocation7 + $0x878] sm:$0xf0] }
 0x25f   :  { %v2836_v56 = vpop.f32.mrf.mxu0  ;;  %v8669_v39 = vor.u32 %v10867_v31, %v8666_v60  ;;  %v10831_v31 = vld [vmem:[#allocation7 + $0x74c] sm:$0xf]  ;;  %v8522_v60 = vld [vmem:[#allocation7 + $0x758] sm:$0xf0] }
 0x260   :  { %v2860_v24 = vadd.f32 %v2859_v14, %v2832_v17  ;;  %v2864_v55 = vpop.f32.mrf.mxu1  ;;  %v10863_v17 = vld [vmem:[#allocation7 + $0x84c] sm:$0xf]  ;;  %v8525_v6 = vor.u32 %v10831_v31, %v8522_v60 }
 0x261   :  { %3162 = vmatpush.bf16.msra.mxu0 %v8669_v39  ;;  %v10859_v39 = vld [vmem:[#allocation7 + $0x82c] sm:$0xf] }
 0x262   :  { %v11731_v3 = vadd.f32 %v2887_v36, %v2860_v24  ;;  %3059 = vmatmul.bf16.gmra.mxu0 %v11517_v28  ;;  %v8650_v24 = vld [vmem:[#allocation7 + $0x858] sm:$0xf0]  ;;  %v10895_v36 = vld [vmem:[#allocation7 + $0x94c] sm:$0xf]  ;;  %3135 = vmatpush.bf16.msra.mxu3 %v8525_v6 }
 0x263   :  { %3087 = vmatmul.bf16.gmra.mxu1 %v11521_v48  ;;  %v8653_v57 = vor.u32 %v10863_v17, %v8650_v24  ;;  %v10827_v60 = vld [vmem:[#allocation7 + $0x72c] sm:$0xf] }
 0x264   :  { %13175 = vst [vmem:[#allocation20_spill] sm:$0xff] %v11731_v3  ;;  %v2889_v14 = vpop.f32.mrf.mxu2  ;;  %v8781_v3 = vor.u32 %v10895_v36, %v8778_v23  ;;  %v8618_v23 = vld [vmem:[#allocation7 + $0x818] sm:$0xf0]  ;;  %v10919_v6 = vld [vmem:[#allocation7 + $0xa0c] sm:$0xf] }
 0x265   :  { %v2805_v42 = vpop.f32.mrf.mxu3  ;;  %3163 = vmatpush.bf16.msra.mxu0 %v8653_v57 }
 0x266   :  { %v2834_v12 = vadd.f32 %v2833_v44, %v2805_v42  ;;  %3191 = vmatpush.bf16.msra.mxu1 %v8781_v3  ;;  %v8762_v42 = vld [vmem:[#allocation7 + $0x938] sm:$0xf0] }
 0x267   :  { %v2838_v41 = vpop.f32.mrf.mxu0  ;;  %v8765_v24 = vor.u32 %v10891_v54, %v8762_v42  ;;  %v8874_v54 = vld [vmem:[#allocation7 + $0xa18] sm:$0xf0] }
 0x268   :  { %v2862_v5 = vadd.f32 %v2861_v58, %v2834_v12  ;;  %v2866_v21 = vpop.f32.mrf.mxu1  ;;  %v8637_v58 = vor.u32 %v10859_v39, %v8634_v43  ;;  %v8506_v39 = vld [vmem:[#allocation7 + $0x738] sm:$0xf0] }
 0x269   :  { %8935 = vmatmul.msk.bf16.gmra.mxu2 %vm1563_vm1, %v11523_v49 }
 0x26a   :  { %v2890_v44 = vadd.f32 %v2889_v14, %v2862_v5  ;;  %3031 = vmatmul.bf16.gmra.mxu3 %v11515_v26  ;;  %3164 = vmatpush.bf16.msra.mxu0 %v8637_v58  ;;  %v10855_v14 = vld [vmem:[#allocation7 + $0x80c] sm:$0xf] }
 0x26b   :  { %3192 = vmatpush.bf16.msra.mxu1 %v8765_v24  ;;  %v10887_v5 = vld [vmem:[#allocation7 + $0x90c] sm:$0xf]  ;;  %v8621_v32 = vor.u32 %v10855_v14, %v8618_v23  ;;  %v8490_v24 = vld [vmem:[#allocation7 + $0x718] sm:$0xf0] }
 0x26c   :  { %v11739_v12 = vadd.f32 %v2890_v44, %v11599_v40  ;;  %v2892_v17 = vpop.f32.mrf.mxu2  ;;  %v8749_v43 = vor.u32 %v10887_v5, %v8746_v30  ;;  %v8509_v40 = vor.u32 %v10827_v60, %v8506_v39  ;;  %v10823_v58 = vld [vmem:[#allocation7 + $0x70c] sm:$0xf]  ;;  %v10964_v30 = vld [vmem:[#allocation7 + $0xb6c] sm:$0xf0] }
 0x26d   :  { %v2808_v36 = vpop.f32.mrf.mxu3 }
 0x26e   :  { %v2837_v57 = vadd.f32 %v2836_v56, %v2808_v36  ;;  %3165 = vmatpush.bf16.msra.mxu0 %v8621_v32  ;;  %3136 = vmatpush.bf16.msra.mxu3 %v8509_v40  ;;  %v9056_v32 = vld [vmem:[#allocation7 + $0xb60] sm:$0xf] }
 0x26f   :  { %v2841_v3 = vpop.f32.mrf.mxu0  ;;  %3193 = vmatpush.bf16.msra.mxu1 %v8749_v43 }
 0x270   :  { %v2865_v31 = vadd.f32 %v2864_v55, %v2837_v57  ;;  %v2869_v9 = vpop.f32.mrf.mxu1  ;;  %v8877_v55 = vor.u32 %v10919_v6, %v8874_v54  ;;  %v8493_v57 = vor.u32 %v10823_v58, %v8490_v24 }
 0x272   :  { %v11741_v44 = vadd.f32 %v2892_v17, %v2865_v31  ;;  %3064 = vmatmul.bf16.gmra.mxu0 %v11538_v61  ;;  %3221 = vmatpush.bf16.msra.mxu2 %v8877_v55  ;;  %v9057_v31 = vor.u32 %v10964_v30, %v9056_v32  ;;  %v9040_v32 = vld [vmem:[#allocation7 + $0xb40] sm:$0xf] }
 0x273   :  { %3092 = vmatmul.bf16.gmra.mxu1 %v11546_v18  ;;  %3137 = vmatpush.bf16.msra.mxu3 %v8493_v57  ;;  %v9376_v57 = vld [vmem:[#allocation7 + $0xde0] sm:$0xf] }
 0x274   :  { %v2894_v56 = vpop.f32.mrf.mxu2 }
 0x275   :  { %v2810_v42 = vpop.f32.mrf.mxu3 }
 0x276   :  { %v2839_v36 = vadd.f32 %v2838_v41, %v2810_v42 }
 0x277   :  { %v2843_v14 = vpop.f32.mrf.mxu0  ;;  %3915 = vmatpush.bf16.msrb.mxu3 %v9057_v31  ;;  %v10960_v31 = vld [vmem:[#allocation7 + $0xb4c] sm:$0xf0] }
 0x278   :  { %v2867_v23 = vadd.f32 %v2866_v21, %v2839_v36  ;;  %v2871_v17 = vpop.f32.mrf.mxu1 }
 0x279   :  { %8936 = vmatmul.msk.bf16.gmra.mxu2 %vm1563_vm1, %v11548_v19 }
 0x27a   :  { %v2895_v5 = vadd.f32 %v2894_v56, %v2867_v23  ;;  %3036 = vmatmul.bf16.gmra.mxu3 %v11536_v1  ;;  %v11044_v23 = vld [vmem:[#allocation7 + $0xdec] sm:$0xf0] }
 0x27c   :  { %v11749_v60 = vadd.f32 %v2895_v5, %v11619_v0  ;;  %v2897_v39 = vpop.f32.mrf.mxu2  ;;  %v10996_v5 = vld [vmem:[#allocation7 + $0xc6c] sm:$0xf0] }
 0x27d   :  { %v2813_v41 = vpop.f32.mrf.mxu3 }
 0x27e   :  { %v2842_v43 = vadd.f32 %v2841_v3, %v2813_v41  ;;  %v9377_v3 = vor.u32 %v11044_v23, %v9376_v57  ;;  %v11028_v41 = vld [vmem:[#allocation7 + $0xd6c] sm:$0xf0]  ;;  %v9024_v23 = vld [vmem:[#allocation7 + $0xb20] sm:$0xf] }
 0x27f   :  { %v2846_v40 = vpop.f32.mrf.mxu0 }
 0x280   :  { %v2870_v21 = vadd.f32 %v2869_v9, %v2842_v43  ;;  %v2874_v6 = vpop.f32.mrf.mxu1  ;;  %v9184_v9 = vld [vmem:[#allocation7 + $0xc60] sm:$0xf]  ;;  %4000 = vmatpush.bf16.msrb.mxu2 %v9377_v3 }
 0x281   :  { %v9296_v3 = vld [vmem:[#allocation7 + $0xd40] sm:$0xf] }
 0x282   :  { %v2898_v54 = vadd.f32 %v2897_v39, %v2870_v21  ;;  %3069 = vmatmul.bf16.gmra.mxu0 %v11555_v47  ;;  %v9312_v39 = vld [vmem:[#allocation7 + $0xd60] sm:$0xf] }
 0x283   :  { %3097 = vmatmul.bf16.gmra.mxu1 %v11559_v62 }
 0x284   :  { %v11754_v56 = vadd.f32 %v2898_v54, %v11623_v27  ;;  %v2899_v58 = vpop.f32.mrf.mxu2  ;;  %v9185_v27 = vor.u32 %v10996_v5, %v9184_v9  ;;  %v10956_v9 = vld [vmem:[#allocation7 + $0xb2c] sm:$0xf0] }
 0x285   :  { %v2815_v42 = vpop.f32.mrf.mxu3 }
 0x286   :  { %v2844_v55 = vadd.f32 %v2843_v14, %v2815_v42  ;;  %v9041_v14 = vor.u32 %v10960_v31, %v9040_v32  ;;  %3942 = vmatpush.bf16.msrb.mxu0 %v9185_v27  ;;  %v11024_v32 = vld [vmem:[#allocation7 + $0xd4c] sm:$0xf0] }
 0x287   :  { %v2848_v0 = vpop.f32.mrf.mxu0 }
 0x288   :  { %v2872_v24 = vadd.f32 %v2871_v17, %v2844_v55  ;;  %v2876_v36 = vpop.f32.mrf.mxu1  ;;  %v9313_v17 = vor.u32 %v11028_v41, %v9312_v39  ;;  %3916 = vmatpush.bf16.msrb.mxu3 %v9041_v14  ;;  %v9360_v39 = vld [vmem:[#allocation7 + $0xdc0] sm:$0xf]  ;;  %v11040_v41 = vld [vmem:[#allocation7 + $0xdcc] sm:$0xf0] }
 0x289   :  { %8937 = vmatmul.msk.bf16.gmra.mxu2 %vm1563_vm1, %v11561_v63  ;;  %v10992_v36 = vld [vmem:[#allocation7 + $0xc4c] sm:$0xf0]  ;;  %v9152_v14 = vld [vmem:[#allocation7 + $0xc20] sm:$0xf] }
 0x28a   :  { %v2900_v30 = vadd.f32 %v2899_v58, %v2872_v24  ;;  %3041 = vmatmul.bf16.gmra.mxu3 %v11553_v46  ;;  %3969 = vmatpush.bf16.msrb.mxu1 %v9313_v17  ;;  %v9168_v24 = vld [vmem:[#allocation7 + $0xc40] sm:$0xf]  ;;  %v9361_v17 = vor.u32 %v11040_v41, %v9360_v39  ;;  %v11016_v41 = vld [vmem:[#allocation7 + $0xd0c] sm:$0xf0] }
 0x28b   :  { %v9169_v57 = vor.u32 %v10992_v36, %v9168_v24  ;;  %v9280_v36 = vld [vmem:[#allocation7 + $0xd20] sm:$0xf] }
 0x28c   :  { %v11760_v43 = vadd.f32 %v2900_v30, %v11628_v53  ;;  %v2902_v21 = vpop.f32.mrf.mxu2  ;;  %v9025_v53 = vor.u32 %v10956_v9, %v9024_v23  ;;  %v9297_v30 = vor.u32 %v11024_v32, %v9296_v3  ;;  %4001 = vmatpush.bf16.msrb.mxu2 %v9361_v17  ;;  %v9136_v32 = vld [vmem:[#allocation7 + $0xc00] sm:$0xf] }
 0x28d   :  { %v2818_v54 = vpop.f32.mrf.mxu3  ;;  %3943 = vmatpush.bf16.msrb.mxu0 %v9169_v57  ;;  %v11020_v57 = vld [vmem:[#allocation7 + $0xd2c] sm:$0xf0] }
 0x28e   :  { %13176 = vst [vmem:[#allocation21_spill] sm:$0xff] %v11760_v43  ;;  %v2847_v42 = vadd.f32 %v2846_v40, %v2818_v54  ;;  %3917 = vmatpush.bf16.msrb.mxu3 %v9025_v53  ;;  %3970 = vmatpush.bf16.msrb.mxu1 %v9297_v30  ;;  %v9008_v54 = vld [vmem:[#allocation7 + $0xb00] sm:$0xf]  ;;  %v9281_v23 = vor.u32 %v11020_v57, %v9280_v36  ;;  %v10984_v30 = vld [vmem:[#allocation7 + $0xc0c] sm:$0xf0] }
 0x28f   :  { %v2943_v55 = vpop.f32.mrf.mxu0  ;;  %v9137_v39 = vor.u32 %v10984_v30, %v9136_v32  ;;  %v11012_v57 = vld [vmem:[#allocation7 + $0xcec] sm:$0xf0]  ;;  %v9232_v30 = vld [vmem:[#allocation7 + $0xcc0] sm:$0xf] }
 0x290   :  { %v2875_v58 = vadd.f32 %v2874_v6, %v2847_v42  ;;  %v2971_v0 = vpop.f32.mrf.mxu1  ;;  %v10952_v42 = vld [vmem:[#allocation7 + $0xb0c] sm:$0xf0] }
 0x291   :  { %v9009_v24 = vor.u32 %v10952_v42, %v9008_v54 }
 0x292   :  { %v11762_v5 = vadd.f32 %v2902_v21, %v2875_v58  ;;  %3166 = vmatmul.bf16.vlgmr.msra.gmra.mxu0 %v11504_v22  ;;  %v10988_v21 = vld [vmem:[#allocation7 + $0xc2c] sm:$0xf0]  ;;  %3971 = vmatpush.bf16.msrb.mxu1 %v9281_v23 }
 0x293   :  { %3194 = vmatmul.bf16.vlgmr.msra.gmra.mxu1 %v11508_v34  ;;  %v9153_v58 = vor.u32 %v10988_v21, %v9152_v14  ;;  %3918 = vmatpush.bf16.msrb.mxu3 %v9009_v24  ;;  %v8992_v14 = vld [vmem:[#allocation7 + $0xae0] sm:$0xf]  ;;  %v10948_v21 = vld [vmem:[#allocation7 + $0xaec] sm:$0xf0] }
 0x294   :  { %13177 = vst [vmem:[#allocation22_spill] sm:$0xff] %v11762_v5  ;;  %v2904_v40 = vpop.f32.mrf.mxu2  ;;  %v8993_v17 = vor.u32 %v10948_v21, %v8992_v14  ;;  %v9248_v24 = vld [vmem:[#allocation7 + $0xce0] sm:$0xf] }
 0x295   :  { %v2820_v6 = vpop.f32.mrf.mxu3  ;;  %3944 = vmatpush.bf16.msrb.mxu0 %v9153_v58  ;;  %v9264_v40 = vld [vmem:[#allocation7 + $0xd00] sm:$0xf] }
 0x296   :  { %v9265_v54 = vor.u32 %v11016_v41, %v9264_v40  ;;  %v9120_v58 = vld [vmem:[#allocation7 + $0xbe0] sm:$0xf]  ;;  %v11008_v41 = vld [vmem:[#allocation7 + $0xccc] sm:$0xf0] }
 0x297   :  { %v2945_v27 = vpop.f32.mrf.mxu0  ;;  %3919 = vmatpush.bf16.msrb.mxu3 %v8993_v17  ;;  %v11036_v17 = vld [vmem:[#allocation7 + $0xdac] sm:$0xf0] }
 0x298   :  { %v2973_v31 = vpop.f32.mrf.mxu1  ;;  %3972 = vmatpush.bf16.msrb.mxu1 %v9265_v54  ;;  %v9344_v54 = vld [vmem:[#allocation7 + $0xda0] sm:$0xf] }
 0x299   :  { %8938 = vmatmul.msk.bf16.vlgmr.msra.gmra.mxu2 %vm1563_vm1, %v11510_v35  ;;  %3945 = vmatpush.bf16.msrb.mxu0 %v9137_v39 }
 0x29a   :  { %3138 = vmatmul.bf16.vlgmr.msra.gmra.mxu3 %v11502_v20 }
 0x29c   :  { %v2999_v9 = vpop.f32.mrf.mxu2 }
 0x29d   :  { %v2915_v3 = vpop.f32.mrf.mxu3 }
 0x29e   :  { %v2944_v53 = vadd.f32 %v2943_v55, %v2915_v3  ;;  %v10980_v55 = vld [vmem:[#allocation7 + $0xbec] sm:$0xf0]  ;;  %v9249_v3 = vor.u32 %v11012_v57, %v9248_v24 }
 0x29f   :  { %v2948_v6 = vpop.f32.mrf.mxu0  ;;  %v9121_v36 = vor.u32 %v10980_v55, %v9120_v58  ;;  %v9233_v58 = vor.u32 %v11008_v41, %v9232_v30  ;;  %v10944_v55 = vld [vmem:[#allocation7 + $0xacc] sm:$0xf0] }
 0x2a0   :  { %v2972_v5 = vadd.f32 %v2971_v0, %v2944_v53  ;;  %v11769_v43 = vpop.f32.mrf.mxu1  ;;  %3973 = vmatpush.bf16.msrb.mxu1 %v9249_v3  ;;  %v10972_v57 = vld [vmem:[#allocation7 + $0xbac] sm:$0xf0]  ;;  %v9216_v3 = vld [vmem:[#allocation7 + $0xca0] sm:$0xf] }
 0x2a1   :  { %3946 = vmatpush.bf16.msrb.mxu0 %v9121_v36  ;;  %v9088_v36 = vld [vmem:[#allocation7 + $0xba0] sm:$0xf]  ;;  %v10968_v41 = vld [vmem:[#allocation7 + $0xb8c] sm:$0xf0] }
 0x2a2   :  { %v3000_v42 = vadd.f32 %v2999_v9, %v2972_v5  ;;  %3171 = vmatmul.bf16.gmra.mxu0 %v11517_v28  ;;  %v9104_v5 = vld [vmem:[#allocation7 + $0xbc0] sm:$0xf]  ;;  %v10976_v9 = vld [vmem:[#allocation7 + $0xbcc] sm:$0xf0] }
 0x2a3   :  { %3199 = vmatmul.bf16.gmra.mxu1 %v11521_v48  ;;  %v9105_v39 = vor.u32 %v10976_v9, %v9104_v5 }
 0x2a4   :  { %v11774_v0 = vadd.f32 %v3000_v42, %v11639_v25  ;;  %v3001_v23 = vpop.f32.mrf.mxu2  ;;  %v9345_v25 = vor.u32 %v11036_v17, %v9344_v54  ;;  %v8976_v42 = vld [vmem:[#allocation7 + $0xac0] sm:$0xf]  ;;  %3974 = vmatpush.bf16.msrb.mxu1 %v9233_v58  ;;  %v11000_v58 = vld [vmem:[#allocation7 + $0xc8c] sm:$0xf0] }
 0x2a5   :  { %v2917_v53 = vpop.f32.mrf.mxu3  ;;  %3947 = vmatpush.bf16.msrb.mxu0 %v9105_v39  ;;  %v8977_v24 = vor.u32 %v10944_v55, %v8976_v42  ;;  %v8960_v55 = vld [vmem:[#allocation7 + $0xaa0] sm:$0xf] }
 0x2a6   :  { %13178 = vst [vmem:[#allocation23_spill] sm:$0xff] %v11774_v0  ;;  %v2946_v32 = vadd.f32 %v2945_v27, %v2917_v53  ;;  %4002 = vmatpush.bf16.msrb.mxu2 %v9345_v25  ;;  %v11004_v53 = vld [vmem:[#allocation7 + $0xcac] sm:$0xf0] }
 0x2a7   :  { %v2950_v40 = vpop.f32.mrf.mxu0  ;;  %3920 = vmatpush.bf16.msrb.mxu3 %v8977_v24  ;;  %v9217_v9 = vor.u32 %v11004_v53, %v9216_v3  ;;  %v9328_v3 = vld [vmem:[#allocation7 + $0xd80] sm:$0xf] }
 0x2a8   :  { %v2974_v14 = vadd.f32 %v2973_v31, %v2946_v32  ;;  %v2978_v21 = vpop.f32.mrf.mxu1  ;;  %v9089_v31 = vor.u32 %v10972_v57, %v9088_v36  ;;  %v10940_v36 = vld [vmem:[#allocation7 + $0xaac] sm:$0xf0] }
 0x2a9   :  { %8939 = vmatmul.msk.bf16.gmra.mxu2 %vm1563_vm1, %v11523_v49  ;;  %3975 = vmatpush.bf16.msrb.mxu1 %v9217_v9 }
 0x2aa   :  { %v3002_v27 = vadd.f32 %v3001_v23, %v2974_v14  ;;  %3143 = vmatmul.bf16.gmra.mxu3 %v11515_v26  ;;  %3948 = vmatpush.bf16.msrb.mxu0 %v9089_v31  ;;  %v9072_v23 = vld [vmem:[#allocation7 + $0xb80] sm:$0xf]  ;;  %v11032_v31 = vld [vmem:[#allocation7 + $0xd8c] sm:$0xf0] }
 0x2ab   :  { %v9200_v14 = vld [vmem:[#allocation7 + $0xc80] sm:$0xf]  ;;  %v9073_v17 = vor.u32 %v10968_v41, %v9072_v23  ;;  %v9329_v9 = vor.u32 %v11032_v31, %v9328_v3 }
 0x2ac   :  { %v11780_v32 = vadd.f32 %v3002_v27, %v11642_v4  ;;  %v3004_v5 = vpop.f32.mrf.mxu2  ;;  %v9201_v4 = vor.u32 %v11000_v58, %v9200_v14  ;;  %v8961_v27 = vor.u32 %v10940_v36, %v8960_v55  ;;  %v9058_v58 = vld [vmem:[#allocation7 + $0xb70] sm:$0xf0] }
 0x2ad   :  { %v2920_v30 = vpop.f32.mrf.mxu3  ;;  %4003 = vmatpush.bf16.msrb.mxu2 %v9329_v9 }
 0x2ae   :  { %v2949_v39 = vadd.f32 %v2948_v6, %v2920_v30  ;;  %3949 = vmatpush.bf16.msrb.mxu0 %v9073_v17  ;;  %3976 = vmatpush.bf16.msrb.mxu1 %v9201_v4  ;;  %v10936_v30 = vld [vmem:[#allocation7 + $0xa8c] sm:$0xf0] }
 0x2af   :  { %v2953_v54 = vpop.f32.mrf.mxu0  ;;  %3921 = vmatpush.bf16.msrb.mxu3 %v8961_v27 }
 0x2b0   :  { %v2977_v25 = vadd.f32 %v11769_v43, %v2949_v39  ;;  %v2981_v42 = vpop.f32.mrf.mxu1  ;;  %v8944_v43 = vld [vmem:[#allocation7 + $0xa80] sm:$0xf] }
 0x2b1   :  { %v8945_v23 = vor.u32 %v10936_v30, %v8944_v43 }
 0x2b2   :  { %v3005_v24 = vadd.f32 %v3004_v5, %v2977_v25  ;;  %3176 = vmatmul.bf16.gmra.mxu0 %v11538_v61 }
 0x2b3   :  { %3204 = vmatmul.bf16.gmra.mxu1 %v11546_v18  ;;  %3922 = vmatpush.bf16.msrb.mxu3 %v8945_v23  ;;  %v9378_v23 = vld [vmem:[#allocation7 + $0xdf0] sm:$0xf0] }
 0x2b4   :  { %v11786_v6 = vadd.f32 %v3005_v24, %v11648_v29  ;;  %v3006_v57 = vpop.f32.mrf.mxu2  ;;  %v10962_v29 = vld [vmem:[#allocation7 + $0xb64] sm:$0xf] }
 0x2b5   :  { %v2922_v53 = vpop.f32.mrf.mxu3  ;;  %v9061_v25 = vor.u32 %v10962_v29, %v9058_v58  ;;  %v9042_v58 = vld [vmem:[#allocation7 + $0xb50] sm:$0xf0] }
 0x2b6   :  { %v2951_v39 = vadd.f32 %v2950_v40, %v2922_v53 }
 0x2b7   :  { %v2955_v41 = vpop.f32.mrf.mxu0  ;;  %4023 = vmatpush.bf16.msra.mxu3 %v9061_v25  ;;  %v11026_v25 = vld [vmem:[#allocation7 + $0xd64] sm:$0xf] }
 0x2b8   :  { %v2979_v5 = vadd.f32 %v2978_v21, %v2951_v39  ;;  %v2983_v14 = vpop.f32.mrf.mxu1  ;;  %v11042_v39 = vld [vmem:[#allocation7 + $0xde4] sm:$0xf] }
 0x2b9   :  { %8940 = vmatmul.msk.bf16.gmra.mxu2 %vm1563_vm1, %v11548_v19 }
 0x2ba   :  { %v3007_v17 = vadd.f32 %v3006_v57, %v2979_v5  ;;  %3148 = vmatmul.bf16.gmra.mxu3 %v11536_v1  ;;  %v9186_v5 = vld [vmem:[#allocation7 + $0xc70] sm:$0xf0] }
 0x2bc   :  { %v11792_v55 = vadd.f32 %v3007_v17, %v11651_v7  ;;  %v3009_v36 = vpop.f32.mrf.mxu2  ;;  %v10958_v17 = vld [vmem:[#allocation7 + $0xb44] sm:$0xf] }
 0x2bd   :  { %v2925_v40 = vpop.f32.mrf.mxu3 }
 0x2be   :  { %v2954_v4 = vadd.f32 %v2953_v54, %v2925_v40  ;;  %v9381_v54 = vor.u32 %v11042_v39, %v9378_v23  ;;  %v10954_v39 = vld [vmem:[#allocation7 + $0xb24] sm:$0xf]  ;;  %v9026_v23 = vld [vmem:[#allocation7 + $0xb30] sm:$0xf0] }
 0x2bf   :  { %v2958_v27 = vpop.f32.mrf.mxu0 }
 0x2c0   :  { %v2982_v21 = vadd.f32 %v2981_v42, %v2954_v4  ;;  %v2986_v24 = vpop.f32.mrf.mxu1  ;;  %v10994_v42 = vld [vmem:[#allocation7 + $0xc64] sm:$0xf]  ;;  %4108 = vmatpush.bf16.msra.mxu2 %v9381_v54 }
 0x2c1   :  { %v11022_v54 = vld [vmem:[#allocation7 + $0xd44] sm:$0xf] }
 0x2c2   :  { %v3010_v3 = vadd.f32 %v3009_v36, %v2982_v21  ;;  %3181 = vmatmul.bf16.gmra.mxu0 %v11555_v47  ;;  %v9314_v36 = vld [vmem:[#allocation7 + $0xd70] sm:$0xf0] }
 0x2c3   :  { %3209 = vmatmul.bf16.gmra.mxu1 %v11559_v62 }
 0x2c4   :  { %v11797_v57 = vadd.f32 %v3010_v3, %v11657_v16  ;;  %v3011_v31 = vpop.f32.mrf.mxu2  ;;  %v9189_v16 = vor.u32 %v10994_v42, %v9186_v5  ;;  %v9298_v5 = vld [vmem:[#allocation7 + $0xd50] sm:$0xf0] }
 0x2c5   :  { %v2927_v43 = vpop.f32.mrf.mxu3 }
 0x2c6   :  { %v2956_v53 = vadd.f32 %v2955_v41, %v2927_v43  ;;  %v9045_v41 = vor.u32 %v10958_v17, %v9042_v58  ;;  %4050 = vmatpush.bf16.msra.mxu0 %v9189_v16  ;;  %v9301_v17 = vor.u32 %v11022_v54, %v9298_v5  ;;  %v11038_v58 = vld [vmem:[#allocation7 + $0xdc4] sm:$0xf]  ;;  %v9138_v5 = vld [vmem:[#allocation7 + $0xc10] sm:$0xf0] }
 0x2c7   :  { %v2960_v7 = vpop.f32.mrf.mxu0 }
 0x2c8   :  { %v2984_v9 = vadd.f32 %v2983_v14, %v2956_v53  ;;  %v2988_v30 = vpop.f32.mrf.mxu1  ;;  %v9317_v14 = vor.u32 %v11026_v25, %v9314_v36  ;;  %4024 = vmatpush.bf16.msra.mxu3 %v9045_v41  ;;  %v10990_v7 = vld [vmem:[#allocation7 + $0xc44] sm:$0xf]  ;;  %v9362_v25 = vld [vmem:[#allocation7 + $0xdd0] sm:$0xf0] }
 0x2c9   :  { %8941 = vmatmul.msk.bf16.gmra.mxu2 %vm1563_vm1, %v11561_v63  ;;  %v10986_v36 = vld [vmem:[#allocation7 + $0xc24] sm:$0xf]  ;;  %v9365_v41 = vor.u32 %v11038_v58, %v9362_v25  ;;  %v9266_v58 = vld [vmem:[#allocation7 + $0xd10] sm:$0xf0] }
 0x2ca   :  { %v3012_v29 = vadd.f32 %v3011_v31, %v2984_v9  ;;  %3153 = vmatmul.bf16.gmra.mxu3 %v11553_v46  ;;  %4077 = vmatpush.bf16.msra.mxu1 %v9317_v14  ;;  %v9170_v9 = vld [vmem:[#allocation7 + $0xc50] sm:$0xf0] }
 0x2cb   :  { %v9173_v30 = vor.u32 %v10990_v7, %v9170_v9  ;;  %v9154_v14 = vld [vmem:[#allocation7 + $0xc30] sm:$0xf0]  ;;  %v11018_v7 = vld [vmem:[#allocation7 + $0xd24] sm:$0xf]  ;;  %4109 = vmatpush.bf16.msra.mxu2 %v9365_v41 }
 0x2cc   :  { %v11803_v40 = vadd.f32 %v3012_v29, %v11660_v50  ;;  %v3014_v4 = vpop.f32.mrf.mxu2  ;;  %v9029_v50 = vor.u32 %v10954_v39, %v9026_v23  ;;  %v9282_v9 = vld [vmem:[#allocation7 + $0xd30] sm:$0xf0] }
 0x2cd   :  { %v2930_v21 = vpop.f32.mrf.mxu3  ;;  %4051 = vmatpush.bf16.msra.mxu0 %v9173_v30  ;;  %v9285_v30 = vor.u32 %v11018_v7, %v9282_v9  ;;  %v9250_v9 = vld [vmem:[#allocation7 + $0xcf0] sm:$0xf0] }
 0x2ce   :  { %13179 = vst [vmem:[#allocation24_spill] sm:$0xff] %v11803_v40  ;;  %v2959_v3 = vadd.f32 %v2958_v27, %v2930_v21  ;;  %4025 = vmatpush.bf16.msra.mxu3 %v9029_v50  ;;  %4078 = vmatpush.bf16.msra.mxu1 %v9301_v17  ;;  %v9010_v21 = vld [vmem:[#allocation7 + $0xb10] sm:$0xf0]  ;;  %v10982_v50 = vld [vmem:[#allocation7 + $0xc04] sm:$0xf]  ;;  %v13213_v40 = vld [vmem:[#allocation16_spill] sm:$0xff] }
 0x2cf   :  { %v3055_v43 = vpop.f32.mrf.mxu0  ;;  %v11014_v17 = vld [vmem:[#allocation7 + $0xd04] sm:$0xf] }
 0x2d0   :  { %v2987_v31 = vadd.f32 %v2986_v24, %v2959_v3  ;;  %v3083_v53 = vpop.f32.mrf.mxu1  ;;  %v9157_v3 = vor.u32 %v10986_v36, %v9154_v14  ;;  %v10946_v36 = vld [vmem:[#allocation7 + $0xae4] sm:$0xf]  ;;  %v8994_v14 = vld [vmem:[#allocation7 + $0xaf0] sm:$0xf0] }
 0x2d1   :  { %v8997_v41 = vor.u32 %v10946_v36, %v8994_v14 }
 0x2d2   :  { %v11805_v42 = vadd.f32 %v3014_v4, %v2987_v31  ;;  %3950 = vmatmul.bf16.vlgmr.msrb.gmra.mxu0 %v11504_v22  ;;  %v10950_v4 = vld [vmem:[#allocation7 + $0xb04] sm:$0xf]  ;;  %4079 = vmatpush.bf16.msra.mxu1 %v9285_v30 }
 0x2d3   :  { %3977 = vmatmul.bf16.vlgmr.msrb.gmra.mxu1 %v11508_v34  ;;  %v9013_v31 = vor.u32 %v10950_v4, %v9010_v21  ;;  %4052 = vmatpush.bf16.msra.mxu0 %v9157_v3  ;;  %v9269_v4 = vor.u32 %v11014_v17, %v9266_v58  ;;  %v10978_v3 = vld [vmem:[#allocation7 + $0xbe4] sm:$0xf] }
 0x2d4   :  { %13180 = vst [vmem:[#allocation25_spill] sm:$0xff] %v11805_v42  ;;  %v3016_v27 = vpop.f32.mrf.mxu2  ;;  %v11006_v17 = vld [vmem:[#allocation7 + $0xcc4] sm:$0xf] }
 0x2d5   :  { %v2932_v24 = vpop.f32.mrf.mxu3  ;;  %4026 = vmatpush.bf16.msra.mxu3 %v9013_v31  ;;  %v11010_v31 = vld [vmem:[#allocation7 + $0xce4] sm:$0xf] }
 0x2d6   :  { %v9141_v24 = vor.u32 %v10982_v50, %v9138_v5  ;;  %4080 = vmatpush.bf16.msra.mxu1 %v9269_v4  ;;  %v9106_v5 = vld [vmem:[#allocation7 + $0xbd0] sm:$0xf0]  ;;  %v11034_v4 = vld [vmem:[#allocation7 + $0xda4] sm:$0xf] }
 0x2d7   :  { %v3057_v29 = vpop.f32.mrf.mxu0 }
 0x2d8   :  { %v3085_v16 = vpop.f32.mrf.mxu1  ;;  %4053 = vmatpush.bf16.msra.mxu0 %v9141_v24 }
 0x2d9   :  { %9390 = vmatmul.msk.bf16.vlgmr.msrb.gmra.mxu2 %vm1563_vm1, %v11510_v35  ;;  %4027 = vmatpush.bf16.msra.mxu3 %v8997_v41  ;;  %v9346_v41 = vld [vmem:[#allocation7 + $0xdb0] sm:$0xf0] }
 0x2da   :  { %3923 = vmatmul.bf16.vlgmr.msrb.gmra.mxu3 %v11502_v20 }
 0x2dc   :  { %v3111_v39 = vpop.f32.mrf.mxu2 }
 0x2dd   :  { %v3027_v23 = vpop.f32.mrf.mxu3 }
 0x2de   :  { %v3056_v54 = vadd.f32 %v3055_v43, %v3027_v23  ;;  %v9122_v43 = vld [vmem:[#allocation7 + $0xbf0] sm:$0xf0]  ;;  %v9253_v23 = vor.u32 %v11010_v31, %v9250_v9 }
 0x2df   :  { %v3060_v27 = vpop.f32.mrf.mxu0  ;;  %v9125_v7 = vor.u32 %v10978_v3, %v9122_v43  ;;  %v8978_v43 = vld [vmem:[#allocation7 + $0xad0] sm:$0xf0] }
 0x2e0   :  { %v3084_v25 = vadd.f32 %v3083_v53, %v3056_v54  ;;  %v11812_v42 = vpop.f32.mrf.mxu1  ;;  %4081 = vmatpush.bf16.msra.mxu1 %v9253_v23  ;;  %v9090_v9 = vld [vmem:[#allocation7 + $0xbb0] sm:$0xf0]  ;;  %v11002_v23 = vld [vmem:[#allocation7 + $0xca4] sm:$0xf] }
 0x2e1   :  { %4054 = vmatpush.bf16.msra.mxu0 %v9125_v7  ;;  %v10970_v7 = vld [vmem:[#allocation7 + $0xba4] sm:$0xf] }
 0x2e2   :  { %v3112_v21 = vadd.f32 %v3111_v39, %v3084_v25  ;;  %3955 = vmatmul.bf16.gmra.mxu0 %v11517_v28  ;;  %v10974_v39 = vld [vmem:[#allocation7 + $0xbc4] sm:$0xf]  ;;  %v9234_v25 = vld [vmem:[#allocation7 + $0xcd0] sm:$0xf0] }
 0x2e3   :  { %3982 = vmatmul.bf16.gmra.mxu1 %v11521_v48  ;;  %v9109_v58 = vor.u32 %v10974_v39, %v9106_v5  ;;  %v9237_v3 = vor.u32 %v11006_v17, %v9234_v25  ;;  %v9074_v25 = vld [vmem:[#allocation7 + $0xb90] sm:$0xf0] }
 0x2e4   :  { %v11817_v53 = vadd.f32 %v3112_v21, %v11671_v13  ;;  %v3113_v30 = vpop.f32.mrf.mxu2  ;;  %v9349_v13 = vor.u32 %v11034_v4, %v9346_v41  ;;  %v10942_v21 = vld [vmem:[#allocation7 + $0xac4] sm:$0xf] }
 0x2e5   :  { %v3029_v54 = vpop.f32.mrf.mxu3  ;;  %4055 = vmatpush.bf16.msra.mxu0 %v9109_v58  ;;  %v8981_v31 = vor.u32 %v10942_v21, %v8978_v43  ;;  %4082 = vmatpush.bf16.msra.mxu1 %v9237_v3  ;;  %v9202_v3 = vld [vmem:[#allocation7 + $0xc90] sm:$0xf0]  ;;  %v10938_v43 = vld [vmem:[#allocation7 + $0xaa4] sm:$0xf] }
 0x2e6   :  { %13181 = vst [vmem:[#allocation26_spill] sm:$0xff] %v11817_v53  ;;  %v3058_v50 = vadd.f32 %v3057_v29, %v3029_v54  ;;  %4110 = vmatpush.bf16.msra.mxu2 %v9349_v13  ;;  %v9218_v54 = vld [vmem:[#allocation7 + $0xcb0] sm:$0xf0] }
 0x2e7   :  { %v3062_v24 = vpop.f32.mrf.mxu0  ;;  %4028 = vmatpush.bf16.msra.mxu3 %v8981_v31  ;;  %v9221_v5 = vor.u32 %v11002_v23, %v9218_v54  ;;  %v11030_v23 = vld [vmem:[#allocation7 + $0xd84] sm:$0xf] }
 0x2e8   :  { %v3086_v36 = vadd.f32 %v3085_v16, %v3058_v50  ;;  %v3090_v14 = vpop.f32.mrf.mxu1  ;;  %v9093_v16 = vor.u32 %v10970_v7, %v9090_v9  ;;  %v8962_v7 = vld [vmem:[#allocation7 + $0xab0] sm:$0xf0] }
 0x2e9   :  { %9391 = vmatmul.msk.bf16.gmra.mxu2 %vm1563_vm1, %v11523_v49  ;;  %4083 = vmatpush.bf16.msra.mxu1 %v9221_v5 }
 0x2ea   :  { %v3114_v29 = vadd.f32 %v3113_v30, %v3086_v36  ;;  %3928 = vmatmul.bf16.gmra.mxu3 %v11515_v26  ;;  %4056 = vmatpush.bf16.msra.mxu0 %v9093_v16  ;;  %v10966_v30 = vld [vmem:[#allocation7 + $0xb84] sm:$0xf]  ;;  %v9330_v16 = vld [vmem:[#allocation7 + $0xd90] sm:$0xf0] }
 0x2eb   :  { %v10998_v36 = vld [vmem:[#allocation7 + $0xc84] sm:$0xf]  ;;  %v9077_v41 = vor.u32 %v10966_v30, %v9074_v25  ;;  %v9333_v5 = vor.u32 %v11030_v23, %v9330_v16 }
 0x2ec   :  { %v11823_v50 = vadd.f32 %v3114_v29, %v11674_v33  ;;  %v3116_v39 = vpop.f32.mrf.mxu2  ;;  %v9205_v33 = vor.u32 %v10998_v36, %v9202_v3  ;;  %v8965_v29 = vor.u32 %v10938_v43, %v8962_v7  ;;  %v10965_v3 = vld [vmem:[#allocation7 + $0xb74] sm:$0xf0] }
 0x2ed   :  { %v3032_v17 = vpop.f32.mrf.mxu3  ;;  %4111 = vmatpush.bf16.msra.mxu2 %v9333_v5 }
 0x2ee   :  { %13182 = vst [vmem:[#allocation27_spill] sm:$0xff] %v11823_v50  ;;  %v3061_v58 = vadd.f32 %v3060_v27, %v3032_v17  ;;  %4057 = vmatpush.bf16.msra.mxu0 %v9077_v41  ;;  %4084 = vmatpush.bf16.msra.mxu1 %v9205_v33  ;;  %v8946_v17 = vld [vmem:[#allocation7 + $0xa90] sm:$0xf0] }
 0x2ef   :  { %v3065_v4 = vpop.f32.mrf.mxu0  ;;  %4029 = vmatpush.bf16.msra.mxu3 %v8965_v29 }
 0x2f0   :  { %v3089_v13 = vadd.f32 %v11812_v42, %v3061_v58  ;;  %v3093_v21 = vpop.f32.mrf.mxu1  ;;  %v10934_v42 = vld [vmem:[#allocation7 + $0xa84] sm:$0xf] }
 0x2f1   :  { %v8949_v30 = vor.u32 %v10934_v42, %v8946_v17 }
 0x2f2   :  { %v3117_v31 = vadd.f32 %v3116_v39, %v3089_v13  ;;  %3960 = vmatmul.bf16.gmra.mxu0 %v11538_v61 }
 0x2f3   :  { %3987 = vmatmul.bf16.gmra.mxu1 %v11546_v18  ;;  %4030 = vmatpush.bf16.msra.mxu3 %v8949_v30  ;;  %v11045_v30 = vld [vmem:[#allocation7 + $0xdf4] sm:$0xf0] }
 0x2f4   :  { %v11829_v27 = vadd.f32 %v3117_v31, %v11680_v2  ;;  %v3118_v9 = vpop.f32.mrf.mxu2  ;;  %v9064_v2 = vld [vmem:[#allocation7 + $0xb68] sm:$0xf] }
 0x2f5   :  { %v3034_v54 = vpop.f32.mrf.mxu3  ;;  %v9065_v13 = vor.u32 %v10965_v3, %v9064_v2  ;;  %v10961_v3 = vld [vmem:[#allocation7 + $0xb54] sm:$0xf0] }
 0x2f6   :  { %13183 = vst [vmem:[#allocation28_spill] sm:$0xff] %v11829_v27  ;;  %v3063_v58 = vadd.f32 %v3062_v24, %v3034_v54  ;;  %v10782_v27 = vld [vmem:[#allocation7 + $0x5c4] sm:$0xf] }
 0x2f7   :  { %v3067_v25 = vpop.f32.mrf.mxu0  ;;  %4131 = vmatpush.bf16.msrb.mxu3 %v9065_v13  ;;  %v9320_v13 = vld [vmem:[#allocation7 + $0xd68] sm:$0xf] }
 0x2f8   :  { %v3091_v39 = vadd.f32 %v3090_v14, %v3063_v58  ;;  %v3095_v36 = vpop.f32.mrf.mxu1  ;;  %v9384_v58 = vld [vmem:[#allocation7 + $0xde8] sm:$0xf] }
 0x2f9   :  { %9392 = vmatmul.msk.bf16.gmra.mxu2 %vm1563_vm1, %v11548_v19 }
 0x2fa   :  { %v3119_v41 = vadd.f32 %v3118_v9, %v3091_v39  ;;  %3933 = vmatmul.bf16.gmra.mxu3 %v11536_v1  ;;  %v10997_v39 = vld [vmem:[#allocation7 + $0xc74] sm:$0xf0] }
 0x2fc   :  { %v11835_v43 = vadd.f32 %v3119_v41, %v11683_v51  ;;  %v3121_v7 = vpop.f32.mrf.mxu2  ;;  %v9048_v41 = vld [vmem:[#allocation7 + $0xb48] sm:$0xf] }
 0x2fd   :  { %v3037_v24 = vpop.f32.mrf.mxu3 }
 0x2fe   :  { %13184 = vst [vmem:[#allocation29_spill] sm:$0xff] %v11835_v43  ;;  %v3066_v33 = vadd.f32 %v3065_v4, %v3037_v24  ;;  %v9385_v4 = vor.u32 %v11045_v30, %v9384_v58  ;;  %v9032_v58 = vld [vmem:[#allocation7 + $0xb28] sm:$0xf]  ;;  %v10957_v30 = vld [vmem:[#allocation7 + $0xb34] sm:$0xf0] }
 0x2ff   :  { %v3070_v29 = vpop.f32.mrf.mxu0 }
 0x300   :  { %v3094_v14 = vadd.f32 %v3093_v21, %v3066_v33  ;;  %v3098_v31 = vpop.f32.mrf.mxu1  ;;  %v9192_v21 = vld [vmem:[#allocation7 + $0xc68] sm:$0xf]  ;;  %4216 = vmatpush.bf16.msrb.mxu2 %v9385_v4 }
 0x301   :  { %v9304_v4 = vld [vmem:[#allocation7 + $0xd48] sm:$0xf] }
 0x302   :  { %v3122_v23 = vadd.f32 %v3121_v7, %v3094_v14  ;;  %3965 = vmatmul.bf16.gmra.mxu0 %v11555_v47  ;;  %v11029_v7 = vld [vmem:[#allocation7 + $0xd74] sm:$0xf0] }
 0x303   :  { %3992 = vmatmul.bf16.gmra.mxu1 %v11559_v62 }
 0x304   :  { %v11840_v9 = vadd.f32 %v3122_v23, %v11689_v8  ;;  %v3123_v16 = vpop.f32.mrf.mxu2  ;;  %v9193_v8 = vor.u32 %v10997_v39, %v9192_v21  ;;  %v11025_v39 = vld [vmem:[#allocation7 + $0xd54] sm:$0xf0] }
 0x305   :  { %v3039_v42 = vpop.f32.mrf.mxu3 }
 0x306   :  { %13185 = vst [vmem:[#allocation30_spill] sm:$0xff] %v11840_v9  ;;  %v3068_v54 = vadd.f32 %v3067_v25, %v3039_v42  ;;  %v9049_v25 = vor.u32 %v10961_v3, %v9048_v41  ;;  %4158 = vmatpush.bf16.msrb.mxu0 %v9193_v8  ;;  %v9305_v41 = vor.u32 %v11025_v39, %v9304_v4  ;;  %v9368_v3 = vld [vmem:[#allocation7 + $0xdc8] sm:$0xf]  ;;  %v10985_v39 = vld [vmem:[#allocation7 + $0xc14] sm:$0xf0] }
 0x307   :  { %v3072_v51 = vpop.f32.mrf.mxu0 }
 0x308   :  { %v3096_v5 = vadd.f32 %v3095_v36, %v3068_v54  ;;  %v3100_v17 = vpop.f32.mrf.mxu1  ;;  %v9321_v36 = vor.u32 %v11029_v7, %v9320_v13  ;;  %4132 = vmatpush.bf16.msrb.mxu3 %v9049_v25  ;;  %v9176_v51 = vld [vmem:[#allocation7 + $0xc48] sm:$0xf]  ;;  %v11041_v13 = vld [vmem:[#allocation7 + $0xdd4] sm:$0xf0] }
 0x309   :  { %9393 = vmatmul.msk.bf16.gmra.mxu2 %vm1563_vm1, %v11561_v63  ;;  %v9160_v7 = vld [vmem:[#allocation7 + $0xc28] sm:$0xf]  ;;  %v9369_v25 = vor.u32 %v11041_v13, %v9368_v3  ;;  %v11017_v3 = vld [vmem:[#allocation7 + $0xd14] sm:$0xf0] }
 0x30a   :  { %v3124_v2 = vadd.f32 %v3123_v16, %v3096_v5  ;;  %3938 = vmatmul.bf16.gmra.mxu3 %v11553_v46  ;;  %4185 = vmatpush.bf16.msrb.mxu1 %v9321_v36  ;;  %v10993_v5 = vld [vmem:[#allocation7 + $0xc54] sm:$0xf0] }
 0x30b   :  { %v9177_v17 = vor.u32 %v10993_v5, %v9176_v51  ;;  %v10989_v36 = vld [vmem:[#allocation7 + $0xc34] sm:$0xf0]  ;;  %v9288_v51 = vld [vmem:[#allocation7 + $0xd28] sm:$0xf]  ;;  %4217 = vmatpush.bf16.msrb.mxu2 %v9369_v25 }
 0x30c   :  { %v11846_v24 = vadd.f32 %v3124_v2, %v11692_v11  ;;  %v3126_v33 = vpop.f32.mrf.mxu2  ;;  %v9033_v11 = vor.u32 %v10957_v30, %v9032_v58  ;;  %v11021_v5 = vld [vmem:[#allocation7 + $0xd34] sm:$0xf0] }
 0x30d   :  { %v3042_v14 = vpop.f32.mrf.mxu3  ;;  %4159 = vmatpush.bf16.msrb.mxu0 %v9177_v17  ;;  %v9289_v17 = vor.u32 %v11021_v5, %v9288_v51  ;;  %v11013_v5 = vld [vmem:[#allocation7 + $0xcf4] sm:$0xf0] }
 0x30e   :  { %13186 = vst [vmem:[#allocation31_spill] sm:$0xff] %v11846_v24  ;;  %v3071_v23 = vadd.f32 %v3070_v29, %v3042_v14  ;;  %4133 = vmatpush.bf16.msrb.mxu3 %v9033_v11  ;;  %4186 = vmatpush.bf16.msrb.mxu1 %v9305_v41  ;;  %v10953_v14 = vld [vmem:[#allocation7 + $0xb14] sm:$0xf0]  ;;  %v9144_v11 = vld [vmem:[#allocation7 + $0xc08] sm:$0xf] }
 0x30f   :  { %v3167_v42 = vpop.f32.mrf.mxu0  ;;  %v9272_v41 = vld [vmem:[#allocation7 + $0xd08] sm:$0xf] }
 0x310   :  { %v3099_v16 = vadd.f32 %v3098_v31, %v3071_v23  ;;  %v3195_v54 = vpop.f32.mrf.mxu1  ;;  %v9161_v23 = vor.u32 %v10989_v36, %v9160_v7  ;;  %v9000_v7 = vld [vmem:[#allocation7 + $0xae8] sm:$0xf]  ;;  %v10949_v36 = vld [vmem:[#allocation7 + $0xaf4] sm:$0xf0] }
 0x311   :  { %v9001_v25 = vor.u32 %v10949_v36, %v9000_v7 }
 0x312   :  { %v11848_v21 = vadd.f32 %v3126_v33, %v3099_v16  ;;  %4058 = vmatmul.bf16.vlgmr.msra.gmra.mxu0 %v11504_v22  ;;  %v9016_v33 = vld [vmem:[#allocation7 + $0xb08] sm:$0xf]  ;;  %4187 = vmatpush.bf16.msrb.mxu1 %v9289_v17 }
 0x313   :  { %4085 = vmatmul.bf16.vlgmr.msra.gmra.mxu1 %v11508_v34  ;;  %v9017_v16 = vor.u32 %v10953_v14, %v9016_v33  ;;  %4160 = vmatpush.bf16.msrb.mxu0 %v9161_v23  ;;  %v9273_v33 = vor.u32 %v11017_v3, %v9272_v41  ;;  %v9128_v23 = vld [vmem:[#allocation7 + $0xbe8] sm:$0xf] }
 0x314   :  { %13187 = vst [vmem:[#allocation32_spill] sm:$0xff] %v11848_v21  ;;  %v3128_v29 = vpop.f32.mrf.mxu2  ;;  %v9240_v41 = vld [vmem:[#allocation7 + $0xcc8] sm:$0xf] }
 0x315   :  { %v3044_v31 = vpop.f32.mrf.mxu3  ;;  %4134 = vmatpush.bf16.msrb.mxu3 %v9017_v16  ;;  %v9256_v16 = vld [vmem:[#allocation7 + $0xce8] sm:$0xf] }
 0x316   :  { %v9145_v31 = vor.u32 %v10985_v39, %v9144_v11  ;;  %4188 = vmatpush.bf16.msrb.mxu1 %v9273_v33  ;;  %v10977_v39 = vld [vmem:[#allocation7 + $0xbd4] sm:$0xf0]  ;;  %v9352_v33 = vld [vmem:[#allocation7 + $0xda8] sm:$0xf] }
 0x317   :  { %v3169_v2 = vpop.f32.mrf.mxu0 }
 0x318   :  { %v3197_v8 = vpop.f32.mrf.mxu1  ;;  %4161 = vmatpush.bf16.msrb.mxu0 %v9145_v31 }
 0x319   :  { %9394 = vmatmul.msk.bf16.vlgmr.msra.gmra.mxu2 %vm1563_vm1, %v11510_v35  ;;  %4135 = vmatpush.bf16.msrb.mxu3 %v9001_v25  ;;  %v11037_v25 = vld [vmem:[#allocation7 + $0xdb4] sm:$0xf0] }
 0x31a   :  { %4031 = vmatmul.bf16.vlgmr.msra.gmra.mxu3 %v11502_v20 }
 0x31c   :  { %v3223_v58 = vpop.f32.mrf.mxu2 }
 0x31d   :  { %v3139_v30 = vpop.f32.mrf.mxu3 }
 0x31e   :  { %v3168_v4 = vadd.f32 %v3167_v42, %v3139_v30  ;;  %v10981_v42 = vld [vmem:[#allocation7 + $0xbf4] sm:$0xf0]  ;;  %v9257_v30 = vor.u32 %v11013_v5, %v9256_v16 }
 0x31f   :  { %v3172_v29 = vpop.f32.mrf.mxu0  ;;  %v9129_v51 = vor.u32 %v10981_v42, %v9128_v23  ;;  %v10945_v42 = vld [vmem:[#allocation7 + $0xad4] sm:$0xf0] }
 0x320   :  { %v3196_v13 = vadd.f32 %v3195_v54, %v3168_v4  ;;  %v11855_v21 = vpop.f32.mrf.mxu1  ;;  %4189 = vmatpush.bf16.msrb.mxu1 %v9257_v30  ;;  %v10973_v5 = vld [vmem:[#allocation7 + $0xbb4] sm:$0xf0]  ;;  %v9224_v30 = vld [vmem:[#allocation7 + $0xca8] sm:$0xf] }
 0x321   :  { %4162 = vmatpush.bf16.msrb.mxu0 %v9129_v51  ;;  %v9096_v51 = vld [vmem:[#allocation7 + $0xba8] sm:$0xf] }
 0x322   :  { %v3224_v14 = vadd.f32 %v3223_v58, %v3196_v13  ;;  %4063 = vmatmul.bf16.gmra.mxu0 %v11517_v28  ;;  %v9112_v58 = vld [vmem:[#allocation7 + $0xbc8] sm:$0xf]  ;;  %v11009_v13 = vld [vmem:[#allocation7 + $0xcd4] sm:$0xf0] }
 0x323   :  { %4090 = vmatmul.bf16.gmra.mxu1 %v11521_v48  ;;  %v9113_v3 = vor.u32 %v10977_v39, %v9112_v58  ;;  %v9241_v23 = vor.u32 %v11009_v13, %v9240_v41  ;;  %v10969_v13 = vld [vmem:[#allocation7 + $0xb94] sm:$0xf0] }
 0x324   :  { %v11860_v54 = vadd.f32 %v3224_v14, %v11703_v45  ;;  %v3225_v17 = vpop.f32.mrf.mxu2  ;;  %v9353_v45 = vor.u32 %v11037_v25, %v9352_v33  ;;  %v8984_v14 = vld [vmem:[#allocation7 + $0xac8] sm:$0xf] }
 0x325   :  { %v3141_v4 = vpop.f32.mrf.mxu3  ;;  %4163 = vmatpush.bf16.msrb.mxu0 %v9113_v3  ;;  %v8985_v16 = vor.u32 %v10945_v42, %v8984_v14  ;;  %4190 = vmatpush.bf16.msrb.mxu1 %v9241_v23  ;;  %v11001_v23 = vld [vmem:[#allocation7 + $0xc94] sm:$0xf0]  ;;  %v8968_v42 = vld [vmem:[#allocation7 + $0xaa8] sm:$0xf] }
 0x326   :  { %13188 = vst [vmem:[#allocation33_spill] sm:$0xff] %v11860_v54  ;;  %v3170_v11 = vadd.f32 %v3169_v2, %v3141_v4  ;;  %4218 = vmatpush.bf16.msrb.mxu2 %v9353_v45  ;;  %v11005_v4 = vld [vmem:[#allocation7 + $0xcb4] sm:$0xf0] }
 0x327   :  { %v3174_v31 = vpop.f32.mrf.mxu0  ;;  %4136 = vmatpush.bf16.msrb.mxu3 %v8985_v16  ;;  %v9225_v39 = vor.u32 %v11005_v4, %v9224_v30  ;;  %v9336_v30 = vld [vmem:[#allocation7 + $0xd88] sm:$0xf] }
 0x328   :  { %v3198_v7 = vadd.f32 %v3197_v8, %v3170_v11  ;;  %v3202_v36 = vpop.f32.mrf.mxu1  ;;  %v9097_v8 = vor.u32 %v10973_v5, %v9096_v51  ;;  %v10941_v51 = vld [vmem:[#allocation7 + $0xab4] sm:$0xf0] }
 0x329   :  { %9395 = vmatmul.msk.bf16.gmra.mxu2 %vm1563_vm1, %v11523_v49  ;;  %4191 = vmatpush.bf16.msrb.mxu1 %v9225_v39 }
 0x32a   :  { %v3226_v2 = vadd.f32 %v3225_v17, %v3198_v7  ;;  %4036 = vmatmul.bf16.gmra.mxu3 %v11515_v26  ;;  %4164 = vmatpush.bf16.msrb.mxu0 %v9097_v8  ;;  %v9080_v17 = vld [vmem:[#allocation7 + $0xb88] sm:$0xf]  ;;  %v11033_v8 = vld [vmem:[#allocation7 + $0xd94] sm:$0xf0] }
 0x32b   :  { %v9208_v7 = vld [vmem:[#allocation7 + $0xc88] sm:$0xf]  ;;  %v9081_v25 = vor.u32 %v10969_v13, %v9080_v17  ;;  %v9337_v39 = vor.u32 %v11033_v8, %v9336_v30  ;;  %v11043_v8 = vld [vmem:[#allocation7 + $0xdec] sm:$0xf] }
 0x32c   :  { %v11866_v11 = vadd.f32 %v3226_v2, %v11706_v10  ;;  %v3228_v58 = vpop.f32.mrf.mxu2  ;;  %v9209_v10 = vor.u32 %v11001_v23, %v9208_v7  ;;  %v8969_v2 = vor.u32 %v10941_v51, %v8968_v42  ;;  %v9066_v23 = vld [vmem:[#allocation7 + $0xb78] sm:$0xf0] }
 0x32d   :  { %v3144_v41 = vpop.f32.mrf.mxu3  ;;  %4219 = vmatpush.bf16.msrb.mxu2 %v9337_v39  ;;  %v9194_v39 = vld [vmem:[#allocation7 + $0xc78] sm:$0xf0] }
 0x32e   :  { %13189 = vst [vmem:[#allocation34_spill] sm:$0xff] %v11866_v11  ;;  %v3173_v3 = vadd.f32 %v3172_v29, %v3144_v41  ;;  %4165 = vmatpush.bf16.msrb.mxu0 %v9081_v25  ;;  %4192 = vmatpush.bf16.msrb.mxu1 %v9209_v10  ;;  %v10937_v41 = vld [vmem:[#allocation7 + $0xa94] sm:$0xf0] }
 0x32f   :  { %v3177_v33 = vpop.f32.mrf.mxu0  ;;  %4137 = vmatpush.bf16.msrb.mxu3 %v8969_v2 }
 0x330   :  { %v3201_v45 = vadd.f32 %v11855_v21, %v3173_v3  ;;  %v3205_v14 = vpop.f32.mrf.mxu1  ;;  %v8952_v21 = vld [vmem:[#allocation7 + $0xa88] sm:$0xf] }
 0x331   :  { %v8953_v17 = vor.u32 %v10937_v41, %v8952_v21  ;;  %v10995_v21 = vld [vmem:[#allocation7 + $0xc6c] sm:$0xf] }
 0x332   :  { %v3229_v16 = vadd.f32 %v3228_v58, %v3201_v45  ;;  %4068 = vmatmul.bf16.gmra.mxu0 %v11538_v61  ;;  %v10959_v41 = vld [vmem:[#allocation7 + $0xb4c] sm:$0xf] }
 0x333   :  { %4095 = vmatmul.bf16.gmra.mxu1 %v11546_v18  ;;  %4138 = vmatpush.bf16.msrb.mxu3 %v8953_v17 }
 0x334   :  { %v11872_v29 = vadd.f32 %v3229_v16, %v11712_v59  ;;  %v3230_v5 = vpop.f32.mrf.mxu2  ;;  %v10963_v59 = vld [vmem:[#allocation7 + $0xb6c] sm:$0xf] }
 0x335   :  { %v3146_v4 = vpop.f32.mrf.mxu3  ;;  %v9069_v45 = vor.u32 %v10963_v59, %v9066_v23 }
 0x336   :  { %13190 = vst [vmem:[#allocation35_spill] sm:$0xff] %v11872_v29  ;;  %v3175_v3 = vadd.f32 %v3174_v31, %v3146_v4  ;;  %v9696_v29 = vld [vmem:[#allocation7 + $0x5c0] sm:$0xf] }
 0x337   :  { %v3179_v13 = vpop.f32.mrf.mxu0  ;;  %4239 = vmatpush.bf16.msra.mxu3 %v9069_v45 }
 0x338   :  { %v3203_v58 = vadd.f32 %v3202_v36, %v3175_v3  ;;  %v3207_v7 = vpop.f32.mrf.mxu1 }
 0x339   :  { %9396 = vmatmul.msk.bf16.gmra.mxu2 %vm1563_vm1, %v11548_v19 }
 0x33a   :  { %v3231_v25 = vadd.f32 %v3230_v5, %v3203_v58  ;;  %4041 = vmatmul.bf16.gmra.mxu3 %v11536_v1  ;;  %v9386_v5 = vld [vmem:[#allocation7 + $0xdf8] sm:$0xf0] }
 0x33b   :  { %v9389_v4 = vor.u32 %v11043_v8, %v9386_v5  ;;  %v10955_v8 = vld [vmem:[#allocation7 + $0xb2c] sm:$0xf] }
 0x33c   :  { %v11878_v42 = vadd.f32 %v3231_v25, %v11715_v38  ;;  %v3233_v51 = vpop.f32.mrf.mxu2  ;;  %v9050_v38 = vld [vmem:[#allocation7 + $0xb58] sm:$0xf0] }
 0x33d   :  { %v3149_v31 = vpop.f32.mrf.mxu3  ;;  %v9053_v58 = vor.u32 %v10959_v41, %v9050_v38  ;;  %v9322_v25 = vld [vmem:[#allocation7 + $0xd78] sm:$0xf0]  ;;  %4324 = vmatpush.bf16.msra.mxu2 %v9389_v4  ;;  %v11023_v4 = vld [vmem:[#allocation7 + $0xd4c] sm:$0xf] }
 0x33e   :  { %13191 = vst [vmem:[#allocation36_spill] sm:$0xff] %v11878_v42  ;;  %v3178_v10 = vadd.f32 %v3177_v33, %v3149_v31  ;;  %v9197_v33 = vor.u32 %v10995_v21, %v9194_v39  ;;  %v9034_v21 = vld [vmem:[#allocation7 + $0xb38] sm:$0xf0] }
 0x33f   :  { %v3182_v2 = vpop.f32.mrf.mxu0  ;;  %4240 = vmatpush.bf16.msra.mxu3 %v9053_v58  ;;  %v9306_v39 = vld [vmem:[#allocation7 + $0xd58] sm:$0xf0]  ;;  %v9037_v38 = vor.u32 %v10955_v8, %v9034_v21  ;;  %v11019_v8 = vld [vmem:[#allocation7 + $0xd2c] sm:$0xf] }
 0x340   :  { %v3206_v36 = vadd.f32 %v3205_v14, %v3178_v10  ;;  %v3210_v16 = vpop.f32.mrf.mxu1  ;;  %v11027_v14 = vld [vmem:[#allocation7 + $0xd6c] sm:$0xf]  ;;  %4266 = vmatpush.bf16.msra.mxu0 %v9197_v33 }
 0x341   :  { %v9325_v23 = vor.u32 %v11027_v14, %v9322_v25 }
 0x342   :  { %v3234_v30 = vadd.f32 %v3233_v51, %v3206_v36  ;;  %4073 = vmatmul.bf16.gmra.mxu0 %v11555_v47  ;;  %v10991_v36 = vld [vmem:[#allocation7 + $0xc4c] sm:$0xf] }
 0x343   :  { %4100 = vmatmul.bf16.gmra.mxu1 %v11559_v62  ;;  %4241 = vmatpush.bf16.msra.mxu3 %v9037_v38  ;;  %v9146_v38 = vld [vmem:[#allocation7 + $0xc18] sm:$0xf0] }
 0x344   :  { %v11883_v3 = vadd.f32 %v3234_v30, %v11721_v15  ;;  %v3235_v17 = vpop.f32.mrf.mxu2  ;;  %4293 = vmatpush.bf16.msra.mxu1 %v9325_v23  ;;  %v9178_v30 = vld [vmem:[#allocation7 + $0xc58] sm:$0xf0]  ;;  %v11039_v23 = vld [vmem:[#allocation7 + $0xdcc] sm:$0xf] }
 0x345   :  { %v3151_v59 = vpop.f32.mrf.mxu3  ;;  %v9181_v5 = vor.u32 %v10991_v36, %v9178_v30 }
 0x346   :  { %13192 = vst [vmem:[#allocation37_spill] sm:$0xff] %v11883_v3  ;;  %v3180_v45 = vadd.f32 %v3179_v13, %v3151_v59 }
 0x347   :  { %v3184_v51 = vpop.f32.mrf.mxu0  ;;  %4267 = vmatpush.bf16.msra.mxu0 %v9181_v5  ;;  %v9290_v5 = vld [vmem:[#allocation7 + $0xd38] sm:$0xf0] }
 0x348   :  { %v3208_v31 = vadd.f32 %v3207_v7, %v3180_v45  ;;  %v3212_v10 = vpop.f32.mrf.mxu1  ;;  %v9309_v7 = vor.u32 %v11023_v4, %v9306_v39  ;;  %v9370_v45 = vld [vmem:[#allocation7 + $0xdd8] sm:$0xf0]  ;;  %v10987_v51 = vld [vmem:[#allocation7 + $0xc2c] sm:$0xf]  ;;  %v9293_v21 = vor.u32 %v11019_v8, %v9290_v5 }
 0x349   :  { %9397 = vmatmul.msk.bf16.gmra.mxu2 %vm1563_vm1, %v11561_v63  ;;  %v10951_v10 = vld [vmem:[#allocation7 + $0xb0c] sm:$0xf]  ;;  %v9354_v5 = vld [vmem:[#allocation7 + $0xdb8] sm:$0xf0] }
 0x34a   :  { %v3236_v15 = vadd.f32 %v3235_v17, %v3208_v31  ;;  %4046 = vmatmul.bf16.gmra.mxu3 %v11553_v46  ;;  %4294 = vmatpush.bf16.msra.mxu1 %v9309_v7  ;;  %v9162_v31 = vld [vmem:[#allocation7 + $0xc38] sm:$0xf0]  ;;  %v10947_v7 = vld [vmem:[#allocation7 + $0xaec] sm:$0xf] }
 0x34b   :  { %v11035_v8 = vld [vmem:[#allocation7 + $0xdac] sm:$0xf] }
 0x34c   :  { %v11889_v13 = vadd.f32 %v3236_v15, %v11724_v37  ;;  %v3238_v41 = vpop.f32.mrf.mxu2  ;;  %v9373_v37 = vor.u32 %v11039_v23, %v9370_v45  ;;  %v9018_v15 = vld [vmem:[#allocation7 + $0xb18] sm:$0xf0] }
 0x34d   :  { %v3154_v33 = vpop.f32.mrf.mxu3  ;;  %v9021_v30 = vor.u32 %v10951_v10, %v9018_v15  ;;  %v9274_v23 = vld [vmem:[#allocation7 + $0xd18] sm:$0xf0] }
 0x34e   :  { %13193 = vst [vmem:[#allocation38_spill] sm:$0xff] %v11889_v13  ;;  %v3183_v58 = vadd.f32 %v3182_v2, %v3154_v33  ;;  %v9165_v2 = vor.u32 %v10987_v51, %v9162_v31  ;;  %4325 = vmatpush.bf16.msra.mxu2 %v9373_v37  ;;  %4295 = vmatpush.bf16.msra.mxu1 %v9293_v21 }
 0x34f   :  { %v3951_v17 = vpop.f32.mrf.mxu0  ;;  %4242 = vmatpush.bf16.msra.mxu3 %v9021_v30  ;;  %v9357_v21 = vor.u32 %v11035_v8, %v9354_v5  ;;  %v9242_v5 = vld [vmem:[#allocation7 + $0xcd8] sm:$0xf0] }
 0x350   :  { %v3211_v14 = vadd.f32 %v3210_v16, %v3183_v58  ;;  %v3978_v25 = vpop.f32.mrf.mxu1  ;;  %4268 = vmatpush.bf16.msra.mxu0 %v9165_v2  ;;  %v9002_v58 = vld [vmem:[#allocation7 + $0xaf8] sm:$0xf0] }
 0x351   :  { %v9005_v51 = vor.u32 %v10947_v7, %v9002_v58  ;;  %v8986_v7 = vld [vmem:[#allocation7 + $0xad8] sm:$0xf0] }
 0x352   :  { %v11891_v59 = vadd.f32 %v3238_v41, %v3211_v14  ;;  %4166 = vmatmul.bf16.vlgmr.msrb.gmra.mxu0 %v11504_v22  ;;  %v10983_v41 = vld [vmem:[#allocation7 + $0xc0c] sm:$0xf]  ;;  %4326 = vmatpush.bf16.msra.mxu2 %v9357_v21  ;;  %v8970_v21 = vld [vmem:[#allocation7 + $0xab8] sm:$0xf0] }
 0x353   :  { %4193 = vmatmul.bf16.vlgmr.msrb.gmra.mxu1 %v11508_v34  ;;  %v9149_v33 = vor.u32 %v10983_v41, %v9146_v38  ;;  %v11015_v14 = vld [vmem:[#allocation7 + $0xd0c] sm:$0xf]  ;;  %4243 = vmatpush.bf16.msra.mxu3 %v9005_v51  ;;  %v9130_v41 = vld [vmem:[#allocation7 + $0xbf8] sm:$0xf0] }
 0x354   :  { %13194 = vst [vmem:[#allocation39_spill] sm:$0xff] %v11891_v59  ;;  %v3240_v36 = vpop.f32.mrf.mxu2  ;;  %v9277_v37 = vor.u32 %v11015_v14, %v9274_v23  ;;  %v10943_v38 = vld [vmem:[#allocation7 + $0xacc] sm:$0xf]  ;;  %v9258_v23 = vld [vmem:[#allocation7 + $0xcf8] sm:$0xf0] }
 0x355   :  { %v3156_v16 = vpop.f32.mrf.mxu3  ;;  %4269 = vmatpush.bf16.msra.mxu0 %v9149_v33  ;;  %v8989_v58 = vor.u32 %v10943_v38, %v8986_v7  ;;  %v11011_v14 = vld [vmem:[#allocation7 + $0xcec] sm:$0xf]  ;;  %v9098_v7 = vld [vmem:[#allocation7 + $0xbb8] sm:$0xf0] }
 0x356   :  { %4296 = vmatpush.bf16.msra.mxu1 %v9277_v37  ;;  %v10979_v16 = vld [vmem:[#allocation7 + $0xbec] sm:$0xf] }
 0x357   :  { %v3953_v4 = vpop.f32.mrf.mxu0  ;;  %4244 = vmatpush.bf16.msra.mxu3 %v8989_v58  ;;  %v10975_v37 = vld [vmem:[#allocation7 + $0xbcc] sm:$0xf]  ;;  %v9226_v58 = vld [vmem:[#allocation7 + $0xcb8] sm:$0xf0] }
 0x358   :  { %v3980_v39 = vpop.f32.mrf.mxu1 }
 0x359   :  { %9398 = vmatmul.msk.bf16.vlgmr.msrb.gmra.mxu2 %vm1563_vm1, %v11510_v35 }
 0x35a   :  { %4139 = vmatmul.bf16.vlgmr.msrb.gmra.mxu3 %v11502_v20 }
 0x35c   :  { %v4005_v45 = vpop.f32.mrf.mxu2 }
 0x35d   :  { %v3924_v31 = vpop.f32.mrf.mxu3 }
 0x35e   :  { %v3952_v10 = vadd.f32 %v3951_v17, %v3924_v31  ;;  %v9133_v17 = vor.u32 %v10979_v16, %v9130_v41  ;;  %v9114_v31 = vld [vmem:[#allocation7 + $0xbd8] sm:$0xf0]  ;;  %v10971_v41 = vld [vmem:[#allocation7 + $0xbac] sm:$0xf] }
 0x35f   :  { %v3956_v15 = vpop.f32.mrf.mxu0  ;;  %v9117_v8 = vor.u32 %v10975_v37, %v9114_v31  ;;  %v10967_v37 = vld [vmem:[#allocation7 + $0xb8c] sm:$0xf]  ;;  %v9082_v31 = vld [vmem:[#allocation7 + $0xb98] sm:$0xf0] }
 0x360   :  { %v3979_v36 = vadd.f32 %v3978_v25, %v3952_v10  ;;  %v3983_v2 = vpop.f32.mrf.mxu1  ;;  %4270 = vmatpush.bf16.msra.mxu0 %v9133_v17  ;;  %v11007_v10 = vld [vmem:[#allocation7 + $0xccc] sm:$0xf] }
 0x361   :  { %v9245_v3 = vor.u32 %v11007_v10, %v9242_v5  ;;  %v11003_v17 = vld [vmem:[#allocation7 + $0xcac] sm:$0xf]  ;;  %v9210_v5 = vld [vmem:[#allocation7 + $0xc98] sm:$0xf0] }
 0x362   :  { %v11898_v30 = vadd.f32 %v4005_v45, %v3979_v36  ;;  %4171 = vmatmul.bf16.gmra.mxu0 %v11517_v28  ;;  %v9261_v45 = vor.u32 %v11011_v14, %v9258_v23  ;;  %v9229_v23 = vor.u32 %v11003_v17, %v9226_v58  ;;  %v10999_v10 = vld [vmem:[#allocation7 + $0xc8c] sm:$0xf] }
 0x363   :  { %4198 = vmatmul.bf16.gmra.mxu1 %v11521_v48  ;;  %v9213_v42 = vor.u32 %v10999_v10, %v9210_v5  ;;  %v10820_v5 = vld [vmem:[#allocation7 + $0x6ec] sm:$0xf0] }
 0x364   :  { %v4007_v33 = vpop.f32.mrf.mxu2  ;;  %4297 = vmatpush.bf16.msra.mxu1 %v9261_v45  ;;  %4271 = vmatpush.bf16.msra.mxu0 %v9117_v8  ;;  %v11031_v45 = vld [vmem:[#allocation7 + $0xd8c] sm:$0xf] }
 0x365   :  { %v3926_v25 = vpop.f32.mrf.mxu3 }
 0x366   :  { %v3954_v51 = vadd.f32 %v3953_v4, %v3926_v25  ;;  %v10939_v4 = vld [vmem:[#allocation7 + $0xaac] sm:$0xf] }
 0x367   :  { %v3958_v36 = vpop.f32.mrf.mxu0  ;;  %v8973_v38 = vor.u32 %v10939_v4, %v8970_v21 }
 0x368   :  { %v3981_v59 = vadd.f32 %v3980_v39, %v3954_v51  ;;  %v3985_v13 = vpop.f32.mrf.mxu1  ;;  %4298 = vmatpush.bf16.msra.mxu1 %v9245_v3  ;;  %v9101_v39 = vor.u32 %v10971_v41, %v9098_v7  ;;  %v9338_v51 = vld [vmem:[#allocation7 + $0xd98] sm:$0xf0]  ;;  %v9085_v3 = vor.u32 %v10967_v37, %v9082_v31  ;;  %v10935_v41 = vld [vmem:[#allocation7 + $0xa8c] sm:$0xf] }
 0x369   :  { %9399 = vmatmul.msk.bf16.gmra.mxu2 %vm1563_vm1, %v11523_v49  ;;  %4245 = vmatpush.bf16.msra.mxu3 %v8973_v38  ;;  %v8954_v7 = vld [vmem:[#allocation7 + $0xa98] sm:$0xf0] }
 0x36a   :  { %v11904_v16 = vadd.f32 %v4007_v33, %v3981_v59  ;;  %4144 = vmatmul.bf16.gmra.mxu3 %v11515_v26  ;;  %4272 = vmatpush.bf16.msra.mxu0 %v9101_v39  ;;  %v9341_v33 = vor.u32 %v11031_v45, %v9338_v51  ;;  %v8957_v17 = vor.u32 %v10935_v41, %v8954_v7  ;;  %v10740_v51 = vld [vmem:[#allocation7 + $0x46c] sm:$0xf0] }
 0x36b   :  { %v10772_v7 = vld [vmem:[#allocation7 + $0x56c] sm:$0xf0] }
 0x36c   :  { %v4010_v14 = vpop.f32.mrf.mxu2  ;;  %4299 = vmatpush.bf16.msra.mxu1 %v9229_v23  ;;  %4327 = vmatpush.bf16.msra.mxu2 %v9341_v33 }
 0x36d   :  { %v3929_v25 = vpop.f32.mrf.mxu3  ;;  %4246 = vmatpush.bf16.msra.mxu3 %v8957_v17  ;;  %v9504_v17 = vld [vmem:[#allocation7 + $0x440] sm:$0xf] }
 0x36e   :  { %v3957_v59 = vadd.f32 %v3956_v15, %v3929_v25  ;;  %4273 = vmatpush.bf16.msra.mxu0 %v9085_v3 }
 0x36f   :  { %v3961_v8 = vpop.f32.mrf.mxu0 }
 0x370   :  { %v3984_v4 = vadd.f32 %v3983_v2, %v3957_v59  ;;  %v3988_v21 = vpop.f32.mrf.mxu1  ;;  %4300 = vmatpush.bf16.msra.mxu1 %v9213_v42 }
 0x372   :  { %v11907_v38 = vadd.f32 %v4010_v14, %v3984_v4  ;;  %4176 = vmatmul.bf16.gmra.mxu0 %v11538_v61  ;;  %v9520_v14 = vld [vmem:[#allocation7 + $0x460] sm:$0xf] }
 0x373   :  { %4203 = vmatmul.bf16.gmra.mxu1 %v11546_v18  ;;  %v9521_v59 = vor.u32 %v10740_v51, %v9520_v14  ;;  %v9648_v4 = vld [vmem:[#allocation7 + $0x560] sm:$0xf]  ;;  %v10804_v14 = vld [vmem:[#allocation7 + $0x66c] sm:$0xf0] }
 0x374   :  { %v4012_v15 = vpop.f32.mrf.mxu2 }
 0x375   :  { %v3931_v58 = vpop.f32.mrf.mxu3  ;;  %4907 = vmatpush.bf16.msrb.mxu3 %v9521_v59 }
 0x376   :  { %v3959_v39 = vadd.f32 %v3958_v36, %v3931_v58 }
 0x377   :  { %v3963_v23 = vpop.f32.mrf.mxu0 }
 0x378   :  { %v3986_v2 = vadd.f32 %v3985_v13, %v3959_v39  ;;  %v3990_v25 = vpop.f32.mrf.mxu1  ;;  %v9840_v13 = vld [vmem:[#allocation7 + $0x6e0] sm:$0xf]  ;;  %v9649_v39 = vor.u32 %v10772_v7, %v9648_v4  ;;  %v10732_v4 = vld [vmem:[#allocation7 + $0x42c] sm:$0xf0] }
 0x379   :  { %9400 = vmatmul.msk.bf16.gmra.mxu2 %vm1563_vm1, %v11548_v19  ;;  %v9841_v41 = vor.u32 %v10820_v5, %v9840_v13  ;;  %v9488_v13 = vld [vmem:[#allocation7 + $0x420] sm:$0xf] }
 0x37a   :  { %v11913_v45 = vadd.f32 %v4012_v15, %v3986_v2  ;;  %4149 = vmatmul.bf16.gmra.mxu3 %v11536_v1  ;;  %v10736_v15 = vld [vmem:[#allocation7 + $0x44c] sm:$0xf0]  ;;  %4935 = vmatpush.bf16.msrb.mxu0 %v9649_v39 }
 0x37b   :  { %v9505_v2 = vor.u32 %v10736_v15, %v9504_v17  ;;  %4995 = vmatpush.bf16.msrb.mxu2 %v9841_v41  ;;  %v9760_v41 = vld [vmem:[#allocation7 + $0x640] sm:$0xf]  ;;  %v9489_v17 = vor.u32 %v10732_v4, %v9488_v13  ;;  %v10796_v13 = vld [vmem:[#allocation7 + $0x62c] sm:$0xf0] }
 0x37c   :  { %v4015_v33 = vpop.f32.mrf.mxu2 }
 0x37d   :  { %v3934_v37 = vpop.f32.mrf.mxu3  ;;  %4908 = vmatpush.bf16.msrb.mxu3 %v9505_v2 }
 0x37e   :  { %v3962_v42 = vadd.f32 %v3961_v8, %v3934_v37  ;;  %v9776_v8 = vld [vmem:[#allocation7 + $0x660] sm:$0xf] }
 0x37f   :  { %v3966_v31 = vpop.f32.mrf.mxu0  ;;  %v9777_v51 = vor.u32 %v10804_v14, %v9776_v8  ;;  %v10816_v8 = vld [vmem:[#allocation7 + $0x6cc] sm:$0xf0]  ;;  %v9616_v14 = vld [vmem:[#allocation7 + $0x520] sm:$0xf] }
 0x380   :  { %v3989_v10 = vadd.f32 %v3988_v21, %v3962_v42  ;;  %v3993_v36 = vpop.f32.mrf.mxu1 }
 0x381   :  { %4963 = vmatpush.bf16.msrb.mxu1 %v9777_v51  ;;  %v10768_v36 = vld [vmem:[#allocation7 + $0x54c] sm:$0xf0]  ;;  %4909 = vmatpush.bf16.msrb.mxu3 %v9489_v17 }
 0x382   :  { %v11916_v3 = vadd.f32 %v4015_v33, %v3989_v10  ;;  %4181 = vmatmul.bf16.gmra.mxu0 %v11555_v47  ;;  %v9632_v10 = vld [vmem:[#allocation7 + $0x540] sm:$0xf]  ;;  %v10764_v51 = vld [vmem:[#allocation7 + $0x52c] sm:$0xf0] }
 0x383   :  { %4208 = vmatmul.bf16.gmra.mxu1 %v11559_v62  ;;  %v9633_v5 = vor.u32 %v10768_v36, %v9632_v10  ;;  %v9744_v36 = vld [vmem:[#allocation7 + $0x620] sm:$0xf]  ;;  %v10760_v17 = vld [vmem:[#allocation7 + $0x50c] sm:$0xf0] }
 0x384   :  { %v4017_v58 = vpop.f32.mrf.mxu2  ;;  %v9745_v4 = vor.u32 %v10796_v13, %v9744_v36 }
 0x385   :  { %v3936_v21 = vpop.f32.mrf.mxu3  ;;  %4936 = vmatpush.bf16.msrb.mxu0 %v9633_v5 }
 0x386   :  { %v3964_v59 = vadd.f32 %v3963_v23, %v3936_v21  ;;  %v10800_v23 = vld [vmem:[#allocation7 + $0x64c] sm:$0xf0] }
 0x387   :  { %v3967_v33 = vpop.f32.mrf.mxu0  ;;  %v9761_v15 = vor.u32 %v10800_v23, %v9760_v41 }
 0x388   :  { %v3991_v37 = vadd.f32 %v3990_v25, %v3964_v59  ;;  %v3994_v42 = vpop.f32.mrf.mxu1  ;;  %v9472_v59 = vld [vmem:[#allocation7 + $0x400] sm:$0xf]  ;;  %v10728_v33 = vld [vmem:[#allocation7 + $0x40c] sm:$0xf0] }
 0x389   :  { %9401 = vmatmul.msk.bf16.gmra.mxu2 %vm1563_vm1, %v11561_v63  ;;  %4964 = vmatpush.bf16.msrb.mxu1 %v9761_v15  ;;  %v9617_v42 = vor.u32 %v10764_v51, %v9616_v14  ;;  %v9473_v10 = vor.u32 %v10728_v33, %v9472_v59  ;;  %v9456_v15 = vld [vmem:[#allocation7 + $0x3e0] sm:$0xf]  ;;  %v10792_v14 = vld [vmem:[#allocation7 + $0x60c] sm:$0xf0] }
 0x38a   :  { %v11922_v31 = vadd.f32 %v4017_v58, %v3991_v37  ;;  %4154 = vmatmul.bf16.gmra.mxu3 %v11553_v46  ;;  %v9824_v58 = vld [vmem:[#allocation7 + $0x6c0] sm:$0xf] }
 0x38b   :  { %v9825_v21 = vor.u32 %v10816_v8, %v9824_v58  ;;  %4937 = vmatpush.bf16.msrb.mxu0 %v9617_v42  ;;  %4910 = vmatpush.bf16.msrb.mxu3 %v9473_v10  ;;  %v10724_v58 = vld [vmem:[#allocation7 + $0x3ec] sm:$0xf0]  ;;  %v9728_v8 = vld [vmem:[#allocation7 + $0x600] sm:$0xf] }
 0x38c   :  { %v4020_v7 = vpop.f32.mrf.mxu2  ;;  %v9729_v59 = vor.u32 %v10792_v14, %v9728_v8  ;;  %v10720_v8 = vld [vmem:[#allocation7 + $0x3cc] sm:$0xf0] }
 0x38d   :  { %v3939_v39 = vpop.f32.mrf.mxu3  ;;  %4996 = vmatpush.bf16.msrb.mxu2 %v9825_v21  ;;  %4965 = vmatpush.bf16.msrb.mxu1 %v9745_v4  ;;  %v9600_v7 = vld [vmem:[#allocation7 + $0x500] sm:$0xf]  ;;  %v9457_v21 = vor.u32 %v10724_v58, %v9456_v15  ;;  %v10812_v4 = vld [vmem:[#allocation7 + $0x6ac] sm:$0xf0] }
 0x38e   :  { %v9601_v39 = vor.u32 %v10760_v17, %v9600_v7  ;;  %v9584_v7 = vld [vmem:[#allocation7 + $0x4e0] sm:$0xf]  ;;  %v10756_v15 = vld [vmem:[#allocation7 + $0x4ec] sm:$0xf0] }
 0x38f   :  { %v4059_v25 = vpop.f32.mrf.mxu0  ;;  %4911 = vmatpush.bf16.msrb.mxu3 %v9457_v21  ;;  %v9440_v58 = vld [vmem:[#allocation7 + $0x3c0] sm:$0xf] }
 0x390   :  { %v4086_v2 = vpop.f32.mrf.mxu1  ;;  %4938 = vmatpush.bf16.msrb.mxu0 %v9601_v39  ;;  %v9441_v14 = vor.u32 %v10720_v8, %v9440_v58  ;;  %v9712_v21 = vld [vmem:[#allocation7 + $0x5e0] sm:$0xf]  ;;  %v10748_v8 = vld [vmem:[#allocation7 + $0x4ac] sm:$0xf0] }
 0x391   :  { %4966 = vmatpush.bf16.msrb.mxu1 %v9729_v59  ;;  %v10788_v59 = vld [vmem:[#allocation7 + $0x5ec] sm:$0xf0] }
 0x392   :  { %4274 = vmatmul.bf16.vlgmr.msra.gmra.mxu0 %v11504_v22 }
 0x393   :  { %4301 = vmatmul.bf16.vlgmr.msra.gmra.mxu1 %v11508_v34  ;;  %4912 = vmatpush.bf16.msrb.mxu3 %v9441_v14  ;;  %v10780_v14 = vld [vmem:[#allocation7 + $0x5ac] sm:$0xf0] }
 0x394   :  { %v4021_v37 = vpop.f32.mrf.mxu2 }
 0x395   :  { %v3940_v5 = vpop.f32.mrf.mxu3 }
 0x396   :  { %v9808_v5 = vld [vmem:[#allocation7 + $0x6a0] sm:$0xf] }
 0x397   :  { %v4061_v41 = vpop.f32.mrf.mxu0  ;;  %v9809_v17 = vor.u32 %v10812_v4, %v9808_v5  ;;  %v10784_v4 = vld [vmem:[#allocation7 + $0x5cc] sm:$0xf0] }
 0x398   :  { %v4088_v23 = vpop.f32.mrf.mxu1  ;;  %v9697_v9 = vor.u32 %v10784_v4, %v9696_v29  ;;  %v10776_v4 = vld [vmem:[#allocation7 + $0x58c] sm:$0xf0] }
 0x399   :  { %9402 = vmatmul.msk.bf16.vlgmr.msra.gmra.mxu2 %vm1563_vm1, %v11510_v35 }
 0x39a   :  { %4247 = vmatmul.bf16.vlgmr.msra.gmra.mxu3 %v11502_v20  ;;  %4997 = vmatpush.bf16.msrb.mxu2 %v9809_v17  ;;  %v10716_v17 = vld [vmem:[#allocation7 + $0x3ac] sm:$0xf0] }
 0x39c   :  { %v4113_v51 = vpop.f32.mrf.mxu2 }
 0x39d   :  { %v4032_v33 = vpop.f32.mrf.mxu3 }
 0x39e   :  { %v4060_v37 = vadd.f32 %v4059_v25, %v4032_v33  ;;  %v9585_v25 = vor.u32 %v10756_v15, %v9584_v7  ;;  %v9552_v15 = vld [vmem:[#allocation7 + $0x4a0] sm:$0xf] }
 0x39f   :  { %v4064_v42 = vpop.f32.mrf.mxu0 }
 0x3a0   :  { %v4087_v10 = vadd.f32 %v4086_v2, %v4060_v37  ;;  %v4091_v36 = vpop.f32.mrf.mxu1  ;;  %4939 = vmatpush.bf16.msrb.mxu0 %v9585_v25  ;;  %v9568_v37 = vld [vmem:[#allocation7 + $0x4c0] sm:$0xf] }
 0x3a1   :  { %v9680_v25 = vld [vmem:[#allocation7 + $0x5a0] sm:$0xf] }
 0x3a2   :  { %v11930_v13 = vadd.f32 %v4113_v51, %v4087_v10  ;;  %4279 = vmatmul.bf16.gmra.mxu0 %v11517_v28  ;;  %v9713_v51 = vor.u32 %v10788_v59, %v9712_v21  ;;  %v10752_v10 = vld [vmem:[#allocation7 + $0x4cc] sm:$0xf0]  ;;  %v9681_v59 = vor.u32 %v10780_v14, %v9680_v25 }
 0x3a3   :  { %4306 = vmatmul.bf16.gmra.mxu1 %v11521_v48  ;;  %v9569_v5 = vor.u32 %v10752_v10, %v9568_v37  ;;  %v10744_v37 = vld [vmem:[#allocation7 + $0x48c] sm:$0xf0]  ;;  %v9664_v10 = vld [vmem:[#allocation7 + $0x580] sm:$0xf] }
 0x3a4   :  { %v4115_v39 = vpop.f32.mrf.mxu2  ;;  %4967 = vmatpush.bf16.msrb.mxu1 %v9713_v51  ;;  %v10808_v51 = vld [vmem:[#allocation7 + $0x68c] sm:$0xf0]  ;;  %v9665_v43 = vor.u32 %v10776_v4, %v9664_v10  ;;  %v9842_v4 = vld [vmem:[#allocation7 + $0x6f0] sm:$0xf0] }
 0x3a5   :  { %v4034_v2 = vpop.f32.mrf.mxu3  ;;  %4940 = vmatpush.bf16.msrb.mxu0 %v9569_v5 }
 0x3a6   :  { %v4062_v33 = vadd.f32 %v4061_v41, %v4034_v2  ;;  %v9424_v41 = vld [vmem:[#allocation7 + $0x3a0] sm:$0xf] }
 0x3a7   :  { %v4066_v11 = vpop.f32.mrf.mxu0  ;;  %v9425_v58 = vor.u32 %v10716_v17, %v9424_v41  ;;  %v9792_v2 = vld [vmem:[#allocation7 + $0x680] sm:$0xf] }
 0x3a8   :  { %v4089_v54 = vadd.f32 %v4088_v23, %v4062_v33  ;;  %v4093_v24 = vpop.f32.mrf.mxu1  ;;  %4968 = vmatpush.bf16.msrb.mxu1 %v9697_v9  ;;  %v9553_v23 = vor.u32 %v10748_v8, %v9552_v15  ;;  %v9536_v33 = vld [vmem:[#allocation7 + $0x480] sm:$0xf]  ;;  %v10712_v8 = vld [vmem:[#allocation7 + $0x38c] sm:$0xf0] }
 0x3a9   :  { %9403 = vmatmul.msk.bf16.gmra.mxu2 %vm1563_vm1, %v11523_v49  ;;  %4913 = vmatpush.bf16.msrb.mxu3 %v9425_v58  ;;  %v9537_v9 = vor.u32 %v10744_v37, %v9536_v33  ;;  %v9408_v15 = vld [vmem:[#allocation7 + $0x380] sm:$0xf] }
 0x3aa   :  { %v11936_v7 = vadd.f32 %v4115_v39, %v4089_v54  ;;  %4252 = vmatmul.bf16.gmra.mxu3 %v11515_v26  ;;  %4941 = vmatpush.bf16.msrb.mxu0 %v9553_v23  ;;  %v9793_v39 = vor.u32 %v10808_v51, %v9792_v2  ;;  %v9409_v25 = vor.u32 %v10712_v8, %v9408_v15  ;;  %v9522_v51 = vld [vmem:[#allocation7 + $0x470] sm:$0xf0] }
 0x3ab   :  { %v9650_v8 = vld [vmem:[#allocation7 + $0x570] sm:$0xf0] }
 0x3ac   :  { %v4118_v21 = vpop.f32.mrf.mxu2  ;;  %4969 = vmatpush.bf16.msrb.mxu1 %v9681_v59  ;;  %4998 = vmatpush.bf16.msrb.mxu2 %v9793_v39 }
 0x3ad   :  { %v4037_v29 = vpop.f32.mrf.mxu3  ;;  %4914 = vmatpush.bf16.msrb.mxu3 %v9409_v25  ;;  %v10734_v25 = vld [vmem:[#allocation7 + $0x444] sm:$0xf] }
 0x3ae   :  { %v4065_v54 = vadd.f32 %v4064_v42, %v4037_v29  ;;  %4942 = vmatpush.bf16.msrb.mxu0 %v9537_v9 }
 0x3af   :  { %v4069_v5 = vpop.f32.mrf.mxu0 }
 0x3b0   :  { %v4092_v41 = vadd.f32 %v4091_v36, %v4065_v54  ;;  %v4096_v17 = vpop.f32.mrf.mxu1  ;;  %4970 = vmatpush.bf16.msrb.mxu1 %v9665_v43 }
 0x3b2   :  { %v11939_v58 = vadd.f32 %v4118_v21, %v4092_v41  ;;  %4284 = vmatmul.bf16.gmra.mxu0 %v11538_v61  ;;  %v10738_v21 = vld [vmem:[#allocation7 + $0x464] sm:$0xf] }
 0x3b3   :  { %4311 = vmatmul.bf16.gmra.mxu1 %v11546_v18  ;;  %v9525_v54 = vor.u32 %v10738_v21, %v9522_v51  ;;  %v10770_v41 = vld [vmem:[#allocation7 + $0x564] sm:$0xf]  ;;  %v9778_v21 = vld [vmem:[#allocation7 + $0x670] sm:$0xf0] }
 0x3b4   :  { %v4120_v42 = vpop.f32.mrf.mxu2 }
 0x3b5   :  { %v4039_v14 = vpop.f32.mrf.mxu3  ;;  %5019 = vmatpush.bf16.msra.mxu3 %v9525_v54 }
 0x3b6   :  { %v4067_v23 = vadd.f32 %v4066_v11, %v4039_v14 }
 0x3b7   :  { %v4071_v59 = vpop.f32.mrf.mxu0 }
 0x3b8   :  { %v4094_v36 = vadd.f32 %v4093_v24, %v4067_v23  ;;  %v4098_v29 = vpop.f32.mrf.mxu1  ;;  %v10818_v24 = vld [vmem:[#allocation7 + $0x6e4] sm:$0xf]  ;;  %v9653_v23 = vor.u32 %v10770_v41, %v9650_v8  ;;  %v9490_v41 = vld [vmem:[#allocation7 + $0x430] sm:$0xf0] }
 0x3b9   :  { %9404 = vmatmul.msk.bf16.gmra.mxu2 %vm1563_vm1, %v11548_v19  ;;  %v9845_v15 = vor.u32 %v10818_v24, %v9842_v4  ;;  %v10730_v24 = vld [vmem:[#allocation7 + $0x424] sm:$0xf] }
 0x3ba   :  { %v11945_v2 = vadd.f32 %v4120_v42, %v4094_v36  ;;  %4257 = vmatmul.bf16.gmra.mxu3 %v11536_v1  ;;  %v9506_v42 = vld [vmem:[#allocation7 + $0x450] sm:$0xf0]  ;;  %5047 = vmatpush.bf16.msra.mxu0 %v9653_v23 }
 0x3bb   :  { %v9509_v36 = vor.u32 %v10734_v25, %v9506_v42  ;;  %5107 = vmatpush.bf16.msra.mxu2 %v9845_v15  ;;  %v10798_v15 = vld [vmem:[#allocation7 + $0x644] sm:$0xf]  ;;  %v9493_v25 = vor.u32 %v10730_v24, %v9490_v41  ;;  %v9746_v24 = vld [vmem:[#allocation7 + $0x630] sm:$0xf0] }
 0x3bc   :  { %v4123_v39 = vpop.f32.mrf.mxu2 }
 0x3bd   :  { %v4042_v33 = vpop.f32.mrf.mxu3  ;;  %5020 = vmatpush.bf16.msra.mxu3 %v9509_v36 }
 0x3be   :  { %v4070_v43 = vadd.f32 %v4069_v5, %v4042_v33  ;;  %v10802_v5 = vld [vmem:[#allocation7 + $0x664] sm:$0xf] }
 0x3bf   :  { %v4074_v37 = vpop.f32.mrf.mxu0  ;;  %v9781_v51 = vor.u32 %v10802_v5, %v9778_v21  ;;  %v9826_v5 = vld [vmem:[#allocation7 + $0x6d0] sm:$0xf0]  ;;  %v10762_v21 = vld [vmem:[#allocation7 + $0x524] sm:$0xf] }
 0x3c0   :  { %v4097_v10 = vadd.f32 %v4096_v17, %v4070_v43  ;;  %v4101_v11 = vpop.f32.mrf.mxu1 }
 0x3c1   :  { %5075 = vmatpush.bf16.msra.mxu1 %v9781_v51  ;;  %v9634_v11 = vld [vmem:[#allocation7 + $0x550] sm:$0xf0]  ;;  %5021 = vmatpush.bf16.msra.mxu3 %v9493_v25 }
 0x3c2   :  { %v11948_v9 = vadd.f32 %v4123_v39, %v4097_v10  ;;  %4289 = vmatmul.bf16.gmra.mxu0 %v11555_v47  ;;  %v10766_v10 = vld [vmem:[#allocation7 + $0x544] sm:$0xf]  ;;  %v9618_v51 = vld [vmem:[#allocation7 + $0x530] sm:$0xf0] }
 0x3c3   :  { %4316 = vmatmul.bf16.gmra.mxu1 %v11559_v62  ;;  %v9637_v4 = vor.u32 %v10766_v10, %v9634_v11  ;;  %v10794_v11 = vld [vmem:[#allocation7 + $0x624] sm:$0xf]  ;;  %v9602_v25 = vld [vmem:[#allocation7 + $0x510] sm:$0xf0] }
 0x3c4   :  { %13195 = vst [vmem:[#allocation40_spill] sm:$0xff] %v11948_v9  ;;  %v4125_v14 = vpop.f32.mrf.mxu2  ;;  %v9749_v41 = vor.u32 %v10794_v11, %v9746_v24  ;;  %v9706_v9 = vld [vmem:[#allocation7 + $0x5d8] sm:$0xf0] }
 0x3c5   :  { %v4044_v17 = vpop.f32.mrf.mxu3  ;;  %5048 = vmatpush.bf16.msra.mxu0 %v9637_v4 }
 0x3c6   :  { %v4072_v54 = vadd.f32 %v4071_v59, %v4044_v17  ;;  %v9762_v59 = vld [vmem:[#allocation7 + $0x650] sm:$0xf0] }
 0x3c7   :  { %v4075_v39 = vpop.f32.mrf.mxu0  ;;  %v9765_v42 = vor.u32 %v10798_v15, %v9762_v59 }
 0x3c8   :  { %v4099_v33 = vadd.f32 %v4098_v29, %v4072_v54  ;;  %v4102_v43 = vpop.f32.mrf.mxu1  ;;  %v10726_v54 = vld [vmem:[#allocation7 + $0x404] sm:$0xf]  ;;  %v9474_v39 = vld [vmem:[#allocation7 + $0x410] sm:$0xf0] }
 0x3c9   :  { %9405 = vmatmul.msk.bf16.gmra.mxu2 %vm1563_vm1, %v11561_v63  ;;  %5076 = vmatpush.bf16.msra.mxu1 %v9765_v42  ;;  %v9621_v43 = vor.u32 %v10762_v21, %v9618_v51  ;;  %v9477_v10 = vor.u32 %v10726_v54, %v9474_v39  ;;  %v10722_v42 = vld [vmem:[#allocation7 + $0x3e4] sm:$0xf]  ;;  %v9730_v21 = vld [vmem:[#allocation7 + $0x610] sm:$0xf0] }
 0x3ca   :  { %v11954_v37 = vadd.f32 %v4125_v14, %v4099_v33  ;;  %4262 = vmatmul.bf16.gmra.mxu3 %v11553_v46  ;;  %v10814_v14 = vld [vmem:[#allocation7 + $0x6c4] sm:$0xf] }
 0x3cb   :  { %v9829_v17 = vor.u32 %v10814_v14, %v9826_v5  ;;  %5049 = vmatpush.bf16.msra.mxu0 %v9621_v43  ;;  %5022 = vmatpush.bf16.msra.mxu3 %v9477_v10  ;;  %v9458_v14 = vld [vmem:[#allocation7 + $0x3f0] sm:$0xf0]  ;;  %v10790_v5 = vld [vmem:[#allocation7 + $0x604] sm:$0xf] }
 0x3cc   :  { %13196 = vst [vmem:[#allocation41_spill] sm:$0xff] %v11954_v37  ;;  %v4128_v8 = vpop.f32.mrf.mxu2  ;;  %v9733_v54 = vor.u32 %v10790_v5, %v9730_v21  ;;  %v9442_v5 = vld [vmem:[#allocation7 + $0x3d0] sm:$0xf0] }
 0x3cd   :  { %v4047_v23 = vpop.f32.mrf.mxu3  ;;  %5108 = vmatpush.bf16.msra.mxu2 %v9829_v17  ;;  %5077 = vmatpush.bf16.msra.mxu1 %v9749_v41  ;;  %v10758_v8 = vld [vmem:[#allocation7 + $0x504] sm:$0xf]  ;;  %v9461_v17 = vor.u32 %v10722_v42, %v9458_v14  ;;  %v9810_v41 = vld [vmem:[#allocation7 + $0x6b0] sm:$0xf0] }
 0x3ce   :  { %v9605_v23 = vor.u32 %v10758_v8, %v9602_v25  ;;  %v10754_v8 = vld [vmem:[#allocation7 + $0x4e4] sm:$0xf]  ;;  %v9586_v42 = vld [vmem:[#allocation7 + $0x4f0] sm:$0xf0] }
 0x3cf   :  { %v4167_v29 = vpop.f32.mrf.mxu0  ;;  %5023 = vmatpush.bf16.msra.mxu3 %v9461_v17  ;;  %v10718_v14 = vld [vmem:[#allocation7 + $0x3c4] sm:$0xf] }
 0x3d0   :  { %v4194_v36 = vpop.f32.mrf.mxu1  ;;  %5050 = vmatpush.bf16.msra.mxu0 %v9605_v23  ;;  %v9445_v21 = vor.u32 %v10718_v14, %v9442_v5  ;;  %v10786_v17 = vld [vmem:[#allocation7 + $0x5e4] sm:$0xf]  ;;  %v9554_v5 = vld [vmem:[#allocation7 + $0x4b0] sm:$0xf0] }
 0x3d1   :  { %5078 = vmatpush.bf16.msra.mxu1 %v9733_v54  ;;  %v9714_v54 = vld [vmem:[#allocation7 + $0x5f0] sm:$0xf0] }
 0x3d2   :  { %4943 = vmatmul.bf16.vlgmr.msrb.gmra.mxu0 %v11504_v22 }
 0x3d3   :  { %4971 = vmatmul.bf16.vlgmr.msrb.gmra.mxu1 %v11508_v34  ;;  %5024 = vmatpush.bf16.msra.mxu3 %v9445_v21  ;;  %v9682_v21 = vld [vmem:[#allocation7 + $0x5b0] sm:$0xf0] }
 0x3d4   :  { %v4129_v33 = vpop.f32.mrf.mxu2 }
 0x3d5   :  { %v4048_v4 = vpop.f32.mrf.mxu3 }
 0x3d6   :  { %v10810_v4 = vld [vmem:[#allocation7 + $0x6a4] sm:$0xf] }
 0x3d7   :  { %v4169_v15 = vpop.f32.mrf.mxu0  ;;  %v9813_v25 = vor.u32 %v10810_v4, %v9810_v41  ;;  %v9698_v41 = vld [vmem:[#allocation7 + $0x5d0] sm:$0xf0] }
 0x3d8   :  { %v4196_v59 = vpop.f32.mrf.mxu1  ;;  %v9701_v37 = vor.u32 %v10782_v27, %v9698_v41  ;;  %v9666_v41 = vld [vmem:[#allocation7 + $0x590] sm:$0xf0] }
 0x3d9   :  { %9854 = vmatmul.msk.bf16.vlgmr.msrb.gmra.mxu2 %vm1563_vm1, %v11510_v35 }
 0x3da   :  { %4915 = vmatmul.bf16.vlgmr.msrb.gmra.mxu3 %v11502_v20  ;;  %5109 = vmatpush.bf16.msra.mxu2 %v9813_v25  ;;  %v9426_v25 = vld [vmem:[#allocation7 + $0x3b0] sm:$0xf0] }
 0x3dc   :  { %v4221_v51 = vpop.f32.mrf.mxu2 }
 0x3dd   :  { %v4140_v39 = vpop.f32.mrf.mxu3 }
 0x3de   :  { %v4168_v33 = vadd.f32 %v4167_v29, %v4140_v39  ;;  %v9589_v29 = vor.u32 %v10754_v8, %v9586_v42  ;;  %v10746_v42 = vld [vmem:[#allocation7 + $0x4a4] sm:$0xf] }
 0x3df   :  { %v4172_v43 = vpop.f32.mrf.mxu0 }
 0x3e0   :  { %v4195_v10 = vadd.f32 %v4194_v36, %v4168_v33  ;;  %v4199_v11 = vpop.f32.mrf.mxu1  ;;  %5051 = vmatpush.bf16.msra.mxu0 %v9589_v29  ;;  %v10750_v33 = vld [vmem:[#allocation7 + $0x4c4] sm:$0xf] }
 0x3e1   :  { %v10778_v29 = vld [vmem:[#allocation7 + $0x5a4] sm:$0xf] }
 0x3e2   :  { %v11962_v24 = vadd.f32 %v4221_v51, %v4195_v10  ;;  %4948 = vmatmul.bf16.gmra.mxu0 %v11517_v28  ;;  %v9717_v51 = vor.u32 %v10786_v17, %v9714_v54  ;;  %v9570_v10 = vld [vmem:[#allocation7 + $0x4d0] sm:$0xf0]  ;;  %v9685_v54 = vor.u32 %v10778_v29, %v9682_v21 }
 0x3e3   :  { %4976 = vmatmul.bf16.gmra.mxu1 %v11521_v48  ;;  %v9573_v4 = vor.u32 %v10750_v33, %v9570_v10  ;;  %v9538_v33 = vld [vmem:[#allocation7 + $0x490] sm:$0xf0]  ;;  %v10774_v10 = vld [vmem:[#allocation7 + $0x584] sm:$0xf] }
 0x3e4   :  { %13197 = vst [vmem:[#allocation42_spill] sm:$0xff] %v11962_v24  ;;  %v4223_v23 = vpop.f32.mrf.mxu2  ;;  %5079 = vmatpush.bf16.msra.mxu1 %v9717_v51  ;;  %v9794_v51 = vld [vmem:[#allocation7 + $0x690] sm:$0xf0] }
 0x3e5   :  { %v4142_v36 = vpop.f32.mrf.mxu3  ;;  %5052 = vmatpush.bf16.msra.mxu0 %v9573_v4 }
 0x3e6   :  { %v4170_v39 = vadd.f32 %v4169_v15, %v4142_v36  ;;  %v10714_v15 = vld [vmem:[#allocation7 + $0x3a4] sm:$0xf] }
 0x3e7   :  { %v4174_v50 = vpop.f32.mrf.mxu0  ;;  %v9429_v14 = vor.u32 %v10714_v15, %v9426_v25  ;;  %v10806_v36 = vld [vmem:[#allocation7 + $0x684] sm:$0xf] }
 0x3e8   :  { %v4197_v24 = vadd.f32 %v4196_v59, %v4170_v39  ;;  %v4201_v53 = vpop.f32.mrf.mxu1  ;;  %5080 = vmatpush.bf16.msra.mxu1 %v9701_v37  ;;  %v9557_v59 = vor.u32 %v10746_v42, %v9554_v5  ;;  %v10742_v39 = vld [vmem:[#allocation7 + $0x484] sm:$0xf]  ;;  %v9410_v5 = vld [vmem:[#allocation7 + $0x390] sm:$0xf0] }
 0x3e9   :  { %9855 = vmatmul.msk.bf16.gmra.mxu2 %vm1563_vm1, %v11523_v49  ;;  %5025 = vmatpush.bf16.msra.mxu3 %v9429_v14  ;;  %v9541_v37 = vor.u32 %v10742_v39, %v9538_v33  ;;  %v10710_v42 = vld [vmem:[#allocation7 + $0x384] sm:$0xf] }
 0x3ea   :  { %v11968_v8 = vadd.f32 %v4223_v23, %v4197_v24  ;;  %4920 = vmatmul.bf16.gmra.mxu3 %v11515_v26  ;;  %5053 = vmatpush.bf16.msra.mxu0 %v9557_v59  ;;  %v9797_v23 = vor.u32 %v10806_v36, %v9794_v51  ;;  %v9413_v29 = vor.u32 %v10710_v42, %v9410_v5  ;;  %v10741_v51 = vld [vmem:[#allocation7 + $0x474] sm:$0xf0] }
 0x3eb   :  { %v10773_v5 = vld [vmem:[#allocation7 + $0x574] sm:$0xf0] }
 0x3ec   :  { %13198 = vst [vmem:[#allocation43_spill] sm:$0xff] %v11968_v8  ;;  %v4226_v17 = vpop.f32.mrf.mxu2  ;;  %5081 = vmatpush.bf16.msra.mxu1 %v9685_v54  ;;  %5110 = vmatpush.bf16.msra.mxu2 %v9797_v23  ;;  %v9669_v8 = vor.u32 %v10774_v10, %v9666_v41  ;;  %v10821_v41 = vld [vmem:[#allocation7 + $0x6f4] sm:$0xf0] }
 0x3ed   :  { %v4145_v27 = vpop.f32.mrf.mxu3  ;;  %5026 = vmatpush.bf16.msra.mxu3 %v9413_v29  ;;  %v9512_v29 = vld [vmem:[#allocation7 + $0x448] sm:$0xf] }
 0x3ee   :  { %v4173_v24 = vadd.f32 %v4172_v43, %v4145_v27  ;;  %5054 = vmatpush.bf16.msra.mxu0 %v9541_v37 }
 0x3ef   :  { %v4177_v4 = vpop.f32.mrf.mxu0 }
 0x3f0   :  { %v4200_v15 = vadd.f32 %v4199_v11, %v4173_v24  ;;  %v4204_v25 = vpop.f32.mrf.mxu1  ;;  %5082 = vmatpush.bf16.msra.mxu1 %v9669_v8 }
 0x3f2   :  { %v11971_v14 = vadd.f32 %v4226_v17, %v4200_v15  ;;  %4953 = vmatmul.bf16.gmra.mxu0 %v11538_v61  ;;  %v9528_v17 = vld [vmem:[#allocation7 + $0x468] sm:$0xf] }
 0x3f3   :  { %4981 = vmatmul.bf16.gmra.mxu1 %v11546_v18  ;;  %v9529_v24 = vor.u32 %v10741_v51, %v9528_v17  ;;  %v9656_v15 = vld [vmem:[#allocation7 + $0x568] sm:$0xf]  ;;  %v10805_v17 = vld [vmem:[#allocation7 + $0x674] sm:$0xf0] }
 0x3f4   :  { %13199 = vst [vmem:[#allocation44_spill] sm:$0xff] %v11971_v14  ;;  %v4228_v43 = vpop.f32.mrf.mxu2 }
 0x3f5   :  { %v4147_v21 = vpop.f32.mrf.mxu3  ;;  %5131 = vmatpush.bf16.msrb.mxu3 %v9529_v24 }
 0x3f6   :  { %v4175_v59 = vadd.f32 %v4174_v50, %v4147_v21 }
 0x3f7   :  { %v4179_v54 = vpop.f32.mrf.mxu0 }
 0x3f8   :  { %v4202_v11 = vadd.f32 %v4201_v53, %v4175_v59  ;;  %v4206_v27 = vpop.f32.mrf.mxu1  ;;  %v9848_v53 = vld [vmem:[#allocation7 + $0x6e8] sm:$0xf]  ;;  %v9657_v59 = vor.u32 %v10773_v5, %v9656_v15  ;;  %v10733_v15 = vld [vmem:[#allocation7 + $0x434] sm:$0xf0] }
 0x3f9   :  { %9856 = vmatmul.msk.bf16.gmra.mxu2 %vm1563_vm1, %v11548_v19  ;;  %v9849_v42 = vor.u32 %v10821_v41, %v9848_v53  ;;  %v9496_v53 = vld [vmem:[#allocation7 + $0x428] sm:$0xf] }
 0x3fa   :  { %v11977_v36 = vadd.f32 %v4228_v43, %v4202_v11  ;;  %4925 = vmatmul.bf16.gmra.mxu3 %v11536_v1  ;;  %v10737_v43 = vld [vmem:[#allocation7 + $0x454] sm:$0xf0]  ;;  %5159 = vmatpush.bf16.msrb.mxu0 %v9657_v59 }
 0x3fb   :  { %v9513_v11 = vor.u32 %v10737_v43, %v9512_v29  ;;  %5219 = vmatpush.bf16.msrb.mxu2 %v9849_v42  ;;  %v9768_v42 = vld [vmem:[#allocation7 + $0x648] sm:$0xf]  ;;  %v9497_v29 = vor.u32 %v10733_v15, %v9496_v53  ;;  %v10797_v53 = vld [vmem:[#allocation7 + $0x634] sm:$0xf0] }
 0x3fc   :  { %13200 = vst [vmem:[#allocation45_spill] sm:$0xff] %v11977_v36  ;;  %v4231_v23 = vpop.f32.mrf.mxu2 }
 0x3fd   :  { %v4150_v39 = vpop.f32.mrf.mxu3  ;;  %5132 = vmatpush.bf16.msrb.mxu3 %v9513_v11 }
 0x3fe   :  { %v4178_v8 = vadd.f32 %v4177_v4, %v4150_v39  ;;  %v9784_v4 = vld [vmem:[#allocation7 + $0x668] sm:$0xf] }
 0x3ff   :  { %v4182_v33 = vpop.f32.mrf.mxu0  ;;  %v9785_v51 = vor.u32 %v10805_v17, %v9784_v4  ;;  %v10817_v4 = vld [vmem:[#allocation7 + $0x6d4] sm:$0xf0]  ;;  %v9624_v17 = vld [vmem:[#allocation7 + $0x528] sm:$0xf] }
 0x400   :  { %v4205_v10 = vadd.f32 %v4204_v25, %v4178_v8  ;;  %v4209_v50 = vpop.f32.mrf.mxu1 }
 0x401   :  { %5187 = vmatpush.bf16.msrb.mxu1 %v9785_v51  ;;  %v10769_v50 = vld [vmem:[#allocation7 + $0x554] sm:$0xf0]  ;;  %5133 = vmatpush.bf16.msrb.mxu3 %v9497_v29 }
 0x402   :  { %v11980_v37 = vadd.f32 %v4231_v23, %v4205_v10  ;;  %4958 = vmatmul.bf16.gmra.mxu0 %v11555_v47  ;;  %v9640_v10 = vld [vmem:[#allocation7 + $0x548] sm:$0xf]  ;;  %v10765_v51 = vld [vmem:[#allocation7 + $0x534] sm:$0xf0] }
 0x403   :  { %4986 = vmatmul.bf16.gmra.mxu1 %v11559_v62  ;;  %v9641_v41 = vor.u32 %v10769_v50, %v9640_v10  ;;  %v9752_v50 = vld [vmem:[#allocation7 + $0x628] sm:$0xf]  ;;  %v10761_v29 = vld [vmem:[#allocation7 + $0x514] sm:$0xf0] }
 0x404   :  { %13201 = vst [vmem:[#allocation46_spill] sm:$0xff] %v11980_v37  ;;  %v4233_v21 = vpop.f32.mrf.mxu2  ;;  %v9753_v15 = vor.u32 %v10797_v53, %v9752_v50 }
 0x405   :  { %v4152_v25 = vpop.f32.mrf.mxu3  ;;  %5160 = vmatpush.bf16.msrb.mxu0 %v9641_v41 }
 0x406   :  { %v4180_v24 = vadd.f32 %v4179_v54, %v4152_v25  ;;  %v10801_v54 = vld [vmem:[#allocation7 + $0x654] sm:$0xf0] }
 0x407   :  { %v4183_v23 = vpop.f32.mrf.mxu0  ;;  %v9769_v43 = vor.u32 %v10801_v54, %v9768_v42 }
 0x408   :  { %v4207_v39 = vadd.f32 %v4206_v27, %v4180_v24  ;;  %v4210_v8 = vpop.f32.mrf.mxu1  ;;  %v9480_v24 = vld [vmem:[#allocation7 + $0x408] sm:$0xf]  ;;  %v10729_v23 = vld [vmem:[#allocation7 + $0x414] sm:$0xf0] }
 0x409   :  { %9857 = vmatmul.msk.bf16.gmra.mxu2 %vm1563_vm1, %v11561_v63  ;;  %5188 = vmatpush.bf16.msrb.mxu1 %v9769_v43  ;;  %v9625_v8 = vor.u32 %v10765_v51, %v9624_v17  ;;  %v9481_v10 = vor.u32 %v10729_v23, %v9480_v24  ;;  %v9464_v43 = vld [vmem:[#allocation7 + $0x3e8] sm:$0xf]  ;;  %v10793_v17 = vld [vmem:[#allocation7 + $0x614] sm:$0xf0] }
 0x40a   :  { %v11986_v33 = vadd.f32 %v4233_v21, %v4207_v39  ;;  %4930 = vmatmul.bf16.gmra.mxu3 %v11553_v46  ;;  %v9832_v21 = vld [vmem:[#allocation7 + $0x6c8] sm:$0xf] }
 0x40b   :  { %v9833_v25 = vor.u32 %v10817_v4, %v9832_v21  ;;  %5161 = vmatpush.bf16.msrb.mxu0 %v9625_v8  ;;  %5134 = vmatpush.bf16.msrb.mxu3 %v9481_v10  ;;  %v10725_v21 = vld [vmem:[#allocation7 + $0x3f4] sm:$0xf0]  ;;  %v9736_v4 = vld [vmem:[#allocation7 + $0x608] sm:$0xf] }
 0x40c   :  { %13202 = vst [vmem:[#allocation47_spill] sm:$0xff] %v11986_v33  ;;  %v4236_v5 = vpop.f32.mrf.mxu2  ;;  %v9737_v24 = vor.u32 %v10793_v17, %v9736_v4  ;;  %v10721_v4 = vld [vmem:[#allocation7 + $0x3d4] sm:$0xf0] }
 0x40d   :  { %v4155_v59 = vpop.f32.mrf.mxu3  ;;  %5220 = vmatpush.bf16.msrb.mxu2 %v9833_v25  ;;  %5189 = vmatpush.bf16.msrb.mxu1 %v9753_v15  ;;  %v9608_v5 = vld [vmem:[#allocation7 + $0x508] sm:$0xf]  ;;  %v9465_v25 = vor.u32 %v10725_v21, %v9464_v43  ;;  %v10813_v15 = vld [vmem:[#allocation7 + $0x6b4] sm:$0xf0] }
 0x40e   :  { %v9609_v59 = vor.u32 %v10761_v29, %v9608_v5  ;;  %v9592_v5 = vld [vmem:[#allocation7 + $0x4e8] sm:$0xf]  ;;  %v10757_v43 = vld [vmem:[#allocation7 + $0x4f4] sm:$0xf0] }
 0x40f   :  { %v4275_v27 = vpop.f32.mrf.mxu0  ;;  %5135 = vmatpush.bf16.msrb.mxu3 %v9465_v25  ;;  %v9448_v21 = vld [vmem:[#allocation7 + $0x3c8] sm:$0xf] }
 0x410   :  { %v4302_v11 = vpop.f32.mrf.mxu1  ;;  %5162 = vmatpush.bf16.msrb.mxu0 %v9609_v59  ;;  %v9449_v17 = vor.u32 %v10721_v4, %v9448_v21  ;;  %v9720_v25 = vld [vmem:[#allocation7 + $0x5e8] sm:$0xf]  ;;  %v10749_v4 = vld [vmem:[#allocation7 + $0x4b4] sm:$0xf0] }
 0x411   :  { %5190 = vmatpush.bf16.msrb.mxu1 %v9737_v24  ;;  %v10789_v24 = vld [vmem:[#allocation7 + $0x5f4] sm:$0xf0] }
 0x412   :  { %5055 = vmatmul.bf16.vlgmr.msra.gmra.mxu0 %v11504_v22 }
 0x413   :  { %5083 = vmatmul.bf16.vlgmr.msra.gmra.mxu1 %v11508_v34  ;;  %5136 = vmatpush.bf16.msrb.mxu3 %v9449_v17  ;;  %v10781_v17 = vld [vmem:[#allocation7 + $0x5b4] sm:$0xf0] }
 0x414   :  { %v4237_v39 = vpop.f32.mrf.mxu2 }
 0x415   :  { %v4156_v41 = vpop.f32.mrf.mxu3 }
 0x416   :  { %v9816_v41 = vld [vmem:[#allocation7 + $0x6a8] sm:$0xf] }
 0x417   :  { %v4277_v42 = vpop.f32.mrf.mxu0  ;;  %v9817_v29 = vor.u32 %v10813_v15, %v9816_v41  ;;  %v10785_v15 = vld [vmem:[#allocation7 + $0x5d4] sm:$0xf0] }
 0x418   :  { %v4304_v54 = vpop.f32.mrf.mxu1 }
 0x419   :  { %9858 = vmatmul.msk.bf16.vlgmr.msra.gmra.mxu2 %vm1563_vm1, %v11510_v35 }
 0x41a   :  { %5027 = vmatmul.bf16.vlgmr.msra.gmra.mxu3 %v11502_v20  ;;  %5221 = vmatpush.bf16.msrb.mxu2 %v9817_v29  ;;  %v10717_v29 = vld [vmem:[#allocation7 + $0x3b4] sm:$0xf0] }
 0x41c   :  { %v4329_v51 = vpop.f32.mrf.mxu2 }
 0x41d   :  { %v4248_v23 = vpop.f32.mrf.mxu3 }
 0x41e   :  { %v4276_v39 = vadd.f32 %v4275_v27, %v4248_v23  ;;  %v9593_v27 = vor.u32 %v10757_v43, %v9592_v5  ;;  %v9560_v43 = vld [vmem:[#allocation7 + $0x4a8] sm:$0xf] }
 0x41f   :  { %v4280_v8 = vpop.f32.mrf.mxu0 }
 0x420   :  { %v4303_v10 = vadd.f32 %v4302_v11, %v4276_v39  ;;  %v4307_v50 = vpop.f32.mrf.mxu1  ;;  %5163 = vmatpush.bf16.msrb.mxu0 %v9593_v27  ;;  %v9576_v39 = vld [vmem:[#allocation7 + $0x4c8] sm:$0xf] }
 0x421   :  { %v9688_v27 = vld [vmem:[#allocation7 + $0x5a8] sm:$0xf] }
 0x422   :  { %v11994_v53 = vadd.f32 %v4329_v51, %v4303_v10  ;;  %5060 = vmatmul.bf16.gmra.mxu0 %v11517_v28  ;;  %v9721_v51 = vor.u32 %v10789_v24, %v9720_v25  ;;  %v10753_v10 = vld [vmem:[#allocation7 + $0x4d4] sm:$0xf0]  ;;  %v9689_v24 = vor.u32 %v10781_v17, %v9688_v27 }
 0x423   :  { %5088 = vmatmul.bf16.gmra.mxu1 %v11521_v48  ;;  %v9577_v41 = vor.u32 %v10753_v10, %v9576_v39  ;;  %v10745_v39 = vld [vmem:[#allocation7 + $0x494] sm:$0xf0]  ;;  %v9672_v10 = vld [vmem:[#allocation7 + $0x588] sm:$0xf] }
 0x424   :  { %13203 = vst [vmem:[#allocation48_spill] sm:$0xff] %v11994_v53  ;;  %v4331_v59 = vpop.f32.mrf.mxu2  ;;  %v9704_v53 = vld [vmem:[#allocation7 + $0x5c8] sm:$0xf]  ;;  %5191 = vmatpush.bf16.msrb.mxu1 %v9721_v51  ;;  %v10809_v51 = vld [vmem:[#allocation7 + $0x694] sm:$0xf0] }
 0x425   :  { %v4250_v11 = vpop.f32.mrf.mxu3  ;;  %v9705_v14 = vor.u32 %v10785_v15, %v9704_v53  ;;  %5164 = vmatpush.bf16.msrb.mxu0 %v9577_v41  ;;  %v10777_v15 = vld [vmem:[#allocation7 + $0x594] sm:$0xf0] }
 0x426   :  { %v4278_v23 = vadd.f32 %v4277_v42, %v4250_v11  ;;  %v9432_v42 = vld [vmem:[#allocation7 + $0x3a8] sm:$0xf] }
 0x427   :  { %v4282_v33 = vpop.f32.mrf.mxu0  ;;  %v9433_v21 = vor.u32 %v10717_v29, %v9432_v42  ;;  %v9800_v11 = vld [vmem:[#allocation7 + $0x688] sm:$0xf] }
 0x428   :  { %v4305_v37 = vadd.f32 %v4304_v54, %v4278_v23  ;;  %v4309_v36 = vpop.f32.mrf.mxu1  ;;  %5192 = vmatpush.bf16.msrb.mxu1 %v9705_v14  ;;  %v9561_v54 = vor.u32 %v10749_v4, %v9560_v43  ;;  %v9544_v23 = vld [vmem:[#allocation7 + $0x488] sm:$0xf]  ;;  %v10713_v4 = vld [vmem:[#allocation7 + $0x394] sm:$0xf0] }
 0x429   :  { %9859 = vmatmul.msk.bf16.gmra.mxu2 %vm1563_vm1, %v11523_v49  ;;  %5137 = vmatpush.bf16.msrb.mxu3 %v9433_v21  ;;  %v9545_v14 = vor.u32 %v10745_v39, %v9544_v23  ;;  %v9416_v43 = vld [vmem:[#allocation7 + $0x388] sm:$0xf] }
 0x42a   :  { %v12000_v5 = vadd.f32 %v4331_v59, %v4305_v37  ;;  %5032 = vmatmul.bf16.gmra.mxu3 %v11515_v26  ;;  %5165 = vmatpush.bf16.msrb.mxu0 %v9561_v54  ;;  %v9801_v59 = vor.u32 %v10809_v51, %v9800_v11  ;;  %v9417_v27 = vor.u32 %v10713_v4, %v9416_v43  ;;  %v9530_v51 = vld [vmem:[#allocation7 + $0x478] sm:$0xf0] }
 0x42c   :  { %13204 = vst [vmem:[#allocation49_spill] sm:$0xff] %v12000_v5  ;;  %v4334_v25 = vpop.f32.mrf.mxu2  ;;  %5193 = vmatpush.bf16.msrb.mxu1 %v9689_v24  ;;  %5222 = vmatpush.bf16.msrb.mxu2 %v9801_v59  ;;  %v9673_v5 = vor.u32 %v10777_v15, %v9672_v10 }
 0x42d   :  { %v4253_v53 = vpop.f32.mrf.mxu3  ;;  %5138 = vmatpush.bf16.msrb.mxu3 %v9417_v27 }
 0x42e   :  { %v4281_v37 = vadd.f32 %v4280_v8, %v4253_v53  ;;  %5166 = vmatpush.bf16.msrb.mxu0 %v9545_v14 }
 0x42f   :  { %v4285_v41 = vpop.f32.mrf.mxu0 }
 0x430   :  { %v4308_v42 = vadd.f32 %v4307_v50, %v4281_v37  ;;  %v4312_v29 = vpop.f32.mrf.mxu1  ;;  %5194 = vmatpush.bf16.msrb.mxu1 %v9673_v5 }
 0x432   :  { %v12003_v21 = vadd.f32 %v4334_v25, %v4308_v42  ;;  %5065 = vmatmul.bf16.gmra.mxu0 %v11538_v61  ;;  %v10739_v25 = vld [vmem:[#allocation7 + $0x46c] sm:$0xf] }
 0x433   :  { %5093 = vmatmul.bf16.gmra.mxu1 %v11546_v18  ;;  %v9533_v37 = vor.u32 %v10739_v25, %v9530_v51  ;;  %v9514_v25 = vld [vmem:[#allocation7 + $0x458] sm:$0xf0] }
 0x434   :  { %13205 = vst [vmem:[#allocation50_spill] sm:$0xff] %v12003_v21  ;;  %v4336_v8 = vpop.f32.mrf.mxu2  ;;  %v10791_v21 = vld [vmem:[#allocation7 + $0x60c] sm:$0xf] }
 0x435   :  { %v4255_v17 = vpop.f32.mrf.mxu3  ;;  %5243 = vmatpush.bf16.msra.mxu3 %v9533_v37 }
 0x436   :  { %v4283_v54 = vadd.f32 %v4282_v33, %v4255_v17  ;;  %v9850_v17 = vld [vmem:[#allocation7 + $0x6f8] sm:$0xf0] }
 0x437   :  { %v4287_v24 = vpop.f32.mrf.mxu0 }
 0x438   :  { %v4310_v50 = vadd.f32 %v4309_v36, %v4283_v54  ;;  %v4314_v53 = vpop.f32.mrf.mxu1  ;;  %v10771_v54 = vld [vmem:[#allocation7 + $0x56c] sm:$0xf] }
 0x439   :  { %9860 = vmatmul.msk.bf16.gmra.mxu2 %vm1563_vm1, %v11548_v19 }
 0x43a   :  { %v12009_v11 = vadd.f32 %v4336_v8, %v4310_v50  ;;  %5037 = vmatmul.bf16.gmra.mxu3 %v11536_v1  ;;  %v10819_v8 = vld [vmem:[#allocation7 + $0x6ec] sm:$0xf] }
 0x43b   :  { %v10735_v50 = vld [vmem:[#allocation7 + $0x44c] sm:$0xf] }
 0x43c   :  { %13206 = vst [vmem:[#allocation51_spill] sm:$0xff] %v12009_v11  ;;  %v4339_v59 = vpop.f32.mrf.mxu2 }
 0x43d   :  { %v4258_v23 = vpop.f32.mrf.mxu3 }
 0x43e   :  { %v4286_v5 = vadd.f32 %v4285_v41, %v4258_v23  ;;  %v9853_v41 = vor.u32 %v10819_v8, %v9850_v17  ;;  %v9786_v23 = vld [vmem:[#allocation7 + $0x678] sm:$0xf0] }
 0x43f   :  { %v4290_v39 = vpop.f32.mrf.mxu0  ;;  %v9770_v8 = vld [vmem:[#allocation7 + $0x658] sm:$0xf0] }
 0x440   :  { %v4313_v10 = vadd.f32 %v4312_v29, %v4286_v5  ;;  %v4317_v33 = vpop.f32.mrf.mxu1  ;;  %v9658_v29 = vld [vmem:[#allocation7 + $0x578] sm:$0xf0]  ;;  %5331 = vmatpush.bf16.msra.mxu2 %v9853_v41 }
 0x441   :  { %v9661_v37 = vor.u32 %v10771_v54, %v9658_v29 }
 0x442   :  { %v12012_v14 = vadd.f32 %v4339_v59, %v4313_v10  ;;  %5070 = vmatmul.bf16.gmra.mxu0 %v11555_v47  ;;  %v9517_v59 = vor.u32 %v10735_v50, %v9514_v25  ;;  %v13209_v50 = vld [vmem:[#allocation13_spill] sm:$0xff] }
 0x443   :  { %5098 = vmatmul.bf16.gmra.mxu1 %v11559_v62  ;;  %5271 = vmatpush.bf16.msra.mxu0 %v9661_v37  ;;  %v1614_v25 = vadd.f32 %v13209_v50, %v11583_v52  ;;  %v9626_v52 = vld [vmem:[#allocation7 + $0x538] sm:$0xf0] }
 0x444   :  { %13207 = vst [vmem:[#allocation52_spill] sm:$0xff] %v12012_v14  ;;  %v4341_v36 = vpop.f32.mrf.mxu2  ;;  %5244 = vmatpush.bf16.msra.mxu3 %v9517_v59  ;;  %v13210_v59 = vld [vmem:[#allocation14_spill] sm:$0xff] }
 0x445   :  { %v4260_v15 = vpop.f32.mrf.mxu3 }
 0x446   :  { %v4288_v42 = vadd.f32 %v4287_v24, %v4260_v15  ;;  %v10803_v24 = vld [vmem:[#allocation7 + $0x66c] sm:$0xf] }
 0x447   :  { %v4291_v43 = vpop.f32.mrf.mxu0  ;;  %v10767_v15 = vld [vmem:[#allocation7 + $0x54c] sm:$0xf] }
 0x448   :  { %v4315_v4 = vadd.f32 %v4314_v53, %v4288_v42  ;;  %v4318_v27 = vpop.f32.mrf.mxu1  ;;  %v9789_v53 = vor.u32 %v10803_v24, %v9786_v23  ;;  %v10731_v42 = vld [vmem:[#allocation7 + $0x42c] sm:$0xf]  ;;  %v1641_v24 = vadd.f32 %v13210_v59, %v1614_v25 }
 0x449   :  { %9861 = vmatmul.msk.bf16.gmra.mxu2 %vm1563_vm1, %v11561_v63  ;;  %v10799_v27 = vld [vmem:[#allocation7 + $0x64c] sm:$0xf] }
 0x44a   :  { %v12018_v51 = vadd.f32 %v4341_v36, %v4315_v4  ;;  %5042 = vmatmul.bf16.gmra.mxu3 %v11553_v46  ;;  %5299 = vmatpush.bf16.msra.mxu1 %v9789_v53  ;;  %v9642_v36 = vld [vmem:[#allocation7 + $0x558] sm:$0xf0]  ;;  %v9773_v41 = vor.u32 %v10799_v27, %v9770_v8  ;;  %v12030_v53 = vld [vmem:[#allocation8] sm:$0xf] }
 0x44b   :  { %v9645_v43 = vor.u32 %v10767_v15, %v9642_v36  ;;  %v9498_v4 = vld [vmem:[#allocation7 + $0x438] sm:$0xf0]  ;;  %v10763_v15 = vld [vmem:[#allocation7 + $0x52c] sm:$0xf]  ;;  %v12037_v50 = vperm.slane %v12030_v53, 0 }
 0x44c   :  { %13208 = vst [vmem:[#allocation53_spill] sm:$0xff] %v12018_v51  ;;  %v4344_v5 = vpop.f32.mrf.mxu2  ;;  %v9501_v54 = vor.u32 %v10731_v42, %v9498_v4  ;;  %v10727_v42 = vld [vmem:[#allocation7 + $0x40c] sm:$0xf]  ;;  %v13211_v4 = vld [vmem:[#allocation15_spill] sm:$0xff]  ;;  %v13212_v51 = vld [vmem:[#allocation20_spill] sm:$0xff] }
 0x44d   :  { %v4263_v39 = vpop.f32.mrf.mxu3  ;;  %5272 = vmatpush.bf16.msra.mxu0 %v9645_v43  ;;  %v10815_v5 = vld [vmem:[#allocation7 + $0x6cc] sm:$0xf]  ;;  %v9482_v43 = vld [vmem:[#allocation7 + $0x418] sm:$0xf0]  ;;  %v1668_v27 = vadd.f32 %v13211_v4, %v1641_v24 }
 0x44e   :  { %5245 = vmatpush.bf16.msra.mxu3 %v9501_v54  ;;  %5300 = vmatpush.bf16.msra.mxu1 %v9773_v41  ;;  %v9834_v39 = vld [vmem:[#allocation7 + $0x6d8] sm:$0xf0]  ;;  %v9485_v54 = vor.u32 %v10727_v42, %v9482_v43  ;;  %v10795_v41 = vld [vmem:[#allocation7 + $0x62c] sm:$0xf] }
 0x44f   :  { %v4944_v10 = vpop.f32.mrf.mxu0  ;;  %v9837_v36 = vor.u32 %v10815_v5, %v9834_v39  ;;  %v5355_v14 = vadd.f32 %v13212_v51, %v1668_v27  ;;  %v10759_v5 = vld [vmem:[#allocation7 + $0x50c] sm:$0xf]  ;;  %v9610_v39 = vld [vmem:[#allocation7 + $0x518] sm:$0xf0] }
 0x450   :  { %v4972_v33 = vpop.f32.mrf.mxu1  ;;  %v10723_v51 = vld [vmem:[#allocation7 + $0x3ec] sm:$0xf] }
 0x451   :  { %5332 = vmatpush.bf16.msra.mxu2 %v9837_v36  ;;  %v5397_v36 = vadd.f32 %v12037_v50, %v5355_v14  ;;  %v10755_v27 = vld [vmem:[#allocation7 + $0x4ec] sm:$0xf] }
 0x452   :  { %5167 = vmatmul.bf16.vlgmr.msrb.gmra.mxu0 %v11504_v22  ;;  %5246 = vmatpush.bf16.msra.mxu3 %v9485_v54  ;;  %v9594_v54 = vld [vmem:[#allocation7 + $0x4f8] sm:$0xf0] }
 0x453   :  { %5195 = vmatmul.bf16.vlgmr.msrb.gmra.mxu1 %v11508_v34 }
 0x454   :  { %v4345_v17 = vpop.f32.mrf.mxu2 }
 0x455   :  { %v4264_v29 = vpop.f32.mrf.mxu3  ;;  %v9629_v17 = vor.u32 %v10763_v15, %v9626_v52  ;;  %v9613_v15 = vor.u32 %v10759_v5, %v9610_v39  ;;  %v9738_v52 = vld [vmem:[#allocation7 + $0x618] sm:$0xf0] }
 0x456   :  { %v9754_v29 = vld [vmem:[#allocation7 + $0x638] sm:$0xf0]  ;;  %v9741_v4 = vor.u32 %v10791_v21, %v9738_v52  ;;  %v9597_v21 = vor.u32 %v10755_v27, %v9594_v54  ;;  %v10751_v52 = vld [vmem:[#allocation7 + $0x4cc] sm:$0xf] }
 0x457   :  { %v12025_v37 = vpop.f32.mrf.mxu0  ;;  %v9757_v59 = vor.u32 %v10795_v41, %v9754_v29  ;;  %5273 = vmatpush.bf16.msra.mxu0 %v9629_v17  ;;  %v10787_v29 = vld [vmem:[#allocation7 + $0x5ec] sm:$0xf] }
 0x458   :  { %v12028_v23 = vpop.f32.mrf.mxu1 }
 0x459   :  { %9862 = vmatmul.msk.bf16.vlgmr.msrb.gmra.mxu2 %vm1563_vm1, %v11510_v35  ;;  %5301 = vmatpush.bf16.msra.mxu1 %v9757_v59 }
 0x45a   :  { %5139 = vmatmul.bf16.vlgmr.msrb.gmra.mxu3 %v11502_v20 }
 0x45b   :  { %5274 = vmatpush.bf16.msra.mxu0 %v9613_v15  ;;  %v13214_v15 = vld [vmem:[#allocation17_spill] sm:$0xff] }
 0x45c   :  { %v5000_v8 = vpop.f32.mrf.mxu2 }
 0x45d   :  { %v4916_v25 = vpop.f32.mrf.mxu3  ;;  %5302 = vmatpush.bf16.msra.mxu1 %v9741_v4 }
 0x45e   :  { %v4945_v11 = vadd.f32 %v4944_v10, %v4916_v25  ;;  %v9466_v10 = vld [vmem:[#allocation7 + $0x3f8] sm:$0xf0] }
 0x45f   :  { %v12040_v24 = vpop.f32.mrf.mxu0  ;;  %v9469_v17 = vor.u32 %v10723_v51, %v9466_v10  ;;  %v9722_v25 = vld [vmem:[#allocation7 + $0x5f8] sm:$0xf0]  ;;  %v1619_v51 = vadd.f32 %v13214_v15, %v13213_v40  ;;  %5275 = vmatpush.bf16.msra.mxu0 %v9597_v21  ;;  %v5405_v21 = vadd.f32 %v12037_v50, %v11739_v12  ;;  %v13216_v15 = vld [vmem:[#allocation19_spill] sm:$0xff] }
 0x460   :  { %v4973_v42 = vadd.f32 %v4972_v33, %v4945_v11  ;;  %v12042_v43 = vpop.f32.mrf.mxu1  ;;  %v9725_v59 = vor.u32 %v10787_v29, %v9722_v25  ;;  %v10811_v29 = vld [vmem:[#allocation7 + $0x6ac] sm:$0xf]  ;;  %v9818_v25 = vld [vmem:[#allocation7 + $0x6b8] sm:$0xf0] }
 0x461   :  { %5247 = vmatpush.bf16.msra.mxu3 %v9469_v17 }
 0x462   :  { %v5001_v41 = vadd.f32 %v5000_v8, %v4973_v42  ;;  %5172 = vmatmul.bf16.gmra.mxu0 %v11517_v28  ;;  %v5453_v8 = vmax.f32 %v5397_v36, 0.0  ;;  %v9578_v42 = vld [vmem:[#allocation7 + $0x4d8] sm:$0xf0]  ;;  %5303 = vmatpush.bf16.msra.mxu1 %v9725_v59  ;;  %v10747_v59 = vld [vmem:[#allocation7 + $0x4ac] sm:$0xf] }
 0x463   :  { %5200 = vmatmul.bf16.gmra.mxu1 %v11521_v48  ;;  %v9581_v0 = vor.u32 %v10751_v52, %v9578_v42  ;;  %v10779_v42 = vld [vmem:[#allocation7 + $0x5ac] sm:$0xf] }
 0x464   :  { %v5393_v11 = vadd.f32 %v12037_v50, %v5001_v41  ;;  %v5002_v33 = vpop.f32.mrf.mxu2  ;;  %v10783_v41 = vld [vmem:[#allocation7 + $0x5cc] sm:$0xf] }
 0x465   :  { %v4918_v14 = vpop.f32.mrf.mxu3  ;;  %v9709_v36 = vor.u32 %v10783_v41, %v9706_v9  ;;  %5276 = vmatpush.bf16.msra.mxu0 %v9581_v0  ;;  %v9562_v9 = vld [vmem:[#allocation7 + $0x4b8] sm:$0xf0]  ;;  %v10743_v0 = vld [vmem:[#allocation7 + $0x48c] sm:$0xf] }
 0x466   :  { %v5449_v5 = vmax.f32 %v5393_v11, 0.0  ;;  %v4919_v39 = vadd.f32 %v4918_v14, %v11898_v30  ;;  %v13215_v30 = vld [vmem:[#allocation18_spill] sm:$0xff]  ;;  %v9450_v14 = vld [vmem:[#allocation7 + $0x3d8] sm:$0xf0]  ;;  %v9565_v52 = vor.u32 %v10747_v59, %v9562_v9 }
 0x467   :  { %v12051_v10 = vpop.f32.mrf.mxu0  ;;  %v1646_v54 = vadd.f32 %v13215_v30, %v1619_v51  ;;  %v10719_v11 = vld [vmem:[#allocation7 + $0x3cc] sm:$0xf]  ;;  %5304 = vmatpush.bf16.msra.mxu1 %v9709_v36  ;;  %v9434_v9 = vld [vmem:[#allocation7 + $0x3b8] sm:$0xf0] }
 0x468   :  { %v12053_v4 = vpack.c.bf16 %v5453_v8, %v5449_v5  ;;  %v4947_v27 = vadd.f32 %v12025_v37, %v4919_v39  ;;  %v12056_v17 = vpop.f32.mrf.mxu1  ;;  %v9821_v37 = vor.u32 %v10811_v29, %v9818_v25  ;;  %v9453_v39 = vor.u32 %v10719_v11, %v9450_v14  ;;  %v9546_v29 = vld [vmem:[#allocation7 + $0x498] sm:$0xf0]  ;;  %v10775_v25 = vld [vmem:[#allocation7 + $0x58c] sm:$0xf] }
 0x469   :  { %9863 = vmatmul.msk.bf16.gmra.mxu2 %vm1563_vm1, %v11523_v49  ;;  %v1673_v51 = vadd.f32 %v13216_v15, %v1646_v54  ;;  %5277 = vmatpush.bf16.msra.mxu0 %v9565_v52  ;;  %v9674_v11 = vld [vmem:[#allocation7 + $0x598] sm:$0xf0]  ;;  %v10807_v52 = vld [vmem:[#allocation7 + $0x68c] sm:$0xf] }
 0x46a   :  { %v4975_v40 = vadd.f32 %v12028_v23, %v4947_v27  ;;  %5144 = vmatmul.bf16.gmra.mxu3 %v11515_v26  ;;  %v9690_v23 = vld [vmem:[#allocation7 + $0x5b8] sm:$0xf0]  ;;  %5333 = vmatpush.bf16.msra.mxu2 %v9821_v37  ;;  %v10715_v37 = vld [vmem:[#allocation7 + $0x3ac] sm:$0xf] }
 0x46b   :  { %v9693_v27 = vor.u32 %v10779_v42, %v9690_v23  ;;  %5248 = vmatpush.bf16.msra.mxu3 %v9453_v39  ;;  %v9677_v42 = vor.u32 %v10775_v25, %v9674_v11  ;;  %v9802_v15 = vld [vmem:[#allocation7 + $0x698] sm:$0xf0] }
 0x46c   :  { %v5003_v8 = vadd.f32 %v5002_v33, %v4975_v40  ;;  %v5005_v5 = vpop.f32.mrf.mxu2  ;;  %v5461_v33 = vmax.f32 %v5405_v21, 0.0  ;;  %v5363_v40 = vadd.f32 %v11741_v44, %v1673_v51  ;;  %v10711_v51 = vld [vmem:[#allocation7 + $0x38c] sm:$0xf] }
 0x46d   :  { %v4921_v41 = vpop.f32.mrf.mxu3  ;;  %5305 = vmatpush.bf16.msra.mxu1 %v9693_v27  ;;  %v9805_v27 = vor.u32 %v10807_v52, %v9802_v15 }
 0x46e   :  { %v5401_v30 = vadd.f32 %v12037_v50, %v5003_v8  ;;  %v4922_v12 = vadd.f32 %v4921_v41, %v11904_v16  ;;  %v9549_v8 = vor.u32 %v10743_v0, %v9546_v29  ;;  %v9437_v16 = vor.u32 %v10715_v37, %v9434_v9 }
 0x46f   :  { %v4954_v36 = vpop.f32.mrf.mxu0  ;;  %v5413_v44 = vadd.f32 %v12037_v50, %v5363_v40  ;;  %5334 = vmatpush.bf16.msra.mxu2 %v9805_v27 }
 0x470   :  { %v5457_v14 = vmax.f32 %v5401_v30, 0.0  ;;  %v4950_v54 = vadd.f32 %v12040_v24, %v4922_v12  ;;  %v4982_v59 = vpop.f32.mrf.mxu1  ;;  %5249 = vmatpush.bf16.msra.mxu3 %v9437_v16  ;;  %5278 = vmatpush.bf16.msra.mxu0 %v9549_v8  ;;  %v9418_v30 = vld [vmem:[#allocation7 + $0x398] sm:$0xf0] }
 0x471   :  { %5306 = vmatpush.bf16.msra.mxu1 %v9677_v42  ;;  %v9421_v0 = vor.u32 %v10711_v51, %v9418_v30  ;;  %v5469_v25 = vmax.f32 %v5413_v44, 0.0 }
 0x472   :  { %v12070_v39 = vpack.c.bf16 %v5461_v33, %v5457_v14  ;;  %v4978_v23 = vadd.f32 %v12042_v43, %v4950_v54  ;;  %5177 = vmatmul.bf16.gmra.mxu0 %v11538_v61 }
 0x473   :  { %5205 = vmatmul.bf16.gmra.mxu1 %v11546_v18 }
 0x474   :  { %v5006_v21 = vadd.f32 %v5005_v5, %v4978_v23  ;;  %v5007_v24 = vpop.f32.mrf.mxu2  ;;  %5250 = vmatpush.bf16.msra.mxu3 %v9421_v0 }
 0x475   :  { %v4923_v41 = vpop.f32.mrf.mxu3 }
 0x476   :  { %v5409_v12 = vadd.f32 %v12037_v50, %v5006_v21  ;;  %v4924_v43 = vadd.f32 %v4923_v41, %v11907_v38  ;;  %v5421_v38 = vadd.f32 %v12037_v50, %v11749_v60  ;;  %v5429_v60 = vadd.f32 %v12037_v50, %v11754_v56  ;;  %v13217_v56 = vld [vmem:[#allocation21_spill] sm:$0xff] }
 0x477   :  { %v4956_v29 = vpop.f32.mrf.mxu0 }
 0x478   :  { %v5465_v33 = vmax.f32 %v5409_v12, 0.0  ;;  %v4952_v5 = vadd.f32 %v12051_v10, %v4924_v43  ;;  %v4984_v40 = vpop.f32.mrf.mxu1  ;;  %v5477_v16 = vmax.f32 %v5421_v38, 0.0 }
 0x479   :  { %9864 = vmatmul.msk.bf16.gmra.mxu2 %vm1563_vm1, %v11548_v19 }
 0x47a   :  { %v12081_v11 = vpack.c.bf16 %v5469_v25, %v5465_v33  ;;  %v4980_v14 = vadd.f32 %v12056_v17, %v4952_v5  ;;  %5149 = vmatmul.bf16.gmra.mxu3 %v11536_v1  ;;  %v5437_v25 = vadd.f32 %v12037_v50, %v13217_v56 }
 0x47c   :  { %v5008_v54 = vadd.f32 %v5007_v24, %v4980_v14  ;;  %v5010_v37 = vpop.f32.mrf.mxu2 }
 0x47d   :  { %v4926_v9 = vpop.f32.mrf.mxu3 }
 0x47e   :  { %v5417_v8 = vadd.f32 %v12037_v50, %v5008_v54  ;;  %v4927_v10 = vadd.f32 %v4926_v9, %v11913_v45  ;;  %v5493_v54 = vmax.f32 %v5437_v25, 0.0  ;;  %v11050_v25 = vld [vmem:[%s13162_s5 + $0x20] sm:$0xff] }
 0x47f   :  { %v4959_v42 = vpop.f32.mrf.mxu0 }
 0x480   :  { %v5473_v23 = vmax.f32 %v5417_v8, 0.0  ;;  %v4955_v44 = vadd.f32 %v4954_v36, %v4927_v10  ;;  %v4987_v21 = vpop.f32.mrf.mxu1  ;;  %v5485_v36 = vmax.f32 %v5429_v60, 0.0 }
 0x482   :  { %v12089_v52 = vpack.c.bf16 %v5477_v16, %v5473_v23  ;;  %v4983_v17 = vadd.f32 %v4982_v59, %v4955_v44  ;;  %5182 = vmatmul.bf16.gmra.mxu0 %v11555_v47  ;;  %v11061_v16 = vld [vmem:[%s13162_s5 + $0x78] sm:$0xff]  ;;  %v13218_v23 = vld [vmem:[#allocation22_spill] sm:$0xff] }
 0x483   :  { %5210 = vmatmul.bf16.gmra.mxu1 %v11559_v62  ;;  %5821 = vmatpush.bf16.msrb.mxu0 %v11061_v16 }
 0x484   :  { %v5011_v24 = vadd.f32 %v5010_v37, %v4983_v17  ;;  %v5012_v15 = vpop.f32.mrf.mxu2 }
 0x485   :  { %v4928_v51 = vpop.f32.mrf.mxu3 }
 0x486   :  { %v5425_v45 = vadd.f32 %v12037_v50, %v5011_v24  ;;  %v4929_v41 = vadd.f32 %v4928_v51, %v11916_v3  ;;  %v11053_v51 = vld [vmem:[%s13162_s5 + $0x38] sm:$0xff] }
 0x487   :  { %v4961_v27 = vpop.f32.mrf.mxu0  ;;  %5778 = vmatpush.bf16.msrb.mxu3 %v11053_v51 }
 0x488   :  { %v5481_v30 = vmax.f32 %v5425_v45, 0.0  ;;  %v4957_v12 = vadd.f32 %v4956_v29, %v4929_v41  ;;  %v4989_v43 = vpop.f32.mrf.mxu1 }
 0x489   :  { %9865 = vmatmul.msk.bf16.gmra.mxu2 %vm1563_vm1, %v11561_v63  ;;  %v11057_v43 = vld [vmem:[%s13162_s5 + $0x58] sm:$0xff] }
 0x48a   :  { %v12099_v59 = vpack.c.bf16 %v5485_v36, %v5481_v30  ;;  %v4985_v0 = vadd.f32 %v4984_v40, %v4957_v12  ;;  %5154 = vmatmul.bf16.gmra.mxu3 %v11553_v46  ;;  %v11051_v12 = vld [vmem:[%s13162_s5 + $0x28] sm:$0xff] }
 0x48c   :  { %v5013_v33 = vadd.f32 %v5012_v15, %v4985_v0  ;;  %v5015_v5 = vpop.f32.mrf.mxu2 }
 0x48d   :  { %v4931_v14 = vpop.f32.mrf.mxu3 }
 0x48e   :  { %v5433_v3 = vadd.f32 %v12037_v50, %v5013_v33  ;;  %v4932_v38 = vadd.f32 %v4931_v14, %v11922_v31  ;;  %v5445_v31 = vadd.f32 %v12037_v50, %v13218_v23  ;;  %v11048_v23 = vld [vmem:[%s13162_s5 + $0x10] sm:$0xff] }
 0x48f   :  { %v12106_v29 = vpop.f32.mrf.mxu0 }
 0x490   :  { %v5489_v37 = vmax.f32 %v5433_v3, 0.0  ;;  %v4960_v9 = vadd.f32 %v4959_v42, %v4932_v38  ;;  %v12108_v8 = vpop.f32.mrf.mxu1  ;;  %v11049_v3 = vld [vmem:[%s13162_s5 + $0x18] sm:$0xff]  ;;  %v12168_v38 = vperm.slane %v12030_v53, 1 }
 0x492   :  { %v12110_v40 = vpack.c.bf16 %v5493_v54, %v5489_v37  ;;  %v4988_v10 = vadd.f32 %v4987_v21, %v4960_v9  ;;  %5279 = vmatmul.bf16.vlgmr.msra.gmra.mxu0 %v11504_v22  ;;  %v11060_v22 = vld [vmem:[%s13162_s5 + $0x70] sm:$0xff]  ;;  %v5501_v21 = vmax.f32 %v5445_v31, 0.0  ;;  %v5406_v37 = vadd.f32 %v12168_v38, %v11780_v32  ;;  %v11054_v32 = vld [vmem:[%s13162_s5 + $0x40] sm:$0xff] }
 0x493   :  { %5307 = vmatmul.bf16.vlgmr.msra.gmra.mxu1 %v11508_v34  ;;  %5822 = vmatpush.bf16.msrb.mxu0 %v11060_v22  ;;  %v5414_v51 = vadd.f32 %v12168_v38, %v11786_v6 }
 0x494   :  { %v5016_v44 = vadd.f32 %v5015_v5, %v4988_v10  ;;  %v5017_v17 = vpop.f32.mrf.mxu2 }
 0x495   :  { %v4933_v60 = vpop.f32.mrf.mxu3 }
 0x496   :  { %v5441_v42 = vadd.f32 %v12037_v50, %v5016_v44  ;;  %v11059_v50 = vld [vmem:[%s13162_s5 + $0x68] sm:$0xff]  ;;  %v5462_v60 = vmax.f32 %v5406_v37, 0.0 }
 0x497   :  { %v5058_v24 = vpop.f32.mrf.mxu0  ;;  %5823 = vmatpush.bf16.msrb.mxu0 %v11059_v50 }
 0x498   :  { %v5497_v34 = vmax.f32 %v5441_v42, 0.0  ;;  %v5086_v15 = vpop.f32.mrf.mxu1 }
 0x499   :  { %9866 = vmatmul.msk.bf16.vlgmr.msra.gmra.mxu2 %vm1563_vm1, %v11510_v35  ;;  %v11052_v35 = vld [vmem:[%s13162_s5 + $0x30] sm:$0xff] }
 0x49a   :  { %v12128_v45 = vpack.c.bf16 %v5501_v21, %v5497_v34  ;;  %5251 = vmatmul.bf16.vlgmr.msra.gmra.mxu3 %v11502_v20  ;;  %v11058_v20 = vld [vmem:[%s13162_s5 + $0x60] sm:$0xff]  ;;  %v11047_v21 = vld [vmem:[%s13162_s5 + $0x8] sm:$0xff] }
 0x49b   :  { %5779 = vmatpush.bf16.msrb.mxu3 %v11052_v35  ;;  %5824 = vmatpush.bf16.msrb.mxu0 %v11058_v20  ;;  %v11046_v20 = vld [vmem:[%s13162_s5] sm:$0xff] }
 0x49c   :  { %13219 = vst [vmem:[#allocation13_spill] sm:$0xff] %v12128_v45  ;;  %v12134_v41 = vpop.f32.mrf.mxu2 }
 0x49d   :  { %v12136_v27 = vpop.f32.mrf.mxu3 }
 0x49f   :  { %v5061_v36 = vpop.f32.mrf.mxu0  ;;  %5780 = vmatpush.bf16.msrb.mxu3 %v11051_v12  ;;  %5825 = vmatpush.bf16.msrb.mxu0 %v11057_v43  ;;  %v5470_v43 = vmax.f32 %v5414_v51, 0.0  ;;  %v13222_v51 = vld [vmem:[#allocation24_spill] sm:$0xff] }
 0x4a0   :  { %v5089_v30 = vpop.f32.mrf.mxu1 }
 0x4a2   :  { %5284 = vmatmul.bf16.gmra.mxu0 %v11517_v28  ;;  %v11056_v28 = vld [vmem:[%s13162_s5 + $0x50] sm:$0xff] }
 0x4a3   :  { %5312 = vmatmul.bf16.gmra.mxu1 %v11521_v48  ;;  %5781 = vmatpush.bf16.msrb.mxu3 %v11050_v25  ;;  %v11065_v25 = vld [vmem:[%s13162_s5 + $0x98] sm:$0xff] }
 0x4a4   :  { %v5114_v0 = vpop.f32.mrf.mxu2  ;;  %5826 = vmatpush.bf16.msrb.mxu0 %v11056_v28 }
 0x4a5   :  { %v5030_v56 = vpop.f32.mrf.mxu3 }
 0x4a6   :  { %v5031_v33 = vadd.f32 %v5030_v56, %v11930_v13  ;;  %v11069_v13 = vld [vmem:[%s13162_s5 + $0xb8] sm:$0xff] }
 0x4a7   :  { %v5063_v5 = vpop.f32.mrf.mxu0  ;;  %5782 = vmatpush.bf16.msrb.mxu3 %v11049_v3  ;;  %5864 = vmatpush.bf16.msrb.mxu1 %v11069_v13 }
 0x4a8   :  { %v5059_v48 = vadd.f32 %v5058_v24, %v5031_v33  ;;  %v5091_v14 = vpop.f32.mrf.mxu1 }
 0x4a9   :  { %9867 = vmatmul.msk.bf16.gmra.mxu2 %vm1563_vm1, %v11523_v49  ;;  %v11055_v49 = vld [vmem:[%s13162_s5 + $0x48] sm:$0xff] }
 0x4aa   :  { %v5087_v54 = vadd.f32 %v5086_v15, %v5059_v48  ;;  %5256 = vmatmul.bf16.gmra.mxu3 %v11515_v26  ;;  %5827 = vmatpush.bf16.msrb.mxu0 %v11055_v49  ;;  %v11068_v26 = vld [vmem:[%s13162_s5 + $0xb0] sm:$0xff] }
 0x4ab   :  { %5783 = vmatpush.bf16.msrb.mxu3 %v11048_v23  ;;  %5865 = vmatpush.bf16.msrb.mxu1 %v11068_v26 }
 0x4ac   :  { %v5115_v9 = vadd.f32 %v5114_v0, %v5087_v54  ;;  %v5117_v10 = vpop.f32.mrf.mxu2 }
 0x4ad   :  { %v5033_v16 = vpop.f32.mrf.mxu3 }
 0x4ae   :  { %v5402_v31 = vadd.f32 %v12168_v38, %v5115_v9  ;;  %v5034_v44 = vadd.f32 %v5033_v16, %v11936_v7  ;;  %5828 = vmatpush.bf16.msrb.mxu0 %v11054_v32  ;;  %v11067_v7 = vld [vmem:[%s13162_s5 + $0xa8] sm:$0xff]  ;;  %v13220_v32 = vld [vmem:[#allocation40_spill] sm:$0xff] }
 0x4af   :  { %v5066_v17 = vpop.f32.mrf.mxu0  ;;  %5784 = vmatpush.bf16.msrb.mxu3 %v11047_v21  ;;  %5866 = vmatpush.bf16.msrb.mxu1 %v11067_v7 }
 0x4b0   :  { %v5458_v42 = vmax.f32 %v5402_v31, 0.0  ;;  %v5062_v24 = vadd.f32 %v5061_v36, %v5034_v44  ;;  %v5094_v22 = vpop.f32.mrf.mxu1  ;;  %v11062_v44 = vld [vmem:[%s13162_s5 + $0x80] sm:$0xff] }
 0x4b2   :  { %v12193_v34 = vpack.c.bf16 %v5462_v60, %v5458_v42  ;;  %v5090_v15 = vadd.f32 %v5089_v30, %v5062_v24  ;;  %5289 = vmatmul.bf16.gmra.mxu0 %v11538_v61  ;;  %v11066_v30 = vld [vmem:[%s13162_s5 + $0xa0] sm:$0xff] }
 0x4b3   :  { %5317 = vmatmul.bf16.gmra.mxu1 %v11546_v18  ;;  %5785 = vmatpush.bf16.msrb.mxu3 %v11046_v20 }
 0x4b4   :  { %v5118_v50 = vadd.f32 %v5117_v10, %v5090_v15  ;;  %v5119_v35 = vpop.f32.mrf.mxu2  ;;  %5867 = vmatpush.bf16.msrb.mxu1 %v11066_v30 }
 0x4b5   :  { %v5035_v36 = vpop.f32.mrf.mxu3 }
 0x4b6   :  { %v5410_v61 = vadd.f32 %v12168_v38, %v5118_v50  ;;  %v5036_v18 = vadd.f32 %v5035_v36, %v11939_v58  ;;  %v5422_v58 = vadd.f32 %v12168_v38, %v11792_v55  ;;  %v5438_v50 = vadd.f32 %v12168_v38, %v13222_v51 }
 0x4b7   :  { %v5068_v12 = vpop.f32.mrf.mxu0 }
 0x4b8   :  { %v5466_v6 = vmax.f32 %v5410_v61, 0.0  ;;  %v5064_v0 = vadd.f32 %v5063_v5, %v5036_v18  ;;  %v5096_v56 = vpop.f32.mrf.mxu1  ;;  %v5057_v5 = vadd.f32 %v12106_v29, %v12136_v27  ;;  %5868 = vmatpush.bf16.msrb.mxu1 %v11065_v25  ;;  %v11063_v29 = vld [vmem:[%s13162_s5 + $0x88] sm:$0xff] }
 0x4b9   :  { %9868 = vmatmul.msk.bf16.gmra.mxu2 %vm1563_vm1, %v11548_v19  ;;  %v11064_v19 = vld [vmem:[%s13162_s5 + $0x90] sm:$0xff] }
 0x4ba   :  { %v12212_v33 = vpack.c.bf16 %v5470_v43, %v5466_v6  ;;  %v5092_v28 = vadd.f32 %v5091_v14, %v5064_v0  ;;  %5261 = vmatmul.bf16.gmra.mxu3 %v11536_v1  ;;  %v5478_v1 = vmax.f32 %v5422_v58, 0.0  ;;  %v5085_v37 = vadd.f32 %v12108_v8, %v5057_v5  ;;  %v11073_v5 = vld [vmem:[%s13162_s5 + $0xd8] sm:$0xff] }
 0x4bb   :  { %v5494_v6 = vmax.f32 %v5438_v50, 0.0  ;;  %5911 = vmatpush.bf16.msrb.mxu2 %v11073_v5  ;;  %v13227_v50 = vld [vmem:[#allocation27_spill] sm:$0xff]  ;;  %v11071_v5 = vld [vmem:[%s13162_s5 + $0xc8] sm:$0xff] }
 0x4bc   :  { %v5120_v48 = vadd.f32 %v5119_v35, %v5092_v28  ;;  %v5122_v3 = vpop.f32.mrf.mxu2  ;;  %5869 = vmatpush.bf16.msrb.mxu1 %v11064_v19  ;;  %v5113_v8 = vadd.f32 %v12134_v41, %v5085_v37  ;;  %v13221_v41 = vld [vmem:[#allocation23_spill] sm:$0xff] }
 0x4bd   :  { %v5038_v13 = vpop.f32.mrf.mxu3  ;;  %v5398_v21 = vadd.f32 %v12168_v38, %v13221_v41 }
 0x4be   :  { %v5418_v54 = vadd.f32 %v12168_v38, %v5120_v48  ;;  %v5039_v14 = vadd.f32 %v5038_v13, %v11945_v2  ;;  %v5430_v2 = vadd.f32 %v12168_v38, %v11797_v57  ;;  %v13224_v48 = vld [vmem:[#allocation25_spill] sm:$0xff] }
 0x4bf   :  { %v5071_v49 = vpop.f32.mrf.mxu0  ;;  %v5454_v61 = vmax.f32 %v5398_v21, 0.0 }
 0x4c0   :  { %v5474_v55 = vmax.f32 %v5418_v54, 0.0  ;;  %v5067_v9 = vadd.f32 %v5066_v17, %v5039_v14  ;;  %v5099_v10 = vpop.f32.mrf.mxu1  ;;  %5870 = vmatpush.bf16.msrb.mxu1 %v11063_v29  ;;  %v5486_v42 = vmax.f32 %v5430_v2, 0.0 }
 0x4c2   :  { %v12228_v27 = vpack.c.bf16 %v5478_v1, %v5474_v55  ;;  %v5095_v16 = vadd.f32 %v5094_v22, %v5067_v9  ;;  %5294 = vmatmul.bf16.gmra.mxu0 %v11555_v47 }
 0x4c3   :  { %5322 = vmatmul.bf16.gmra.mxu1 %v11559_v62  ;;  %v5394_v62 = vadd.f32 %v12168_v38, %v5113_v8 }
 0x4c4   :  { %v5123_v23 = vadd.f32 %v5122_v3, %v5095_v16  ;;  %v5124_v26 = vpop.f32.mrf.mxu2  ;;  %5871 = vmatpush.bf16.msrb.mxu1 %v11062_v44  ;;  %v5446_v3 = vadd.f32 %v12168_v38, %v13224_v48  ;;  %v12267_v16 = vperm.slane %v12030_v53, 2  ;;  %v13229_v48 = vld [vmem:[#allocation28_spill] sm:$0xff] }
 0x4c5   :  { %v5040_v31 = vpop.f32.mrf.mxu3  ;;  %v5450_v35 = vmax.f32 %v5394_v62, 0.0 }
 0x4c6   :  { %v5426_v17 = vadd.f32 %v12168_v38, %v5123_v23  ;;  %v5041_v60 = vadd.f32 %v5040_v31, %v13220_v32  ;;  %v5502_v1 = vmax.f32 %v5446_v3, 0.0  ;;  %v13225_v31 = vld [vmem:[#allocation26_spill] sm:$0xff]  ;;  %v5415_v3 = vadd.f32 %v12267_v16, %v13229_v48  ;;  %v11109_v48 = vld [vmem:[%s13162_s5 + $0x1f8] sm:$0xff] }
 0x4c7   :  { %v5073_v47 = vpop.f32.mrf.mxu0  ;;  %v12252_v0 = vpack.c.bf16 %v5454_v61, %v5450_v35  ;;  %v5407_v35 = vadd.f32 %v12267_v16, %v13227_v50  ;;  %v11117_v50 = vld [vmem:[%s13162_s5 + $0x238] sm:$0xff]  ;;  %6232 = vmatpush.bf16.msra.mxu3 %v11109_v48  ;;  %v11104_v48 = vld [vmem:[%s13162_s5 + $0x1d0] sm:$0xff] }
 0x4c8   :  { %v5482_v24 = vmax.f32 %v5426_v17, 0.0  ;;  %v5069_v57 = vadd.f32 %v5068_v12, %v5041_v60  ;;  %v5101_v22 = vpop.f32.mrf.mxu1  ;;  %v13223_v12 = vld [vmem:[#allocation41_spill] sm:$0xff]  ;;  %v11072_v17 = vld [vmem:[%s13162_s5 + $0xd0] sm:$0xff]  ;;  %6276 = vmatpush.bf16.msra.mxu0 %v11117_v50 }
 0x4c9   :  { %9869 = vmatmul.msk.bf16.gmra.mxu2 %vm1563_vm1, %v11561_v63 }
 0x4ca   :  { %v12245_v7 = vpack.c.bf16 %v5486_v42, %v5482_v24  ;;  %v5097_v15 = vadd.f32 %v5096_v56, %v5069_v57  ;;  %5266 = vmatmul.bf16.gmra.mxu3 %v11553_v46  ;;  %5912 = vmatpush.bf16.msrb.mxu2 %v11072_v17  ;;  %v13226_v24 = vld [vmem:[#allocation42_spill] sm:$0xff] }
 0x4cc   :  { %v5125_v36 = vadd.f32 %v5124_v26, %v5097_v15  ;;  %v5127_v20 = vpop.f32.mrf.mxu2 }
 0x4cd   :  { %v5043_v30 = vpop.f32.mrf.mxu3 }
 0x4ce   :  { %v5434_v18 = vadd.f32 %v12168_v38, %v5125_v36  ;;  %v5044_v63 = vadd.f32 %v5043_v30, %v13223_v12  ;;  %5913 = vmatpush.bf16.msrb.mxu2 %v11071_v5 }
 0x4cf   :  { %v5168_v43 = vpop.f32.mrf.mxu0 }
 0x4d0   :  { %v5490_v25 = vmax.f32 %v5434_v18, 0.0  ;;  %v5072_v56 = vadd.f32 %v5071_v49, %v5044_v63  ;;  %v5196_v28 = vpop.f32.mrf.mxu1  ;;  %v13228_v18 = vld [vmem:[#allocation43_spill] sm:$0xff] }
 0x4d2   :  { %v12254_v46 = vpack.c.bf16 %v5494_v6, %v5490_v25  ;;  %v5100_v58 = vadd.f32 %v5099_v10, %v5072_v56  ;;  %5829 = vmatmul.bf16.vlgmr.msrb.gmra.mxu0 %v12252_v0 }
 0x4d4   :  { %v5128_v13 = vadd.f32 %v5127_v20, %v5100_v58  ;;  %v5129_v19 = vpop.f32.mrf.mxu2 }
 0x4d5   :  { %v5045_v54 = vpop.f32.mrf.mxu3 }
 0x4d6   :  { %v5442_v14 = vadd.f32 %v12168_v38, %v5128_v13  ;;  %v5399_v38 = vadd.f32 %v12267_v16, %v13225_v31  ;;  %v13231_v31 = vld [vmem:[#allocation29_spill] sm:$0xff] }
 0x4d7   :  { %v5170_v49 = vpop.f32.mrf.mxu0 }
 0x4d8   :  { %v5498_v37 = vmax.f32 %v5442_v14, 0.0  ;;  %v5198_v55 = vpop.f32.mrf.mxu1  ;;  %v5455_v42 = vmax.f32 %v5399_v38, 0.0  ;;  %v5423_v38 = vadd.f32 %v12267_v16, %v13231_v31 }
 0x4da   :  { %v12263_v9 = vpack.c.bf16 %v5502_v1, %v5498_v37  ;;  %5786 = vmatmul.bf16.vlgmr.msrb.gmra.mxu3 %v12053_v4 }
 0x4dc   :  { %v5224_v10 = vpop.f32.mrf.mxu2 }
 0x4dd   :  { %v5140_v29 = vpop.f32.mrf.mxu3 }
 0x4de   :  { %v5169_v2 = vadd.f32 %v5168_v43, %v5140_v29  ;;  %v5463_v43 = vmax.f32 %v5407_v35, 0.0  ;;  %v13233_v35 = vld [vmem:[#allocation30_spill] sm:$0xff] }
 0x4df   :  { %v5173_v8 = vpop.f32.mrf.mxu0 }
 0x4e0   :  { %v5197_v23 = vadd.f32 %v5196_v28, %v5169_v2  ;;  %v5201_v26 = vpop.f32.mrf.mxu1 }
 0x4e2   :  { %v5225_v44 = vadd.f32 %v5224_v10, %v5197_v23  ;;  %5833 = vmatmul.bf16.gmra.mxu0 %v12193_v34 }
 0x4e4   :  { %v5395_v32 = vadd.f32 %v12267_v16, %v5225_v44  ;;  %v5226_v60 = vpop.f32.mrf.mxu2 }
 0x4e5   :  { %v5142_v47 = vpop.f32.mrf.mxu3 }
 0x4e6   :  { %v5451_v62 = vmax.f32 %v5395_v32, 0.0  ;;  %v5143_v57 = vadd.f32 %v5142_v47, %v13226_v24  ;;  %v13232_v47 = vld [vmem:[#allocation45_spill] sm:$0xff]  ;;  %v5479_v24 = vmax.f32 %v5423_v38, 0.0 }
 0x4e7   :  { %v5175_v22 = vpop.f32.mrf.mxu0 }
 0x4e8   :  { %v12277_v41 = vpack.c.bf16 %v5455_v42, %v5451_v62  ;;  %v5171_v21 = vadd.f32 %v5170_v49, %v5143_v57  ;;  %v5203_v15 = vpop.f32.mrf.mxu1  ;;  %v13230_v49 = vld [vmem:[#allocation44_spill] sm:$0xff] }
 0x4ea   :  { %v5199_v51 = vadd.f32 %v5198_v55, %v5171_v21  ;;  %5790 = vmatmul.bf16.gmra.mxu3 %v12070_v39  ;;  %5872 = vmatmul.bf16.vlgmr.msrb.gmra.mxu1 %v12277_v41  ;;  %v5471_v55 = vmax.f32 %v5415_v3, 0.0 }
 0x4ec   :  { %v5227_v36 = vadd.f32 %v5226_v60, %v5199_v51  ;;  %v5229_v20 = vpop.f32.mrf.mxu2 }
 0x4ed   :  { %v5145_v30 = vpop.f32.mrf.mxu3 }
 0x4ee   :  { %v5403_v61 = vadd.f32 %v12267_v16, %v5227_v36  ;;  %v5146_v12 = vadd.f32 %v5145_v30, %v13228_v18  ;;  %v5431_v36 = vadd.f32 %v12267_v16, %v13233_v35  ;;  %v11106_v35 = vld [vmem:[%s13162_s5 + $0x1e0] sm:$0xff] }
 0x4ef   :  { %v5178_v63 = vpop.f32.mrf.mxu0 }
 0x4f0   :  { %v5459_v6 = vmax.f32 %v5403_v61, 0.0  ;;  %v5174_v25 = vadd.f32 %v5173_v8, %v5146_v12  ;;  %v5206_v56 = vpop.f32.mrf.mxu1  ;;  %v13234_v12 = vld [vmem:[#allocation46_spill] sm:$0xff] }
 0x4f2   :  { %v12285_v28 = vpack.c.bf16 %v5463_v43, %v5459_v6  ;;  %v5202_v58 = vadd.f32 %v5201_v26, %v5174_v25  ;;  %5838 = vmatmul.bf16.gmra.mxu0 %v12212_v33  ;;  %v11070_v26 = vld [vmem:[%s13162_s5 + $0xc0] sm:$0xff]  ;;  %v11116_v6 = vld [vmem:[%s13162_s5 + $0x230] sm:$0xff]  ;;  %v5487_v25 = vmax.f32 %v5431_v36, 0.0 }
 0x4f3   :  { %5914 = vmatpush.bf16.msrb.mxu2 %v11070_v26  ;;  %6277 = vmatpush.bf16.msra.mxu0 %v11116_v6  ;;  %v11111_v6 = vld [vmem:[%s13162_s5 + $0x208] sm:$0xff] }
 0x4f4   :  { %v5230_v13 = vadd.f32 %v5229_v20, %v5202_v58  ;;  %v5231_v19 = vpop.f32.mrf.mxu2 }
 0x4f5   :  { %v5147_v54 = vpop.f32.mrf.mxu3 }
 0x4f6   :  { %v5411_v14 = vadd.f32 %v12267_v16, %v5230_v13  ;;  %v5148_v1 = vadd.f32 %v5147_v54, %v13230_v49 }
 0x4f7   :  { %v5180_v37 = vpop.f32.mrf.mxu0 }
 0x4f8   :  { %v5467_v10 = vmax.f32 %v5411_v14, 0.0  ;;  %v5176_v29 = vadd.f32 %v5175_v22, %v5148_v1  ;;  %v5208_v2 = vpop.f32.mrf.mxu1  ;;  %v11115_v1 = vld [vmem:[%s13162_s5 + $0x228] sm:$0xff] }
 0x4f9   :  { %6278 = vmatpush.bf16.msra.mxu0 %v11115_v1 }
 0x4fa   :  { %v12295_v8 = vpack.c.bf16 %v5471_v55, %v5467_v10  ;;  %v5204_v23 = vadd.f32 %v5203_v15, %v5176_v29  ;;  %5795 = vmatmul.bf16.gmra.mxu3 %v12081_v11  ;;  %5876 = vmatmul.bf16.gmra.mxu1 %v12285_v28  ;;  %v13236_v10 = vld [vmem:[#allocation47_spill] sm:$0xff] }
 0x4fc   :  { %v5232_v44 = vadd.f32 %v5231_v19, %v5204_v23  ;;  %v5234_v17 = vpop.f32.mrf.mxu2  ;;  %v13235_v19 = vld [vmem:[#allocation31_spill] sm:$0xff] }
 0x4fd   :  { %v5150_v32 = vpop.f32.mrf.mxu3  ;;  %v5439_v54 = vadd.f32 %v12267_v16, %v13235_v19 }
 0x4fe   :  { %v5419_v60 = vadd.f32 %v12267_v16, %v5232_v44  ;;  %v5151_v42 = vadd.f32 %v5150_v32, %v13232_v47  ;;  %v11129_v47 = vld [vmem:[%s13162_s5 + $0x298] sm:$0xff] }
 0x4ff   :  { %v5183_v62 = vpop.f32.mrf.mxu0  ;;  %v5495_v26 = vmax.f32 %v5439_v54, 0.0  ;;  %6368 = vmatpush.bf16.msra.mxu2 %v11129_v47 }
 0x500   :  { %v5475_v57 = vmax.f32 %v5419_v60, 0.0  ;;  %v5179_v22 = vadd.f32 %v5178_v63, %v5151_v42  ;;  %v5211_v21 = vpop.f32.mrf.mxu1  ;;  %v11107_v42 = vld [vmem:[%s13162_s5 + $0x1e8] sm:$0xff] }
 0x502   :  { %v12306_v15 = vpack.c.bf16 %v5479_v24, %v5475_v57  ;;  %v5207_v51 = vadd.f32 %v5206_v56, %v5179_v22  ;;  %5843 = vmatmul.bf16.gmra.mxu0 %v12228_v27 }
 0x504   :  { %v5235_v20 = vadd.f32 %v5234_v17, %v5207_v51  ;;  %v5236_v30 = vpop.f32.mrf.mxu2  ;;  %v11114_v17 = vld [vmem:[%s13162_s5 + $0x220] sm:$0xff] }
 0x505   :  { %v5152_v61 = vpop.f32.mrf.mxu3  ;;  %6279 = vmatpush.bf16.msra.mxu0 %v11114_v17  ;;  %v11122_v17 = vld [vmem:[%s13162_s5 + $0x260] sm:$0xff] }
 0x506   :  { %v5427_v18 = vadd.f32 %v12267_v16, %v5235_v20  ;;  %v5153_v63 = vadd.f32 %v5152_v61, %v13234_v12 }
 0x507   :  { %v5185_v43 = vpop.f32.mrf.mxu0 }
 0x508   :  { %v5483_v56 = vmax.f32 %v5427_v18, 0.0  ;;  %v5181_v58 = vadd.f32 %v5180_v37, %v5153_v63  ;;  %v5213_v5 = vpop.f32.mrf.mxu1  ;;  %v11112_v18 = vld [vmem:[%s13162_s5 + $0x210] sm:$0xff]  ;;  %v11105_v63 = vld [vmem:[%s13162_s5 + $0x1d8] sm:$0xff] }
 0x509   :  { %v11124_v5 = vld [vmem:[%s13162_s5 + $0x270] sm:$0xff] }
 0x50a   :  { %v12322_v3 = vpack.c.bf16 %v5487_v25, %v5483_v56  ;;  %v5209_v13 = vadd.f32 %v5208_v2, %v5181_v58  ;;  %5800 = vmatmul.bf16.gmra.mxu3 %v12089_v52  ;;  %5881 = vmatmul.bf16.gmra.mxu1 %v12295_v8  ;;  %v11108_v2 = vld [vmem:[%s13162_s5 + $0x1f0] sm:$0xff]  ;;  %v12374_v56 = vperm.slane %v12030_v53, 3  ;;  %v11110_v53 = vld [vmem:[%s13162_s5 + $0x200] sm:$0xff] }
 0x50b   :  { %6233 = vmatpush.bf16.msra.mxu3 %v11108_v2 }
 0x50c   :  { %v5237_v14 = vadd.f32 %v5236_v30, %v5209_v13  ;;  %v5239_v49 = vpop.f32.mrf.mxu2 }
 0x50d   :  { %v5155_v37 = vpop.f32.mrf.mxu3 }
 0x50e   :  { %v5435_v55 = vadd.f32 %v12267_v16, %v5237_v14  ;;  %v5156_v29 = vadd.f32 %v5155_v37, %v13236_v10  ;;  %v13239_v14 = vld [vmem:[#allocation33_spill] sm:$0xff] }
 0x50f   :  { %v5280_v23 = vpop.f32.mrf.mxu0  ;;  %6234 = vmatpush.bf16.msra.mxu3 %v11107_v42  ;;  %v11103_v37 = vld [vmem:[%s13162_s5 + $0x1c8] sm:$0xff] }
 0x510   :  { %v5491_v31 = vmax.f32 %v5435_v55, 0.0  ;;  %v5184_v38 = vadd.f32 %v5183_v62, %v5156_v29  ;;  %v5308_v44 = vpop.f32.mrf.mxu1  ;;  %v13238_v62 = vld [vmem:[#allocation32_spill] sm:$0xff]  ;;  %v11123_v55 = vld [vmem:[%s13162_s5 + $0x268] sm:$0xff] }
 0x511   :  { %v5447_v24 = vadd.f32 %v12267_v16, %v13238_v62 }
 0x512   :  { %v12339_v32 = vpack.c.bf16 %v5495_v26, %v5491_v31  ;;  %v5212_v60 = vadd.f32 %v5211_v21, %v5184_v38  ;;  %5848 = vmatmul.bf16.gmra.mxu0 %v12245_v7  ;;  %v11113_v21 = vld [vmem:[%s13162_s5 + $0x218] sm:$0xff] }
 0x513   :  { %6280 = vmatpush.bf16.msra.mxu0 %v11113_v21  ;;  %v5503_v20 = vmax.f32 %v5447_v24, 0.0  ;;  %6235 = vmatpush.bf16.msra.mxu3 %v11106_v35  ;;  %v13240_v31 = vld [vmem:[#allocation48_spill] sm:$0xff] }
 0x514   :  { %13237 = vst [vmem:[#allocation14_spill] sm:$0xff] %v12339_v32  ;;  %v5240_v57 = vadd.f32 %v5239_v49, %v5212_v60  ;;  %v5241_v22 = vpop.f32.mrf.mxu2  ;;  %v5400_v49 = vadd.f32 %v12374_v56, %v13239_v14 }
 0x515   :  { %v5157_v51 = vpop.f32.mrf.mxu3  ;;  %v13241_v22 = vld [vmem:[#allocation34_spill] sm:$0xff] }
 0x516   :  { %v5443_v50 = vadd.f32 %v12267_v16, %v5240_v57  ;;  %v11125_v16 = vld [vmem:[%s13162_s5 + $0x278] sm:$0xff]  ;;  %v5408_v21 = vadd.f32 %v12374_v56, %v13241_v22 }
 0x517   :  { %v5282_v36 = vpop.f32.mrf.mxu0  ;;  %6281 = vmatpush.bf16.msra.mxu0 %v11112_v18  ;;  %6320 = vmatpush.bf16.msra.mxu1 %v11125_v16  ;;  %v11121_v57 = vld [vmem:[%s13162_s5 + $0x258] sm:$0xff] }
 0x518   :  { %v5499_v30 = vmax.f32 %v5443_v50, 0.0  ;;  %v5310_v61 = vpop.f32.mrf.mxu1  ;;  %6236 = vmatpush.bf16.msra.mxu3 %v11105_v63  ;;  %v5464_v16 = vmax.f32 %v5408_v21, 0.0  ;;  %v13247_v22 = vld [vmem:[#allocation51_spill] sm:$0xff] }
 0x51a   :  { %v12360_v12 = vpack.c.bf16 %v5503_v20, %v5499_v30  ;;  %5805 = vmatmul.bf16.gmra.mxu3 %v12099_v59  ;;  %5886 = vmatmul.bf16.gmra.mxu1 %v12306_v15  ;;  %v13242_v20 = vld [vmem:[#allocation49_spill] sm:$0xff] }
 0x51b   :  { %6282 = vmatpush.bf16.msra.mxu0 %v11111_v6  ;;  %6321 = vmatpush.bf16.msra.mxu1 %v11124_v5  ;;  %v11128_v5 = vld [vmem:[%s13162_s5 + $0x290] sm:$0xff] }
 0x51c   :  { %v5336_v43 = vpop.f32.mrf.mxu2  ;;  %6237 = vmatpush.bf16.msra.mxu3 %v11104_v48  ;;  %v11119_v48 = vld [vmem:[%s13162_s5 + $0x248] sm:$0xff]  ;;  %6369 = vmatpush.bf16.msra.mxu2 %v11128_v5 }
 0x51d   :  { %v5252_v25 = vpop.f32.mrf.mxu3 }
 0x51e   :  { %v5281_v58 = vadd.f32 %v5280_v23, %v5252_v25  ;;  %v5456_v23 = vmax.f32 %v5400_v49, 0.0 }
 0x51f   :  { %v5285_v13 = vpop.f32.mrf.mxu0  ;;  %6283 = vmatpush.bf16.msra.mxu0 %v11110_v53  ;;  %6322 = vmatpush.bf16.msra.mxu1 %v11123_v55  ;;  %v11118_v55 = vld [vmem:[%s13162_s5 + $0x240] sm:$0xff] }
 0x520   :  { %v5309_v19 = vadd.f32 %v5308_v44, %v5281_v58  ;;  %v5313_v54 = vpop.f32.mrf.mxu1  ;;  %6238 = vmatpush.bf16.msra.mxu3 %v11103_v37  ;;  %v11102_v44 = vld [vmem:[%s13162_s5 + $0x1c0] sm:$0xff] }
 0x522   :  { %v5337_v1 = vadd.f32 %v5336_v43, %v5309_v19  ;;  %5853 = vmatmul.bf16.gmra.mxu0 %v12254_v46  ;;  %v13244_v19 = vld [vmem:[#allocation35_spill] sm:$0xff] }
 0x523   :  { %6323 = vmatpush.bf16.msra.mxu1 %v11122_v17  ;;  %v5416_v53 = vadd.f32 %v12374_v56, %v13244_v19  ;;  %v13249_v19 = vld [vmem:[#allocation52_spill] sm:$0xff] }
 0x524   :  { %v5396_v10 = vadd.f32 %v12374_v56, %v5337_v1  ;;  %v5338_v29 = vpop.f32.mrf.mxu2  ;;  %6239 = vmatpush.bf16.msra.mxu3 %v11102_v44  ;;  %v13245_v1 = vld [vmem:[#allocation50_spill] sm:$0xff]  ;;  %v13246_v44 = vld [vmem:[#allocation36_spill] sm:$0xff] }
 0x525   :  { %v5254_v2 = vpop.f32.mrf.mxu3  ;;  %v5424_v17 = vadd.f32 %v12374_v56, %v13246_v44 }
 0x526   :  { %v5452_v26 = vmax.f32 %v5396_v10, 0.0  ;;  %v5255_v38 = vadd.f32 %v5254_v2, %v13240_v31 }
 0x527   :  { %v5287_v60 = vpop.f32.mrf.mxu0  ;;  %6324 = vmatpush.bf16.msra.mxu1 %v11121_v57 }
 0x528   :  { %v12402_v47 = vpack.c.bf16 %v5456_v23, %v5452_v26  ;;  %v5283_v42 = vadd.f32 %v5282_v36, %v5255_v38  ;;  %v5315_v62 = vpop.f32.mrf.mxu1 }
 0x52a   :  { %v5311_v24 = vadd.f32 %v5310_v61, %v5283_v42  ;;  %5810 = vmatmul.bf16.gmra.mxu3 %v12110_v40  ;;  %5891 = vmatmul.bf16.gmra.mxu1 %v12322_v3  ;;  %v11120_v61 = vld [vmem:[%s13162_s5 + $0x250] sm:$0xff] }
 0x52b   :  { %9982 = vmatmul.msk.bf16.vlgmr.msrb.gmra.mxu2 %vm1563_vm1, %v12402_v47  ;;  %6325 = vmatpush.bf16.msra.mxu1 %v11120_v61 }
 0x52c   :  { %v5339_v51 = vadd.f32 %v5338_v29, %v5311_v24  ;;  %v5341_v50 = vpop.f32.mrf.mxu2  ;;  %v5472_v29 = vmax.f32 %v5416_v53, 0.0 }
 0x52d   :  { %v5257_v35 = vpop.f32.mrf.mxu3 }
 0x52e   :  { %v5404_v36 = vadd.f32 %v12374_v56, %v5339_v51  ;;  %v5258_v30 = vadd.f32 %v5257_v35, %v13242_v20 }
 0x52f   :  { %v5290_v18 = vpop.f32.mrf.mxu0  ;;  %6326 = vmatpush.bf16.msra.mxu1 %v11119_v48 }
 0x530   :  { %v5460_v63 = vmax.f32 %v5404_v36, 0.0  ;;  %v5286_v43 = vadd.f32 %v5285_v13, %v5258_v30  ;;  %v5318_v6 = vpop.f32.mrf.mxu1 }
 0x532   :  { %v12418_v25 = vpack.c.bf16 %v5464_v16, %v5460_v63  ;;  %v5314_v58 = vadd.f32 %v5313_v54, %v5286_v43  ;;  %5858 = vmatmul.bf16.gmra.mxu0 %v12263_v9  ;;  %v13248_v16 = vld [vmem:[#allocation37_spill] sm:$0xff] }
 0x533   :  { %6327 = vmatpush.bf16.msra.mxu1 %v11118_v55  ;;  %v5432_v63 = vadd.f32 %v12374_v56, %v13248_v16 }
 0x534   :  { %13243 = vst [vmem:[#allocation15_spill] sm:$0xff] %v12418_v25  ;;  %v5342_v14 = vadd.f32 %v5341_v50, %v5314_v58  ;;  %v5343_v13 = vpop.f32.mrf.mxu2  ;;  %v5480_v50 = vmax.f32 %v5424_v17, 0.0 }
 0x535   :  { %v5259_v49 = vpop.f32.mrf.mxu3 }
 0x536   :  { %v5412_v54 = vadd.f32 %v12374_v56, %v5342_v14  ;;  %v5260_v37 = vadd.f32 %v5259_v49, %v13245_v1 }
 0x537   :  { %v5292_v10 = vpop.f32.mrf.mxu0 }
 0x538   :  { %v5468_v2 = vmax.f32 %v5412_v54, 0.0  ;;  %v5288_v23 = vadd.f32 %v5287_v60, %v5260_v37  ;;  %v5320_v26 = vpop.f32.mrf.mxu1  ;;  %v13250_v37 = vld [vmem:[#allocation38_spill] sm:$0xff] }
 0x539   :  { %v5440_v55 = vadd.f32 %v12374_v56, %v13250_v37 }
 0x53a   :  { %v12434_v31 = vpack.c.bf16 %v5472_v29, %v5468_v2  ;;  %v5316_v38 = vadd.f32 %v5315_v62, %v5288_v23  ;;  %5815 = vmatmul.bf16.gmra.mxu3 %v12128_v45  ;;  %5896 = vmatmul.bf16.gmra.mxu1 %v12339_v32  ;;  %v11127_v62 = vld [vmem:[%s13162_s5 + $0x288] sm:$0xff] }
 0x53b   :  { %9983 = vmatmul.msk.bf16.gmra.mxu2 %vm1563_vm1, %v12418_v25 }
 0x53c   :  { %v5344_v42 = vadd.f32 %v5343_v13, %v5316_v38  ;;  %v5346_v24 = vpop.f32.mrf.mxu2  ;;  %6370 = vmatpush.bf16.msra.mxu2 %v11127_v62  ;;  %v5488_v13 = vmax.f32 %v5432_v63, 0.0 }
 0x53d   :  { %v5262_v57 = vpop.f32.mrf.mxu3 }
 0x53e   :  { %v5420_v60 = vadd.f32 %v12374_v56, %v5344_v42  ;;  %v5263_v21 = vadd.f32 %v5262_v57, %v13247_v22  ;;  %v5496_v42 = vmax.f32 %v5440_v55, 0.0  ;;  %v13252_v22 = vld [vmem:[#allocation39_spill] sm:$0xff] }
 0x53f   :  { %v5295_v51 = vpop.f32.mrf.mxu0 }
 0x540   :  { %v5476_v35 = vmax.f32 %v5420_v60, 0.0  ;;  %v5291_v36 = vadd.f32 %v5290_v18, %v5263_v21  ;;  %v5323_v20 = vpop.f32.mrf.mxu1  ;;  %v5448_v21 = vadd.f32 %v12374_v56, %v13252_v22 }
 0x542   :  { %v12447_v30 = vpack.c.bf16 %v5480_v50, %v5476_v35  ;;  %v5319_v61 = vadd.f32 %v5318_v6, %v5291_v36  ;;  %6284 = vmatmul.bf16.vlgmr.msra.gmra.mxu0 %v12252_v0  ;;  %v5504_v16 = vmax.f32 %v5448_v21, 0.0 }
 0x544   :  { %v5347_v43 = vadd.f32 %v5346_v24, %v5319_v61  ;;  %v5348_v58 = vpop.f32.mrf.mxu2 }
 0x545   :  { %v5264_v5 = vpop.f32.mrf.mxu3 }
 0x546   :  { %v5428_v48 = vadd.f32 %v12374_v56, %v5347_v43  ;;  %v5265_v53 = vadd.f32 %v5264_v5, %v13249_v19 }
 0x547   :  { %v5297_v14 = vpop.f32.mrf.mxu0 }
 0x548   :  { %v5484_v18 = vmax.f32 %v5428_v48, 0.0  ;;  %v5293_v49 = vadd.f32 %v5292_v10, %v5265_v53  ;;  %v5325_v54 = vpop.f32.mrf.mxu1  ;;  %v13251_v10 = vld [vmem:[#allocation53_spill] sm:$0xff] }
 0x549   :  { %v11137_v54 = vld [vmem:[%s13162_s5 + $0x2d8] sm:$0xff] }
 0x54a   :  { %v12454_v1 = vpack.c.bf16 %v5488_v13, %v5484_v18  ;;  %v5321_v6 = vadd.f32 %v5320_v26, %v5293_v49  ;;  %5901 = vmatmul.bf16.gmra.mxu1 %v12360_v12  ;;  %6240 = vmatmul.bf16.vlgmr.msra.gmra.mxu3 %v12053_v4 }
 0x54b   :  { %9984 = vmatmul.msk.bf16.gmra.mxu2 %vm1563_vm1, %v12434_v31  ;;  %6633 = vmatpush.bf16.msrb.mxu3 %v11137_v54 }
 0x54c   :  { %v5349_v29 = vadd.f32 %v5348_v58, %v5321_v6  ;;  %v5351_v2 = vpop.f32.mrf.mxu2  ;;  %v11145_v6 = vld [vmem:[%s13162_s5 + $0x318] sm:$0xff] }
 0x54d   :  { %v5267_v23 = vpop.f32.mrf.mxu3  ;;  %6676 = vmatpush.bf16.msrb.mxu0 %v11145_v6  ;;  %v11138_v6 = vld [vmem:[%s13162_s5 + $0x2e0] sm:$0xff] }
 0x54e   :  { %v5436_v38 = vadd.f32 %v12374_v56, %v5349_v29  ;;  %v5268_v44 = vadd.f32 %v5267_v23, %v13251_v10  ;;  %v11157_v10 = vld [vmem:[%s13162_s5 + $0x378] sm:$0xff] }
 0x54f   :  { %v5830_v17 = vpop.f32.mrf.mxu0 }
 0x550   :  { %v5492_v26 = vmax.f32 %v5436_v38, 0.0  ;;  %v5296_v24 = vadd.f32 %v5295_v51, %v5268_v44  ;;  %v11144_v38 = vld [vmem:[%s13162_s5 + $0x310] sm:$0xff]  ;;  %v11143_v44 = vld [vmem:[%s13162_s5 + $0x308] sm:$0xff] }
 0x551   :  { %6677 = vmatpush.bf16.msrb.mxu0 %v11144_v38  ;;  %v11130_v38 = vld [vmem:[%s13162_s5 + $0x2a0] sm:$0xff] }
 0x552   :  { %v12464_v57 = vpack.c.bf16 %v5496_v42, %v5492_v26  ;;  %v5324_v60 = vadd.f32 %v5323_v20, %v5296_v24  ;;  %6289 = vmatmul.bf16.gmra.mxu0 %v12193_v34  ;;  %v11126_v20 = vld [vmem:[%s13162_s5 + $0x280] sm:$0xff]  ;;  %v11153_v26 = vld [vmem:[%s13162_s5 + $0x358] sm:$0xff]  ;;  %v11136_v24 = vld [vmem:[%s13162_s5 + $0x2d0] sm:$0xff] }
 0x553   :  { %6371 = vmatpush.bf16.msra.mxu2 %v11126_v20  ;;  %6719 = vmatpush.bf16.msrb.mxu1 %v11153_v26 }
 0x554   :  { %v5352_v62 = vadd.f32 %v5351_v2, %v5324_v60  ;;  %v5353_v50 = vpop.f32.mrf.mxu2  ;;  %6634 = vmatpush.bf16.msrb.mxu3 %v11136_v24  ;;  %v11149_v24 = vld [vmem:[%s13162_s5 + $0x338] sm:$0xff] }
 0x555   :  { %v5269_v35 = vpop.f32.mrf.mxu3  ;;  %6678 = vmatpush.bf16.msrb.mxu0 %v11143_v44  ;;  %v11135_v50 = vld [vmem:[%s13162_s5 + $0x2c8] sm:$0xff] }
 0x556   :  { %v5444_v36 = vadd.f32 %v12374_v56, %v5352_v62  ;;  %v11142_v62 = vld [vmem:[%s13162_s5 + $0x300] sm:$0xff]  ;;  %v11141_v35 = vld [vmem:[%s13162_s5 + $0x2f8] sm:$0xff] }
 0x557   :  { %v5831_v61 = vpop.f32.mrf.mxu0  ;;  %6766 = vmatpush.bf16.msrb.mxu2 %v11157_v10  ;;  %v11150_v10 = vld [vmem:[%s13162_s5 + $0x340] sm:$0xff] }
 0x558   :  { %v5500_v63 = vmax.f32 %v5444_v36, 0.0  ;;  %6635 = vmatpush.bf16.msrb.mxu3 %v11135_v50 }
 0x559   :  { %6679 = vmatpush.bf16.msrb.mxu0 %v11142_v62  ;;  %v11148_v62 = vld [vmem:[%s13162_s5 + $0x330] sm:$0xff] }
 0x55a   :  { %v12470_v43 = vpack.c.bf16 %v5504_v16, %v5500_v63  ;;  %6245 = vmatmul.bf16.gmra.mxu3 %v12070_v39  ;;  %6328 = vmatmul.bf16.vlgmr.msra.gmra.mxu1 %v12277_v41  ;;  %v11134_v16 = vld [vmem:[%s13162_s5 + $0x2c0] sm:$0xff] }
 0x55b   :  { %9985 = vmatmul.msk.bf16.gmra.mxu2 %vm1563_vm1, %v12447_v30 }
 0x55c   :  { %6636 = vmatpush.bf16.msrb.mxu3 %v11134_v16 }
 0x55d   :  { %v5787_v51 = vpop.f32.mrf.mxu3  ;;  %6680 = vmatpush.bf16.msrb.mxu0 %v11141_v35 }
 0x55f   :  { %v5834_v58 = vpop.f32.mrf.mxu0 }
 0x562   :  { %6294 = vmatmul.bf16.gmra.mxu0 %v12212_v33 }
 0x565   :  { %v5788_v56 = vpop.f32.mrf.mxu3 }
 0x566   :  { %v5832_v5 = vadd.f32 %v5831_v61, %v5788_v56  ;;  %v11133_v56 = vld [vmem:[%s13162_s5 + $0x2b8] sm:$0xff] }
 0x567   :  { %v5873_v48 = vpop.f32.mrf.mxu1  ;;  %v5836_v19 = vpop.f32.mrf.mxu0  ;;  %6637 = vmatpush.bf16.msrb.mxu3 %v11133_v56 }
 0x568   :  { %v11139_v48 = vld [vmem:[%s13162_s5 + $0x2e8] sm:$0xff] }
 0x56a   :  { %6250 = vmatmul.bf16.gmra.mxu3 %v12081_v11  ;;  %6333 = vmatmul.bf16.gmra.mxu1 %v12285_v28 }
 0x56b   :  { %9986 = vmatmul.msk.bf16.gmra.mxu2 %vm1563_vm1, %v12454_v1 }
 0x56d   :  { %v5791_v53 = vpop.f32.mrf.mxu3 }
 0x56e   :  { %v5835_v14 = vadd.f32 %v5834_v58, %v5791_v53  ;;  %v11140_v58 = vld [vmem:[%s13162_s5 + $0x2f0] sm:$0xff] }
 0x56f   :  { %v5874_v13 = vpop.f32.mrf.mxu1  ;;  %v5839_v18 = vpop.f32.mrf.mxu0  ;;  %6681 = vmatpush.bf16.msrb.mxu0 %v11140_v58 }
 0x570   :  { %v12484_v49 = vadd.f32 %v5874_v13, %v5832_v5  ;;  %v11152_v5 = vld [vmem:[%s13162_s5 + $0x350] sm:$0xff] }
 0x571   :  { %6720 = vmatpush.bf16.msrb.mxu1 %v11152_v5 }
 0x572   :  { %6299 = vmatmul.bf16.gmra.mxu0 %v12228_v27 }
 0x573   :  { %6682 = vmatpush.bf16.msrb.mxu0 %v11139_v48 }
 0x575   :  { %v5793_v37 = vpop.f32.mrf.mxu3 }
 0x576   :  { %v5837_v55 = vadd.f32 %v5836_v19, %v5793_v37  ;;  %v11131_v37 = vld [vmem:[%s13162_s5 + $0x2a8] sm:$0xff] }
 0x577   :  { %v5877_v29 = vpop.f32.mrf.mxu1  ;;  %v5841_v2 = vpop.f32.mrf.mxu0  ;;  %6683 = vmatpush.bf16.msrb.mxu0 %v11138_v6  ;;  %v11155_v6 = vld [vmem:[%s13162_s5 + $0x368] sm:$0xff] }
 0x578   :  { %v12493_v23 = vadd.f32 %v5877_v29, %v5835_v14  ;;  %v11132_v14 = vld [vmem:[%s13162_s5 + $0x2b0] sm:$0xff] }
 0x579   :  { %6638 = vmatpush.bf16.msrb.mxu3 %v11132_v14 }
 0x57a   :  { %6255 = vmatmul.bf16.gmra.mxu3 %v12089_v52  ;;  %6338 = vmatmul.bf16.gmra.mxu1 %v12295_v8 }
 0x57b   :  { %9987 = vmatmul.msk.bf16.gmra.mxu2 %vm1563_vm1, %v12464_v57 }
 0x57d   :  { %v5796_v17 = vpop.f32.mrf.mxu3  ;;  %6639 = vmatpush.bf16.msrb.mxu3 %v11131_v37 }
 0x57e   :  { %v5840_v42 = vadd.f32 %v5839_v18, %v5796_v17 }
 0x57f   :  { %v5879_v60 = vpop.f32.mrf.mxu1  ;;  %v5844_v22 = vpop.f32.mrf.mxu0 }
 0x580   :  { %v12514_v21 = vadd.f32 %v5879_v60, %v5837_v55  ;;  %v11151_v55 = vld [vmem:[%s13162_s5 + $0x348] sm:$0xff] }
 0x581   :  { %6721 = vmatpush.bf16.msrb.mxu1 %v11151_v55  ;;  %6640 = vmatpush.bf16.msrb.mxu3 %v11130_v38 }
 0x582   :  { %6304 = vmatmul.bf16.gmra.mxu0 %v12245_v7 }
 0x585   :  { %v5798_v36 = vpop.f32.mrf.mxu3  ;;  %6722 = vmatpush.bf16.msrb.mxu1 %v11150_v10 }
 0x586   :  { %v5842_v61 = vadd.f32 %v5841_v2, %v5798_v36 }
 0x587   :  { %v5882_v63 = vpop.f32.mrf.mxu1  ;;  %v5846_v51 = vpop.f32.mrf.mxu0 }
 0x588   :  { %v12529_v20 = vadd.f32 %v5882_v63, %v5840_v42  ;;  %v11156_v42 = vld [vmem:[%s13162_s5 + $0x370] sm:$0xff] }
 0x589   :  { %6767 = vmatpush.bf16.msrb.mxu2 %v11156_v42  ;;  %6723 = vmatpush.bf16.msrb.mxu1 %v11149_v24 }
 0x58a   :  { %6260 = vmatmul.bf16.gmra.mxu3 %v12099_v59  ;;  %6343 = vmatmul.bf16.gmra.mxu1 %v12306_v15 }
 0x58b   :  { %9988 = vmatmul.msk.bf16.gmra.mxu2 %vm1563_vm1, %v12470_v43 }
 0x58d   :  { %v5801_v19 = vpop.f32.mrf.mxu3  ;;  %6724 = vmatpush.bf16.msrb.mxu1 %v11148_v62  ;;  %6768 = vmatpush.bf16.msrb.mxu2 %v11155_v6 }
 0x58e   :  { %v5845_v53 = vadd.f32 %v5844_v22, %v5801_v19 }
 0x58f   :  { %v5884_v13 = vpop.f32.mrf.mxu1  ;;  %v5849_v18 = vpop.f32.mrf.mxu0 }
 0x590   :  { %v12550_v54 = vadd.f32 %v5884_v13, %v5842_v61  ;;  %v11147_v61 = vld [vmem:[%s13162_s5 + $0x328] sm:$0xff] }
 0x591   :  { %6725 = vmatpush.bf16.msrb.mxu1 %v11147_v61 }
 0x592   :  { %6309 = vmatmul.bf16.gmra.mxu0 %v12254_v46 }
 0x595   :  { %v5803_v29 = vpop.f32.mrf.mxu3 }
 0x596   :  { %v5847_v2 = vadd.f32 %v5846_v51, %v5803_v29  ;;  %v11146_v51 = vld [vmem:[%s13162_s5 + $0x320] sm:$0xff] }
 0x597   :  { %v5887_v44 = vpop.f32.mrf.mxu1  ;;  %v5851_v17 = vpop.f32.mrf.mxu0  ;;  %6726 = vmatpush.bf16.msrb.mxu1 %v11146_v51 }
 0x598   :  { %v12571_v26 = vadd.f32 %v5887_v44, %v5845_v53 }
 0x59a   :  { %6265 = vmatmul.bf16.gmra.mxu3 %v12110_v40  ;;  %6348 = vmatmul.bf16.gmra.mxu1 %v12322_v3 }
 0x59b   :  { %10213 = vmatmul.msk.bf16.vlgmr.msra.gmra.mxu2 %vm1563_vm1, %v12402_v47 }
 0x59d   :  { %v5806_v60 = vpop.f32.mrf.mxu3 }
 0x59e   :  { %v5850_v22 = vadd.f32 %v5849_v18, %v5806_v60 }
 0x59f   :  { %v5889_v50 = vpop.f32.mrf.mxu1  ;;  %v5854_v35 = vpop.f32.mrf.mxu0 }
 0x5a0   :  { %v12583_v36 = vadd.f32 %v5889_v50, %v5847_v2 }
 0x5a2   :  { %6314 = vmatmul.bf16.gmra.mxu0 %v12263_v9 }
 0x5a5   :  { %v5808_v16 = vpop.f32.mrf.mxu3 }
 0x5a6   :  { %v5852_v63 = vadd.f32 %v5851_v17, %v5808_v16 }
 0x5a7   :  { %v5892_v58 = vpop.f32.mrf.mxu1  ;;  %v5856_v56 = vpop.f32.mrf.mxu0 }
 0x5a8   :  { %v12592_v5 = vadd.f32 %v5892_v58, %v5850_v22 }
 0x5aa   :  { %6270 = vmatmul.bf16.gmra.mxu3 %v12128_v45  ;;  %6353 = vmatmul.bf16.gmra.mxu1 %v12339_v32 }
 0x5ab   :  { %10214 = vmatmul.msk.bf16.gmra.mxu2 %vm1563_vm1, %v12418_v25 }
 0x5ad   :  { %v5811_v48 = vpop.f32.mrf.mxu3 }
 0x5ae   :  { %v5855_v19 = vadd.f32 %v5854_v35, %v5811_v48  ;;  %v5916_v53 = vpop.f32.mrf.mxu2 }
 0x5af   :  { %v5894_v14 = vpop.f32.mrf.mxu1  ;;  %v5859_v13 = vpop.f32.mrf.mxu0 }
 0x5b0   :  { %v12598_v18 = vadd.f32 %v5894_v14, %v5852_v63  ;;  %v11154_v14 = vld [vmem:[%s13162_s5 + $0x360] sm:$0xff] }
 0x5b1   :  { %6769 = vmatpush.bf16.msrb.mxu2 %v11154_v14  ;;  %v11088_v14 = vld [vmem:[%s13162_s5 + $0x150] sm:$0xff] }
 0x5b2   :  { %6684 = vmatmul.bf16.vlgmr.msrb.gmra.mxu0 %v12252_v0 }
 0x5b5   :  { %v5813_v37 = vpop.f32.mrf.mxu3 }
 0x5b6   :  { %v5857_v55 = vadd.f32 %v5856_v56, %v5813_v37  ;;  %v5917_v29 = vpop.f32.mrf.mxu2 }
 0x5b7   :  { %v12605_v2 = vadd.f32 %v5917_v29, %v12484_v49  ;;  %v5897_v38 = vpop.f32.mrf.mxu1  ;;  %v5861_v10 = vpop.f32.mrf.mxu0 }
 0x5b8   :  { %v12607_v44 = vadd.f32 %v5897_v38, %v5855_v19 }
 0x5ba   :  { %6358 = vmatmul.bf16.gmra.mxu1 %v12360_v12  ;;  %6641 = vmatmul.bf16.vlgmr.msrb.gmra.mxu3 %v12053_v4 }
 0x5bb   :  { %10215 = vmatmul.msk.bf16.gmra.mxu2 %vm1563_vm1, %v12434_v31 }
 0x5bd   :  { %v5816_v17 = vpop.f32.mrf.mxu3 }
 0x5be   :  { %v5860_v42 = vadd.f32 %v5859_v13, %v5816_v17  ;;  %v5920_v24 = vpop.f32.mrf.mxu2  ;;  %v7163_v13 = vld [vmem:[#allocation2] sm:$0x1] }
 0x5bf   :  { %v12614_v60 = vadd.f32 %v5920_v24, %v12493_v23  ;;  %v5899_v22 = vpop.f32.mrf.mxu1  ;;  %v6285_v49 = vpop.f32.mrf.mxu0  ;;  %11158 = vpush %v7163_v13  ;;  %v11087_v13 = vld [vmem:[%s13162_s5 + $0x148] sm:$0xff] }
 0x5c0   :  { %v12616_v62 = vadd.f32 %v5899_v22, %v5857_v55 }
 0x5c2   :  { %6689 = vmatmul.bf16.gmra.mxu0 %v12193_v34 }
 0x5c5   :  { %v5818_v50 = vpop.f32.mrf.mxu3 }
 0x5c6   :  { %v5862_v35 = vadd.f32 %v5861_v10, %v5818_v50  ;;  %v5922_v61 = vpop.f32.mrf.mxu2 }
 0x5c7   :  { %v12620_v16 = vadd.f32 %v5922_v61, %v12514_v21  ;;  %v5902_v63 = vpop.f32.mrf.mxu1  ;;  %v6287_v51 = vpop.f32.mrf.mxu0  ;;  %v11081_v61 = vld [vmem:[%s13162_s5 + $0x118] sm:$0xff] }
 0x5c8   :  { %v12622_v58 = vadd.f32 %v5902_v63, %v5860_v42  ;;  %6973 = vmatpush.bf16.msra.mxu3 %v11081_v61  ;;  %v11089_v63 = vld [vmem:[%s13162_s5 + $0x158] sm:$0xff]  ;;  %v11079_v61 = vld [vmem:[%s13162_s5 + $0x108] sm:$0xff] }
 0x5c9   :  { %7017 = vmatpush.bf16.msra.mxu0 %v11089_v63 }
 0x5ca   :  { %6646 = vmatmul.bf16.gmra.mxu3 %v12070_v39  ;;  %6727 = vmatmul.bf16.vlgmr.msrb.gmra.mxu1 %v12277_v41 }
 0x5cb   :  { %10216 = vmatmul.msk.bf16.gmra.mxu2 %vm1563_vm1, %v12447_v30 }
 0x5cd   :  { %v6241_v23 = vpop.f32.mrf.mxu3  ;;  %7018 = vmatpush.bf16.msra.mxu0 %v11088_v14 }
 0x5ce   :  { %v5925_v56 = vpop.f32.mrf.mxu2  ;;  %v6286_v48 = vadd.f32 %v6285_v49, %v6241_v23 }
 0x5cf   :  { %v12629_v19 = vadd.f32 %v5925_v56, %v12529_v20  ;;  %v5904_v53 = vpop.f32.mrf.mxu1  ;;  %v6290_v21 = vpop.f32.mrf.mxu0 }
 0x5d0   :  { %v12634_v6 = vadd.f32 %v5904_v53, %v5862_v35 }
 0x5d1   :  { %7019 = vmatpush.bf16.msra.mxu0 %v11087_v13 }
 0x5d2   :  { %6694 = vmatmul.bf16.gmra.mxu0 %v12212_v33 }
 0x5d5   :  { %v6243_v37 = vpop.f32.mrf.mxu3 }
 0x5d6   :  { %v5927_v55 = vpop.f32.mrf.mxu2  ;;  %v6288_v29 = vadd.f32 %v6287_v51, %v6243_v37 }
 0x5d7   :  { %v12638_v38 = vadd.f32 %v5927_v55, %v12550_v54  ;;  %v6329_v20 = vpop.f32.mrf.mxu1  ;;  %v6292_v10 = vpop.f32.mrf.mxu0 }
 0x5d8   :  { %v12640_v17 = vadd.f32 %v6329_v20, %v6286_v48  ;;  %v11080_v20 = vld [vmem:[%s13162_s5 + $0x110] sm:$0xff] }
 0x5d9   :  { %6974 = vmatpush.bf16.msra.mxu3 %v11080_v20 }
 0x5da   :  { %6651 = vmatmul.bf16.gmra.mxu3 %v12081_v11  ;;  %6732 = vmatmul.bf16.gmra.mxu1 %v12285_v28 }
 0x5db   :  { %10217 = vmatmul.msk.bf16.gmra.mxu2 %vm1563_vm1, %v12454_v1 }
 0x5dd   :  { %v6246_v42 = vpop.f32.mrf.mxu3  ;;  %6975 = vmatpush.bf16.msra.mxu3 %v11079_v61 }
 0x5de   :  { %v5930_v24 = vpop.f32.mrf.mxu2  ;;  %v6291_v22 = vadd.f32 %v6290_v21, %v6246_v42 }
 0x5df   :  { %v12647_v49 = vadd.f32 %v5930_v24, %v12571_v26  ;;  %v6331_v50 = vpop.f32.mrf.mxu1  ;;  %v6295_v54 = vpop.f32.mrf.mxu0 }
 0x5e0   :  { %v12649_v35 = vadd.f32 %v6331_v50, %v6288_v29 }
 0x5e2   :  { %6699 = vmatmul.bf16.gmra.mxu0 %v12228_v27 }
 0x5e5   :  { %v6248_v51 = vpop.f32.mrf.mxu3 }
 0x5e6   :  { %v5932_v23 = vpop.f32.mrf.mxu2  ;;  %v6293_v56 = vadd.f32 %v6292_v10, %v6248_v51 }
 0x5e7   :  { %v12659_v26 = vadd.f32 %v5932_v23, %v12583_v36  ;;  %v6334_v48 = vpop.f32.mrf.mxu1  ;;  %v6297_v53 = vpop.f32.mrf.mxu0  ;;  %v11101_v36 = vld [vmem:[%s13162_s5 + $0x1b8] sm:$0xff] }
 0x5e8   :  { %v12661_v21 = vadd.f32 %v6334_v48, %v6291_v22  ;;  %7109 = vmatpush.bf16.msra.mxu2 %v11101_v36  ;;  %v11097_v22 = vld [vmem:[%s13162_s5 + $0x198] sm:$0xff] }
 0x5e9   :  { %7061 = vmatpush.bf16.msra.mxu1 %v11097_v22  ;;  %v11076_v22 = vld [vmem:[%s13162_s5 + $0xf0] sm:$0xff] }
 0x5ea   :  { %6656 = vmatmul.bf16.gmra.mxu3 %v12089_v52  ;;  %6737 = vmatmul.bf16.gmra.mxu1 %v12295_v8 }
 0x5eb   :  { %10218 = vmatmul.msk.bf16.gmra.mxu2 %vm1563_vm1, %v12464_v57 }
 0x5ed   :  { %v6251_v37 = vpop.f32.mrf.mxu3 }
 0x5ee   :  { %v5935_v55 = vpop.f32.mrf.mxu2  ;;  %v6296_v29 = vadd.f32 %v6295_v54, %v6251_v37  ;;  %v11086_v54 = vld [vmem:[%s13162_s5 + $0x140] sm:$0xff]  ;;  %v11084_v37 = vld [vmem:[%s13162_s5 + $0x130] sm:$0xff] }
 0x5ef   :  { %v12680_v10 = vadd.f32 %v5935_v55, %v12592_v5  ;;  %v6336_v42 = vpop.f32.mrf.mxu1  ;;  %v6300_v24 = vpop.f32.mrf.mxu0  ;;  %7020 = vmatpush.bf16.msra.mxu0 %v11086_v54  ;;  %v11085_v5 = vld [vmem:[%s13162_s5 + $0x138] sm:$0xff]  ;;  %v11083_v55 = vld [vmem:[%s13162_s5 + $0x128] sm:$0xff] }
 0x5f0   :  { %v12685_v50 = vadd.f32 %v6336_v42, %v6293_v56  ;;  %v11078_v56 = vld [vmem:[%s13162_s5 + $0x100] sm:$0xff]  ;;  %s11159_s12 = spop %11158 }
 0x5f1   :  { %6976 = vmatpush.bf16.msra.mxu3 %v11078_v56 }
 0x5f2   :  { %6704 = vmatmul.bf16.gmra.mxu0 %v12245_v7 }
 0x5f3   :  { %7021 = vmatpush.bf16.msra.mxu0 %v11085_v5 }
 0x5f5   :  { %v6253_v63 = vpop.f32.mrf.mxu3 }
 0x5f6   :  { %v5937_v51 = vpop.f32.mrf.mxu2  ;;  %v6298_v23 = vadd.f32 %v6297_v53, %v6253_v63  ;;  %v11077_v53 = vld [vmem:[%s13162_s5 + $0xf8] sm:$0xff] }
 0x5f7   :  { %v12701_v48 = vadd.f32 %v5937_v51, %v12598_v18  ;;  %v6339_v14 = vpop.f32.mrf.mxu1  ;;  %v6302_v36 = vpop.f32.mrf.mxu0  ;;  %7022 = vmatpush.bf16.msra.mxu0 %v11084_v37  ;;  %v11096_v18 = vld [vmem:[%s13162_s5 + $0x190] sm:$0xff]  ;;  %6977 = vmatpush.bf16.msra.mxu3 %v11077_v53  ;;  %v11082_v51 = vld [vmem:[%s13162_s5 + $0x120] sm:$0xff] }
 0x5f8   :  { %v12703_v13 = vadd.f32 %v6339_v14, %v6296_v29  ;;  %7062 = vmatpush.bf16.msra.mxu1 %v11096_v18  ;;  %v11074_v37 = vld [vmem:[%s13162_s5 + $0xe0] sm:$0xff] }
 0x5f9   :  { %v11094_v53 = vld [vmem:[%s13162_s5 + $0x180] sm:$0xff] }
 0x5fa   :  { %6661 = vmatmul.bf16.gmra.mxu3 %v12099_v59  ;;  %6742 = vmatmul.bf16.gmra.mxu1 %v12306_v15 }
 0x5fb   :  { %10219 = vmatmul.msk.bf16.gmra.mxu2 %vm1563_vm1, %v12470_v43  ;;  %7023 = vmatpush.bf16.msra.mxu0 %v11083_v55 }
 0x5fc   :  { %6978 = vmatpush.bf16.msra.mxu3 %v11076_v22 }
 0x5fd   :  { %v6256_v29 = vpop.f32.mrf.mxu3 }
 0x5fe   :  { %v5940_v20 = vpop.f32.mrf.mxu2  ;;  %v6301_v42 = vadd.f32 %v6300_v24, %v6256_v29  ;;  %v11075_v24 = vld [vmem:[%s13162_s5 + $0xe8] sm:$0xff] }
 0x5ff   :  { %v12725_v54 = vadd.f32 %v5940_v20, %v12607_v44  ;;  %v6341_v61 = vpop.f32.mrf.mxu1  ;;  %v6305_v5 = vpop.f32.mrf.mxu0  ;;  %v11095_v44 = vld [vmem:[%s13162_s5 + $0x188] sm:$0xff]  ;;  %7024 = vmatpush.bf16.msra.mxu0 %v11082_v51 }
 0x600   :  { %v12727_v63 = vadd.f32 %v6341_v61, %v6298_v23  ;;  %6979 = vmatpush.bf16.msra.mxu3 %v11075_v24  ;;  %7063 = vmatpush.bf16.msra.mxu1 %v11095_v44  ;;  %v11092_v44 = vld [vmem:[%s13162_s5 + $0x170] sm:$0xff] }
 0x602   :  { %6709 = vmatmul.bf16.gmra.mxu0 %v12254_v46 }
 0x604   :  { %6980 = vmatpush.bf16.msra.mxu3 %v11074_v37  ;;  %7064 = vmatpush.bf16.msra.mxu1 %v11094_v53 }
 0x605   :  { %v6258_v23 = vpop.f32.mrf.mxu3 }
 0x606   :  { %v5942_v56 = vpop.f32.mrf.mxu2  ;;  %v6303_v14 = vadd.f32 %v6302_v36, %v6258_v23  ;;  %v11093_v36 = vld [vmem:[%s13162_s5 + $0x178] sm:$0xff] }
 0x607   :  { %v12746_v18 = vadd.f32 %v5942_v56, %v12616_v62  ;;  %v6344_v55 = vpop.f32.mrf.mxu1  ;;  %v6307_v29 = vpop.f32.mrf.mxu0  ;;  %v11091_v56 = vld [vmem:[%s13162_s5 + $0x168] sm:$0xff] }
 0x608   :  { %v12748_v20 = vadd.f32 %v6344_v55, %v6301_v42  ;;  %7065 = vmatpush.bf16.msra.mxu1 %v11093_v36 }
 0x60a   :  { %6666 = vmatmul.bf16.gmra.mxu3 %v12110_v40  ;;  %6747 = vmatmul.bf16.gmra.mxu1 %v12322_v3 }
 0x60b   :  { %10388 = vmatmul.msk.bf16.vlgmr.msrb.gmra.mxu2 %vm1563_vm1, %v12402_v47 }
 0x60c   :  { %7066 = vmatpush.bf16.msra.mxu1 %v11092_v44 }
 0x60d   :  { %v6261_v22 = vpop.f32.mrf.mxu3 }
 0x60e   :  { %v5945_v62 = vpop.f32.mrf.mxu2  ;;  %v6306_v61 = vadd.f32 %v6305_v5, %v6261_v22 }
 0x60f   :  { %v12758_v42 = vadd.f32 %v5945_v62, %v12622_v58  ;;  %v6346_v51 = vpop.f32.mrf.mxu1  ;;  %v6310_v24 = vpop.f32.mrf.mxu0 }
 0x610   :  { %v12763_v23 = vadd.f32 %v6346_v51, %v6303_v14  ;;  %7067 = vmatpush.bf16.msra.mxu1 %v11091_v56  ;;  %v11090_v14 = vld [vmem:[%s13162_s5 + $0x160] sm:$0xff] }
 0x612   :  { %6714 = vmatmul.bf16.gmra.mxu0 %v12263_v9 }
 0x614   :  { %7068 = vmatpush.bf16.msra.mxu1 %v11090_v14 }
 0x615   :  { %v6263_v37 = vpop.f32.mrf.mxu3 }
 0x616   :  { %v5947_v5 = vpop.f32.mrf.mxu2  ;;  %v6308_v58 = vadd.f32 %v6307_v29, %v6263_v37 }
 0x617   :  { %v12770_v53 = vadd.f32 %v5947_v5, %v12634_v6  ;;  %v6349_v55 = vpop.f32.mrf.mxu1  ;;  %v6312_v36 = vpop.f32.mrf.mxu0 }
 0x618   :  { %v12775_v22 = vadd.f32 %v6349_v55, %v6306_v61  ;;  %v12784_v61 = vstv %s11159_s12 }
 0x61a   :  { %6671 = vmatmul.bf16.gmra.mxu3 %v12128_v45  ;;  %6752 = vmatmul.bf16.gmra.mxu1 %v12339_v32 }
 0x61b   :  { %10389 = vmatmul.msk.bf16.gmra.mxu2 %vm1563_vm1, %v12418_v25 }
 0x61d   :  { %v6266_v29 = vpop.f32.mrf.mxu3 }
 0x61e   :  { %v6311_v6 = vadd.f32 %v6310_v24, %v6266_v29  ;;  %v6373_v62 = vpop.f32.mrf.mxu2 }
 0x61f   :  { %v6374_v51 = vadd.f32 %v6373_v62, %v12640_v17  ;;  %v6351_v44 = vpop.f32.mrf.mxu1  ;;  %v6315_v56 = vpop.f32.mrf.mxu0 }
 0x620   :  { %v12782_v37 = vadd.f32 %v6351_v44, %v6308_v58 }
 0x621   :  { %v7149_v5 = vadd.f32 %v6374_v51, %v12605_v2  ;;  %v11100_v2 = vld [vmem:[%s13162_s5 + $0x1b0] sm:$0xff] }
 0x622   :  { %7025 = vmatmul.bf16.vlgmr.msra.gmra.mxu0 %v12252_v0  ;;  %7110 = vmatpush.bf16.msra.mxu2 %v11100_v2 }
 0x623   :  { %v7167_v55 = vadd.f32 %v12784_v61, %v7149_v5 }
 0x625   :  { %v10515_v14 = vmul.f32 -1.442695, %v7167_v55  ;;  %v6268_v25 = vpop.f32.mrf.mxu3 }
 0x626   :  { %v6313_v32 = vadd.f32 %v6312_v36, %v6268_v25  ;;  %v6375_v45 = vpop.f32.mrf.mxu2 }
 0x627   :  { %11166 = vpow2.f32 %v10515_v14  ;;  %v6376_v24 = vadd.f32 %v6375_v45, %v12649_v35  ;;  %v6354_v17 = vpop.f32.mrf.mxu1  ;;  %v6317_v29 = vpop.f32.mrf.mxu0 }
 0x628   :  { %v12790_v62 = vadd.f32 %v6354_v17, %v6311_v6 }
 0x629   :  { %v7150_v58 = vadd.f32 %v6376_v24, %v12614_v60 }
 0x62a   :  { %6757 = vmatmul.bf16.gmra.mxu1 %v12360_v12  ;;  %6981 = vmatmul.bf16.vlgmr.msra.gmra.mxu3 %v12053_v4 }
 0x62b   :  { %v7169_v0 = vadd.f32 %v12784_v61, %v7150_v58  ;;  %10390 = vmatmul.msk.bf16.gmra.mxu2 %vm1563_vm1, %v12434_v31 }
 0x62d   :  { %v11167_v45 = vpop.eup %11166  ;;  %v10517_v25 = vmul.f32 -1.442695, %v7169_v0  ;;  %v6271_v35 = vpop.f32.mrf.mxu3 }
 0x62e   :  { %v7279_v36 = vadd.f32 1.0, %v11167_v45  ;;  %v6316_v6 = vadd.f32 %v6315_v56, %v6271_v35  ;;  %v6378_v60 = vpop.f32.mrf.mxu2 }
 0x62f   :  { %11168 = vpow2.f32 %v10517_v25  ;;  %v6379_v51 = vadd.f32 %v6378_v60, %v12661_v21  ;;  %v6356_v44 = vpop.f32.mrf.mxu1  ;;  %v6685_v5 = vpop.f32.mrf.mxu0 }
 0x630   :  { %11170 = vrcp.f32 %v7279_v36  ;;  %v12803_v55 = vadd.f32 %v6356_v44, %v6313_v32  ;;  %v7330_v44 = vand.u32 2147483647, %v7279_v36  ;;  %vm7326_vm3 = vweird.f32 %v7279_v36 }
 0x631   :  { %v7151_v4 = vadd.f32 %v6379_v51, %v12620_v16  ;;  %v7332_v51 = vand.u32 2147483648, %v7279_v36 }
 0x632   :  { %7030 = vmatmul.bf16.gmra.mxu0 %v12193_v34  ;;  %vm7331_vm6 = vcmp.eq.f32.partialorder %v7330_v44, 8.507059e+37 }
 0x633   :  { %v7171_v14 = vadd.f32 %v12784_v61, %v7151_v4 }
 0x635   :  { %v11169_v24 = vpop.eup %11168  ;;  %v10519_v17 = vmul.f32 -1.442695, %v7171_v14  ;;  %v6273_v58 = vpop.f32.mrf.mxu3 }
 0x636   :  { %v11171_v2 = vpop.eup %11170  ;;  %v12807_v56 = vadd.f32 1.0, %v11169_v24  ;;  %v6318_v0 = vadd.f32 %v6317_v29, %v6273_v58  ;;  %v6380_v45 = vpop.f32.mrf.mxu2 }
 0x637   :  { %v7322_v21 = vmul.f32 %v11171_v2, %v7279_v36  ;;  %11172 = vpow2.f32 %v10519_v17  ;;  %v6381_v25 = vadd.f32 %v6380_v45, %v12685_v50  ;;  %v6359_v35 = vpop.f32.mrf.mxu1  ;;  %v6687_v16 = vpop.f32.mrf.mxu0  ;;  %vm7327_vm2 = vweird.f32 %v11171_v2 }
 0x638   :  { %11174 = vrcp.f32 %v12807_v56  ;;  %v12812_v60 = vadd.f32 %v6359_v35, %v6316_v6  ;;  %vm7328_vm4 = vmor %vm7326_vm3, %vm7327_vm2  ;;  %v7333_v17 = vor.u32 1.1754944e-38, %v7332_v51  ;;  %vm7356_vm8 = vweird.f32 %v12807_v56 }
 0x639   :  { %v7323_v32 = vsub.f32 1.0, %v7322_v21  ;;  %v7152_v34 = vadd.f32 %v6381_v25, %v12629_v19 }
 0x63a   :  { %6986 = vmatmul.bf16.gmra.mxu3 %v12070_v39  ;;  %7069 = vmatmul.bf16.vlgmr.msra.gmra.mxu1 %v12277_v41 }
 0x63b   :  { %v7324_v29 = vmul.f32 %v11171_v2, %v7323_v32  ;;  %v7173_v4 = vadd.f32 %v12784_v61, %v7152_v34  ;;  %10391 = vmatmul.msk.bf16.gmra.mxu2 %vm1563_vm1, %v12447_v30 }
 0x63d   :  { %v11173_v50 = vpop.eup %11172  ;;  %v7325_v14 = vadd.f32 %v11171_v2, %v7324_v29  ;;  %v10521_v24 = vmul.f32 -1.442695, %v7173_v4  ;;  %v6642_v19 = vpop.f32.mrf.mxu3  ;;  %v7360_v29 = vand.u32 2147483647, %v12807_v56  ;;  %v11099_v4 = vld [vmem:[%s13162_s5 + $0x1a8] sm:$0xff] }
 0x63e   :  { %v11175_v6 = vpop.eup %11174  ;;  %v12819_v39 = vadd.f32 1.0, %v11173_v50  ;;  %v6383_v41 = vpop.f32.mrf.mxu2  ;;  %v6686_v58 = vadd.f32 %v6685_v5, %v6642_v19  ;;  %v7362_v5 = vand.u32 2147483648, %v12807_v56  ;;  %7111 = vmatpush.bf16.msra.mxu2 %v11099_v4 }
 0x63f   :  { %v7329_v45 = vsel %vm7328_vm4, %v11171_v2, %v7325_v14  ;;  %v7352_v21 = vmul.f32 %v11175_v6, %v12807_v56  ;;  %11176 = vpow2.f32 %v10521_v24  ;;  %v6361_v25 = vpop.f32.mrf.mxu1  ;;  %v6690_v35 = vpop.f32.mrf.mxu0  ;;  %v6384_v34 = vadd.f32 %v6383_v41, %v12703_v13 }
 0x640   :  { %v7334_v32 = vsel %vm7331_vm6, %v7333_v17, %v7329_v45  ;;  %11178 = vrcp.f32 %v12819_v39  ;;  %v12828_v51 = vadd.f32 %v6361_v25, %v6318_v0  ;;  %vm7357_vm7 = vweird.f32 %v11175_v6 }
 0x641   :  { %7728 = vst.msk [vmem:[%s13164_s7 + $0x8] sm:$0xff] %vm7726_vm5, %v7334_v32  ;;  %v7353_v36 = vsub.f32 1.0, %v7352_v21  ;;  %v7153_v44 = vadd.f32 %v6384_v34, %v12638_v38  ;;  %vm7358_vm9 = vmor %vm7356_vm8, %vm7357_vm7  ;;  %vm7361_vm10 = vcmp.eq.f32.partialorder %v7360_v29, 8.507059e+37  ;;  %vm7386_vm12 = vweird.f32 %v12819_v39 }
 0x642   :  { %7035 = vmatmul.bf16.gmra.mxu0 %v12212_v33  ;;  %v7363_v33 = vor.u32 1.1754944e-38, %v7362_v5 }
 0x643   :  { %v7354_v2 = vmul.f32 %v11175_v6, %v7353_v36  ;;  %v7175_v13 = vadd.f32 %v12784_v61, %v7153_v44 }
 0x645   :  { %v11177_v50 = vpop.eup %11176  ;;  %v7355_v14 = vadd.f32 %v11175_v6, %v7354_v2  ;;  %v6644_v0 = vpop.f32.mrf.mxu3  ;;  %v10523_v21 = vmul.f32 -1.442695, %v7175_v13  ;;  %v7390_v2 = vand.u32 2147483647, %v12819_v39 }
 0x646   :  { %v11179_v24 = vpop.eup %11178  ;;  %v12839_v19 = vadd.f32 1.0, %v11177_v50  ;;  %v6385_v17 = vpop.f32.mrf.mxu2  ;;  %v6688_v41 = vadd.f32 %v6687_v16, %v6644_v0  ;;  %v7392_v16 = vand.u32 2147483648, %v12819_v39 }
 0x647   :  { %v7359_v38 = vsel %vm7358_vm9, %v11175_v6, %v7355_v14  ;;  %v7382_v45 = vmul.f32 %v11179_v24, %v12819_v39  ;;  %v6728_v25 = vpop.f32.mrf.mxu1  ;;  %v6692_v32 = vpop.f32.mrf.mxu0  ;;  %v6386_v34 = vadd.f32 %v6385_v17, %v12727_v63  ;;  %vm7387_vm11 = vweird.f32 %v11179_v24 }
 0x648   :  { %v7364_v36 = vsel %vm7361_vm10, %v7363_v33, %v7359_v38  ;;  %11180 = vrcp.f32 %v12839_v19  ;;  %v12849_v6 = vadd.f32 %v6728_v25, %v6686_v58  ;;  %vm7388_vm13 = vmor %vm7386_vm12, %vm7387_vm11  ;;  %vm7391_vm14 = vcmp.eq.f32.partialorder %v7390_v2, 8.507059e+37 }
 0x649   :  { %7730 = vst.msk [vmem:[%s13164_s7 + $0x18] sm:$0xff] %vm7726_vm5, %v7364_v36  ;;  %v7383_v56 = vsub.f32 1.0, %v7382_v45  ;;  %11182 = vpow2.f32 %v10523_v21  ;;  %v7154_v29 = vadd.f32 %v6386_v34, %v12647_v49  ;;  %v7420_v36 = vand.u32 2147483647, %v12839_v19 }
 0x64a   :  { %6991 = vmatmul.bf16.gmra.mxu3 %v12081_v11  ;;  %7074 = vmatmul.bf16.gmra.mxu1 %v12285_v28  ;;  %v7393_v11 = vor.u32 1.1754944e-38, %v7392_v16  ;;  %vm7416_vm0 = vweird.f32 %v12839_v19 }
 0x64b   :  { %v7384_v5 = vmul.f32 %v11179_v24, %v7383_v56  ;;  %10392 = vmatmul.msk.bf16.gmra.mxu2 %vm1563_vm1, %v12454_v1  ;;  %v7177_v63 = vadd.f32 %v12784_v61, %v7154_v29  ;;  %vm7421_vm3 = vcmp.eq.f32.partialorder %v7420_v36, 8.507059e+37 }
 0x64d   :  { %v7385_v44 = vadd.f32 %v11179_v24, %v7384_v5  ;;  %v6647_v58 = vpop.f32.mrf.mxu3  ;;  %v10525_v49 = vmul.f32 -1.442695, %v7177_v63 }
 0x64e   :  { %v11181_v4 = vpop.eup %11180  ;;  %v6388_v50 = vpop.f32.mrf.mxu2  ;;  %v6691_v28 = vadd.f32 %v6690_v35, %v6647_v58 }
 0x64f   :  { %v11183_v14 = vpop.eup %11182  ;;  %v7389_v13 = vsel %vm7388_vm13, %v11179_v24, %v7385_v44  ;;  %v7412_v0 = vmul.f32 %v11181_v4, %v12839_v19  ;;  %v6730_v33 = vpop.f32.mrf.mxu1  ;;  %v6389_v39 = vadd.f32 %v6388_v50, %v12748_v20  ;;  %11184 = vpow2.f32 %v10525_v49 }
 0x650   :  { %v6695_v17 = vpop.f32.mrf.mxu0  ;;  %v7394_v38 = vsel %vm7391_vm14, %v7393_v11, %v7389_v13  ;;  %v12860_v45 = vadd.f32 1.0, %v11183_v14  ;;  %v12863_v21 = vadd.f32 %v6730_v33, %v6688_v41  ;;  %v7422_v24 = vand.u32 2147483648, %v12839_v19 }
 0x651   :  { %7732 = vst.msk [vmem:[%s13164_s7 + $0x28] sm:$0xff] %vm7726_vm5, %v7394_v38  ;;  %v7413_v35 = vsub.f32 1.0, %v7412_v0  ;;  %vm7417_vm15 = vweird.f32 %v11181_v4  ;;  %v7155_v20 = vadd.f32 %v6389_v39, %v12659_v26 }
 0x652   :  { %11186 = vrcp.f32 %v12860_v45  ;;  %7040 = vmatmul.bf16.gmra.mxu0 %v12228_v27  ;;  %vm7418_vm2 = vmor %vm7416_vm0, %vm7417_vm15  ;;  %v7423_v16 = vor.u32 1.1754944e-38, %v7422_v24  ;;  %v7452_v0 = vand.u32 2147483648, %v12860_v45  ;;  %v7450_v49 = vand.u32 2147483647, %v12860_v45 }
 0x653   :  { %v7414_v25 = vmul.f32 %v11181_v4, %v7413_v35  ;;  %v7179_v56 = vadd.f32 %v12784_v61, %v7155_v20  ;;  %vm7446_vm6 = vweird.f32 %v12860_v45 }
 0x654   :  { %vm7451_vm8 = vcmp.eq.f32.partialorder %v7450_v49, 8.507059e+37 }
 0x655   :  { %v7415_v41 = vadd.f32 %v11181_v4, %v7414_v25  ;;  %v6649_v34 = vpop.f32.mrf.mxu3  ;;  %v11185_v29 = vpop.eup %11184  ;;  %v10527_v27 = vmul.f32 -1.442695, %v7179_v56 }
 0x656   :  { %v6390_v5 = vpop.f32.mrf.mxu2  ;;  %v6693_v2 = vadd.f32 %v6692_v32, %v6649_v34  ;;  %v12877_v14 = vadd.f32 1.0, %v11185_v29 }
 0x657   :  { %v7419_v44 = vsel %vm7418_vm2, %v11181_v4, %v7415_v41  ;;  %v6391_v63 = vadd.f32 %v6390_v5, %v12763_v23  ;;  %v6733_v58 = vpop.f32.mrf.mxu1  ;;  %11188 = vpow2.f32 %v10527_v27  ;;  %v11098_v23 = vld [vmem:[%s13162_s5 + $0x1a0] sm:$0xff]  ;;  %v7453_v41 = vor.u32 1.1754944e-38, %v7452_v0 }
 0x658   :  { %v6697_v11 = vpop.f32.mrf.mxu0  ;;  %v11187_v50 = vpop.eup %11186  ;;  %v7424_v26 = vsel %vm7421_vm3, %v7423_v16, %v7419_v44  ;;  %v12879_v19 = vadd.f32 %v6733_v58, %v6691_v28  ;;  %11190 = vrcp.f32 %v12877_v14  ;;  %7112 = vmatpush.bf16.msra.mxu2 %v11098_v23  ;;  %vm7476_vm10 = vweird.f32 %v12877_v14 }
 0x659   :  { %7734 = vst.msk [vmem:[%s13164_s7 + $0x38] sm:$0xff] %vm7726_vm5, %v7424_v26  ;;  %v7442_v32 = vmul.f32 %v11187_v50, %v12860_v45  ;;  %v7156_v4 = vadd.f32 %v6391_v63, %v12680_v10  ;;  %vm7447_vm4 = vweird.f32 %v11187_v50 }
 0x65a   :  { %6996 = vmatmul.bf16.gmra.mxu3 %v12089_v52  ;;  %7079 = vmatmul.bf16.gmra.mxu1 %v12295_v8  ;;  %vm7448_vm7 = vmor %vm7446_vm6, %vm7447_vm4 }
 0x65b   :  { %v7443_v28 = vsub.f32 1.0, %v7442_v32  ;;  %v7181_v13 = vadd.f32 %v12784_v61, %v7156_v4  ;;  %10393 = vmatmul.msk.bf16.gmra.mxu2 %vm1563_vm1, %v12464_v57 }
 0x65d   :  { %v7444_v10 = vmul.f32 %v11187_v50, %v7443_v28  ;;  %v10529_v33 = vmul.f32 -1.442695, %v7181_v13  ;;  %v6652_v38 = vpop.f32.mrf.mxu3  ;;  %v11189_v52 = vpop.eup %11188 }
 0x65e   :  { %v6393_v39 = vpop.f32.mrf.mxu2  ;;  %v6696_v35 = vadd.f32 %v6695_v17, %v6652_v38  ;;  %v11191_v20 = vpop.eup %11190  ;;  %v12900_v56 = vadd.f32 1.0, %v11189_v52 }
 0x65f   :  { %v7445_v24 = vadd.f32 %v11187_v50, %v7444_v10  ;;  %11192 = vpow2.f32 %v10529_v33  ;;  %v6394_v8 = vadd.f32 %v6393_v39, %v12775_v22  ;;  %v6735_v25 = vpop.f32.mrf.mxu1  ;;  %v7472_v17 = vmul.f32 %v11191_v20, %v12877_v14 }
 0x660   :  { %v6700_v36 = vpop.f32.mrf.mxu0  ;;  %v12902_v34 = vadd.f32 %v6735_v25, %v6693_v2  ;;  %11194 = vrcp.f32 %v12900_v56  ;;  %v7482_v2 = vand.u32 2147483648, %v12877_v14  ;;  %vm7477_vm9 = vweird.f32 %v11191_v20 }
 0x661   :  { %v7449_v16 = vsel %vm7448_vm7, %v11187_v50, %v7445_v24  ;;  %v7157_v5 = vadd.f32 %v6394_v8, %v12701_v48  ;;  %v7473_v22 = vsub.f32 1.0, %v7472_v17  ;;  %v7480_v48 = vand.u32 2147483647, %v12877_v14  ;;  %vm7478_vm11 = vmor %vm7476_vm10, %vm7477_vm9 }
 0x662   :  { %v7454_v29 = vsel %vm7451_vm8, %v7453_v41, %v7449_v16  ;;  %7045 = vmatmul.bf16.gmra.mxu0 %v12245_v7  ;;  %v7483_v0 = vor.u32 1.1754944e-38, %v7482_v2  ;;  %v7510_v39 = vand.u32 2147483647, %v12900_v56  ;;  %v7512_v52 = vand.u32 2147483648, %v12900_v56 }
 0x663   :  { %7736 = vst.msk [vmem:[%s13164_s7 + $0x48] sm:$0xff] %vm7726_vm5, %v7454_v29  ;;  %v7183_v45 = vadd.f32 %v12784_v61, %v7157_v5  ;;  %v7474_v27 = vmul.f32 %v11191_v20, %v7473_v22  ;;  %vm7481_vm12 = vcmp.eq.f32.partialorder %v7480_v48, 8.507059e+37  ;;  %vm7506_vm14 = vweird.f32 %v12900_v56 }
 0x664   :  { %vm7511_vm0 = vcmp.eq.f32.partialorder %v7510_v39, 8.507059e+37  ;;  %v7513_v29 = vor.u32 1.1754944e-38, %v7512_v52 }
 0x665   :  { %v11193_v44 = vpop.eup %11192  ;;  %v10531_v63 = vmul.f32 -1.442695, %v7183_v45  ;;  %v6654_v58 = vpop.f32.mrf.mxu3  ;;  %v7475_v32 = vadd.f32 %v11191_v20, %v7474_v27 }
 0x666   :  { %v12915_v50 = vadd.f32 1.0, %v11193_v44  ;;  %v6395_v7 = vpop.f32.mrf.mxu2  ;;  %v6698_v26 = vadd.f32 %v6697_v11, %v6654_v58  ;;  %v11195_v13 = vpop.eup %11194 }
 0x667   :  { %11196 = vpow2.f32 %v10531_v63  ;;  %v6396_v4 = vadd.f32 %v6395_v7, %v12782_v37  ;;  %v6738_v23 = vpop.f32.mrf.mxu1  ;;  %v7479_v10 = vsel %vm7478_vm11, %v11191_v20, %v7475_v32  ;;  %v7502_v49 = vmul.f32 %v11195_v13, %v12900_v56 }
 0x668   :  { %v6702_v28 = vpop.f32.mrf.mxu0  ;;  %11198 = vrcp.f32 %v12915_v50  ;;  %v7484_v11 = vsel %vm7481_vm12, %v7483_v0, %v7479_v10  ;;  %v12922_v38 = vadd.f32 %v6738_v23, %v6696_v35  ;;  %vm7507_vm13 = vweird.f32 %v11195_v13 }
 0x669   :  { %v7158_v33 = vadd.f32 %v6396_v4, %v12725_v54  ;;  %7738 = vst.msk [vmem:[%s13164_s7 + $0x58] sm:$0xff] %vm7726_vm5, %v7484_v11  ;;  %v7503_v37 = vsub.f32 1.0, %v7502_v49  ;;  %vm7508_vm15 = vmor %vm7506_vm14, %vm7507_vm13  ;;  %v7542_v27 = vand.u32 2147483648, %v12915_v50  ;;  %v7540_v48 = vand.u32 2147483647, %v12915_v50 }
 0x66a   :  { %7001 = vmatmul.bf16.gmra.mxu3 %v12099_v59  ;;  %7084 = vmatmul.bf16.gmra.mxu1 %v12306_v15  ;;  %vm7536_vm3 = vweird.f32 %v12915_v50 }
 0x66b   :  { %v7185_v14 = vadd.f32 %v12784_v61, %v7158_v33  ;;  %10394 = vmatmul.msk.bf16.gmra.mxu2 %vm1563_vm1, %v12470_v43  ;;  %v7504_v35 = vmul.f32 %v11195_v13, %v7503_v37  ;;  %vm7541_vm6 = vcmp.eq.f32.partialorder %v7540_v48, 8.507059e+37 }
 0x66d   :  { %v11197_v54 = vpop.eup %11196  ;;  %v10533_v59 = vmul.f32 -1.442695, %v7185_v14  ;;  %v6657_v15 = vpop.f32.mrf.mxu3  ;;  %v7505_v41 = vadd.f32 %v11195_v13, %v7504_v35 }
 0x66e   :  { %v11199_v24 = vpop.eup %11198  ;;  %v12935_v8 = vadd.f32 1.0, %v11197_v54  ;;  %v6398_v25 = vpop.f32.mrf.mxu2  ;;  %v6701_v20 = vadd.f32 %v6700_v36, %v6657_v15 }
 0x66f   :  { %v7532_v16 = vmul.f32 %v11199_v24, %v12915_v50  ;;  %11200 = vpow2.f32 %v10533_v59  ;;  %v6740_v17 = vpop.f32.mrf.mxu1  ;;  %v7509_v22 = vsel %vm7508_vm15, %v11195_v13, %v7505_v41  ;;  %v6399_v2 = vadd.f32 %v6398_v25, %v12790_v62 }
 0x670   :  { %v6705_v5 = vpop.f32.mrf.mxu0  ;;  %11202 = vrcp.f32 %v12935_v8  ;;  %v12941_v44 = vadd.f32 %v6740_v17, %v6698_v26  ;;  %v7514_v36 = vsel %vm7511_vm0, %v7513_v29, %v7509_v22  ;;  %vm7537_vm2 = vweird.f32 %v11199_v24 }
 0x671   :  { %v7533_v45 = vsub.f32 1.0, %v7532_v16  ;;  %7740 = vst.msk [vmem:[%s13164_s7 + $0x68] sm:$0xff] %vm7726_vm5, %v7514_v36  ;;  %v7159_v63 = vadd.f32 %v6399_v2, %v12746_v18  ;;  %vm7538_vm4 = vmor %vm7536_vm3, %vm7537_vm2  ;;  %v7570_v52 = vand.u32 2147483647, %v12935_v8  ;;  %vm7566_vm8 = vweird.f32 %v12935_v8 }
 0x672   :  { %7050 = vmatmul.bf16.gmra.mxu0 %v12254_v46  ;;  %v7543_v46 = vor.u32 1.1754944e-38, %v7542_v27 }
 0x673   :  { %v7534_v56 = vmul.f32 %v11199_v24, %v7533_v45  ;;  %v7187_v7 = vadd.f32 %v12784_v61, %v7159_v63  ;;  %vm7571_vm10 = vcmp.eq.f32.partialorder %v7570_v52, 8.507059e+37 }
 0x675   :  { %v11201_v58 = vpop.eup %11200  ;;  %v7535_v62 = vadd.f32 %v11199_v24, %v7534_v56  ;;  %v6659_v26 = vpop.f32.mrf.mxu3  ;;  %v10535_v49 = vmul.f32 -1.442695, %v7187_v7 }
 0x676   :  { %v11203_v32 = vpop.eup %11202  ;;  %v12953_v4 = vadd.f32 1.0, %v11201_v58  ;;  %v6400_v23 = vpop.f32.mrf.mxu2  ;;  %v6703_v13 = vadd.f32 %v6702_v28, %v6659_v26  ;;  %v7572_v28 = vand.u32 2147483648, %v12935_v8 }
 0x677   :  { %v7539_v0 = vsel %vm7538_vm4, %v11199_v24, %v7535_v62  ;;  %v7562_v10 = vmul.f32 %v11203_v32, %v12935_v8  ;;  %v6743_v18 = vpop.f32.mrf.mxu1  ;;  %v6401_v37 = vadd.f32 %v6400_v23, %v12803_v55  ;;  %vm7567_vm7 = vweird.f32 %v11203_v32 }
 0x678   :  { %v6707_v33 = vpop.f32.mrf.mxu0  ;;  %v7544_v11 = vsel %vm7541_vm6, %v7543_v46, %v7539_v0  ;;  %11204 = vrcp.f32 %v12953_v4  ;;  %v12963_v14 = vadd.f32 %v6743_v18, %v6701_v20  ;;  %vm7568_vm9 = vmor %vm7566_vm8, %vm7567_vm7  ;;  %v7602_v45 = vand.u32 2147483648, %v12953_v4  ;;  %v13253_v18 = vld [vmem:[#allocation13_spill] sm:$0xff] }
 0x679   :  { %7742 = vst.msk [vmem:[%s13164_s7 + $0x78] sm:$0xff] %vm7726_vm5, %v7544_v11  ;;  %v7563_v50 = vsub.f32 1.0, %v7562_v10  ;;  %11206 = vpow2.f32 %v10535_v49  ;;  %v7160_v54 = vadd.f32 %v6401_v37, %v12758_v42  ;;  %v7600_v36 = vand.u32 2147483647, %v12953_v4  ;;  %v13255_v37 = vld [vmem:[#allocation15_spill] sm:$0xff] }
 0x67a   :  { %7006 = vmatmul.bf16.gmra.mxu3 %v12110_v40  ;;  %7089 = vmatmul.bf16.gmra.mxu1 %v12322_v3  ;;  %v7573_v40 = vor.u32 1.1754944e-38, %v7572_v28  ;;  %vm7596_vm12 = vweird.f32 %v12953_v4  ;;  %v7603_v63 = vor.u32 1.1754944e-38, %v7602_v45 }
 0x67b   :  { %v7564_v39 = vmul.f32 %v11203_v32, %v7563_v50  ;;  %10507 = vmatmul.msk.bf16.vlgmr.msra.gmra.mxu2 %vm1563_vm1, %v12402_v47  ;;  %v7189_v55 = vadd.f32 %v12784_v61, %v7160_v54  ;;  %vm7601_vm14 = vcmp.eq.f32.partialorder %v7600_v36, 8.507059e+37 }
 0x67d   :  { %v7565_v35 = vadd.f32 %v11203_v32, %v7564_v39  ;;  %v6662_v59 = vpop.f32.mrf.mxu3  ;;  %v10537_v42 = vmul.f32 -1.442695, %v7189_v55 }
 0x67e   :  { %v11205_v15 = vpop.eup %11204  ;;  %v6403_v24 = vpop.f32.mrf.mxu2  ;;  %v6706_v3 = vadd.f32 %v6705_v5, %v6662_v59 }
 0x67f   :  { %v11207_v25 = vpop.eup %11206  ;;  %v7569_v20 = vsel %vm7568_vm9, %v11203_v32, %v7565_v35  ;;  %v7592_v41 = vmul.f32 %v11205_v15, %v12953_v4  ;;  %v6745_v16 = vpop.f32.mrf.mxu1  ;;  %v6404_v8 = vadd.f32 %v6403_v24, %v12812_v60  ;;  %11208 = vpow2.f32 %v10537_v42 }
 0x680   :  { %v6710_v17 = vpop.f32.mrf.mxu0  ;;  %v7574_v47 = vsel %vm7571_vm10, %v7573_v40, %v7569_v20  ;;  %v12974_v29 = vadd.f32 1.0, %v11207_v25  ;;  %v12977_v22 = vadd.f32 %v6745_v16, %v6703_v13  ;;  %vm7597_vm11 = vweird.f32 %v11205_v15 }
 0x681   :  { %7744 = vst.msk [vmem:[%s13164_s7 + $0x88] sm:$0xff] %vm7726_vm5, %v7574_v47  ;;  %v7593_v5 = vsub.f32 1.0, %v7592_v41  ;;  %v7161_v60 = vadd.f32 %v6404_v8, %v12770_v53  ;;  %vm7598_vm13 = vmor %vm7596_vm12, %vm7597_vm11 }
 0x682   :  { %11210 = vrcp.f32 %v12974_v29  ;;  %7055 = vmatmul.bf16.gmra.mxu0 %v12263_v9  ;;  %v7632_v50 = vand.u32 2147483648, %v12974_v29  ;;  %v7630_v39 = vand.u32 2147483647, %v12974_v29  ;;  %vm7626_vm0 = vweird.f32 %v12974_v29 }
 0x683   :  { %v7594_v2 = vmul.f32 %v11205_v15, %v7593_v5  ;;  %v7191_v56 = vadd.f32 %v12784_v61, %v7161_v60 }
 0x684   :  { %v7633_v25 = vor.u32 1.1754944e-38, %v7632_v50  ;;  %vm7631_vm3 = vcmp.eq.f32.partialorder %v7630_v39, 8.507059e+37 }
 0x685   :  { %v7595_v27 = vadd.f32 %v11205_v15, %v7594_v2  ;;  %v6664_v48 = vpop.f32.mrf.mxu3  ;;  %v11209_v7 = vpop.eup %11208  ;;  %v10539_v9 = vmul.f32 -1.442695, %v7191_v56 }
 0x686   :  { %v6405_v58 = vpop.f32.mrf.mxu2  ;;  %v6708_v62 = vadd.f32 %v6707_v33, %v6664_v48  ;;  %v7301_v0 = vadd.f32 1.0, %v11209_v7 }
 0x687   :  { %v7599_v26 = vsel %vm7598_vm13, %v11205_v15, %v7595_v27  ;;  %v6406_v32 = vadd.f32 %v6405_v58, %v12828_v51  ;;  %v6748_v46 = vpop.f32.mrf.mxu1  ;;  %11212 = vpow2.f32 %v10539_v9  ;;  %v13254_v51 = vld [vmem:[#allocation14_spill] sm:$0xff] }
 0x688   :  { %v6712_v23 = vpop.f32.mrf.mxu0  ;;  %v11211_v13 = vpop.eup %11210  ;;  %v7604_v53 = vsel %vm7601_vm14, %v7603_v63, %v7599_v26  ;;  %v12991_v10 = vadd.f32 %v6748_v46, %v6706_v3  ;;  %11214 = vrcp.f32 %v7301_v0  ;;  %v7660_v45 = vand.u32 2147483647, %v7301_v0 }
 0x689   :  { %7746 = vst.msk [vmem:[%s13164_s7 + $0x98] sm:$0xff] %vm7726_vm5, %v7604_v53  ;;  %v7622_v4 = vmul.f32 %v11211_v13, %v12974_v29  ;;  %v7193_v49 = vadd.f32 %v12784_v61, %v6406_v32  ;;  %vm7627_vm15 = vweird.f32 %v11211_v13  ;;  %v7662_v29 = vand.u32 2147483648, %v7301_v0 }
 0x68a   :  { %7011 = vmatmul.bf16.gmra.mxu3 %v13253_v18  ;;  %7094 = vmatmul.bf16.gmra.mxu1 %v13254_v51  ;;  %vm7628_vm2 = vmor %vm7626_vm0, %vm7627_vm15  ;;  %vm7656_vm6 = vweird.f32 %v7301_v0  ;;  %vm7661_vm8 = vcmp.eq.f32.partialorder %v7660_v45, 8.507059e+37 }
 0x68b   :  { %v7623_v33 = vsub.f32 1.0, %v7622_v4  ;;  %v10541_v11 = vmul.f32 -1.442695, %v7193_v49  ;;  %10508 = vmatmul.msk.bf16.gmra.mxu2 %vm1563_vm1, %v13255_v37 }
 0x68d   :  { %v7624_v28 = vmul.f32 %v11211_v13, %v7623_v33  ;;  %11216 = vpow2.f32 %v10541_v11  ;;  %v6667_v52 = vpop.f32.mrf.mxu3  ;;  %v11213_v55 = vpop.eup %11212 }
 0x68e   :  { %v6711_v54 = vadd.f32 %v6710_v17, %v6667_v52  ;;  %v6771_v35 = vpop.f32.mrf.mxu2  ;;  %v11215_v3 = vpop.eup %11214  ;;  %v7303_v20 = vadd.f32 1.0, %v11213_v55 }
 0x68f   :  { %v7625_v59 = vadd.f32 %v11211_v13, %v7624_v28  ;;  %v13007_v15 = vadd.f32 %v6771_v35, %v12849_v6  ;;  %v6750_v40 = vpop.f32.mrf.mxu1  ;;  %v7652_v16 = vmul.f32 %v11215_v3, %v7301_v0  ;;  %vm7657_vm4 = vweird.f32 %v11215_v3 }
 0x690   :  { %v6715_v24 = vpop.f32.mrf.mxu0  ;;  %v13009_v41 = vadd.f32 %v6750_v40, %v6708_v62  ;;  %11218 = vrcp.f32 %v7303_v20  ;;  %vm7658_vm7 = vmor %vm7656_vm6, %vm7657_vm4  ;;  %v7663_v62 = vor.u32 1.1754944e-38, %v7662_v29  ;;  %vm7686_vm10 = vweird.f32 %v7303_v20 }
 0x691   :  { %v7629_v42 = vsel %vm7628_vm2, %v11211_v13, %v7625_v59  ;;  %v7653_v6 = vsub.f32 1.0, %v7652_v16  ;;  %v7692_v13 = vand.u32 2147483648, %v7303_v20 }
 0x692   :  { %v7634_v17 = vsel %vm7631_vm3, %v7633_v25, %v7629_v42 }
 0x693   :  { %v11217_v47 = vpop.eup %11216  ;;  %7748 = vst.msk [vmem:[%s13164_s7 + $0xa8] sm:$0xff] %vm7726_vm5, %v7634_v17  ;;  %v7654_v5 = vmul.f32 %v11215_v3, %v7653_v6  ;;  %v7693_v50 = vor.u32 1.1754944e-38, %v7692_v13 }
 0x694   :  { %v7305_v8 = vadd.f32 1.0, %v11217_v47 }
 0x695   :  { %v6669_v2 = vpop.f32.mrf.mxu3  ;;  %v7655_v60 = vadd.f32 %v11215_v3, %v7654_v5 }
 0x696   :  { %11220 = vrcp.f32 %v7305_v8  ;;  %v6773_v36 = vpop.f32.mrf.mxu2  ;;  %v6713_v27 = vadd.f32 %v6712_v23, %v6669_v2  ;;  %v11219_v58 = vpop.eup %11218  ;;  %v7690_v23 = vand.u32 2147483647, %v7303_v20  ;;  %v7722_v37 = vand.u32 2147483648, %v7305_v8 }
 0x697   :  { %v13016_v56 = vadd.f32 %v6773_v36, %v12863_v21  ;;  %v6753_v48 = vpop.f32.mrf.mxu1  ;;  %v7659_v26 = vsel %vm7658_vm7, %v11215_v3, %v7655_v60  ;;  %v7682_v9 = vmul.f32 %v11219_v58, %v7303_v20  ;;  %vm7687_vm9 = vweird.f32 %v11219_v58 }
 0x698   :  { %v6717_v63 = vpop.f32.mrf.mxu0  ;;  %v13018_v7 = vadd.f32 %v6753_v48, %v6711_v54  ;;  %v7664_v32 = vsel %vm7661_vm8, %v7663_v62, %v7659_v26  ;;  %vm7688_vm11 = vmor %vm7686_vm10, %vm7687_vm9  ;;  %vm7691_vm12 = vcmp.eq.f32.partialorder %v7690_v23, 8.507059e+37  ;;  %v7720_v52 = vand.u32 2147483647, %v7305_v8 }
 0x699   :  { %7750 = vst.msk [vmem:[%s13164_s7 + $0xb8] sm:$0xff] %vm7726_vm5, %v7664_v32  ;;  %v7683_v21 = vsub.f32 1.0, %v7682_v9  ;;  %vm7716_vm14 = vweird.f32 %v7305_v8 }
 0x69a   :  { %7099 = vmatmul.bf16.gmra.mxu1 %v12360_v12  ;;  %vm7721_vm0 = vcmp.eq.f32.partialorder %v7720_v52, 8.507059e+37 }
 0x69b   :  { %10509 = vmatmul.msk.bf16.gmra.mxu2 %vm1563_vm1, %v12434_v31  ;;  %v7684_v53 = vmul.f32 %v11219_v58, %v7683_v21 }
 0x69c   :  { %v11221_v46 = vpop.eup %11220 }
 0x69d   :  { %v7712_v0 = vmul.f32 %v11221_v46, %v7305_v8  ;;  %v6672_v4 = vpop.f32.mrf.mxu3  ;;  %v7685_v51 = vadd.f32 %v11219_v58, %v7684_v53  ;;  %vm7717_vm13 = vweird.f32 %v11221_v46 }
 0x69e   :  { %v6716_v49 = vadd.f32 %v6715_v24, %v6672_v4  ;;  %v6776_v18 = vpop.f32.mrf.mxu2  ;;  %vm7718_vm15 = vmor %vm7716_vm14, %vm7717_vm13 }
 0x69f   :  { %v7713_v12 = vsub.f32 1.0, %v7712_v0  ;;  %v13028_v33 = vadd.f32 %v6776_v18, %v12879_v19  ;;  %v6755_v11 = vpop.f32.mrf.mxu1  ;;  %v7689_v39 = vsel %vm7688_vm11, %v11219_v58, %v7685_v51  ;;  %v7723_v19 = vor.u32 1.1754944e-38, %v7722_v37 }
 0x6a0   :  { %v6756_v28 = vadd.f32 %v6755_v11, %v6713_v27  ;;  %v7694_v54 = vsel %vm7691_vm12, %v7693_v50, %v7689_v39  ;;  %v7026_v2 = vpop.f32.mrf.mxu0 }
 0x6a1   :  { %v7714_v31 = vmul.f32 %v11221_v46, %v7713_v12  ;;  %7752 = vst.msk [vmem:[%s13164_s7 + $0xc8] sm:$0xff] %vm7726_vm5, %v7694_v54 }
 0x6a3   :  { %v7715_v35 = vadd.f32 %v11221_v46, %v7714_v31 }
 0x6a5   :  { %v7719_v55 = vsel %vm7718_vm15, %v11221_v46, %v7715_v35  ;;  %v6674_v59 = vpop.f32.mrf.mxu3 }
 0x6a6   :  { %v7724_v40 = vsel %vm7721_vm0, %v7723_v19, %v7719_v55  ;;  %v6778_v24 = vpop.f32.mrf.mxu2 }
 0x6a7   :  { %7754 = vst.msk [vmem:[%s13164_s7 + $0xd8] sm:$0xff] %vm7726_vm5, %v7724_v40  ;;  %v13039_v3 = vadd.f32 %v6778_v24, %v12902_v34  ;;  %v6758_v25 = vpop.f32.mrf.mxu1 }
 0x6a8   :  { %v6759_v20 = vadd.f32 %v6758_v25, %v6716_v49 }
 0x6ab   :  { %10510 = vmatmul.msk.bf16.gmra.mxu2 %vm1563_vm1, %v12447_v30 }
 0x6ae   :  { %v6781_v42 = vpop.f32.mrf.mxu2 }
 0x6af   :  { %v6760_v16 = vpop.f32.mrf.mxu1  ;;  %v13044_v17 = vadd.f32 %v6781_v42, %v12922_v38 }
 0x6b6   :  { %v6783_v47 = vpop.f32.mrf.mxu2 }
 0x6b7   :  { %v13047_v6 = vadd.f32 %v6783_v47, %v12941_v44  ;;  %v7070_v36 = vpop.f32.mrf.mxu1 }
 0x6bb   :  { %10511 = vmatmul.msk.bf16.gmra.mxu2 %vm1563_vm1, %v12454_v1  ;;  %v6982_v1 = vpop.f32.mrf.mxu3 }
 0x6bc   :  { %v7027_v32 = vadd.f32 %v7026_v2, %v6982_v1 }
 0x6be   :  { %v6786_v29 = vpop.f32.mrf.mxu2  ;;  %v7071_v21 = vadd.f32 %v7070_v36, %v7027_v32 }
 0x6bf   :  { %v13052_v34 = vadd.f32 %v6786_v29, %v12963_v14  ;;  %v7072_v48 = vpop.f32.mrf.mxu1 }
 0x6c3   :  { %v6984_v60 = vpop.f32.mrf.mxu3 }
 0x6c4   :  { %v6985_v13 = vadd.f32 %v6984_v60, %v13007_v15 }
 0x6c6   :  { %v6788_v8 = vpop.f32.mrf.mxu2 }
 0x6c7   :  { %v13055_v5 = vadd.f32 %v6788_v8, %v12977_v22  ;;  %v7075_v26 = vpop.f32.mrf.mxu1 }
 0x6cb   :  { %10512 = vmatmul.msk.bf16.gmra.mxu2 %vm1563_vm1, %v12464_v57  ;;  %v6987_v63 = vpop.f32.mrf.mxu3 }
 0x6cc   :  { %v6988_v11 = vadd.f32 %v6987_v63, %v13016_v56 }
 0x6ce   :  { %v6791_v30 = vpop.f32.mrf.mxu2 }
 0x6cf   :  { %v13060_v38 = vadd.f32 %v6791_v30, %v12991_v10  ;;  %v7028_v10 = vpop.f32.mrf.mxu0  ;;  %v7077_v23 = vpop.f32.mrf.mxu1 }
 0x6d0   :  { %v7029_v49 = vadd.f32 %v7028_v10, %v6985_v13 }
 0x6d2   :  { %v7073_v51 = vadd.f32 %v7072_v48, %v7029_v49 }
 0x6d6   :  { %v6793_v44 = vpop.f32.mrf.mxu2 }
 0x6d7   :  { %v13063_v45 = vadd.f32 %v6793_v44, %v13009_v41  ;;  %v7031_v62 = vpop.f32.mrf.mxu0  ;;  %v7080_v37 = vpop.f32.mrf.mxu1 }
 0x6d8   :  { %v7032_v52 = vadd.f32 %v7031_v62, %v6988_v11 }
 0x6da   :  { %v7076_v19 = vadd.f32 %v7075_v26, %v7032_v52 }
 0x6db   :  { %10513 = vmatmul.msk.bf16.gmra.mxu2 %vm1563_vm1, %v12470_v43  ;;  %v6989_v43 = vpop.f32.mrf.mxu3 }
 0x6dc   :  { %v6990_v59 = vadd.f32 %v6989_v43, %v13028_v33 }
 0x6de   :  { %v6796_v14 = vpop.f32.mrf.mxu2 }
 0x6df   :  { %v13068_v22 = vadd.f32 %v6796_v14, %v13018_v7  ;;  %v7033_v46 = vpop.f32.mrf.mxu0  ;;  %v7082_v25 = vpop.f32.mrf.mxu1 }
 0x6e0   :  { %v7034_v42 = vadd.f32 %v7033_v46, %v6990_v59 }
 0x6e2   :  { %v7078_v8 = vadd.f32 %v7077_v23, %v7034_v42 }
 0x6e3   :  { %v6992_v0 = vpop.f32.mrf.mxu3 }
 0x6e4   :  { %v6993_v1 = vadd.f32 %v6992_v0, %v13039_v3 }
 0x6e6   :  { %v6798_v57 = vpop.f32.mrf.mxu2 }
 0x6e7   :  { %v13070_v27 = vadd.f32 %v6798_v57, %v6756_v28  ;;  %v7036_v50 = vpop.f32.mrf.mxu0  ;;  %v7085_v62 = vpop.f32.mrf.mxu1 }
 0x6e8   :  { %v7037_v48 = vadd.f32 %v7036_v50, %v6993_v1 }
 0x6ea   :  { %v7081_v32 = vadd.f32 %v7080_v37, %v7037_v48 }
 0x6eb   :  { %v6994_v54 = vpop.f32.mrf.mxu3 }
 0x6ee   :  { %v6801_v58 = vpop.f32.mrf.mxu2 }
 0x6ef   :  { %v13072_v41 = vadd.f32 %v6801_v58, %v6759_v20  ;;  %v7038_v24 = vpop.f32.mrf.mxu0 }
 0x6f3   :  { %v6997_v30 = vpop.f32.mrf.mxu3 }
 0x6f4   :  { %v6998_v59 = vadd.f32 %v6997_v30, %v13047_v6 }
 0x6f6   :  { %v6803_v9 = vpop.f32.mrf.mxu2 }
 0x6f7   :  { %v7041_v58 = vpop.f32.mrf.mxu0 }
 0x6fb   :  { %v6999_v0 = vpop.f32.mrf.mxu3 }
 0x6fe   :  { %v7114_v7 = vpop.f32.mrf.mxu2 }
 0x6ff   :  { %v7115_v53 = vadd.f32 %v7114_v7, %v7071_v21  ;;  %v6995_v7 = vadd.f32 %v6994_v54, %v13044_v17 }
 0x701   :  { %v7166_v4 = vadd.f32 %v12784_v61, %v7115_v53  ;;  %v7039_v50 = vadd.f32 %v7038_v24, %v6995_v7 }
 0x703   :  { %v10514_v18 = vmul.f32 -1.442695, %v7166_v4  ;;  %v7002_v42 = vpop.f32.mrf.mxu3 }
 0x705   :  { %11222 = vpow2.f32 %v10514_v18 }
 0x706   :  { %v7116_v12 = vpop.f32.mrf.mxu2 }
 0x707   :  { %v7117_v28 = vadd.f32 %v7116_v12, %v7073_v51 }
 0x709   :  { %v7168_v39 = vadd.f32 %v12784_v61, %v7117_v28 }
 0x70b   :  { %v11223_v31 = vpop.eup %11222  ;;  %v10516_v15 = vmul.f32 -1.442695, %v7168_v39 }
 0x70c   :  { %v7278_v35 = vadd.f32 1.0, %v11223_v31  ;;  %v7083_v31 = vadd.f32 %v7082_v25, %v7039_v50 }
 0x70d   :  { %11224 = vpow2.f32 %v10516_v15  ;;  %v7043_v15 = vpop.f32.mrf.mxu0 }
 0x70e   :  { %11226 = vrcp.f32 %v7278_v35  ;;  %v7119_v55 = vpop.f32.mrf.mxu2  ;;  %v7317_v36 = vand.u32 2147483648, %v7278_v35  ;;  %v7315_v57 = vand.u32 2147483647, %v7278_v35  ;;  %vm7311_vm2 = vweird.f32 %v7278_v35 }
 0x70f   :  { %v7120_v40 = vadd.f32 %v7119_v55, %v7076_v19 }
 0x710   :  { %v7318_v3 = vor.u32 1.1754944e-38, %v7317_v36  ;;  %vm7316_vm4 = vcmp.eq.f32.partialorder %v7315_v57, 8.507059e+37  ;;  %v7000_v57 = vadd.f32 %v6999_v0, %v13052_v34 }
 0x711   :  { %v7170_v56 = vadd.f32 %v12784_v61, %v7120_v40 }
 0x713   :  { %v11225_v20 = vpop.eup %11224  ;;  %v10518_v16 = vmul.f32 -1.442695, %v7170_v56 }
 0x714   :  { %v11227_v47 = vpop.eup %11226  ;;  %v7280_v29 = vadd.f32 1.0, %v11225_v20 }
 0x715   :  { %v7307_v44 = vmul.f32 %v11227_v47, %v7278_v35  ;;  %11228 = vpow2.f32 %v10518_v16  ;;  %vm7312_vm1 = vweird.f32 %v11227_v47  ;;  %v7087_v35 = vpop.f32.mrf.mxu1 }
 0x716   :  { %11230 = vrcp.f32 %v7280_v29  ;;  %v7121_v14 = vpop.f32.mrf.mxu2  ;;  %vm7313_vm3 = vmor %vm7311_vm2, %vm7312_vm1  ;;  %v7347_v18 = vand.u32 2147483648, %v7280_v29  ;;  %v7345_v12 = vand.u32 2147483647, %v7280_v29  ;;  %vm7341_vm7 = vweird.f32 %v7280_v29 }
 0x717   :  { %v7308_v2 = vsub.f32 1.0, %v7307_v44  ;;  %v7122_v33 = vadd.f32 %v7121_v14, %v7078_v8  ;;  %v7042_v8 = vadd.f32 %v7041_v58, %v6998_v59 }
 0x718   :  { %v7348_v52 = vor.u32 1.1754944e-38, %v7347_v18  ;;  %vm7346_vm9 = vcmp.eq.f32.partialorder %v7345_v12, 8.507059e+37 }
 0x719   :  { %v7309_v60 = vmul.f32 %v11227_v47, %v7308_v2  ;;  %v7172_v10 = vadd.f32 %v12784_v61, %v7122_v33  ;;  %v7086_v14 = vadd.f32 %v7085_v62, %v7042_v8 }
 0x71b   :  { %v11229_v63 = vpop.eup %11228  ;;  %v7310_v26 = vadd.f32 %v11227_v47, %v7309_v60  ;;  %v10520_v9 = vmul.f32 -1.442695, %v7172_v10 }
 0x71c   :  { %v11231_v43 = vpop.eup %11230  ;;  %v7282_v21 = vadd.f32 1.0, %v11229_v63  ;;  %v7046_v63 = vpop.f32.mrf.mxu0 }
 0x71d   :  { %v7314_v46 = vsel %vm7313_vm3, %v11227_v47, %v7310_v26  ;;  %v7337_v23 = vmul.f32 %v11231_v43, %v7280_v29  ;;  %11232 = vpow2.f32 %v10520_v9  ;;  %vm7342_vm6 = vweird.f32 %v11231_v43  ;;  %v7090_v58 = vpop.f32.mrf.mxu1 }
 0x71e   :  { %v7319_v13 = vsel %vm7316_vm4, %v7318_v3, %v7314_v46  ;;  %11234 = vrcp.f32 %v7282_v21  ;;  %v7124_v53 = vpop.f32.mrf.mxu2  ;;  %vm7343_vm8 = vmor %vm7341_vm7, %vm7342_vm6  ;;  %v7377_v20 = vand.u32 2147483648, %v7282_v21  ;;  %v7375_v47 = vand.u32 2147483647, %v7282_v21  ;;  %v7004_v46 = vpop.f32.mrf.mxu3 }
 0x71f   :  { %7727 = vst.msk [vmem:[%s13164_s7] sm:$0xff] %vm7726_vm5, %v7319_v13  ;;  %v7338_v4 = vsub.f32 1.0, %v7337_v23  ;;  %v7125_v49 = vadd.f32 %v7124_v53, %v7081_v32  ;;  %vm7371_vm11 = vweird.f32 %v7282_v21 }
 0x720   :  { %v7378_v2 = vor.u32 1.1754944e-38, %v7377_v20  ;;  %vm7376_vm13 = vcmp.eq.f32.partialorder %v7375_v47, 8.507059e+37 }
 0x721   :  { %v7339_v51 = vmul.f32 %v11231_v43, %v7338_v4  ;;  %v7174_v11 = vadd.f32 %v12784_v61, %v7125_v49 }
 0x723   :  { %v11233_v37 = vpop.eup %11232  ;;  %v7340_v17 = vadd.f32 %v11231_v43, %v7339_v51  ;;  %v10522_v28 = vmul.f32 -1.442695, %v7174_v11  ;;  %v7003_v51 = vadd.f32 %v7002_v42, %v13055_v5  ;;  %v7005_v42 = vadd.f32 %v7004_v46, %v13060_v38 }
 0x724   :  { %v11235_v39 = vpop.eup %11234  ;;  %v7284_v54 = vadd.f32 1.0, %v11233_v37 }
 0x725   :  { %v7344_v19 = vsel %vm7343_vm8, %v11231_v43, %v7340_v17  ;;  %v7367_v55 = vmul.f32 %v11235_v39, %v7282_v21  ;;  %11236 = vpow2.f32 %v10522_v28  ;;  %vm7372_vm10 = vweird.f32 %v11235_v39  ;;  %v7048_v28 = vpop.f32.mrf.mxu0 }
 0x726   :  { %v7349_v40 = vsel %vm7346_vm9, %v7348_v52, %v7344_v19  ;;  %11238 = vrcp.f32 %v7284_v54  ;;  %v7126_v24 = vpop.f32.mrf.mxu2  ;;  %vm7373_vm12 = vmor %vm7371_vm11, %vm7372_vm10  ;;  %v7407_v9 = vand.u32 2147483648, %v7284_v54  ;;  %v7405_v32 = vand.u32 2147483647, %v7284_v54 }
 0x727   :  { %7729 = vst.msk [vmem:[%s13164_s7 + $0x10] sm:$0xff] %vm7726_vm5, %v7349_v40  ;;  %v7368_v25 = vsub.f32 1.0, %v7367_v55  ;;  %v7127_v56 = vadd.f32 %v7126_v24, %v7083_v31  ;;  %v7044_v21 = vadd.f32 %v7043_v15, %v7000_v57  ;;  %vm7401_vm15 = vweird.f32 %v7284_v54 }
 0x728   :  { %v7408_v0 = vor.u32 1.1754944e-38, %v7407_v9  ;;  %vm7406_vm1 = vcmp.eq.f32.partialorder %v7405_v32, 8.507059e+37  ;;  %v7047_v15 = vadd.f32 %v7046_v63, %v7003_v51 }
 0x729   :  { %v7369_v16 = vmul.f32 %v11235_v39, %v7368_v25  ;;  %v7176_v29 = vadd.f32 %v12784_v61, %v7127_v56  ;;  %v7088_v53 = vadd.f32 %v7087_v35, %v7044_v21  ;;  %v7007_v25 = vpop.f32.mrf.mxu3 }
 0x72a   :  { %v7091_v59 = vadd.f32 %v7090_v58, %v7047_v15 }
 0x72b   :  { %v11237_v44 = vpop.eup %11236  ;;  %v7370_v6 = vadd.f32 %v11235_v39, %v7369_v16  ;;  %v10524_v30 = vmul.f32 -1.442695, %v7176_v29 }
 0x72c   :  { %v11239_v1 = vpop.eup %11238  ;;  %v7286_v33 = vadd.f32 1.0, %v11237_v44 }
 0x72d   :  { %v7374_v36 = vsel %vm7373_vm12, %v11235_v39, %v7370_v6  ;;  %v7397_v60 = vmul.f32 %v11239_v1, %v7284_v54  ;;  %11240 = vpow2.f32 %v10524_v30  ;;  %vm7402_vm14 = vweird.f32 %v11239_v1  ;;  %v7092_v39 = vpop.f32.mrf.mxu1 }
 0x72e   :  { %v7379_v10 = vsel %vm7376_vm13, %v7378_v2, %v7374_v36  ;;  %11242 = vrcp.f32 %v7286_v33  ;;  %v7129_v48 = vpop.f32.mrf.mxu2  ;;  %vm7403_vm0 = vmor %vm7401_vm15, %vm7402_vm14  ;;  %v7437_v17 = vand.u32 2147483648, %v7286_v33  ;;  %v7435_v52 = vand.u32 2147483647, %v7286_v33 }
 0x72f   :  { %7731 = vst.msk [vmem:[%s13164_s7 + $0x20] sm:$0xff] %vm7726_vm5, %v7379_v10  ;;  %v7398_v62 = vsub.f32 1.0, %v7397_v60  ;;  %v7130_v26 = vadd.f32 %v7129_v48, %v7086_v14  ;;  %vm7431_vm3 = vweird.f32 %v7286_v33  ;;  %v7049_v14 = vadd.f32 %v7048_v28, %v7005_v42 }
 0x730   :  { %v7438_v40 = vor.u32 1.1754944e-38, %v7437_v17  ;;  %vm7436_vm6 = vcmp.eq.f32.partialorder %v7435_v52, 8.507059e+37 }
 0x731   :  { %v7399_v43 = vmul.f32 %v11239_v1, %v7398_v62  ;;  %v7178_v3 = vadd.f32 %v12784_v61, %v7130_v26  ;;  %v7093_v10 = vadd.f32 %v7092_v39, %v7049_v14  ;;  %v7008_v26 = vadd.f32 %v7007_v25, %v13063_v45  ;;  %v7009_v32 = vpop.f32.mrf.mxu3 }
 0x732   :  { %v7010_v17 = vadd.f32 %v7009_v32, %v13068_v22 }
 0x733   :  { %v11241_v34 = vpop.eup %11240  ;;  %v7400_v23 = vadd.f32 %v11239_v1, %v7399_v43  ;;  %v10526_v7 = vmul.f32 -1.442695, %v7178_v3 }
 0x734   :  { %v11243_v13 = vpop.eup %11242  ;;  %v7288_v4 = vadd.f32 1.0, %v11241_v34 }
 0x735   :  { %v7404_v49 = vsel %vm7403_vm0, %v11239_v1, %v7400_v23  ;;  %v7427_v18 = vmul.f32 %v11243_v13, %v7286_v33  ;;  %11244 = vpow2.f32 %v10526_v7  ;;  %vm7432_vm2 = vweird.f32 %v11243_v13  ;;  %v7051_v33 = vpop.f32.mrf.mxu0  ;;  %v7095_v38 = vpop.f32.mrf.mxu1 }
 0x736   :  { %v7409_v12 = vsel %vm7406_vm1, %v7408_v0, %v7404_v49  ;;  %11246 = vrcp.f32 %v7288_v4  ;;  %v7131_v11 = vpop.f32.mrf.mxu2  ;;  %vm7433_vm4 = vmor %vm7431_vm3, %vm7432_vm2  ;;  %v7467_v44 = vand.u32 2147483648, %v7288_v4  ;;  %v7465_v30 = vand.u32 2147483647, %v7288_v4 }
 0x737   :  { %7733 = vst.msk [vmem:[%s13164_s7 + $0x30] sm:$0xff] %vm7726_vm5, %v7409_v12  ;;  %v7428_v50 = vsub.f32 1.0, %v7427_v18  ;;  %v7132_v37 = vadd.f32 %v7131_v11, %v7088_v53  ;;  %vm7461_vm8 = vweird.f32 %v7288_v4 }
 0x738   :  { %v7468_v48 = vor.u32 1.1754944e-38, %v7467_v44  ;;  %vm7466_vm10 = vcmp.eq.f32.partialorder %v7465_v30, 8.507059e+37 }
 0x739   :  { %v7429_v31 = vmul.f32 %v11243_v13, %v7428_v50  ;;  %v7180_v54 = vadd.f32 %v12784_v61, %v7132_v37  ;;  %v7012_v15 = vpop.f32.mrf.mxu3 }
 0x73b   :  { %v11245_v5 = vpop.eup %11244  ;;  %v7430_v35 = vadd.f32 %v11243_v13, %v7429_v31  ;;  %v10528_v19 = vmul.f32 -1.442695, %v7180_v54 }
 0x73c   :  { %v11247_v55 = vpop.eup %11246  ;;  %v7290_v24 = vadd.f32 1.0, %v11245_v5 }
 0x73d   :  { %v7434_v56 = vsel %vm7433_vm4, %v11243_v13, %v7430_v35  ;;  %v7457_v20 = vmul.f32 %v11247_v55, %v7288_v4  ;;  %11248 = vpow2.f32 %v10528_v19  ;;  %vm7462_vm7 = vweird.f32 %v11247_v55  ;;  %v7053_v12 = vpop.f32.mrf.mxu0  ;;  %v7097_v11 = vpop.f32.mrf.mxu1 }
 0x73e   :  { %v7439_v16 = vsel %vm7436_vm6, %v7438_v40, %v7434_v56  ;;  %11250 = vrcp.f32 %v7290_v24  ;;  %v7134_v47 = vpop.f32.mrf.mxu2  ;;  %vm7463_vm9 = vmor %vm7461_vm8, %vm7462_vm7  ;;  %v7497_v34 = vand.u32 2147483648, %v7290_v24  ;;  %v7495_v23 = vand.u32 2147483647, %v7290_v24 }
 0x73f   :  { %7735 = vst.msk [vmem:[%s13164_s7 + $0x40] sm:$0xff] %vm7726_vm5, %v7439_v16  ;;  %v7458_v29 = vsub.f32 1.0, %v7457_v20  ;;  %v7135_v8 = vadd.f32 %v7134_v47, %v7091_v59  ;;  %v7052_v13 = vadd.f32 %v7051_v33, %v7008_v26  ;;  %vm7491_vm12 = vweird.f32 %v7290_v24 }
 0x740   :  { %v7498_v18 = vor.u32 1.1754944e-38, %v7497_v34  ;;  %vm7496_vm14 = vcmp.eq.f32.partialorder %v7495_v23, 8.507059e+37  ;;  %v7013_v47 = vadd.f32 %v7012_v15, %v13070_v27 }
 0x741   :  { %v7459_v6 = vmul.f32 %v11247_v55, %v7458_v29  ;;  %v7182_v1 = vadd.f32 %v12784_v61, %v7135_v8  ;;  %v7096_v49 = vadd.f32 %v7095_v38, %v7052_v13 }
 0x743   :  { %v11249_v2 = vpop.eup %11248  ;;  %v7460_v36 = vadd.f32 %v11247_v55, %v7459_v6  ;;  %v10530_v60 = vmul.f32 -1.442695, %v7182_v1 }
 0x744   :  { %v11251_v57 = vpop.eup %11250  ;;  %v7292_v63 = vadd.f32 1.0, %v11249_v2 }
 0x745   :  { %v7464_v58 = vsel %vm7463_vm9, %v11247_v55, %v7460_v36  ;;  %v7487_v62 = vmul.f32 %v11251_v57, %v7290_v24  ;;  %11252 = vpow2.f32 %v10530_v60  ;;  %vm7492_vm11 = vweird.f32 %v11251_v57  ;;  %v7056_v44 = vpop.f32.mrf.mxu0  ;;  %v7100_v6 = vpop.f32.mrf.mxu1 }
 0x746   :  { %v7469_v9 = vsel %vm7466_vm10, %v7468_v48, %v7464_v58  ;;  %11254 = vrcp.f32 %v7292_v63  ;;  %v7136_v43 = vpop.f32.mrf.mxu2  ;;  %vm7493_vm13 = vmor %vm7491_vm12, %vm7492_vm11  ;;  %v7527_v54 = vand.u32 2147483648, %v7292_v63  ;;  %v7525_v35 = vand.u32 2147483647, %v7292_v63  ;;  %v7014_v60 = vpop.f32.mrf.mxu3 }
 0x747   :  { %7737 = vst.msk [vmem:[%s13164_s7 + $0x50] sm:$0xff] %vm7726_vm5, %v7469_v9  ;;  %v7488_v3 = vsub.f32 1.0, %v7487_v62  ;;  %v7137_v21 = vadd.f32 %v7136_v43, %v7093_v10  ;;  %v7054_v55 = vadd.f32 %v7053_v12, %v7010_v17  ;;  %vm7521_vm0 = vweird.f32 %v7292_v63 }
 0x748   :  { %v7528_v56 = vor.u32 1.1754944e-38, %v7527_v54  ;;  %vm7526_vm2 = vcmp.eq.f32.partialorder %v7525_v35, 8.507059e+37  ;;  %v7057_v36 = vadd.f32 %v7056_v44, %v7013_v47  ;;  %v7015_v43 = vadd.f32 %v7014_v60, %v13072_v41 }
 0x749   :  { %v7489_v46 = vmul.f32 %v11251_v57, %v7488_v3  ;;  %v7184_v7 = vadd.f32 %v12784_v61, %v7137_v21  ;;  %v7098_v25 = vadd.f32 %v7097_v11, %v7054_v55 }
 0x74b   :  { %v11253_v53 = vpop.eup %11252  ;;  %v7490_v45 = vadd.f32 %v11251_v57, %v7489_v46  ;;  %v10532_v0 = vmul.f32 -1.442695, %v7184_v7 }
 0x74c   :  { %v11255_v4 = vpop.eup %11254  ;;  %v7294_v51 = vadd.f32 1.0, %v11253_v53 }
 0x74d   :  { %v7494_v50 = vsel %vm7493_vm13, %v11251_v57, %v7490_v45  ;;  %v7517_v37 = vmul.f32 %v11255_v4, %v7292_v63  ;;  %11256 = vpow2.f32 %v10532_v0  ;;  %vm7522_vm15 = vweird.f32 %v11255_v4  ;;  %v7058_v23 = vpop.f32.mrf.mxu0  ;;  %v7102_v7 = vpop.f32.mrf.mxu1 }
 0x74e   :  { %v7499_v28 = vsel %vm7496_vm14, %v7498_v18, %v7494_v50  ;;  %11258 = vrcp.f32 %v7294_v51  ;;  %v7139_v39 = vpop.f32.mrf.mxu2  ;;  %vm7523_vm1 = vmor %vm7521_vm0, %vm7522_vm15  ;;  %v7557_v14 = vand.u32 2147483648, %v7294_v51  ;;  %v7555_v33 = vand.u32 2147483647, %v7294_v51 }
 0x74f   :  { %7739 = vst.msk [vmem:[%s13164_s7 + $0x60] sm:$0xff] %vm7726_vm5, %v7499_v28  ;;  %v7518_v31 = vsub.f32 1.0, %v7517_v37  ;;  %v7140_v52 = vadd.f32 %v7139_v39, %v7096_v49  ;;  %vm7551_vm4 = vweird.f32 %v7294_v51  ;;  %v7101_v63 = vadd.f32 %v7100_v6, %v7057_v36 }
 0x750   :  { %v7558_v58 = vor.u32 1.1754944e-38, %v7557_v14  ;;  %vm7556_vm7 = vcmp.eq.f32.partialorder %v7555_v33, 8.507059e+37  ;;  %v7059_v0 = vadd.f32 %v7058_v23, %v7015_v43 }
 0x751   :  { %v7519_v5 = vmul.f32 %v11255_v4, %v7518_v31  ;;  %v7186_v19 = vadd.f32 %v12784_v61, %v7140_v52 }
 0x753   :  { %v11257_v59 = vpop.eup %11256  ;;  %v7520_v22 = vadd.f32 %v11255_v4, %v7519_v5  ;;  %v10534_v40 = vmul.f32 -1.442695, %v7186_v19 }
 0x754   :  { %v11259_v24 = vpop.eup %11258  ;;  %v7296_v20 = vadd.f32 1.0, %v11257_v59 }
 0x755   :  { %v7524_v42 = vsel %vm7523_vm1, %v11255_v4, %v7520_v22  ;;  %v7547_v16 = vmul.f32 %v11259_v24, %v7294_v51  ;;  %11260 = vpow2.f32 %v10534_v40  ;;  %vm7552_vm3 = vweird.f32 %v11259_v24 }
 0x756   :  { %v7529_v29 = vsel %vm7526_vm2, %v7528_v56, %v7524_v42  ;;  %11262 = vrcp.f32 %v7296_v20  ;;  %v7141_v8 = vpop.f32.mrf.mxu2  ;;  %vm7553_vm6 = vmor %vm7551_vm4, %vm7552_vm3  ;;  %v7587_v46 = vand.u32 2147483648, %v7296_v20  ;;  %v7585_v53 = vand.u32 2147483647, %v7296_v20 }
 0x757   :  { %7741 = vst.msk [vmem:[%s13164_s7 + $0x70] sm:$0xff] %vm7726_vm5, %v7529_v29  ;;  %v7548_v30 = vsub.f32 1.0, %v7547_v16  ;;  %v7142_v1 = vadd.f32 %v7141_v8, %v7098_v25  ;;  %vm7581_vm9 = vweird.f32 %v7296_v20  ;;  %v7103_v51 = vadd.f32 %v7102_v7, %v7059_v0 }
 0x758   :  { %v7588_v12 = vor.u32 1.1754944e-38, %v7587_v46  ;;  %vm7586_vm11 = vcmp.eq.f32.partialorder %v7585_v53, 8.507059e+37 }
 0x759   :  { %v7549_v2 = vmul.f32 %v11259_v24, %v7548_v30  ;;  %v7188_v38 = vadd.f32 %v12784_v61, %v7142_v1 }
 0x75b   :  { %v11261_v27 = vpop.eup %11260  ;;  %v7550_v57 = vadd.f32 %v11259_v24, %v7549_v2  ;;  %v10536_v10 = vmul.f32 -1.442695, %v7188_v38 }
 0x75c   :  { %v11263_v48 = vpop.eup %11262  ;;  %v7298_v62 = vadd.f32 1.0, %v11261_v27 }
 0x75d   :  { %v7554_v26 = vsel %vm7553_vm6, %v11259_v24, %v7550_v57  ;;  %v7577_v9 = vmul.f32 %v11263_v48, %v7296_v20  ;;  %11264 = vpow2.f32 %v10536_v10  ;;  %vm7582_vm8 = vweird.f32 %v11263_v48 }
 0x75e   :  { %v7559_v32 = vsel %vm7556_vm7, %v7558_v58, %v7554_v26  ;;  %11266 = vrcp.f32 %v7298_v62  ;;  %v7144_v3 = vpop.f32.mrf.mxu2  ;;  %vm7583_vm10 = vmor %vm7581_vm9, %vm7582_vm8  ;;  %v7617_v52 = vand.u32 2147483648, %v7298_v62  ;;  %v7615_v15 = vand.u32 2147483647, %v7298_v62 }
 0x75f   :  { %7743 = vst.msk [vmem:[%s13164_s7 + $0x80] sm:$0xff] %vm7726_vm5, %v7559_v32  ;;  %v7578_v21 = vsub.f32 1.0, %v7577_v9  ;;  %v7145_v34 = vadd.f32 %v7144_v3, %v7101_v63  ;;  %vm7611_vm13 = vweird.f32 %v7298_v62 }
 0x760   :  { %v7618_v22 = vor.u32 1.1754944e-38, %v7617_v52  ;;  %vm7616_vm15 = vcmp.eq.f32.partialorder %v7615_v15, 8.507059e+37 }
 0x761   :  { %v7579_v13 = vmul.f32 %v11263_v48, %v7578_v21  ;;  %v7190_v45 = vadd.f32 %v12784_v61, %v7145_v34 }
 0x763   :  { %v11265_v41 = vpop.eup %11264  ;;  %v7580_v4 = vadd.f32 %v11263_v48, %v7579_v13  ;;  %v10538_v49 = vmul.f32 -1.442695, %v7190_v45 }
 0x764   :  { %v11267_v18 = vpop.eup %11266  ;;  %v7300_v11 = vadd.f32 1.0, %v11265_v41 }
 0x765   :  { %v7584_v50 = vsel %vm7583_vm10, %v11263_v48, %v7580_v4  ;;  %v7607_v37 = vmul.f32 %v11267_v18, %v7298_v62  ;;  %11268 = vpow2.f32 %v10538_v49  ;;  %vm7612_vm12 = vweird.f32 %v11267_v18 }
 0x766   :  { %v7589_v17 = vsel %vm7586_vm11, %v7588_v12, %v7584_v50  ;;  %11270 = vrcp.f32 %v7300_v11  ;;  %v7146_v28 = vpop.f32.mrf.mxu2  ;;  %vm7613_vm14 = vmor %vm7611_vm13, %vm7612_vm12  ;;  %v7647_v20 = vand.u32 2147483648, %v7300_v11  ;;  %v7645_v16 = vand.u32 2147483647, %v7300_v11 }
 0x767   :  { %7745 = vst.msk [vmem:[%s13164_s7 + $0x90] sm:$0xff] %vm7726_vm5, %v7589_v17  ;;  %v7608_v39 = vsub.f32 1.0, %v7607_v37  ;;  %v7147_v31 = vadd.f32 %v7146_v28, %v7103_v51  ;;  %vm7641_vm1 = vweird.f32 %v7300_v11 }
 0x768   :  { %v7648_v44 = vor.u32 1.1754944e-38, %v7647_v20  ;;  %vm7646_vm3 = vcmp.eq.f32.partialorder %v7645_v16, 8.507059e+37 }
 0x769   :  { %v7609_v54 = vmul.f32 %v11267_v18, %v7608_v39  ;;  %v7192_v5 = vadd.f32 %v12784_v61, %v7147_v31 }
 0x76b   :  { %v11269_v35 = vpop.eup %11268  ;;  %v7610_v19 = vadd.f32 %v11267_v18, %v7609_v54  ;;  %v10540_v55 = vmul.f32 -1.442695, %v7192_v5 }
 0x76c   :  { %v11271_v59 = vpop.eup %11270  ;;  %v7302_v40 = vadd.f32 1.0, %v11269_v35 }
 0x76d   :  { %v7614_v24 = vsel %vm7613_vm14, %v11267_v18, %v7610_v19  ;;  %v7637_v25 = vmul.f32 %v11271_v59, %v7300_v11  ;;  %11272 = vpow2.f32 %v10540_v55  ;;  %vm7642_vm0 = vweird.f32 %v11271_v59 }
 0x76e   :  { %v7619_v56 = vsel %vm7616_vm15, %v7618_v22, %v7614_v24  ;;  %11274 = vrcp.f32 %v7302_v40  ;;  %vm7643_vm2 = vmor %vm7641_vm1, %vm7642_vm0  ;;  %v7677_v33 = vand.u32 2147483648, %v7302_v40  ;;  %v7675_v36 = vand.u32 2147483647, %v7302_v40 }
 0x76f   :  { %7747 = vst.msk [vmem:[%s13164_s7 + $0xa0] sm:$0xff] %vm7726_vm5, %v7619_v56  ;;  %v7638_v61 = vsub.f32 1.0, %v7637_v25  ;;  %vm7671_vm6 = vweird.f32 %v7302_v40 }
 0x770   :  { %v7678_v57 = vor.u32 1.1754944e-38, %v7677_v33  ;;  %vm7676_vm8 = vcmp.eq.f32.partialorder %v7675_v36, 8.507059e+37 }
 0x771   :  { %v7639_v42 = vmul.f32 %v11271_v59, %v7638_v61 }
 0x773   :  { %v11273_v47 = vpop.eup %11272  ;;  %v7640_v29 = vadd.f32 %v11271_v59, %v7639_v42 }
 0x774   :  { %v11275_v8 = vpop.eup %11274  ;;  %v7304_v6 = vadd.f32 1.0, %v11273_v47 }
 0x775   :  { %v7644_v30 = vsel %vm7643_vm2, %v11271_v59, %v7640_v29  ;;  %v7667_v1 = vmul.f32 %v11275_v8, %v7302_v40  ;;  %vm7672_vm4 = vweird.f32 %v11275_v8 }
 0x776   :  { %v7649_v14 = vsel %vm7646_vm3, %v7648_v44, %v7644_v30  ;;  %11276 = vrcp.f32 %v7304_v6  ;;  %vm7673_vm7 = vmor %vm7671_vm6, %vm7672_vm4  ;;  %v7707_v62 = vand.u32 2147483648, %v7304_v6  ;;  %v7705_v9 = vand.u32 2147483647, %v7304_v6 }
 0x777   :  { %7749 = vst.msk [vmem:[%s13164_s7 + $0xb0] sm:$0xff] %vm7726_vm5, %v7649_v14  ;;  %v7668_v2 = vsub.f32 1.0, %v7667_v1  ;;  %vm7701_vm10 = vweird.f32 %v7304_v6 }
 0x778   :  { %v7708_v32 = vor.u32 1.1754944e-38, %v7707_v62  ;;  %vm7706_vm12 = vcmp.eq.f32.partialorder %v7705_v9, 8.507059e+37 }
 0x779   :  { %v7669_v38 = vmul.f32 %v11275_v8, %v7668_v2 }
 0x77b   :  { %v7670_v27 = vadd.f32 %v11275_v8, %v7669_v38 }
 0x77c   :  { %v11277_v60 = vpop.eup %11276 }
 0x77d   :  { %v7674_v10 = vsel %vm7673_vm7, %v11275_v8, %v7670_v27  ;;  %v7697_v48 = vmul.f32 %v11277_v60, %v7304_v6  ;;  %vm7702_vm9 = vweird.f32 %v11277_v60 }
 0x77e   :  { %v7679_v63 = vsel %vm7676_vm8, %v7678_v57, %v7674_v10  ;;  %vm7703_vm11 = vmor %vm7701_vm10, %vm7702_vm9 }
 0x77f   :  { %7751 = vst.msk [vmem:[%s13164_s7 + $0xc0] sm:$0xff] %vm7726_vm5, %v7679_v63  ;;  %v7698_v58 = vsub.f32 1.0, %v7697_v48 }
 0x781   :  { %v7699_v26 = vmul.f32 %v11277_v60, %v7698_v58 }
 0x783   :  { %v7700_v43 = vadd.f32 %v11277_v60, %v7699_v26 }
 0x785   :  { %v7704_v3 = vsel %vm7703_vm11, %v11277_v60, %v7700_v43 }
 0x786   :  { %v7709_v21 = vsel %vm7706_vm12, %v7708_v32, %v7704_v3 }
 0x787   :  { %7753 = vst.msk [vmem:[%s13164_s7 + $0xd0] sm:$0xff] %vm7726_vm5, %v7709_v21 }
 0x788   :  { %7759 = vsyncpa [#allocation4], 1 }
 0x789   :  { %7760 = vsyncpa [#allocation6], 1 }
 0x78a   :  { %7761 = vsyncpa [#allocation9], 1 }

</bundles_post_ra>
